<compile_context>
chip_gen: v7x
topology: tpu7x:2x2x1
jax: 0.10.0
libtpu: 0.0.40
codegen_flags: <defaults>
</compile_context>

<pallas_src>
import jax
import jax.numpy as jnp
from jax import lax
from jax.experimental import pallas as pl
from jax.experimental.pallas import tpu as pltpu


def critic_mlp_kernel(state_ref, action_ref, w1sT_ref, w1a_ref, b1_ref,
                      w2T_ref, b2_ref, w3_ref, b3_ref, o_ref):
    """One batch tile; all activations are feature-major (batch on lanes)."""
    cd = w1sT_ref.dtype                      # MXU input dtype (f32 or bf16)

    # ----- layer 1 (concat fused, batch-on-lanes) -----------------------------
    # h1T[o, b] = sum_k W1_s[k, o] * state[b, k]   (A @ B^T MXU pattern)
    h1 = lax.dot_general(
        w1sT_ref[...], state_ref[...].astype(cd),
        dimension_numbers=(((1,), (1,)), ((), ())),
        preferred_element_type=jnp.float32)                      # (64, TILE_B) f32
    # Action contribution: rank-1 outer product, fully lane-dense on the VPU.
    h1 = h1 + w1a_ref[...] * action_ref[...].astype(jnp.float32)
    h1 = jnp.maximum(h1 + b1_ref[...], 0.0)                      # (64, TILE_B) f32

    # ----- layer 2 -------------------------------------------------------------
    h2 = jnp.dot(w2T_ref[...], h1.astype(cd),
                 preferred_element_type=jnp.float32)             # (32, TILE_B) f32
    h2 = jnp.maximum(h2 + b2_ref[...], 0.0)

    # ----- layer 3 (already lane-dense output row) -----------------------------
    out = jnp.dot(w3_ref[...], h2.astype(cd),
                  preferred_element_type=jnp.float32)            # (1, TILE_B) f32
    o_ref[...] = (out + b3_ref[...]).astype(o_ref.dtype)


def _round_up(x, m):
    return ((x + m - 1) // m) * m


def critic_forward(state, action, params, *, tile_b=4096,
                   compute_dtype=jnp.float32):
    """state: (B, 32), action: (B, 1) -> (B, 1) f32.

    compute_dtype=jnp.bfloat16 feeds the MXU in bf16 (cast happens *inside* the
    kernel; accumulation and the bias/ReLU epilogue stay f32).  To actually halve
    HBM traffic, pass state/action already in bf16 -- the wrapper never makes a
    converted HBM copy of the activations.  Valid on v5e/v6e/v7x alike.
    """
    w1, b1, w2, b2, w3, b3 = params            # w: (in, out), b: (1, out)
    B, S = state.shape
    A = action.shape[1]
    assert A == 1, "CriticNetwork has action_size=1"

    cd = compute_dtype
    # Output-major weights so every layer produces feature-major activations.
    w1_sT = w1[:S, :].T.astype(cd)                  # (64, 32)
    w1_a = w1[S:, :].T.astype(jnp.float32)          # (64, 1)  rank-1 action column
    w2_T = w2.T.astype(cd)                          # (32, 64)
    w3_r = w3.T.astype(cd)                          # (1, 32)
    b1_c = b1.reshape(-1, 1).astype(jnp.float32)    # (64, 1)
    b2_c = b2.reshape(-1, 1).astype(jnp.float32)    # (32, 1)
    b3_c = b3.reshape(1, 1).astype(jnp.float32)     # (1, 1)

    # (B, 1) -> (1, B): metadata-only reshape; gives lane-dense action blocks.
    action_row = action.reshape(1, B)

    # Batch tile: lane-aligned, capped so the grid has >= 2 steps whenever possible
    # (keeps both v7x TensorCores busy through the "parallel" batch axis).
    tile_b = max(128, _round_up(int(tile_b), 128))
    if B > 128:
        tile_b = min(tile_b, _round_up(pl.cdiv(B, 2), 128))
    num_tiles = pl.cdiv(B, tile_b)
    # No jnp.pad: a non-dividing final tile reads (ignored) garbage rows and its
    # out-of-range lanes are masked on the store; rows < B are computed exactly.

    const = lambda a: pl.BlockSpec(a.shape, lambda i: (0, 0))

    in_bytes = state.dtype.itemsize
    cost = pl.CostEstimate(
        flops=2 * B * ((S + A) * 64 + 64 * 32 + 32 * 1),
        transcendentals=0,
        bytes_accessed=B * (S * in_bytes + A * action.dtype.itemsize) + B * 4
        + sum(int(a.size) * a.dtype.itemsize
              for a in (w1_sT, w1_a, b1_c, w2_T, b2_c, w3_r, b3_c)),
    )

    out_row = pl.pallas_call(
        critic_mlp_kernel,
        out_shape=jax.ShapeDtypeStruct((1, B), jnp.float32),
        grid_spec=pltpu.PrefetchScalarGridSpec(
            num_scalar_prefetch=0,
            grid=(num_tiles,),
            in_specs=[
                pl.BlockSpec((tile_b, S), lambda i: (i, 0)),   # state tile
                pl.BlockSpec((1, tile_b), lambda i: (0, i)),   # action row (lane-dense)
                const(w1_sT), const(w1_a), const(b1_c),        # weights: VMEM-resident
                const(w2_T), const(b2_c),
                const(w3_r), const(b3_c),
            ],
            out_specs=pl.BlockSpec((1, tile_b), lambda i: (0, i)),  # lane-dense out
        ),
        compiler_params=pltpu.CompilerParams(
            dimension_semantics=("parallel",),
        ),
        cost_estimate=cost,
    )(state, action_row, w1_sT, w1_a, b1_c, w2_T, b2_c, w3_r, b3_c)

    # (1, B) -> (B, 1): metadata-only reshape.
    return out_row.reshape(B, 1)


def init_params(key, state_size=32, action_size=1):
    """Deterministic init mimicking nn.Linear's uniform(-1/sqrt(fan_in), +)."""
    dims = [(state_size + action_size, 64), (64, 32), (32, 1)]
    params = []
    for i, (fan_in, fan_out) in enumerate(dims):
        kw, kb = jax.random.split(jax.random.fold_in(key, i))
        bound = 1.0 / jnp.sqrt(float(fan_in))
        w = jax.random.uniform(kw, (fan_in, fan_out), jnp.float32, -bound, bound)
        b = jax.random.uniform(kb, (1, fan_out), jnp.float32, -bound, bound)
        params += [w, b]
    return tuple(params)


def reference(state, action, params):
    w1, b1, w2, b2, w3, b3 = params
    x = jnp.concatenate([state, action], axis=1)
    h = jnp.maximum(x @ w1 + b1, 0.0)
    h = jnp.maximum(h @ w2 + b2, 0.0)
    return h @ w3 + b3


if __name__ == "__main__":
    key = jax.random.PRNGKey(0)
    k_state, k_action, k_params = jax.random.split(key, 3)

    batch, state_size, action_size = 4, 32, 1
    state = jax.random.normal(k_state, (batch, state_size), jnp.float32)
    action = jax.random.normal(k_action, (batch, action_size), jnp.float32)
    params = init_params(k_params, state_size, action_size)
    ref = reference(state, action, params)

    # 1) Small single-tile run (f32), B < 128 (partial block, masked store).
    out = critic_forward(state, action, params)
    jax.block_until_ready(out)
    assert out.shape == (batch, 1)
    assert jnp.allclose(out, ref, atol=1e-4, rtol=1e-4)

    # 2) Multi-tile path with a non-dividing tail (no jnp.pad, >= 2 grid steps).
    k_s2, k_a2 = jax.random.split(jax.random.fold_in(key, 7))
    b_big = 260
    state2 = jax.random.normal(k_s2, (b_big, state_size), jnp.float32)
    action2 = jax.random.normal(k_a2, (b_big, action_size), jnp.float32)
    out2 = critic_forward(state2, action2, params)
    jax.block_until_ready(out2)
    ref2 = reference(state2, action2, params)
    assert out2.shape == (b_big, 1)
    assert jnp.allclose(out2, ref2, atol=1e-4, rtol=1e-4)

    # 3) bf16 MXU-input path (in-kernel cast; f32 accumulation / epilogue).
    out_bf16 = critic_forward(state, action, params, compute_dtype=jnp.bfloat16)
    jax.block_until_ready(out_bf16)
    assert jnp.allclose(out_bf16, ref, atol=5e-2, rtol=5e-2)

    print("KERNEL_OK")
</pallas_src>

<mosaic_0001>
module attributes {stable_mosaic.version = 11 : i64} {
  func.func @critic_mlp_kernel(%arg0: i32, %arg1: memref<4096x32xf32, #tpu.memory_space<vmem>>, %arg2: memref<1x4096xf32, #tpu.memory_space<vmem>>, %arg3: memref<64x32xf32, #tpu.memory_space<vmem>>, %arg4: memref<64x1xf32, #tpu.memory_space<vmem>>, %arg5: memref<64x1xf32, #tpu.memory_space<vmem>>, %arg6: memref<32x64xf32, #tpu.memory_space<vmem>>, %arg7: memref<32x1xf32, #tpu.memory_space<vmem>>, %arg8: memref<1x32xf32, #tpu.memory_space<vmem>>, %arg9: memref<1x1xf32, #tpu.memory_space<vmem>>, %arg10: memref<1x4096xf32, #tpu.memory_space<vmem>>) attributes {dimension_semantics = [#tpu.dimension_semantics<parallel>], iteration_bounds = array<i64: 1>, scalar_prefetch = 0 : i64, scratch_operands = 0 : i64, tpu.core_type = #tpu.core_type<tc>, window_params = [{transform_indices = @transform_0, window_bounds = array<i64: 4096, 32>}, {transform_indices = @transform_1, window_bounds = array<i64: 1, 4096>}, {pipeline_mode = #tpu.pipeline_mode<synchronous>, transform_indices = @transform_2, window_bounds = array<i64: 64, 32>}, {pipeline_mode = #tpu.pipeline_mode<synchronous>, transform_indices = @transform_3, window_bounds = array<i64: 64, 1>}, {pipeline_mode = #tpu.pipeline_mode<synchronous>, transform_indices = @transform_4, window_bounds = array<i64: 64, 1>}, {pipeline_mode = #tpu.pipeline_mode<synchronous>, transform_indices = @transform_5, window_bounds = array<i64: 32, 64>}, {pipeline_mode = #tpu.pipeline_mode<synchronous>, transform_indices = @transform_6, window_bounds = array<i64: 32, 1>}, {pipeline_mode = #tpu.pipeline_mode<synchronous>, transform_indices = @transform_7, window_bounds = array<i64: 1, 32>}, {pipeline_mode = #tpu.pipeline_mode<synchronous>, transform_indices = @transform_8, window_bounds = array<i64: 1, 1>}, {transform_indices = @transform_9, window_bounds = array<i64: 1, 4096>}]} {
    %c0 = arith.constant 0 : index
    %c0_0 = arith.constant 0 : index
    %0 = vector.load %arg3[%c0, %c0_0] : memref<64x32xf32, #tpu.memory_space<vmem>>, vector<64x32xf32>
    %c0_1 = arith.constant 0 : index
    %c0_2 = arith.constant 0 : index
    %1 = vector.load %arg1[%c0_1, %c0_2] : memref<4096x32xf32, #tpu.memory_space<vmem>>, vector<4096x32xf32>
    %cst = arith.constant dense<0.000000e+00> : vector<64x4096xf32>
    %2 = tpu.matmul %0, %1, %cst {dimension_numbers = #tpu.dot_dimension_numbers<[1], [1], [0], [0], [0, 0, 1, 0], [], []>} : vector<64x32xf32>, vector<4096x32xf32>, vector<64x4096xf32> -> vector<64x4096xf32>
    %c0_3 = arith.constant 0 : index
    %c0_4 = arith.constant 0 : index
    %3 = vector.load %arg4[%c0_3, %c0_4] : memref<64x1xf32, #tpu.memory_space<vmem>>, vector<64x1xf32>
    %c0_5 = arith.constant 0 : index
    %c0_6 = arith.constant 0 : index
    %4 = vector.load %arg2[%c0_5, %c0_6] : memref<1x4096xf32, #tpu.memory_space<vmem>>, vector<1x4096xf32>
    %5 = vector.broadcast %3 : vector<64x1xf32> to vector<64x4096xf32>
    %6 = vector.broadcast %4 : vector<1x4096xf32> to vector<64x4096xf32>
    %7 = arith.mulf %5, %6 : vector<64x4096xf32>
    %8 = arith.addf %2, %7 : vector<64x4096xf32>
    %c0_7 = arith.constant 0 : index
    %c0_8 = arith.constant 0 : index
    %9 = vector.load %arg5[%c0_7, %c0_8] : memref<64x1xf32, #tpu.memory_space<vmem>>, vector<64x1xf32>
    %10 = vector.broadcast %9 : vector<64x1xf32> to vector<64x4096xf32>
    %11 = arith.addf %8, %10 : vector<64x4096xf32>
    %cst_9 = arith.constant 0.000000e+00 : f32
    %12 = vector.broadcast %cst_9 : f32 to vector<64x4096xf32>
    %13 = arith.maximumf %11, %12 : vector<64x4096xf32>
    %c0_10 = arith.constant 0 : index
    %c0_11 = arith.constant 0 : index
    %14 = vector.load %arg6[%c0_10, %c0_11] : memref<32x64xf32, #tpu.memory_space<vmem>>, vector<32x64xf32>
    %cst_12 = arith.constant dense<0.000000e+00> : vector<32x4096xf32>
    %15 = tpu.matmul %14, %13, %cst_12 {dimension_numbers = #tpu.dot_dimension_numbers<[1], [0], [0], [1], [0, 0, 1, 1], [], []>} : vector<32x64xf32>, vector<64x4096xf32>, vector<32x4096xf32> -> vector<32x4096xf32>
    %c0_13 = arith.constant 0 : index
    %c0_14 = arith.constant 0 : index
    %16 = vector.load %arg7[%c0_13, %c0_14] : memref<32x1xf32, #tpu.memory_space<vmem>>, vector<32x1xf32>
    %17 = vector.broadcast %16 : vector<32x1xf32> to vector<32x4096xf32>
    %18 = arith.addf %15, %17 : vector<32x4096xf32>
    %cst_15 = arith.constant 0.000000e+00 : f32
    %19 = vector.broadcast %cst_15 : f32 to vector<32x4096xf32>
    %20 = arith.maximumf %18, %19 : vector<32x4096xf32>
    %c0_16 = arith.constant 0 : index
    %c0_17 = arith.constant 0 : index
    %21 = vector.load %arg8[%c0_16, %c0_17] : memref<1x32xf32, #tpu.memory_space<vmem>>, vector<1x32xf32>
    %cst_18 = arith.constant dense<0.000000e+00> : vector<1x4096xf32>
    %22 = tpu.matmul %21, %20, %cst_18 {dimension_numbers = #tpu.dot_dimension_numbers<[1], [0], [0], [1], [0, 0, 1, 1], [], []>} : vector<1x32xf32>, vector<32x4096xf32>, vector<1x4096xf32> -> vector<1x4096xf32>
    %c0_19 = arith.constant 0 : index
    %c0_20 = arith.constant 0 : index
    %23 = vector.load %arg9[%c0_19, %c0_20] : memref<1x1xf32, #tpu.memory_space<vmem>>, vector<1x1xf32>
    %24 = vector.broadcast %23 : vector<1x1xf32> to vector<1x4096xf32>
    %25 = arith.addf %22, %24 : vector<1x4096xf32>
    %c0_21 = arith.constant 0 : index
    %c0_22 = arith.constant 0 : index
    %26 = vector.load %arg10[%c0_21, %c0_22] : memref<1x4096xf32, #tpu.memory_space<vmem>>, vector<1x4096xf32>
    tpu.vector_store %arg10[%c0_21, %c0_22], %25 {strides = array<i32>} : memref<1x4096xf32, #tpu.memory_space<vmem>>, vector<1x4096xf32>,
    return
  }
  func.func @transform_0(%arg0: i32) -> (i32, i32) {
    %c0_i32 = arith.constant 0 : i32
    %c0_i32_0 = arith.constant 0 : i32
    return %arg0, %c0_i32 : i32, i32
  }
  func.func @transform_1(%arg0: i32) -> (i32, i32) {
    %c0_i32 = arith.constant 0 : i32
    %c0_i32_0 = arith.constant 0 : i32
    return %c0_i32, %arg0 : i32, i32
  }
  func.func @transform_2(%arg0: i32) -> (i32, i32) {
    %c0_i32 = arith.constant 0 : i32
    %c0_i32_0 = arith.constant 0 : i32
    %c0_i32_1 = arith.constant 0 : i32
    return %c0_i32, %c0_i32_0 : i32, i32
  }
  func.func @transform_3(%arg0: i32) -> (i32, i32) {
    %c0_i32 = arith.constant 0 : i32
    %c0_i32_0 = arith.constant 0 : i32
    %c0_i32_1 = arith.constant 0 : i32
    return %c0_i32, %c0_i32_0 : i32, i32
  }
  func.func @transform_4(%arg0: i32) -> (i32, i32) {
    %c0_i32 = arith.constant 0 : i32
    %c0_i32_0 = arith.constant 0 : i32
    %c0_i32_1 = arith.constant 0 : i32
    return %c0_i32, %c0_i32_0 : i32, i32
  }
  func.func @transform_5(%arg0: i32) -> (i32, i32) {
    %c0_i32 = arith.constant 0 : i32
    %c0_i32_0 = arith.constant 0 : i32
    %c0_i32_1 = arith.constant 0 : i32
    return %c0_i32, %c0_i32_0 : i32, i32
  }
  func.func @transform_6(%arg0: i32) -> (i32, i32) {
    %c0_i32 = arith.constant 0 : i32
    %c0_i32_0 = arith.constant 0 : i32
    %c0_i32_1 = arith.constant 0 : i32
    return %c0_i32, %c0_i32_0 : i32, i32
  }
  func.func @transform_7(%arg0: i32) -> (i32, i32) {
    %c0_i32 = arith.constant 0 : i32
    %c0_i32_0 = arith.constant 0 : i32
    %c0_i32_1 = arith.constant 0 : i32
    return %c0_i32, %c0_i32_0 : i32, i32
  }
  func.func @transform_8(%arg0: i32) -> (i32, i32) {
    %c0_i32 = arith.constant 0 : i32
    %c0_i32_0 = arith.constant 0 : i32
    %c0_i32_1 = arith.constant 0 : i32
    return %c0_i32, %c0_i32_0 : i32, i32
  }
  func.func @transform_9(%arg0: i32) -> (i32, i32) {
    %c0_i32 = arith.constant 0 : i32
    %c0_i32_0 = arith.constant 0 : i32
    return %c0_i32, %arg0 : i32, i32
  }
}

</mosaic_0001>

<bundles_post_ra>
// kernel: tpu_custom_call.1
= control target key start
LH: loop header
LB: loop body
LE: loop exit
PB: predicated region body
PF: predicated region fallthrough
CT: control target
= control target key end

     0   :  { %s16381_s0 = inlined_call_operand.vmem [shape: f32[4,32], index: 0, kind: input, shape index: {}]   ;;  %s16382_s1 = inlined_call_operand.vmem [shape: f32[1,4], index: 1, kind: input, shape index: {}]   ;;  %s16383_s2 = inlined_call_operand.vmem [shape: f32[64,32], index: 2, kind: input, shape index: {}]   ;;  %s16384_s3 = inlined_call_operand.vmem [shape: f32[64,1], index: 3, kind: input, shape index: {}]   ;;  %s16385_s4 = inlined_call_operand.vmem [shape: f32[64,1], index: 4, kind: input, shape index: {}]   ;;  %s16386_s5 = inlined_call_operand.vmem [shape: f32[32,64], index: 5, kind: input, shape index: {}]   ;;  %s16387_s6 = inlined_call_operand.vmem [shape: f32[32,1], index: 6, kind: input, shape index: {}]   ;;  %s16388_s7 = inlined_call_operand.vmem [shape: f32[1,32], index: 7, kind: input, shape index: {}]   ;;  %s16389_s8 = inlined_call_operand.<no memory space> [shape: f32[1,1], index: 8, kind: input, shape index: {}]   ;;  %s16390_s9 = inlined_call_operand.hbm [shape: f32[1,4], index: 9, kind: output, shape index: {}]  }
   0x1   :  { %v14_v0 = vstv %s16389_s8 }
   0x2   :  { %15 = vst [vmem:[#allocation2] sm:$0x1] %v14_v0 }
   0x3   :  { %16 = vsyncpa [#allocation4], 0  ;;  %v59_v1 = vld [vmem:[%s16381_s0 + $0x80] sm:$0xff]  ;;  %v60_v2 = vld [vmem:[%s16381_s0 + $0x88] sm:$0xff]  ;;  %vm1027_vm0 = vcmask 261120   ;;  %v10647_v38 = vmov 0  }
   0x4   :  { %v9437_v3 = vpack.c.bf16 %v60_v2, %v59_v1  ;;  %vm10712_vm1 = vmpackc.low %vm1027_vm0, %vm1027_vm0  ;;  %v91_v5 = vld [vmem:[%s16381_s0 + $0x180] sm:$0xff]  ;;  %v92_v6 = vld [vmem:[%s16381_s0 + $0x188] sm:$0xff]  ;;  %10593 = vset.pattern.permute.xlu0 %v10647_v38  ;;  %10594 = vset.pattern.permute.xlu1 %v10647_v38  ;;  %vm4984_vm2 = vcmask 523264  }
   0x5   :  { %v9485_v7 = vpack.c.bf16 %v92_v6, %v91_v5  ;;  %v43_v8 = vld [vmem:[%s16381_s0] sm:$0xff]  ;;  %v44_v9 = vld [vmem:[%s16381_s0 + $0x8] sm:$0xff]  ;;  %v61_v13 = vld [vmem:[%s16381_s0 + $0x90] sm:$0xff] }
   0x6   :  { %v75_v10 = vld [vmem:[%s16381_s0 + $0x100] sm:$0xff]  ;;  %9439 = vmatprep.subr.msk.bf16.mxu0 %vm10712_vm1, %v9437_v3  ;;  %v9440_v11 = vpack.c.bf16 %v44_v9, %v43_v8  ;;  %v76_v12 = vld [vmem:[%s16381_s0 + $0x108] sm:$0xff]  ;;  %v62_v14 = vld [vmem:[%s16381_s0 + $0x98] sm:$0xff] }
   0x7   :  { %9487 = vmatprep.subr.msk.bf16.mxu1 %vm10712_vm1, %v9485_v7  ;;  %v9488_v15 = vpack.c.bf16 %v76_v12, %v75_v10  ;;  %v9443_v16 = vpack.c.bf16 %v62_v14, %v61_v13  ;;  %v93_v17 = vld [vmem:[%s16381_s0 + $0x190] sm:$0xff]  ;;  %v94_v18 = vld [vmem:[%s16381_s0 + $0x198] sm:$0xff]  ;;  %v63_v24 = vld [vmem:[%s16381_s0 + $0xa0] sm:$0xff] }
   0x8   :  { %9442 = vmatpush3.bf16.xpose.msk.msra.mxu0 %vm10712_vm1, %v9440_v11  ;;  %v9491_v19 = vpack.c.bf16 %v94_v18, %v93_v17  ;;  %v45_v20 = vld [vmem:[%s16381_s0 + $0x10] sm:$0xff]  ;;  %v46_v21 = vld [vmem:[%s16381_s0 + $0x18] sm:$0xff]  ;;  %v64_v25 = vld [vmem:[%s16381_s0 + $0xa8] sm:$0xff] }
   0x9   :  { %9490 = vmatpush3.bf16.xpose.msk.msra.mxu1 %vm10712_vm1, %v9488_v15  ;;  %9445 = vmatprep.subr.msk.bf16.mxu0 %vm10712_vm1, %v9443_v16  ;;  %v77_v22 = vld [vmem:[%s16381_s0 + $0x110] sm:$0xff]  ;;  %v78_v23 = vld [vmem:[%s16381_s0 + $0x118] sm:$0xff]  ;;  %v95_v26 = vld [vmem:[%s16381_s0 + $0x1a0] sm:$0xff]  ;;  %v9446_v28 = vpack.c.bf16 %v46_v21, %v45_v20  ;;  %v9449_v30 = vpack.c.bf16 %v64_v25, %v63_v24 }
   0xa   :  { %9493 = vmatprep.subr.msk.bf16.mxu1 %vm10712_vm1, %v9491_v19  ;;  %v96_v27 = vld [vmem:[%s16381_s0 + $0x1a8] sm:$0xff]  ;;  %v9494_v29 = vpack.c.bf16 %v78_v23, %v77_v22  ;;  %v47_v32 = vld [vmem:[%s16381_s0 + $0x20] sm:$0xff]  ;;  %v65_v36 = vld [vmem:[%s16381_s0 + $0xb0] sm:$0xff] }
   0xb   :  { %v9497_v31 = vpack.c.bf16 %v96_v27, %v95_v26  ;;  %v48_v33 = vld [vmem:[%s16381_s0 + $0x28] sm:$0xff]  ;;  %v79_v34 = vld [vmem:[%s16381_s0 + $0x120] sm:$0xff]  ;;  %v66_v37 = vld [vmem:[%s16381_s0 + $0xb8] sm:$0xff] }
   0xc   :  { %v80_v35 = vld [vmem:[%s16381_s0 + $0x128] sm:$0xff]  ;;  %v97_v39 = vld [vmem:[%s16381_s0 + $0x1b0] sm:$0xff]  ;;  %v98_v40 = vld [vmem:[%s16381_s0 + $0x1b8] sm:$0xff]  ;;  %v9452_v41 = vpack.c.bf16 %v48_v33, %v47_v32  ;;  %v9455_v43 = vpack.c.bf16 %v66_v37, %v65_v36 }
   0xd   :  { %v9500_v42 = vpack.c.bf16 %v80_v35, %v79_v34  ;;  %v9503_v44 = vpack.c.bf16 %v98_v40, %v97_v39  ;;  %v49_v45 = vld [vmem:[%s16381_s0 + $0x30] sm:$0xff]  ;;  %v50_v46 = vld [vmem:[%s16381_s0 + $0x38] sm:$0xff]  ;;  %v10832_v48 = vld [vmem:[%s16383_s2] sm:$0xff] }
   0xe   :  { %v81_v47 = vld [vmem:[%s16381_s0 + $0x130] sm:$0xff]  ;;  %v82_v49 = vld [vmem:[%s16381_s0 + $0x138] sm:$0xff]  ;;  %v67_v50 = vld [vmem:[%s16381_s0 + $0xc0] sm:$0xff]  ;;  %8701 = vmatprep.mubr.msk.f32.mxu0 %vm1027_vm0, %v10832_v48  ;;  %8749 = vmatprep.mubr.msk.f32.mxu1 %vm1027_vm0, %v10832_v48  ;;  %v9458_v54 = vpack.c.bf16 %v50_v46, %v49_v45 }
   0xf   :  { %v68_v51 = vld [vmem:[%s16381_s0 + $0xc8] sm:$0xff]  ;;  %v99_v52 = vld [vmem:[%s16381_s0 + $0x1c0] sm:$0xff]  ;;  %v9506_v55 = vpack.c.bf16 %v82_v49, %v81_v47  ;;  %v69_v62 = vld [vmem:[%s16381_s0 + $0xd0] sm:$0xff] }
  0x10   :  { %9448 = vmatpush3.bf16.xpose.msk.msra.mxu0 %vm10712_vm1, %v9446_v28  ;;  %v100_v53 = vld [vmem:[%s16381_s0 + $0x1c8] sm:$0xff]  ;;  %v9461_v56 = vpack.c.bf16 %v68_v51, %v67_v50  ;;  %v51_v58 = vld [vmem:[%s16381_s0 + $0x40] sm:$0xff]  ;;  %v70_v63 = vld [vmem:[%s16381_s0 + $0xd8] sm:$0xff] }
  0x11   :  { %9496 = vmatpush3.bf16.xpose.msk.msra.mxu1 %vm10712_vm1, %v9494_v29  ;;  %9451 = vmatprep.subr.msk.bf16.mxu0 %vm10712_vm1, %v9449_v30  ;;  %v9509_v57 = vpack.c.bf16 %v100_v53, %v99_v52  ;;  %v52_v59 = vld [vmem:[%s16381_s0 + $0x48] sm:$0xff]  ;;  %v83_v60 = vld [vmem:[%s16381_s0 + $0x140] sm:$0xff]  ;;  %v101_v0 = vld [vmem:[%s16381_s0 + $0x1d0] sm:$0xff]  ;;  %v9467_v5 = vpack.c.bf16 %v70_v63, %v69_v62 }
  0x12   :  { %9499 = vmatprep.subr.msk.bf16.mxu1 %vm10712_vm1, %v9497_v31  ;;  %v84_v61 = vld [vmem:[%s16381_s0 + $0x148] sm:$0xff]  ;;  %v102_v1 = vld [vmem:[%s16381_s0 + $0x1d8] sm:$0xff]  ;;  %v9464_v2 = vpack.c.bf16 %v52_v59, %v51_v58  ;;  %v53_v7 = vld [vmem:[%s16381_s0 + $0x50] sm:$0xff] }
  0x13   :  { %v9512_v3 = vpack.c.bf16 %v84_v61, %v83_v60  ;;  %v9515_v6 = vpack.c.bf16 %v102_v1, %v101_v0  ;;  %v54_v8 = vld [vmem:[%s16381_s0 + $0x58] sm:$0xff]  ;;  %v85_v9 = vld [vmem:[%s16381_s0 + $0x150] sm:$0xff]  ;;  %v71_v11 = vld [vmem:[%s16381_s0 + $0xe0] sm:$0xff] }
  0x14   :  { %v86_v10 = vld [vmem:[%s16381_s0 + $0x158] sm:$0xff]  ;;  %v72_v12 = vld [vmem:[%s16381_s0 + $0xe8] sm:$0xff]  ;;  %v103_v13 = vld [vmem:[%s16381_s0 + $0x1e0] sm:$0xff]  ;;  %v9470_v15 = vpack.c.bf16 %v54_v8, %v53_v7 }
  0x15   :  { %v104_v14 = vld [vmem:[%s16381_s0 + $0x1e8] sm:$0xff]  ;;  %v9518_v16 = vpack.c.bf16 %v86_v10, %v85_v9  ;;  %v9473_v17 = vpack.c.bf16 %v72_v12, %v71_v11  ;;  %v55_v19 = vld [vmem:[%s16381_s0 + $0x60] sm:$0xff]  ;;  %v73_v23 = vld [vmem:[%s16381_s0 + $0xf0] sm:$0xff] }
  0x16   :  { %v9521_v18 = vpack.c.bf16 %v104_v14, %v103_v13  ;;  %v56_v20 = vld [vmem:[%s16381_s0 + $0x68] sm:$0xff]  ;;  %v87_v21 = vld [vmem:[%s16381_s0 + $0x160] sm:$0xff]  ;;  %v74_v24 = vld [vmem:[%s16381_s0 + $0xf8] sm:$0xff] }
  0x17   :  { %v88_v22 = vld [vmem:[%s16381_s0 + $0x168] sm:$0xff]  ;;  %v105_v25 = vld [vmem:[%s16381_s0 + $0x1f0] sm:$0xff]  ;;  %v106_v26 = vld [vmem:[%s16381_s0 + $0x1f8] sm:$0xff]  ;;  %v9476_v27 = vpack.c.bf16 %v56_v20, %v55_v19  ;;  %v9479_v29 = vpack.c.bf16 %v74_v24, %v73_v23 }
  0x18   :  { %9454 = vmatpush3.bf16.xpose.msk.msra.mxu0 %vm10712_vm1, %v9452_v41  ;;  %v9524_v28 = vpack.c.bf16 %v88_v22, %v87_v21  ;;  %v9527_v30 = vpack.c.bf16 %v106_v26, %v105_v25  ;;  %v555_v31 = vld [vmem:[%s16384_s3] sm:$0xff]  ;;  %v57_v32 = vld [vmem:[%s16381_s0 + $0x70] sm:$0xff]  ;;  %v58_v33 = vld [vmem:[%s16381_s0 + $0x78] sm:$0xff] }
  0x19   :  { %9502 = vmatpush3.bf16.xpose.msk.msra.mxu1 %vm10712_vm1, %v9500_v42  ;;  %9457 = vmatprep.subr.msk.bf16.mxu0 %vm10712_vm1, %v9455_v43  ;;  %v89_v34 = vld [vmem:[%s16381_s0 + $0x170] sm:$0xff]  ;;  %v556_v36 = vld [vmem:[%s16384_s3 + $0x8] sm:$0xff]  ;;  %v90_v37 = vld [vmem:[%s16381_s0 + $0x178] sm:$0xff]  ;;  %v9482_v43 = vpack.c.bf16 %v58_v33, %v57_v32 }
  0x1a   :  { %9505 = vmatprep.subr.msk.bf16.mxu1 %vm10712_vm1, %v9503_v44  ;;  %569 = vperm.xlu0 %10593, %v555_v31   ;;  %v557_v35 = vld [vmem:[%s16384_s3 + $0x10] sm:$0xff]  ;;  %v123_v38 = vld [vmem:[%s16381_s0 + $0x280] sm:$0xff]  ;;  %v124_v39 = vld [vmem:[%s16381_s0 + $0x288] sm:$0xff]  ;;  %v9530_v45 = vpack.c.bf16 %v90_v37, %v89_v34 }
  0x1b   :  { %579 = vperm.xlu1 %10594, %v557_v35   ;;  %v155_v40 = vld [vmem:[%s16381_s0 + $0x380] sm:$0xff]  ;;  %v156_v41 = vld [vmem:[%s16381_s0 + $0x388] sm:$0xff]  ;;  %v558_v42 = vld [vmem:[%s16384_s3 + $0x18] sm:$0xff]  ;;  %v9533_v46 = vpack.c.bf16 %v124_v39, %v123_v38 }
  0x1c   :  { %v4396_v44 = vld [vmem:[%s16385_s4] sm:$0xff]  ;;  %v9581_v47 = vpack.c.bf16 %v156_v41, %v155_v40  ;;  %v4397_v49 = vld [vmem:[%s16385_s4 + $0x8] sm:$0xff]  ;;  %v158_v58 = vld [vmem:[%s16381_s0 + $0x398] sm:$0xff] }
  0x1d   :  { %v107_v50 = vld [vmem:[%s16381_s0 + $0x200] sm:$0xff]  ;;  %v108_v51 = vld [vmem:[%s16381_s0 + $0x208] sm:$0xff]  ;;  %v109_v63 = vld [vmem:[%s16381_s0 + $0x210] sm:$0xff] }
  0x1e   :  { %574 = vperm.xlu0 %10593, %v556_v36   ;;  %v139_v52 = vld [vmem:[%s16381_s0 + $0x300] sm:$0xff]  ;;  %v140_v53 = vld [vmem:[%s16381_s0 + $0x308] sm:$0xff]  ;;  %v110_v0 = vld [vmem:[%s16381_s0 + $0x218] sm:$0xff] }
  0x1f   :  { %584 = vperm.xlu1 %10594, %v558_v42   ;;  %v9584_v59 = vpack.c.bf16 %v140_v53, %v139_v52  ;;  %v11036_v60 = vld [vmem:[%s16383_s2 + $0x8] sm:$0xff]  ;;  %v141_v1 = vld [vmem:[%s16381_s0 + $0x310] sm:$0xff]  ;;  %v159_v8 = vld [vmem:[%s16381_s0 + $0x3a0] sm:$0xff]  ;;  %v9542_v11 = vpack.c.bf16 %v110_v0, %v109_v63 }
  0x20   :  { %9460 = vmatpush3.bf16.xpose.msk.msra.mxu0 %vm10712_vm1, %v9458_v54  ;;  %v125_v54 = vld [vmem:[%s16381_s0 + $0x290] sm:$0xff]  ;;  %v560_v7 = vld [vmem:[%s16384_s3 + $0x28] sm:$0xff]  ;;  %v559_v10 = vld [vmem:[%s16384_s3 + $0x20] sm:$0xff] }
  0x21   :  { %9508 = vmatpush3.bf16.xpose.msk.msra.mxu1 %vm10712_vm1, %v9506_v55  ;;  %9463 = vmatprep.subr.msk.bf16.mxu0 %vm10712_vm1, %v9461_v56  ;;  %v126_v55 = vld [vmem:[%s16381_s0 + $0x298] sm:$0xff]  ;;  %v9536_v56 = vpack.c.bf16 %v108_v51, %v107_v50  ;;  %v160_v9 = vld [vmem:[%s16381_s0 + $0x3a8] sm:$0xff]  ;;  %v11127_v20 = vld [vmem:[%s16383_s2 + $0x20] sm:$0xff] }
  0x22   :  { %9511 = vmatprep.subr.msk.bf16.mxu1 %vm10712_vm1, %v9509_v57  ;;  %4406 = vperm.xlu0 %10593, %v4396_v44   ;;  %v157_v57 = vld [vmem:[%s16381_s0 + $0x390] sm:$0xff]  ;;  %v9539_v61 = vpack.c.bf16 %v126_v55, %v125_v54  ;;  %v9593_v14 = vpack.c.bf16 %v160_v9, %v159_v8  ;;  %v144_v19 = vld [vmem:[%s16381_s0 + $0x328] sm:$0xff]  ;;  %v130_v22 = vld [vmem:[%s16381_s0 + $0x2b8] sm:$0xff] }
  0x23   :  { %4411 = vperm.xlu1 %10594, %v4397_v49   ;;  %v9587_v62 = vpack.c.bf16 %v158_v58, %v157_v57  ;;  %v129_v21 = vld [vmem:[%s16381_s0 + $0x2b0] sm:$0xff]  ;;  %v4399_v23 = vld [vmem:[%s16385_s4 + $0x18] sm:$0xff]  ;;  %v11166_v31 = vld [vmem:[%s16383_s2 + $0x28] sm:$0xff] }
  0x24   :  { %v161_v24 = vld [vmem:[%s16381_s0 + $0x3b0] sm:$0xff]  ;;  %v162_v25 = vld [vmem:[%s16381_s0 + $0x3b8] sm:$0xff]  ;;  %v131_v37 = vld [vmem:[%s16381_s0 + $0x2c0] sm:$0xff] }
  0x25   :  { %v4398_v26 = vld [vmem:[%s16385_s4 + $0x10] sm:$0xff]  ;;  %v114_v33 = vld [vmem:[%s16381_s0 + $0x238] sm:$0xff]  ;;  %v132_v38 = vld [vmem:[%s16381_s0 + $0x2c8] sm:$0xff] }
  0x26   :  { %589 = vperm.xlu0 %10593, %v559_v10   ;;  %v113_v32 = vld [vmem:[%s16381_s0 + $0x230] sm:$0xff]  ;;  %v146_v35 = vld [vmem:[%s16381_s0 + $0x338] sm:$0xff]  ;;  %v163_v40 = vld [vmem:[%s16381_s0 + $0x3c0] sm:$0xff] }
  0x27   :  { %594 = vperm.xlu1 %10594, %v560_v7   ;;  %v145_v34 = vld [vmem:[%s16381_s0 + $0x330] sm:$0xff]  ;;  %v562_v39 = vld [vmem:[%s16384_s3 + $0x38] sm:$0xff]  ;;  %v164_v41 = vld [vmem:[%s16381_s0 + $0x3c8] sm:$0xff] }
  0x28   :  { %9466 = vmatpush3.bf16.xpose.msk.msra.mxu0 %vm10712_vm1, %v9464_v2  ;;  %v142_v2 = vld [vmem:[%s16381_s0 + $0x318] sm:$0xff]  ;;  %v11191_v36 = vld [vmem:[%s16383_s2 + $0x30] sm:$0xff]  ;;  %v9602_v44 = vpack.c.bf16 %v146_v35, %v145_v34  ;;  %v115_v49 = vld [vmem:[%s16381_s0 + $0x240] sm:$0xff] }
  0x29   :  { %9514 = vmatpush3.bf16.xpose.msk.msra.mxu1 %vm10712_vm1, %v9512_v3  ;;  %9469 = vmatprep.subr.msk.bf16.mxu0 %vm10712_vm1, %v9467_v5  ;;  %v11063_v3 = vld [vmem:[%s16383_s2 + $0x10] sm:$0xff]  ;;  %v127_v5 = vld [vmem:[%s16381_s0 + $0x2a0] sm:$0xff]  ;;  %v9590_v12 = vpack.c.bf16 %v142_v2, %v141_v1  ;;  %v116_v50 = vld [vmem:[%s16381_s0 + $0x248] sm:$0xff] }
  0x2a   :  { %9517 = vmatprep.subr.msk.bf16.mxu1 %vm10712_vm1, %v9515_v6  ;;  %v128_v6 = vld [vmem:[%s16381_s0 + $0x2a8] sm:$0xff]  ;;  %4416 = vperm.xlu0 %10593, %v4398_v26   ;;  %v561_v42 = vld [vmem:[%s16384_s3 + $0x30] sm:$0xff]  ;;  %v147_v51 = vld [vmem:[%s16381_s0 + $0x340] sm:$0xff] }
  0x2b   :  { %v9545_v13 = vpack.c.bf16 %v128_v6, %v127_v5  ;;  %4421 = vperm.xlu1 %10594, %v4399_v23   ;;  %v148_v52 = vld [vmem:[%s16381_s0 + $0x348] sm:$0xff]  ;;  %v133_v53 = vld [vmem:[%s16381_s0 + $0x2d0] sm:$0xff]  ;;  %v134_v54 = vld [vmem:[%s16381_s0 + $0x2d8] sm:$0xff] }
  0x2c   :  { %v4401_v55 = vld [vmem:[%s16385_s4 + $0x28] sm:$0xff]  ;;  %v166_v57 = vld [vmem:[%s16381_s0 + $0x3d8] sm:$0xff]  ;;  %v4400_v58 = vld [vmem:[%s16385_s4 + $0x20] sm:$0xff] }
  0x2d   :  { %v4403_v0 = vld [vmem:[%s16385_s4 + $0x38] sm:$0xff]  ;;  %v4402_v1 = vld [vmem:[%s16385_s4 + $0x30] sm:$0xff]  ;;  %v135_v8 = vld [vmem:[%s16381_s0 + $0x2e0] sm:$0xff] }
  0x2e   :  { %599 = vperm.xlu0 %10593, %v561_v42   ;;  %v117_v2 = vld [vmem:[%s16381_s0 + $0x250] sm:$0xff]  ;;  %v118_v5 = vld [vmem:[%s16381_s0 + $0x258] sm:$0xff]  ;;  %v136_v9 = vld [vmem:[%s16381_s0 + $0x2e8] sm:$0xff] }
  0x2f   :  { %604 = vperm.xlu1 %10594, %v562_v39   ;;  %v149_v6 = vld [vmem:[%s16381_s0 + $0x350] sm:$0xff]  ;;  %v150_v7 = vld [vmem:[%s16381_s0 + $0x358] sm:$0xff]  ;;  %v167_v10 = vld [vmem:[%s16381_s0 + $0x3e0] sm:$0xff] }
  0x30   :  { %9472 = vmatpush3.bf16.xpose.msk.msra.mxu0 %vm10712_vm1, %v9470_v15  ;;  %v11102_v15 = vld [vmem:[%s16383_s2 + $0x18] sm:$0xff]  ;;  %v187_v35 = vld [vmem:[%s16381_s0 + $0x480] sm:$0xff]  ;;  %v220_v39 = vld [vmem:[%s16381_s0 + $0x588] sm:$0xff] }
  0x31   :  { %9520 = vmatpush3.bf16.xpose.msk.msra.mxu1 %vm10712_vm1, %v9518_v16  ;;  %9475 = vmatprep.subr.msk.bf16.mxu0 %vm10712_vm1, %v9473_v17  ;;  %v111_v16 = vld [vmem:[%s16381_s0 + $0x220] sm:$0xff]  ;;  %v112_v17 = vld [vmem:[%s16381_s0 + $0x228] sm:$0xff]  ;;  %v138_v23 = vld [vmem:[%s16381_s0 + $0x2f8] sm:$0xff] }
  0x32   :  { %9523 = vmatprep.subr.msk.bf16.mxu1 %vm10712_vm1, %v9521_v18  ;;  %v143_v18 = vld [vmem:[%s16381_s0 + $0x320] sm:$0xff]  ;;  %4426 = vperm.xlu0 %10593, %v4400_v58   ;;  %v154_v34 = vld [vmem:[%s16381_s0 + $0x378] sm:$0xff]  ;;  %v173_v58 = vld [vmem:[%s16381_s0 + $0x410] sm:$0xff] }
  0x33   :  { %4431 = vperm.xlu1 %10594, %v4401_v55   ;;  %v10612_v4 = vld [vmem:[%s16383_s2 + $0x8] sm:$0xff] }
  0x36   :  { %4436 = vperm.xlu0 %10593, %v4402_v1   ;;  %v223_v1 = vld [vmem:[%s16381_s0 + $0x5a0] sm:$0xff] }
  0x37   :  { %4441 = vperm.xlu1 %10594, %v4403_v0   ;;  %v192_v0 = vld [vmem:[%s16381_s0 + $0x4a8] sm:$0xff] }
  0x38   :  { %9478 = vmatpush3.bf16.xpose.msk.msra.mxu0 %vm10712_vm1, %v9476_v27  ;;  %v9548_v27 = vpack.c.bf16 %v112_v17, %v111_v16  ;;  %v119_v17 = vld [vmem:[%s16381_s0 + $0x260] sm:$0xff] }
  0x39   :  { %9526 = vmatpush3.bf16.xpose.msk.msra.mxu1 %vm10712_vm1, %v9524_v28  ;;  %9481 = vmatprep.subr.msk.bf16.mxu0 %vm10712_vm1, %v9479_v29  ;;  %v9596_v28 = vpack.c.bf16 %v144_v19, %v143_v18  ;;  %v9551_v29 = vpack.c.bf16 %v130_v22, %v129_v21  ;;  %v120_v18 = vld [vmem:[%s16381_s0 + $0x268] sm:$0xff]  ;;  %v151_v19 = vld [vmem:[%s16381_s0 + $0x360] sm:$0xff]  ;;  %v137_v22 = vld [vmem:[%s16381_s0 + $0x2f0] sm:$0xff] }
  0x3a   :  { %9529 = vmatprep.subr.msk.bf16.mxu1 %vm10712_vm1, %v9527_v30  ;;  %v9599_v30 = vpack.c.bf16 %v162_v25, %v161_v24  ;;  %v152_v21 = vld [vmem:[%s16381_s0 + $0x368] sm:$0xff]  ;;  %v169_v24 = vld [vmem:[%s16381_s0 + $0x3f0] sm:$0xff]  ;;  %v170_v25 = vld [vmem:[%s16381_s0 + $0x3f8] sm:$0xff]  ;;  %v9572_v26 = vpack.c.bf16 %v120_v18, %v119_v17 }
  0x3b   :  { %v226_v17 = vld [vmem:[%s16381_s0 + $0x5b8] sm:$0xff] }
  0x40   :  { %9484 = vmatpush3.bf16.xpose.msk.msra.mxu0 %vm10712_vm1, %v9482_v43  ;;  %v9554_v43 = vpack.c.bf16 %v114_v33, %v113_v32  ;;  %v122_v32 = vld [vmem:[%s16381_s0 + $0x278] sm:$0xff]  ;;  %v153_v33 = vld [vmem:[%s16381_s0 + $0x370] sm:$0xff] }
  0x41   :  { %9532 = vmatpush3.bf16.xpose.msk.msra.mxu1 %vm10712_vm1, %v9530_v45  ;;  %9535 = vmatprep.subr.msk.bf16.mxu0 %vm10712_vm1, %v9533_v46  ;;  %v9557_v45 = vpack.c.bf16 %v132_v38, %v131_v37  ;;  %v9605_v46 = vpack.c.bf16 %v164_v41, %v163_v40  ;;  %v188_v37 = vld [vmem:[%s16381_s0 + $0x488] sm:$0xff]  ;;  %v219_v38 = vld [vmem:[%s16381_s0 + $0x580] sm:$0xff]  ;;  %v9626_v41 = vpack.c.bf16 %v154_v34, %v153_v33 }
  0x42   :  { %9583 = vmatprep.subr.msk.bf16.mxu1 %vm10712_vm1, %v9581_v47  ;;  %v11230_v47 = vld [vmem:[%s16383_s2 + $0x38] sm:$0xff]  ;;  %v9629_v42 = vpack.c.bf16 %v188_v37, %v187_v35  ;;  %v179_v37 = vld [vmem:[%s16381_s0 + $0x440] sm:$0xff] }
  0x47   :  { %8702 = vmatmul.mubr.msk.f32.vlgmr.msra.gmra.mrb[0].mxu0 %vm1027_vm0, %v10832_v48 }
  0x48   :  { %8750 = vmatmul.mubr.msk.f32.vlgmr.msra.gmra.mrb[0].mxu1 %vm1027_vm0, %v10832_v48  ;;  %9538 = vmatpush3.bf16.xpose.msk.msra.mxu0 %vm10712_vm1, %v9536_v56  ;;  %v165_v56 = vld [vmem:[%s16381_s0 + $0x3d0] sm:$0xff] }
  0x49   :  { %9586 = vmatpush3.bf16.xpose.msk.msra.mxu1 %vm10712_vm1, %v9584_v59  ;;  %8703 = vmatprep.mubr.msk.f32.mxu0 %vm1027_vm0, %v11036_v60  ;;  %v9560_v59 = vpack.c.bf16 %v116_v50, %v115_v49  ;;  %v9611_v63 = vpack.c.bf16 %v166_v57, %v165_v56  ;;  %v204_v49 = vld [vmem:[%s16381_s0 + $0x508] sm:$0xff]  ;;  %v189_v50 = vld [vmem:[%s16381_s0 + $0x490] sm:$0xff] }
  0x4a   :  { %8751 = vmatprep.mubr.msk.f32.mxu1 %vm1027_vm0, %v11036_v60  ;;  %9541 = vmatprep.subr.msk.bf16.mxu0 %vm10712_vm1, %v9539_v61  ;;  %v9608_v61 = vpack.c.bf16 %v148_v52, %v147_v51  ;;  %v190_v51 = vld [vmem:[%s16381_s0 + $0x498] sm:$0xff] }
  0x4b   :  { %8704 = vmatmul.mubr.msk.f32.gmra.mrb[2].mxu0 %vm1027_vm0, %v11036_v60  ;;  %9589 = vmatprep.subr.msk.bf16.mxu1 %vm10712_vm1, %v9587_v62  ;;  %v9563_v62 = vpack.c.bf16 %v134_v54, %v133_v53  ;;  %v221_v53 = vld [vmem:[%s16381_s0 + $0x590] sm:$0xff]  ;;  %v222_v54 = vld [vmem:[%s16381_s0 + $0x598] sm:$0xff]  ;;  %v9635_v56 = vpack.c.bf16 %v190_v51, %v189_v50 }
  0x4c   :  { %8752 = vmatmul.mubr.msk.f32.gmra.mrb[2].mxu1 %vm1027_vm0, %v11036_v60  ;;  %8705 = vmatprep.mubr.msk.f32.mxu0 %vm1027_vm0, %v11063_v3  ;;  %v9683_v57 = vpack.c.bf16 %v222_v54, %v221_v53  ;;  %v181_v51 = vld [vmem:[%s16381_s0 + $0x450] sm:$0xff]  ;;  %v214_v54 = vld [vmem:[%s16381_s0 + $0x558] sm:$0xff] }
  0x4d   :  { %8753 = vmatprep.mubr.msk.f32.mxu1 %vm1027_vm0, %v11063_v3  ;;  %v213_v53 = vld [vmem:[%s16381_s0 + $0x550] sm:$0xff] }
  0x4f   :  { %8706 = vmatmul.mubr.msk.f32.gmra.mrb[4].mxu0 %vm1027_vm0, %v11063_v3 }
  0x50   :  { %9544 = vmatpush3.bf16.xpose.msk.msra.mxu0 %vm10712_vm1, %v9542_v11  ;;  %8754 = vmatmul.mubr.msk.f32.gmra.mrb[4].mxu1 %vm1027_vm0, %v11063_v3  ;;  %v168_v11 = vld [vmem:[%s16381_s0 + $0x3e8] sm:$0xff] }
  0x51   :  { %9592 = vmatpush3.bf16.xpose.msk.msra.mxu1 %vm10712_vm1, %v9590_v12  ;;  %9547 = vmatprep.subr.msk.bf16.mxu0 %vm10712_vm1, %v9545_v13  ;;  %v9566_v12 = vpack.c.bf16 %v118_v5, %v117_v2  ;;  %v9614_v13 = vpack.c.bf16 %v150_v7, %v149_v6  ;;  %v9617_v16 = vpack.c.bf16 %v168_v11, %v167_v10  ;;  %v224_v2 = vld [vmem:[%s16381_s0 + $0x5a8] sm:$0xff]  ;;  %v207_v11 = vld [vmem:[%s16381_s0 + $0x520] sm:$0xff] }
  0x52   :  { %9595 = vmatprep.subr.msk.bf16.mxu1 %vm10712_vm1, %v9593_v14  ;;  %8707 = vmatprep.mubr.msk.f32.mxu0 %vm1027_vm0, %v11102_v15  ;;  %v9569_v14 = vpack.c.bf16 %v136_v9, %v135_v8  ;;  %v9689_v8 = vpack.c.bf16 %v224_v2, %v223_v1  ;;  %v175_v9 = vld [vmem:[%s16381_s0 + $0x420] sm:$0xff]  ;;  %v176_v10 = vld [vmem:[%s16381_s0 + $0x428] sm:$0xff] }
  0x53   :  { %8755 = vmatprep.mubr.msk.f32.mxu1 %vm1027_vm0, %v11102_v15  ;;  %8708 = vmatmul.mubr.msk.f32.gmra.mrb[6].mxu0 %vm1027_vm0, %v11102_v15  ;;  %v9644_v18 = vpack.c.bf16 %v176_v10, %v175_v9  ;;  %v184_v1 = vld [vmem:[%s16381_s0 + $0x468] sm:$0xff]  ;;  %v215_v2 = vld [vmem:[%s16381_s0 + $0x560] sm:$0xff]  ;;  %v234_v9 = vld [vmem:[%s16381_s0 + $0x5f8] sm:$0xff] }
  0x54   :  { %8756 = vmatmul.mubr.msk.f32.gmra.mrb[6].mxu1 %vm1027_vm0, %v11102_v15  ;;  %8709 = vmatprep.mubr.msk.f32.mxu0 %vm1027_vm0, %v11127_v20 }
  0x55   :  { %8757 = vmatprep.mubr.msk.f32.mxu1 %vm1027_vm0, %v11127_v20 }
  0x57   :  { %8710 = vmatmul.mubr.msk.f32.gmra.mrb[8].mxu0 %vm1027_vm0, %v11127_v20 }
  0x58   :  { %9550 = vmatpush3.bf16.xpose.msk.msra.mxu0 %vm10712_vm1, %v9548_v27  ;;  %8758 = vmatmul.mubr.msk.f32.gmra.mrb[8].mxu1 %vm1027_vm0, %v11127_v20  ;;  %v9620_v27 = vpack.c.bf16 %v152_v21, %v151_v19 }
  0x59   :  { %9598 = vmatpush3.bf16.xpose.msk.msra.mxu1 %vm10712_vm1, %v9596_v28  ;;  %9553 = vmatprep.subr.msk.bf16.mxu0 %vm10712_vm1, %v9551_v29  ;;  %v9575_v28 = vpack.c.bf16 %v138_v23, %v137_v22  ;;  %v9623_v29 = vpack.c.bf16 %v170_v25, %v169_v24  ;;  %v177_v23 = vld [vmem:[%s16381_s0 + $0x430] sm:$0xff]  ;;  %v178_v24 = vld [vmem:[%s16381_s0 + $0x438] sm:$0xff] }
  0x5a   :  { %9601 = vmatprep.subr.msk.bf16.mxu1 %vm10712_vm1, %v9599_v30  ;;  %8711 = vmatprep.mubr.msk.f32.mxu0 %vm1027_vm0, %v11166_v31  ;;  %v121_v30 = vld [vmem:[%s16381_s0 + $0x270] sm:$0xff] }
  0x5b   :  { %8759 = vmatprep.mubr.msk.f32.mxu1 %vm1027_vm0, %v11166_v31  ;;  %8712 = vmatmul.mubr.msk.f32.gmra.mrb[10].mxu0 %vm1027_vm0, %v11166_v31  ;;  %v9578_v40 = vpack.c.bf16 %v122_v32, %v121_v30  ;;  %v209_v25 = vld [vmem:[%s16381_s0 + $0x530] sm:$0xff]  ;;  %v228_v30 = vld [vmem:[%s16381_s0 + $0x5c8] sm:$0xff]  ;;  %v9650_v32 = vpack.c.bf16 %v178_v24, %v177_v23 }
  0x5c   :  { %8760 = vmatmul.mubr.msk.f32.gmra.mrb[10].mxu1 %vm1027_vm0, %v11166_v31  ;;  %8713 = vmatprep.mubr.msk.f32.mxu0 %vm1027_vm0, %v11191_v36  ;;  %v284_v23 = vld [vmem:[%s16381_s0 + $0x788] sm:$0xff] }
  0x5d   :  { %8761 = vmatprep.mubr.msk.f32.mxu1 %vm1027_vm0, %v11191_v36 }
  0x5f   :  { %8714 = vmatmul.mubr.msk.f32.gmra.mrb[12].mxu0 %vm1027_vm0, %v11191_v36 }
  0x60   :  { %9556 = vmatpush3.bf16.xpose.msk.msra.mxu0 %vm10712_vm1, %v9554_v43  ;;  %8762 = vmatmul.mubr.msk.f32.gmra.mrb[12].mxu1 %vm1027_vm0, %v11191_v36  ;;  %v9677_v43 = vpack.c.bf16 %v220_v39, %v219_v38  ;;  %v180_v38 = vld [vmem:[%s16381_s0 + $0x448] sm:$0xff]  ;;  %v211_v39 = vld [vmem:[%s16381_s0 + $0x540] sm:$0xff] }
  0x61   :  { %9604 = vmatpush3.bf16.xpose.msk.msra.mxu1 %vm10712_vm1, %v9602_v44  ;;  %9559 = vmatprep.subr.msk.bf16.mxu0 %vm10712_vm1, %v9557_v45  ;;  %v171_v44 = vld [vmem:[%s16381_s0 + $0x400] sm:$0xff]  ;;  %v172_v45 = vld [vmem:[%s16381_s0 + $0x408] sm:$0xff] }
  0x62   :  { %9607 = vmatprep.subr.msk.bf16.mxu1 %vm10712_vm1, %v9605_v46  ;;  %8715 = vmatprep.mubr.msk.f32.mxu0 %vm1027_vm0, %v11230_v47  ;;  %v203_v46 = vld [vmem:[%s16381_s0 + $0x500] sm:$0xff]  ;;  %v9632_v52 = vpack.c.bf16 %v172_v45, %v171_v44  ;;  %v230_v44 = vld [vmem:[%s16381_s0 + $0x5d8] sm:$0xff]  ;;  %v9656_v45 = vpack.c.bf16 %v180_v38, %v179_v37  ;;  %v285_v37 = vld [vmem:[%s16381_s0 + $0x790] sm:$0xff] }
  0x63   :  { %8763 = vmatprep.mubr.msk.f32.mxu1 %vm1027_vm0, %v11230_v47  ;;  %8716 = vmatmul.mubr.msk.f32.gmra.mrb[14].mxu0 %vm1027_vm0, %v11230_v47  ;;  %v9680_v55 = vpack.c.bf16 %v204_v49, %v203_v46  ;;  %v286_v38 = vld [vmem:[%s16381_s0 + $0x798] sm:$0xff] }
  0x64   :  { %8764 = vmatmul.mubr.msk.f32.gmra.mrb[14].mxu1 %vm1027_vm0, %v11230_v47  ;;  %8797 = vmatprep.mubr.msk.f32.mxu0 %vm1027_vm0, %v10832_v48 }
  0x65   :  { %8845 = vmatprep.mubr.msk.f32.mxu1 %vm1027_vm0, %v10832_v48 }
  0x68   :  { %9562 = vmatpush3.bf16.xpose.msk.msra.mxu0 %vm10712_vm1, %v9560_v59  ;;  %v174_v59 = vld [vmem:[%s16381_s0 + $0x418] sm:$0xff] }
  0x69   :  { %9610 = vmatpush3.bf16.xpose.msk.msra.mxu1 %vm10712_vm1, %v9608_v61  ;;  %9565 = vmatprep.subr.msk.bf16.mxu0 %vm10712_vm1, %v9563_v62  ;;  %v205_v61 = vld [vmem:[%s16381_s0 + $0x510] sm:$0xff]  ;;  %v206_v62 = vld [vmem:[%s16381_s0 + $0x518] sm:$0xff]  ;;  %v9638_v5 = vpack.c.bf16 %v174_v59, %v173_v58  ;;  %v232_v58 = vld [vmem:[%s16381_s0 + $0x5e8] sm:$0xff] }
  0x6a   :  { %9613 = vmatprep.subr.msk.bf16.mxu1 %vm10712_vm1, %v9611_v63  ;;  %v191_v63 = vld [vmem:[%s16381_s0 + $0x4a0] sm:$0xff]  ;;  %v9686_v6 = vpack.c.bf16 %v206_v62, %v205_v61  ;;  %v9710_v61 = vpack.c.bf16 %v214_v54, %v213_v53 }
  0x6b   :  { %v9641_v7 = vpack.c.bf16 %v192_v0, %v191_v63  ;;  %v183_v0 = vld [vmem:[%s16381_s0 + $0x460] sm:$0xff] }
  0x6c   :  { %v9668_v10 = vpack.c.bf16 %v184_v1, %v183_v0 }
  0x70   :  { %9568 = vmatpush3.bf16.xpose.msk.msra.mxu0 %vm10712_vm1, %v9566_v12  ;;  %v208_v12 = vld [vmem:[%s16381_s0 + $0x528] sm:$0xff] }
  0x71   :  { %9616 = vmatpush3.bf16.xpose.msk.msra.mxu1 %vm10712_vm1, %v9614_v13  ;;  %9571 = vmatprep.subr.msk.bf16.mxu0 %vm10712_vm1, %v9569_v14  ;;  %v193_v13 = vld [vmem:[%s16381_s0 + $0x4b0] sm:$0xff]  ;;  %v194_v14 = vld [vmem:[%s16381_s0 + $0x4b8] sm:$0xff]  ;;  %v9692_v19 = vpack.c.bf16 %v208_v12, %v207_v11 }
  0x72   :  { %9619 = vmatprep.subr.msk.bf16.mxu1 %vm10712_vm1, %v9617_v16  ;;  %v225_v16 = vld [vmem:[%s16381_s0 + $0x5b0] sm:$0xff]  ;;  %v9647_v21 = vpack.c.bf16 %v194_v14, %v193_v13 }
  0x73   :  { %v9695_v22 = vpack.c.bf16 %v226_v17, %v225_v16  ;;  %v185_v14 = vld [vmem:[%s16381_s0 + $0x470] sm:$0xff]  ;;  %v186_v16 = vld [vmem:[%s16381_s0 + $0x478] sm:$0xff] }
  0x74   :  { %v217_v17 = vld [vmem:[%s16381_s0 + $0x570] sm:$0xff]  ;;  %v9674_v24 = vpack.c.bf16 %v186_v16, %v185_v14  ;;  %v244_v14 = vld [vmem:[%s16381_s0 + $0x648] sm:$0xff]  ;;  %v275_v16 = vld [vmem:[%s16381_s0 + $0x740] sm:$0xff] }
  0x78   :  { %9574 = vmatpush3.bf16.xpose.msk.msra.mxu0 %vm10712_vm1, %v9572_v26  ;;  %v210_v26 = vld [vmem:[%s16381_s0 + $0x538] sm:$0xff] }
  0x79   :  { %9622 = vmatpush3.bf16.xpose.msk.msra.mxu1 %vm10712_vm1, %v9620_v27  ;;  %9577 = vmatprep.subr.msk.bf16.mxu0 %vm10712_vm1, %v9575_v28  ;;  %v195_v27 = vld [vmem:[%s16381_s0 + $0x4c0] sm:$0xff]  ;;  %v196_v28 = vld [vmem:[%s16381_s0 + $0x4c8] sm:$0xff]  ;;  %v9698_v33 = vpack.c.bf16 %v210_v26, %v209_v25 }
  0x7a   :  { %9625 = vmatprep.subr.msk.bf16.mxu1 %vm10712_vm1, %v9623_v29  ;;  %v227_v29 = vld [vmem:[%s16381_s0 + $0x5c0] sm:$0xff]  ;;  %v9653_v34 = vpack.c.bf16 %v196_v28, %v195_v27 }
  0x7b   :  { %v9701_v35 = vpack.c.bf16 %v228_v30, %v227_v29  ;;  %v235_v28 = vld [vmem:[%s16381_s0 + $0x600] sm:$0xff]  ;;  %v236_v29 = vld [vmem:[%s16381_s0 + $0x608] sm:$0xff] }
  0x7c   :  { %v267_v30 = vld [vmem:[%s16381_s0 + $0x700] sm:$0xff] }
  0x80   :  { %9580 = vmatpush3.bf16.xpose.msk.msra.mxu0 %vm10712_vm1, %v9578_v40  ;;  %v212_v40 = vld [vmem:[%s16381_s0 + $0x548] sm:$0xff] }
  0x81   :  { %9628 = vmatpush3.bf16.xpose.msk.msra.mxu1 %vm10712_vm1, %v9626_v41  ;;  %9631 = vmatprep.subr.msk.bf16.mxu0 %vm10712_vm1, %v9629_v42  ;;  %v197_v41 = vld [vmem:[%s16381_s0 + $0x4d0] sm:$0xff]  ;;  %v198_v42 = vld [vmem:[%s16381_s0 + $0x4d8] sm:$0xff]  ;;  %v9704_v46 = vpack.c.bf16 %v212_v40, %v211_v39 }
  0x82   :  { %9679 = vmatprep.subr.msk.bf16.mxu1 %vm10712_vm1, %v9677_v43  ;;  %v229_v43 = vld [vmem:[%s16381_s0 + $0x5d0] sm:$0xff]  ;;  %v9659_v49 = vpack.c.bf16 %v198_v42, %v197_v41  ;;  %v9779_v41 = vpack.c.bf16 %v286_v38, %v285_v37 }
  0x83   :  { %v9707_v50 = vpack.c.bf16 %v230_v44, %v229_v43  ;;  %v237_v42 = vld [vmem:[%s16381_s0 + $0x610] sm:$0xff]  ;;  %v238_v43 = vld [vmem:[%s16381_s0 + $0x618] sm:$0xff] }
  0x84   :  { %v270_v44 = vld [vmem:[%s16381_s0 + $0x718] sm:$0xff] }
  0x87   :  { %8798 = vmatmul.mubr.msk.f32.vlgmr.msra.gmra.mrb[16].mxu0 %vm1027_vm0, %v10832_v48 }
  0x88   :  { %8846 = vmatmul.mubr.msk.f32.vlgmr.msra.gmra.mrb[16].mxu1 %vm1027_vm0, %v10832_v48  ;;  %9634 = vmatpush3.bf16.xpose.msk.msra.mxu0 %vm10712_vm1, %v9632_v52  ;;  %v182_v52 = vld [vmem:[%s16381_s0 + $0x458] sm:$0xff] }
  0x89   :  { %9682 = vmatpush3.bf16.xpose.msk.msra.mxu1 %vm10712_vm1, %v9680_v55  ;;  %8799 = vmatprep.mubr.msk.f32.mxu0 %vm1027_vm0, %v11036_v60  ;;  %v199_v55 = vld [vmem:[%s16381_s0 + $0x4e0] sm:$0xff]  ;;  %v9662_v59 = vpack.c.bf16 %v182_v52, %v181_v51  ;;  %v9734_v51 = vpack.c.bf16 %v238_v43, %v237_v42  ;;  %v280_v43 = vld [vmem:[%s16381_s0 + $0x768] sm:$0xff] }
  0x8a   :  { %8847 = vmatprep.mubr.msk.f32.mxu1 %vm1027_vm0, %v11036_v60  ;;  %9637 = vmatprep.subr.msk.bf16.mxu0 %vm10712_vm1, %v9635_v56  ;;  %v200_v56 = vld [vmem:[%s16381_s0 + $0x4e8] sm:$0xff]  ;;  %v279_v42 = vld [vmem:[%s16381_s0 + $0x760] sm:$0xff] }
  0x8b   :  { %8800 = vmatmul.mubr.msk.f32.gmra.mrb[18].mxu0 %vm1027_vm0, %v11036_v60  ;;  %9685 = vmatprep.subr.msk.bf16.mxu1 %vm10712_vm1, %v9683_v57  ;;  %v231_v57 = vld [vmem:[%s16381_s0 + $0x5e0] sm:$0xff]  ;;  %v9665_v62 = vpack.c.bf16 %v200_v56, %v199_v55  ;;  %v240_v55 = vld [vmem:[%s16381_s0 + $0x628] sm:$0xff] }
  0x8c   :  { %8848 = vmatmul.mubr.msk.f32.gmra.mrb[18].mxu1 %vm1027_vm0, %v11036_v60  ;;  %8801 = vmatprep.mubr.msk.f32.mxu0 %vm1027_vm0, %v11063_v3  ;;  %v9713_v63 = vpack.c.bf16 %v232_v58, %v231_v57  ;;  %v271_v56 = vld [vmem:[%s16381_s0 + $0x720] sm:$0xff]  ;;  %v257_v57 = vld [vmem:[%s16381_s0 + $0x6b0] sm:$0xff]  ;;  %v258_v58 = vld [vmem:[%s16381_s0 + $0x6b8] sm:$0xff] }
  0x8d   :  { %8849 = vmatprep.mubr.msk.f32.mxu1 %vm1027_vm0, %v11063_v3  ;;  %v9743_v0 = vpack.c.bf16 %v258_v58, %v257_v57  ;;  %v347_v57 = vld [vmem:[%s16381_s0 + $0x980] sm:$0xff]  ;;  %v348_v58 = vld [vmem:[%s16381_s0 + $0x988] sm:$0xff] }
  0x8f   :  { %8802 = vmatmul.mubr.msk.f32.gmra.mrb[20].mxu0 %vm1027_vm0, %v11063_v3 }
  0x90   :  { %9640 = vmatpush3.bf16.xpose.msk.msra.mxu0 %vm10712_vm1, %v9638_v5  ;;  %8850 = vmatmul.mubr.msk.f32.gmra.mrb[20].mxu1 %vm1027_vm0, %v11063_v3  ;;  %v216_v5 = vld [vmem:[%s16381_s0 + $0x568] sm:$0xff] }
  0x91   :  { %9688 = vmatpush3.bf16.xpose.msk.msra.mxu1 %vm10712_vm1, %v9686_v6  ;;  %9643 = vmatprep.subr.msk.bf16.mxu0 %vm10712_vm1, %v9641_v7  ;;  %v201_v6 = vld [vmem:[%s16381_s0 + $0x4f0] sm:$0xff]  ;;  %v202_v7 = vld [vmem:[%s16381_s0 + $0x4f8] sm:$0xff]  ;;  %v9716_v11 = vpack.c.bf16 %v216_v5, %v215_v2 }
  0x92   :  { %9691 = vmatprep.subr.msk.bf16.mxu1 %vm10712_vm1, %v9689_v8  ;;  %8803 = vmatprep.mubr.msk.f32.mxu0 %vm1027_vm0, %v11102_v15  ;;  %v233_v8 = vld [vmem:[%s16381_s0 + $0x5f0] sm:$0xff]  ;;  %v9671_v12 = vpack.c.bf16 %v202_v7, %v201_v6  ;;  %v242_v2 = vld [vmem:[%s16381_s0 + $0x638] sm:$0xff]  ;;  %v259_v6 = vld [vmem:[%s16381_s0 + $0x6c0] sm:$0xff] }
  0x93   :  { %8851 = vmatprep.mubr.msk.f32.mxu1 %vm1027_vm0, %v11102_v15  ;;  %8804 = vmatmul.mubr.msk.f32.gmra.mrb[22].mxu0 %vm1027_vm0, %v11102_v15  ;;  %v9719_v13 = vpack.c.bf16 %v234_v9, %v233_v8  ;;  %v273_v5 = vld [vmem:[%s16381_s0 + $0x730] sm:$0xff]  ;;  %v260_v7 = vld [vmem:[%s16381_s0 + $0x6c8] sm:$0xff]  ;;  %v291_v8 = vld [vmem:[%s16381_s0 + $0x7c0] sm:$0xff] }
  0x94   :  { %8852 = vmatmul.mubr.msk.f32.gmra.mrb[22].mxu1 %vm1027_vm0, %v11102_v15  ;;  %8805 = vmatprep.mubr.msk.f32.mxu0 %vm1027_vm0, %v11127_v20  ;;  %v292_v9 = vld [vmem:[%s16381_s0 + $0x7c8] sm:$0xff] }
  0x95   :  { %8853 = vmatprep.mubr.msk.f32.mxu1 %vm1027_vm0, %v11127_v20 }
  0x97   :  { %8806 = vmatmul.mubr.msk.f32.gmra.mrb[24].mxu0 %vm1027_vm0, %v11127_v20 }
  0x98   :  { %9646 = vmatpush3.bf16.xpose.msk.msra.mxu0 %vm10712_vm1, %v9644_v18  ;;  %8854 = vmatmul.mubr.msk.f32.gmra.mrb[24].mxu1 %vm1027_vm0, %v11127_v20  ;;  %v218_v18 = vld [vmem:[%s16381_s0 + $0x578] sm:$0xff] }
  0x99   :  { %9694 = vmatpush3.bf16.xpose.msk.msra.mxu1 %vm10712_vm1, %v9692_v19  ;;  %9649 = vmatprep.subr.msk.bf16.mxu0 %vm10712_vm1, %v9647_v21  ;;  %v251_v19 = vld [vmem:[%s16381_s0 + $0x680] sm:$0xff]  ;;  %v252_v21 = vld [vmem:[%s16381_s0 + $0x688] sm:$0xff]  ;;  %v9722_v25 = vpack.c.bf16 %v218_v18, %v217_v17  ;;  %v261_v17 = vld [vmem:[%s16381_s0 + $0x6d0] sm:$0xff] }
  0x9a   :  { %9697 = vmatprep.subr.msk.bf16.mxu1 %vm10712_vm1, %v9695_v22  ;;  %8807 = vmatprep.mubr.msk.f32.mxu0 %vm1027_vm0, %v11166_v31  ;;  %v283_v22 = vld [vmem:[%s16381_s0 + $0x780] sm:$0xff]  ;;  %v9725_v26 = vpack.c.bf16 %v252_v21, %v251_v19  ;;  %v262_v18 = vld [vmem:[%s16381_s0 + $0x6d8] sm:$0xff]  ;;  %v293_v19 = vld [vmem:[%s16381_s0 + $0x7d0] sm:$0xff] }
  0x9b   :  { %8855 = vmatprep.mubr.msk.f32.mxu1 %vm1027_vm0, %v11166_v31  ;;  %8808 = vmatmul.mubr.msk.f32.gmra.mrb[26].mxu0 %vm1027_vm0, %v11166_v31  ;;  %v9773_v27 = vpack.c.bf16 %v284_v23, %v283_v22  ;;  %v294_v21 = vld [vmem:[%s16381_s0 + $0x7d8] sm:$0xff]  ;;  %v11929_v23 = vld [vmem:[%s16383_s2] sm:$0xff] }
  0x9c   :  { %8856 = vmatmul.mubr.msk.f32.gmra.mrb[26].mxu1 %vm1027_vm0, %v11166_v31  ;;  %8809 = vmatprep.mubr.msk.f32.mxu0 %vm1027_vm0, %v11191_v36 }
  0x9d   :  { %8857 = vmatprep.mubr.msk.f32.mxu1 %vm1027_vm0, %v11191_v36 }
  0x9f   :  { %8810 = vmatmul.mubr.msk.f32.gmra.mrb[28].mxu0 %vm1027_vm0, %v11191_v36 }
  0xa0   :  { %9652 = vmatpush3.bf16.xpose.msk.msra.mxu0 %vm10712_vm1, %v9650_v32  ;;  %8858 = vmatmul.mubr.msk.f32.gmra.mrb[28].mxu1 %vm1027_vm0, %v11191_v36  ;;  %v268_v32 = vld [vmem:[%s16381_s0 + $0x708] sm:$0xff] }
  0xa1   :  { %9700 = vmatpush3.bf16.xpose.msk.msra.mxu1 %vm10712_vm1, %v9698_v33  ;;  %9655 = vmatprep.subr.msk.bf16.mxu0 %vm10712_vm1, %v9653_v34  ;;  %v253_v33 = vld [vmem:[%s16381_s0 + $0x690] sm:$0xff]  ;;  %v254_v34 = vld [vmem:[%s16381_s0 + $0x698] sm:$0xff]  ;;  %v9776_v39 = vpack.c.bf16 %v268_v32, %v267_v30  ;;  %v263_v30 = vld [vmem:[%s16381_s0 + $0x6e0] sm:$0xff] }
  0xa2   :  { %9703 = vmatprep.subr.msk.bf16.mxu1 %vm10712_vm1, %v9701_v35  ;;  %8811 = vmatprep.mubr.msk.f32.mxu0 %vm1027_vm0, %v11230_v47  ;;  %v9728_v35 = vpack.c.bf16 %v236_v29, %v235_v28  ;;  %v9731_v40 = vpack.c.bf16 %v254_v34, %v253_v33  ;;  %v277_v28 = vld [vmem:[%s16381_s0 + $0x750] sm:$0xff]  ;;  %v278_v29 = vld [vmem:[%s16381_s0 + $0x758] sm:$0xff]  ;;  %v264_v32 = vld [vmem:[%s16381_s0 + $0x6e8] sm:$0xff] }
  0xa3   :  { %8859 = vmatprep.mubr.msk.f32.mxu1 %vm1027_vm0, %v11230_v47  ;;  %8812 = vmatmul.mubr.msk.f32.gmra.mrb[30].mxu0 %vm1027_vm0, %v11230_v47  ;;  %v295_v33 = vld [vmem:[%s16381_s0 + $0x7e0] sm:$0xff]  ;;  %v296_v34 = vld [vmem:[%s16381_s0 + $0x7e8] sm:$0xff]  ;;  %v9806_v37 = vpack.c.bf16 %v278_v29, %v277_v28  ;;  %v9761_v38 = vpack.c.bf16 %v264_v32, %v263_v30  ;;  %v12131_v28 = vld [vmem:[%s16383_s2 + $0x10] sm:$0xff] }
  0xa4   :  { %8860 = vmatmul.mubr.msk.f32.gmra.mrb[30].mxu1 %vm1027_vm0, %v11230_v47  ;;  %8893 = vmatprep.mubr.msk.f32.mxu0 %vm1027_vm0, %v10832_v48  ;;  %16552 = vst [vmem:[#allocation10_spill] sm:$0xff] %v12131_v28  ;;  %v12138_v32 = vld [vmem:[%s16381_s0 + $0x920] sm:$0xff] }
  0xa5   :  { %8941 = vmatprep.mubr.msk.f32.mxu1 %vm1027_vm0, %v10832_v48 }
  0xa8   :  { %9658 = vmatpush3.bf16.xpose.msk.msra.mxu0 %vm10712_vm1, %v9656_v45  ;;  %v255_v45 = vld [vmem:[%s16381_s0 + $0x6a0] sm:$0xff] }
  0xa9   :  { %9706 = vmatpush3.bf16.xpose.msk.msra.mxu1 %vm10712_vm1, %v9704_v46  ;;  %9661 = vmatprep.subr.msk.bf16.mxu0 %vm10712_vm1, %v9659_v49  ;;  %v256_v46 = vld [vmem:[%s16381_s0 + $0x6a8] sm:$0xff]  ;;  %v287_v49 = vld [vmem:[%s16381_s0 + $0x7a0] sm:$0xff] }
  0xaa   :  { %9709 = vmatprep.subr.msk.bf16.mxu1 %vm10712_vm1, %v9707_v50  ;;  %v288_v50 = vld [vmem:[%s16381_s0 + $0x7a8] sm:$0xff]  ;;  %v9737_v53 = vpack.c.bf16 %v256_v46, %v255_v45  ;;  %v297_v45 = vld [vmem:[%s16381_s0 + $0x7f0] sm:$0xff]  ;;  %v298_v46 = vld [vmem:[%s16381_s0 + $0x7f8] sm:$0xff] }
  0xab   :  { %v9785_v54 = vpack.c.bf16 %v288_v50, %v287_v49  ;;  %v9812_v50 = vpack.c.bf16 %v280_v43, %v279_v42  ;;  %v12169_v42 = vld [vmem:[%s16381_s0 + $0x8b0] sm:$0xff]  ;;  %v12174_v43 = vld [vmem:[%s16381_s0 + $0x8b8] sm:$0xff] }
  0xb0   :  { %9664 = vmatpush3.bf16.xpose.msk.msra.mxu0 %vm10712_vm1, %v9662_v59  ;;  %v289_v59 = vld [vmem:[%s16381_s0 + $0x7b0] sm:$0xff] }
  0xb1   :  { %9712 = vmatpush3.bf16.xpose.msk.msra.mxu1 %vm10712_vm1, %v9710_v61  ;;  %9667 = vmatprep.subr.msk.bf16.mxu0 %vm10712_vm1, %v9665_v62  ;;  %v290_v61 = vld [vmem:[%s16381_s0 + $0x7b8] sm:$0xff] }
  0xb2   :  { %9715 = vmatprep.subr.msk.bf16.mxu1 %vm10712_vm1, %v9713_v63  ;;  %v9791_v1 = vpack.c.bf16 %v290_v61, %v289_v59 }
  0xb8   :  { %9670 = vmatpush3.bf16.xpose.msk.msra.mxu0 %vm10712_vm1, %v9668_v10 }
  0xb9   :  { %9718 = vmatpush3.bf16.xpose.msk.msra.mxu1 %vm10712_vm1, %v9716_v11  ;;  %9673 = vmatprep.subr.msk.bf16.mxu0 %vm10712_vm1, %v9671_v12  ;;  %v9749_v12 = vpack.c.bf16 %v260_v7, %v259_v6  ;;  %v349_v7 = vld [vmem:[%s16381_s0 + $0x990] sm:$0xff] }
  0xba   :  { %9721 = vmatprep.subr.msk.bf16.mxu1 %vm10712_vm1, %v9719_v13  ;;  %v9797_v13 = vpack.c.bf16 %v292_v9, %v291_v8  ;;  %v350_v8 = vld [vmem:[%s16381_s0 + $0x998] sm:$0xff] }
  0xc0   :  { %9676 = vmatpush3.bf16.xpose.msk.msra.mxu0 %vm10712_vm1, %v9674_v24 }
  0xc1   :  { %9724 = vmatpush3.bf16.xpose.msk.msra.mxu1 %vm10712_vm1, %v9722_v25  ;;  %9727 = vmatprep.subr.msk.bf16.mxu0 %vm10712_vm1, %v9725_v26  ;;  %v9755_v25 = vpack.c.bf16 %v262_v18, %v261_v17  ;;  %v9803_v26 = vpack.c.bf16 %v294_v21, %v293_v19  ;;  %v334_v18 = vld [vmem:[%s16381_s0 + $0x918] sm:$0xff]  ;;  %v319_v19 = vld [vmem:[%s16381_s0 + $0x8a0] sm:$0xff]  ;;  %v320_v21 = vld [vmem:[%s16381_s0 + $0x8a8] sm:$0xff] }
  0xc2   :  { %9775 = vmatprep.subr.msk.bf16.mxu1 %vm10712_vm1, %v9773_v27  ;;  %v246_v27 = vld [vmem:[%s16381_s0 + $0x658] sm:$0xff]  ;;  %v9833_v30 = vpack.c.bf16 %v320_v21, %v319_v19 }
  0xc7   :  { %8894 = vmatmul.mubr.msk.f32.vlgmr.msra.gmra.mrb[32].mxu0 %vm1027_vm0, %v10832_v48 }
  0xc8   :  { %8942 = vmatmul.mubr.msk.f32.vlgmr.msra.gmra.mrb[32].mxu1 %vm1027_vm0, %v10832_v48  ;;  %9730 = vmatpush3.bf16.xpose.msk.msra.mxu0 %vm10712_vm1, %v9728_v35  ;;  %v269_v48 = vld [vmem:[%s16381_s0 + $0x710] sm:$0xff] }
  0xc9   :  { %9778 = vmatpush3.bf16.xpose.msk.msra.mxu1 %vm10712_vm1, %v9776_v39  ;;  %8895 = vmatprep.mubr.msk.f32.mxu0 %vm1027_vm0, %v11036_v60  ;;  %v9782_v52 = vpack.c.bf16 %v270_v44, %v269_v48  ;;  %v9809_v39 = vpack.c.bf16 %v296_v34, %v295_v33  ;;  %v265_v48 = vld [vmem:[%s16381_s0 + $0x6f0] sm:$0xff]  ;;  %v266_v44 = vld [vmem:[%s16381_s0 + $0x6f8] sm:$0xff]  ;;  %v12143_v33 = vld [vmem:[%s16381_s0 + $0x928] sm:$0xff] }
  0xca   :  { %8943 = vmatprep.mubr.msk.f32.mxu1 %vm1027_vm0, %v11036_v60  ;;  %9733 = vmatprep.subr.msk.bf16.mxu0 %vm10712_vm1, %v9731_v40  ;;  %v247_v40 = vld [vmem:[%s16381_s0 + $0x660] sm:$0xff] }
  0xcb   :  { %8896 = vmatmul.mubr.msk.f32.gmra.mrb[34].mxu0 %vm1027_vm0, %v11036_v60  ;;  %9781 = vmatprep.subr.msk.bf16.mxu1 %vm10712_vm1, %v9779_v41  ;;  %v248_v41 = vld [vmem:[%s16381_s0 + $0x668] sm:$0xff]  ;;  %v12148_v34 = vld [vmem:[%s16382_s1] sm:$0xff] }
  0xcc   :  { %8944 = vmatmul.mubr.msk.f32.gmra.mrb[34].mxu1 %vm1027_vm0, %v11036_v60  ;;  %8897 = vmatprep.mubr.msk.f32.mxu0 %vm1027_vm0, %v11063_v3  ;;  %v239_v60 = vld [vmem:[%s16381_s0 + $0x620] sm:$0xff]  ;;  %v9764_v49 = vpack.c.bf16 %v248_v41, %v247_v40  ;;  %16553 = vst [vmem:[#allocation11_spill] sm:$0xff] %v12148_v34 }
  0xcd   :  { %8945 = vmatprep.mubr.msk.f32.mxu1 %vm1027_vm0, %v11063_v3  ;;  %v9740_v62 = vpack.c.bf16 %v240_v55, %v239_v60  ;;  %v281_v60 = vld [vmem:[%s16381_s0 + $0x770] sm:$0xff]  ;;  %v282_v55 = vld [vmem:[%s16381_s0 + $0x778] sm:$0xff] }
  0xce   :  { %v9818_v61 = vpack.c.bf16 %v282_v55, %v281_v60  ;;  %v12235_v55 = vld [vmem:[%s16381_s0 + $0x840] sm:$0xff] }
  0xcf   :  { %8898 = vmatmul.mubr.msk.f32.gmra.mrb[36].mxu0 %vm1027_vm0, %v11063_v3 }
  0xd0   :  { %9736 = vmatpush3.bf16.xpose.msk.msra.mxu0 %vm10712_vm1, %v9734_v51  ;;  %8946 = vmatmul.mubr.msk.f32.gmra.mrb[36].mxu1 %vm1027_vm0, %v11063_v3  ;;  %v272_v3 = vld [vmem:[%s16381_s0 + $0x728] sm:$0xff]  ;;  %v9767_v51 = vpack.c.bf16 %v266_v44, %v265_v48  ;;  %v12179_v48 = vld [vmem:[%s16381_s0 + $0x9b0] sm:$0xff]  ;;  %v12184_v44 = vld [vmem:[%s16381_s0 + $0x9b8] sm:$0xff] }
  0xd1   :  { %9784 = vmatpush3.bf16.xpose.msk.msra.mxu1 %vm10712_vm1, %v9782_v52  ;;  %9739 = vmatprep.subr.msk.bf16.mxu0 %vm10712_vm1, %v9737_v53  ;;  %v9788_v63 = vpack.c.bf16 %v272_v3, %v271_v56  ;;  %v9815_v52 = vpack.c.bf16 %v298_v46, %v297_v45  ;;  %v249_v53 = vld [vmem:[%s16381_s0 + $0x670] sm:$0xff]  ;;  %v315_v56 = vld [vmem:[%s16381_s0 + $0x880] sm:$0xff]  ;;  %v316_v3 = vld [vmem:[%s16381_s0 + $0x888] sm:$0xff] }
  0xd2   :  { %9787 = vmatprep.subr.msk.bf16.mxu1 %vm10712_vm1, %v9785_v54  ;;  %8899 = vmatprep.mubr.msk.f32.mxu0 %vm1027_vm0, %v11102_v15  ;;  %v250_v54 = vld [vmem:[%s16381_s0 + $0x678] sm:$0xff]  ;;  %v12189_v45 = vld [vmem:[%s16381_s0 + $0x830] sm:$0xff] }
  0xd3   :  { %8947 = vmatprep.mubr.msk.f32.mxu1 %vm1027_vm0, %v11102_v15  ;;  %8900 = vmatmul.mubr.msk.f32.gmra.mrb[38].mxu0 %vm1027_vm0, %v11102_v15  ;;  %v9770_v59 = vpack.c.bf16 %v250_v54, %v249_v53  ;;  %v12194_v46 = vld [vmem:[%s16381_s0 + $0x838] sm:$0xff]  ;;  %v12219_v53 = vld [vmem:[%s16381_s0 + $0x9c0] sm:$0xff]  ;;  %v12224_v54 = vld [vmem:[%s16381_s0 + $0x9c8] sm:$0xff] }
  0xd4   :  { %8948 = vmatmul.mubr.msk.f32.gmra.mrb[38].mxu1 %vm1027_vm0, %v11102_v15  ;;  %8901 = vmatprep.mubr.msk.f32.mxu0 %vm1027_vm0, %v11127_v20  ;;  %v241_v15 = vld [vmem:[%s16381_s0 + $0x630] sm:$0xff] }
  0xd5   :  { %8949 = vmatprep.mubr.msk.f32.mxu1 %vm1027_vm0, %v11127_v20  ;;  %v9746_v10 = vpack.c.bf16 %v242_v2, %v241_v15  ;;  %v331_v15 = vld [vmem:[%s16381_s0 + $0x900] sm:$0xff]  ;;  %v332_v2 = vld [vmem:[%s16381_s0 + $0x908] sm:$0xff] }
  0xd6   :  { %v9872_v9 = vpack.c.bf16 %v332_v2, %v331_v15  ;;  %v12289_v15 = vld [vmem:[%s16381_s0 + $0x850] sm:$0xff]  ;;  %v12294_v2 = vld [vmem:[%s16381_s0 + $0x858] sm:$0xff] }
  0xd7   :  { %8902 = vmatmul.mubr.msk.f32.gmra.mrb[40].mxu0 %vm1027_vm0, %v11127_v20 }
  0xd8   :  { %9742 = vmatpush3.bf16.xpose.msk.msra.mxu0 %vm10712_vm1, %v9740_v62  ;;  %8950 = vmatmul.mubr.msk.f32.gmra.mrb[40].mxu1 %vm1027_vm0, %v11127_v20  ;;  %v274_v20 = vld [vmem:[%s16381_s0 + $0x738] sm:$0xff]  ;;  %v9821_v62 = vpack.c.bf16 %v316_v3, %v315_v56  ;;  %v12240_v56 = vld [vmem:[%s16381_s0 + $0x848] sm:$0xff]  ;;  %v12245_v3 = vld [vmem:[%s16381_s0 + $0x940] sm:$0xff] }
  0xd9   :  { %9790 = vmatpush3.bf16.xpose.msk.msra.mxu1 %vm10712_vm1, %v9788_v63  ;;  %9745 = vmatprep.subr.msk.bf16.mxu0 %vm10712_vm1, %v9743_v0  ;;  %v9794_v11 = vpack.c.bf16 %v274_v20, %v273_v5  ;;  %v9869_v63 = vpack.c.bf16 %v348_v58, %v347_v57  ;;  %v299_v0 = vld [vmem:[%s16381_s0 + $0x800] sm:$0xff]  ;;  %v317_v5 = vld [vmem:[%s16381_s0 + $0x890] sm:$0xff]  ;;  %v318_v20 = vld [vmem:[%s16381_s0 + $0x898] sm:$0xff] }
  0xda   :  { %9793 = vmatprep.subr.msk.bf16.mxu1 %vm10712_vm1, %v9791_v1  ;;  %8903 = vmatprep.mubr.msk.f32.mxu0 %vm1027_vm0, %v11166_v31  ;;  %v300_v1 = vld [vmem:[%s16381_s0 + $0x808] sm:$0xff]  ;;  %v12257_v58 = vld [vmem:[%s16381_s0 + $0x8d0] sm:$0xff] }
  0xdb   :  { %8951 = vmatprep.mubr.msk.f32.mxu1 %vm1027_vm0, %v11166_v31  ;;  %8904 = vmatmul.mubr.msk.f32.gmra.mrb[42].mxu0 %vm1027_vm0, %v11166_v31  ;;  %v9824_v6 = vpack.c.bf16 %v300_v1, %v299_v0  ;;  %v12250_v57 = vld [vmem:[%s16381_s0 + $0x948] sm:$0xff]  ;;  %v12284_v1 = vld [vmem:[%s16381_s0 + $0x9d8] sm:$0xff] }
  0xdc   :  { %8952 = vmatmul.mubr.msk.f32.gmra.mrb[42].mxu1 %vm1027_vm0, %v11166_v31  ;;  %8905 = vmatprep.mubr.msk.f32.mxu0 %vm1027_vm0, %v11191_v36  ;;  %v243_v31 = vld [vmem:[%s16381_s0 + $0x640] sm:$0xff] }
  0xdd   :  { %8953 = vmatprep.mubr.msk.f32.mxu1 %vm1027_vm0, %v11191_v36  ;;  %v9752_v22 = vpack.c.bf16 %v244_v14, %v243_v31  ;;  %v12076_v31 = vld [vmem:[%s16383_s2 + $0x8] sm:$0xff]  ;;  %v301_v14 = vld [vmem:[%s16381_s0 + $0x810] sm:$0xff] }
  0xde   :  { %16549 = vst [vmem:[#allocation7_spill] sm:$0xff] %v12076_v31 }
  0xdf   :  { %8906 = vmatmul.mubr.msk.f32.gmra.mrb[44].mxu0 %vm1027_vm0, %v11191_v36 }
  0xe0   :  { %9748 = vmatpush3.bf16.xpose.msk.msra.mxu0 %vm10712_vm1, %v9746_v10  ;;  %8954 = vmatmul.mubr.msk.f32.gmra.mrb[44].mxu1 %vm1027_vm0, %v11191_v36  ;;  %v276_v36 = vld [vmem:[%s16381_s0 + $0x748] sm:$0xff]  ;;  %v611_v10 = vlaneseq }
  0xe1   :  { %9796 = vmatpush3.bf16.xpose.msk.msra.mxu1 %vm10712_vm1, %v9794_v11  ;;  %9751 = vmatprep.subr.msk.bf16.mxu0 %vm10712_vm1, %v9749_v12  ;;  %v9800_v24 = vpack.c.bf16 %v276_v36, %v275_v16  ;;  %v9827_v11 = vpack.c.bf16 %v318_v20, %v317_v5  ;;  %v9875_v12 = vpack.c.bf16 %v350_v8, %v349_v7  ;;  %v302_v16 = vld [vmem:[%s16381_s0 + $0x818] sm:$0xff]  ;;  %v333_v36 = vld [vmem:[%s16381_s0 + $0x910] sm:$0xff] }
  0xe2   :  { %9799 = vmatprep.subr.msk.bf16.mxu1 %vm10712_vm1, %v9797_v13  ;;  %8907 = vmatprep.mubr.msk.f32.mxu0 %vm1027_vm0, %v11230_v47  ;;  %v12069_v13 = vpop.permute.xlu0 %569  ;;  %v12089_v17 = vshrl.u32 %v611_v10, 7  ;;  %v9878_v29 = vpack.c.bf16 %v334_v18, %v333_v36  ;;  %v12313_v7 = vld [vmem:[%s16383_s2 + $0x18] sm:$0xff]  ;;  %v12320_v8 = vld [vmem:[%s16381_s0 + $0x950] sm:$0xff]  ;;  %v12330_v10 = vld [vmem:[%s16381_s0 + $0x8e0] sm:$0xff] }
  0xe3   :  { %8955 = vmatprep.mubr.msk.f32.mxu1 %vm1027_vm0, %v11230_v47  ;;  %8908 = vmatmul.mubr.msk.f32.gmra.mrb[46].mxu0 %vm1027_vm0, %v11230_v47  ;;  %16548 = vst [vmem:[#allocation6_spill] sm:$0xff] %v12069_v13  ;;  %16560 = vst [vmem:[#allocation18_spill] sm:$0xff] %v12313_v7  ;;  %v12350_v36 = vld [vmem:[%s16381_s0 + $0x9e0] sm:$0xff]  ;;  %v12355_v18 = vld [vmem:[%s16381_s0 + $0x9e8] sm:$0xff] }
  0xe4   :  { %8956 = vmatmul.mubr.msk.f32.gmra.mrb[46].mxu1 %vm1027_vm0, %v11230_v47  ;;  %8989 = vmatprep.mubr.msk.f32.mxu0 %vm1027_vm0, %v11929_v23  ;;  %v245_v47 = vld [vmem:[%s16381_s0 + $0x650] sm:$0xff]  ;;  %16550 = vst [vmem:[#allocation8_spill] sm:$0xff] %v12089_v17  ;;  %v12161_v40 = vsub.s32 1, %v12089_v17  ;;  %v12164_v41 = vsub.s32 3, %v12089_v17  ;;  %16561 = vst [vmem:[#allocation19_spill] sm:$0xff] %v12350_v36 }
  0xe5   :  { %9037 = vmatprep.mubr.msk.f32.mxu1 %vm1027_vm0, %v11929_v23  ;;  %v9758_v35 = vpack.c.bf16 %v246_v27, %v245_v47  ;;  %v12121_v47 = vld [vmem:[%s16381_s0 + $0x820] sm:$0xff]  ;;  %v12126_v27 = vld [vmem:[%s16381_s0 + $0x828] sm:$0xff] }
  0xe6   :  { %16557 = vst [vmem:[#allocation15_spill] sm:$0xff] %v12161_v40  ;;  %16558 = vst [vmem:[#allocation16_spill] sm:$0xff] %v12164_v41  ;;  %v12304_v20 = vrot.slane %v12148_v34, %v12161_v40 }
  0xe8   :  { %9754 = vmatpush3.bf16.xpose.msk.msra.mxu0 %vm10712_vm1, %v9752_v22  ;;  %v12104_v22 = vpop.permute.xlu1 %579  ;;  %v772_v21 = vmul.f32 %v12304_v20, %v12069_v13 }
  0xe9   :  { %9802 = vmatpush3.bf16.xpose.msk.msra.mxu1 %vm10712_vm1, %v9800_v24  ;;  %9757 = vmatprep.subr.msk.bf16.mxu0 %vm10712_vm1, %v9755_v25  ;;  %16551 = vst [vmem:[#allocation9_spill] sm:$0xff] %v12104_v22  ;;  %v351_v24 = vld [vmem:[%s16381_s0 + $0x9a0] sm:$0xff]  ;;  %v352_v25 = vld [vmem:[%s16381_s0 + $0x9a8] sm:$0xff] }
  0xea   :  { %9805 = vmatprep.subr.msk.bf16.mxu1 %vm10712_vm1, %v9803_v26  ;;  %v9830_v26 = vpack.c.bf16 %v302_v16, %v301_v14  ;;  %v12345_v16 = vld [vmem:[%s16381_s0 + $0x8e8] sm:$0xff]  ;;  %v12447_v14 = vld [vmem:[%s16381_s0 + $0x9f0] sm:$0xff] }
  0xeb   :  { %16570 = vst [vmem:[#allocation28_spill] sm:$0xff] %v12447_v14 }
  0xec   :  { %v12230_v60 = vpop.permute.xlu1 %584 }
  0xed   :  { %16559 = vst [vmem:[#allocation17_spill] sm:$0xff] %v12230_v60 }
  0xf0   :  { %9760 = vmatpush3.bf16.xpose.msk.msra.mxu0 %vm10712_vm1, %v9758_v35  ;;  %v12151_v35 = vsub.s32 0, %v12089_v17 }
  0xf1   :  { %9808 = vmatpush3.bf16.xpose.msk.msra.mxu1 %vm10712_vm1, %v9806_v37  ;;  %9763 = vmatprep.subr.msk.bf16.mxu0 %vm10712_vm1, %v9761_v38  ;;  %v9881_v37 = vpack.c.bf16 %v352_v25, %v351_v24  ;;  %v12155_v38 = vpop.permute.xlu0 %574 }
  0xf2   :  { %9811 = vmatprep.subr.msk.bf16.mxu1 %vm10712_vm1, %v9809_v39  ;;  %16554 = vst [vmem:[#allocation12_spill] sm:$0xff] %v12151_v35  ;;  %16555 = vst [vmem:[#allocation13_spill] sm:$0xff] %v12155_v38  ;;  %v12158_v39 = vsub.s32 2, %v12089_v17  ;;  %v12279_v0 = vrot.slane %v12148_v34, %v12151_v35 }
  0xf4   :  { %16556 = vst [vmem:[#allocation14_spill] sm:$0xff] %v12158_v39  ;;  %v12300_v5 = vrot.slane %v12148_v34, %v12158_v39  ;;  %v771_v25 = vmul.f32 %v12279_v0, %v12069_v13 }
  0xf5   :  { %v12357_v19 = vpop.permute.xlu0 %4406 }
  0xf6   :  { %16562 = vst [vmem:[#allocation20_spill] sm:$0xff] %v12357_v19  ;;  %v773_v24 = vmul.f32 %v12300_v5, %v12069_v13  ;;  %v805_v39 = vmul.f32 %v12300_v5, %v12155_v38 }
  0xf8   :  { %9766 = vmatpush3.bf16.xpose.msk.msra.mxu0 %vm10712_vm1, %v9764_v49  ;;  %v12199_v49 = vld [vmem:[%s16381_s0 + $0x930] sm:$0xff] }
  0xf9   :  { %9814 = vmatpush3.bf16.xpose.msk.msra.mxu1 %vm10712_vm1, %v9812_v50  ;;  %9769 = vmatprep.subr.msk.bf16.mxu0 %vm10712_vm1, %v9767_v51  ;;  %v12204_v50 = vld [vmem:[%s16381_s0 + $0x938] sm:$0xff]  ;;  %v12209_v51 = vld [vmem:[%s16381_s0 + $0x8c0] sm:$0xff] }
  0xfa   :  { %9817 = vmatprep.subr.msk.bf16.mxu1 %vm10712_vm1, %v9815_v52  ;;  %v12214_v52 = vld [vmem:[%s16381_s0 + $0x8c8] sm:$0xff] }
 0x100   :  { %9772 = vmatpush3.bf16.xpose.msk.msra.mxu0 %vm10712_vm1, %v9770_v59  ;;  %v12262_v59 = vld [vmem:[%s16381_s0 + $0x8d8] sm:$0xff] }
 0x101   :  { %9820 = vmatpush3.bf16.xpose.msk.msra.mxu1 %vm10712_vm1, %v9818_v61  ;;  %9823 = vmatprep.subr.msk.bf16.mxu0 %vm10712_vm1, %v9821_v62  ;;  %v12267_v61 = vld [vmem:[%s16381_s0 + $0x9d0] sm:$0xff]  ;;  %v9836_v62 = vpack.c.bf16 %v12126_v27, %v12121_v47  ;;  %v12377_v47 = vld [vmem:[%s16381_s0 + $0x860] sm:$0xff]  ;;  %v12382_v27 = vld [vmem:[%s16381_s0 + $0x868] sm:$0xff] }
 0x102   :  { %9871 = vmatprep.subr.msk.bf16.mxu1 %vm10712_vm1, %v9869_v63  ;;  %v9884_v63 = vpack.c.bf16 %v12143_v33, %v12138_v32  ;;  %16564 = vst [vmem:[#allocation22_spill] sm:$0xff] %v12377_v47  ;;  %16565 = vst [vmem:[#allocation23_spill] sm:$0xff] %v12382_v27  ;;  %v12454_v33 = vpop.permute.xlu0 %589  ;;  %v803_v32 = vmul.f32 %v12279_v0, %v12155_v38 }
 0x103   :  { %16572 = vst [vmem:[#allocation30_spill] sm:$0xff] %v12454_v33 }
 0x107   :  { %8990 = vmatmul.mubr.msk.f32.vlgmr.msra.gmra.mrb[48].mxu0 %vm1027_vm0, %v11929_v23 }
 0x108   :  { %9038 = vmatmul.mubr.msk.f32.vlgmr.msra.gmra.mrb[48].mxu1 %vm1027_vm0, %v11929_v23  ;;  %9826 = vmatpush3.bf16.xpose.msk.msra.mxu0 %vm10712_vm1, %v9824_v6  ;;  %v12308_v6 = vrot.slane %v12148_v34, %v12164_v41  ;;  %v12468_v41 = vmul.f32 %v12300_v5, %v12104_v22 }
 0x109   :  { %9874 = vmatpush3.bf16.xpose.msk.msra.mxu1 %vm10712_vm1, %v9872_v9  ;;  %8991 = vmatprep.mubr.msk.f32.mxu0 %vm1027_vm0, %v12076_v31  ;;  %v12325_v9 = vld [vmem:[%s16381_s0 + $0x958] sm:$0xff] }
 0x10a   :  { %9039 = vmatprep.mubr.msk.f32.mxu1 %vm1027_vm0, %v12076_v31  ;;  %9829 = vmatprep.subr.msk.bf16.mxu0 %vm10712_vm1, %v9827_v11  ;;  %v9839_v11 = vpack.c.bf16 %v12174_v43, %v12169_v42  ;;  %v12402_v42 = vld [vmem:[%s16381_s0 + $0x968] sm:$0xff]  ;;  %v12407_v43 = vld [vmem:[%s16381_s0 + $0x8f0] sm:$0xff]  ;;  %v806_v35 = vmul.f32 %v12308_v6, %v12155_v38 }
 0x10b   :  { %8992 = vmatmul.mubr.msk.f32.gmra.mrb[50].mxu0 %vm1027_vm0, %v12076_v31  ;;  %9877 = vmatprep.subr.msk.bf16.mxu1 %vm10712_vm1, %v9875_v12  ;;  %v9887_v12 = vpack.c.bf16 %v12184_v44, %v12179_v48  ;;  %16567 = vst [vmem:[#allocation25_spill] sm:$0xff] %v12402_v42  ;;  %16568 = vst [vmem:[#allocation26_spill] sm:$0xff] %v12407_v43  ;;  %v12412_v48 = vld [vmem:[%s16381_s0 + $0x8f8] sm:$0xff]  ;;  %v12414_v44 = vpop.permute.xlu1 %4411 }
 0x10c   :  { %9040 = vmatmul.mubr.msk.f32.gmra.mrb[50].mxu1 %vm1027_vm0, %v12076_v31  ;;  %8993 = vmatprep.mubr.msk.f32.mxu0 %vm1027_vm0, %v12131_v28  ;;  %16569 = vst [vmem:[#allocation27_spill] sm:$0xff] %v12412_v48  ;;  %v12522_v31 = vmul.f32 %v12308_v6, %v12230_v60 }
 0x10d   :  { %9041 = vmatprep.mubr.msk.f32.mxu1 %vm1027_vm0, %v12131_v28 }
 0x10f   :  { %8994 = vmatmul.mubr.msk.f32.gmra.mrb[52].mxu0 %vm1027_vm0, %v12131_v28 }
 0x110   :  { %9832 = vmatpush3.bf16.xpose.msk.msra.mxu0 %vm10712_vm1, %v9830_v26  ;;  %9042 = vmatmul.mubr.msk.f32.gmra.mrb[52].mxu1 %vm1027_vm0, %v12131_v28  ;;  %v12370_v26 = vld [vmem:[%s16383_s2 + $0x20] sm:$0xff] }
 0x111   :  { %9880 = vmatpush3.bf16.xpose.msk.msra.mxu1 %vm10712_vm1, %v9878_v29  ;;  %9835 = vmatprep.subr.msk.bf16.mxu0 %vm10712_vm1, %v9833_v30  ;;  %16563 = vst [vmem:[#allocation21_spill] sm:$0xff] %v12370_v26  ;;  %v12387_v29 = vld [vmem:[%s16381_s0 + $0x960] sm:$0xff]  ;;  %v774_v30 = vmul.f32 %v12308_v6, %v12069_v13 }
 0x112   :  { %9883 = vmatprep.subr.msk.bf16.mxu1 %vm10712_vm1, %v9881_v37  ;;  %8995 = vmatprep.mubr.msk.f32.mxu0 %vm1027_vm0, %v12313_v7  ;;  %16566 = vst [vmem:[#allocation24_spill] sm:$0xff] %v12387_v29  ;;  %v12464_v37 = vmul.f32 %v12279_v0, %v12104_v22 }
 0x113   :  { %9043 = vmatprep.mubr.msk.f32.mxu1 %vm1027_vm0, %v12313_v7  ;;  %8996 = vmatmul.mubr.msk.f32.gmra.mrb[54].mxu0 %vm1027_vm0, %v12313_v7 }
 0x114   :  { %9044 = vmatmul.mubr.msk.f32.gmra.mrb[54].mxu1 %vm1027_vm0, %v12313_v7  ;;  %8997 = vmatprep.mubr.msk.f32.mxu0 %vm1027_vm0, %v12370_v26 }
 0x115   :  { %9045 = vmatprep.mubr.msk.f32.mxu1 %vm1027_vm0, %v12370_v26 }
 0x117   :  { %8998 = vmatmul.mubr.msk.f32.gmra.mrb[56].mxu0 %vm1027_vm0, %v12370_v26 }
 0x118   :  { %9838 = vmatpush3.bf16.xpose.msk.msra.mxu0 %vm10712_vm1, %v9836_v62  ;;  %9046 = vmatmul.mubr.msk.f32.gmra.mrb[56].mxu1 %vm1027_vm0, %v12370_v26  ;;  %v12452_v62 = vld [vmem:[%s16381_s0 + $0x9f8] sm:$0xff]  ;;  %v12485_v26 = vpop.permute.xlu1 %594 }
 0x119   :  { %16571 = vst [vmem:[#allocation29_spill] sm:$0xff] %v12452_v62  ;;  %9886 = vmatpush3.bf16.xpose.msk.msra.mxu1 %vm10712_vm1, %v9884_v63  ;;  %9841 = vmatprep.subr.msk.bf16.mxu0 %vm10712_vm1, %v9839_v11  ;;  %v804_v63 = vmul.f32 %v12304_v20, %v12155_v38  ;;  %v12481_v11 = vld [vmem:[%s16383_s2 + $0x28] sm:$0xff]  ;;  %16574 = vst [vmem:[#allocation32_spill] sm:$0xff] %v12485_v26  ;;  %v836_v38 = vmul.f32 %v12304_v20, %v12104_v22  ;;  %v12524_v62 = vpop.permute.xlu0 %4416 }
 0x11a   :  { %v2654_v40 = vpop.f32.mrb[0].mxu0  ;;  %9889 = vmatprep.subr.msk.bf16.mxu1 %vm10712_vm1, %v9887_v12  ;;  %16573 = vst [vmem:[#allocation31_spill] sm:$0xff] %v12481_v11  ;;  %8999 = vmatprep.mubr.msk.f32.mxu0 %vm1027_vm0, %v12481_v11  ;;  %v12508_v12 = vmul.f32 %v12279_v0, %v12230_v60 }
 0x11b   :  { %v2655_v13 = vadd.f32 %v2654_v40, %v771_v25  ;;  %v2767_v7 = vpop.f32.mrb[0].mxu1  ;;  %v2656_v34 = vpop.f32.mrb[1].mxu0  ;;  %9047 = vmatprep.mubr.msk.f32.mxu1 %vm1027_vm0, %v12481_v11  ;;  %9000 = vmatmul.mubr.msk.f32.gmra.mrb[58].mxu0 %vm1027_vm0, %v12481_v11  ;;  %v12500_v40 = vld [vmem:[%s16383_s2 + $0x30] sm:$0xff]  ;;  %v838_v25 = vmul.f32 %v12308_v6, %v12104_v22 }
 0x11c   :  { %v2657_v28 = vadd.f32 %v2656_v34, %v772_v21  ;;  %v2769_v17 = vpop.f32.mrb[1].mxu1  ;;  %9048 = vmatmul.mubr.msk.f32.gmra.mrb[58].mxu1 %vm1027_vm0, %v12481_v11  ;;  %9001 = vmatprep.mubr.msk.f32.mxu0 %vm1027_vm0, %v12500_v40  ;;  %v12514_v21 = vmul.f32 %v12300_v5, %v12230_v60  ;;  %v12518_v11 = vmul.f32 %v12304_v20, %v12230_v60 }
 0x11d   :  { %v2770_v34 = vadd.f32 %v2769_v17, %v774_v30  ;;  %9049 = vmatprep.mubr.msk.f32.mxu1 %vm1027_vm0, %v12500_v40  ;;  %v2768_v22 = vadd.f32 %v2767_v7, %v773_v24  ;;  %v12528_v17 = vmul.f32 %v12279_v0, %v12485_v26  ;;  %v12532_v30 = vmul.f32 %v12300_v5, %v12485_v26 }
 0x11e   :  { %v2660_v14 = vpop.f32.mrb[2].mxu0  ;;  %v4445_v43 = vadd.f32 %v12357_v19, %v2657_v28  ;;  %v12539_v7 = vmul.f32 %v12304_v20, %v12485_v26  ;;  %v12543_v24 = vmul.f32 %v12308_v6, %v12485_v26  ;;  %v4444_v60 = vadd.f32 %v12357_v19, %v2655_v13 }
 0x11f   :  { %v2661_v48 = vadd.f32 %v2660_v14, %v803_v32  ;;  %v2773_v29 = vpop.f32.mrb[2].mxu1  ;;  %v2662_v42 = vpop.f32.mrb[3].mxu0  ;;  %9002 = vmatmul.mubr.msk.f32.gmra.mrb[60].mxu0 %vm1027_vm0, %v12500_v40  ;;  %v16575_v28 = vpack.c.bf16 %v12194_v46, %v12189_v45  ;;  %v12557_v32 = vmul.f32 %v12279_v0, %v12454_v33  ;;  %v16576_v13 = vpack.c.bf16 %v12204_v50, %v12199_v49  ;;  %v12582_v49 = vld [vmem:[%s16383_s2 + $0x38] sm:$0xff] }
 0x120   :  { %v2774_v47 = vadd.f32 %v2773_v29, %v805_v39  ;;  %v2663_v27 = vadd.f32 %v2662_v42, %v804_v63  ;;  %v2775_v36 = vpop.f32.mrb[3].mxu1  ;;  %9050 = vmatmul.mubr.msk.f32.gmra.mrb[60].mxu1 %vm1027_vm0, %v12500_v40  ;;  %v12553_v14 = vpop.permute.xlu1 %4421  ;;  %v16577_v39 = vpack.c.bf16 %v12214_v52, %v12209_v51  ;;  %v12571_v45 = vmul.f32 %v12300_v5, %v12454_v33 }
 0x121   :  { %9844 = vmatpush3.bf16.xpose.msk.msra.mxu0 %vm10712_vm1, %v16575_v28  ;;  %v2776_v26 = vadd.f32 %v2775_v36, %v806_v35  ;;  %9892 = vmatpush3.bf16.xpose.msk.msra.mxu1 %vm10712_vm1, %v16576_v13  ;;  %v4447_v46 = vadd.f32 %v12357_v19, %v2770_v34  ;;  %v16578_v35 = vpack.c.bf16 %v12224_v54, %v12219_v53  ;;  %v4701_v52 = vmax.f32 %v4445_v43, 0.0 }
 0x122   :  { %9847 = vmatprep.subr.msk.bf16.mxu0 %vm10712_vm1, %v16577_v39  ;;  %16579 = vst [vmem:[#allocation33_spill] sm:$0xff] %v12582_v49  ;;  %9003 = vmatprep.mubr.msk.f32.mxu0 %vm1027_vm0, %v12582_v49  ;;  %v2666_v50 = vpop.f32.mrb[4].mxu0  ;;  %v4477_v51 = vadd.f32 %v12414_v44, %v2663_v27  ;;  %v4476_v36 = vadd.f32 %v12414_v44, %v2661_v48  ;;  %v4700_v34 = vmax.f32 %v4444_v60, 0.0  ;;  %v12600_v48 = vpop.permute.xlu0 %599 }
 0x123   :  { %9895 = vmatprep.subr.msk.bf16.mxu1 %vm10712_vm1, %v16578_v35  ;;  %v4446_v29 = vadd.f32 %v12357_v19, %v2768_v22  ;;  %9051 = vmatprep.mubr.msk.f32.mxu1 %vm1027_vm0, %v12582_v49  ;;  %v2667_v53 = vadd.f32 %v2666_v50, %v12464_v37  ;;  %v2779_v54 = vpop.f32.mrb[4].mxu1  ;;  %v2668_v42 = vpop.f32.mrb[5].mxu0  ;;  %v4479_v63 = vadd.f32 %v12414_v44, %v2776_v26  ;;  %v4703_v13 = vmax.f32 %v4447_v46, 0.0 }
 0x124   :  { %9004 = vmatmul.mubr.msk.f32.gmra.mrb[62].mxu0 %vm1027_vm0, %v12582_v49  ;;  %v4478_v27 = vadd.f32 %v12414_v44, %v2774_v47  ;;  %9052 = vmatmul.mubr.msk.f32.gmra.mrb[62].mxu1 %vm1027_vm0, %v12582_v49  ;;  %v2669_v43 = vadd.f32 %v2668_v42, %v836_v38  ;;  %v2781_v22 = vpop.f32.mrb[5].mxu1  ;;  %v4733_v28 = vmax.f32 %v4477_v51, 0.0  ;;  %v4732_v37 = vmax.f32 %v4476_v36, 0.0  ;;  %v12605_v50 = vpop.permute.xlu1 %604 }
 0x125   :  { %9085 = vmatprep.mubr.msk.f32.mxu0 %vm1027_vm0, %v11929_v23  ;;  %v2780_v39 = vadd.f32 %v2779_v54, %v12468_v41  ;;  %v2782_v35 = vadd.f32 %v2781_v22, %v838_v25  ;;  %9133 = vmatprep.mubr.msk.f32.mxu1 %vm1027_vm0, %v11929_v23  ;;  %v4735_v60 = vmax.f32 %v4479_v63, 0.0  ;;  %v4702_v49 = vmax.f32 %v4446_v29, 0.0 }
 0x126   :  { %v4734_v26 = vmax.f32 %v4478_v27, 0.0  ;;  %v2672_v47 = vpop.f32.mrb[6].mxu0  ;;  %v12607_v38 = vpack.c.bf16 %v4733_v28, %v4701_v52  ;;  %v12609_v42 = vpack.c.bf16 %v4732_v37, %v4700_v34  ;;  %v4509_v51 = vadd.f32 %v12524_v62, %v2669_v43 }
 0x127   :  { %v2673_v46 = vadd.f32 %v2672_v47, %v12508_v12  ;;  %v2785_v36 = vpop.f32.mrb[6].mxu1  ;;  %v2674_v41 = vpop.f32.mrb[7].mxu0  ;;  %v900_v25 = vmul.f32 %v12304_v20, %v12454_v33  ;;  %v902_v54 = vmul.f32 %v12308_v6, %v12454_v33  ;;  %v12617_v63 = vpack.c.bf16 %v4735_v60, %v4703_v13 }
 0x128   :  { %16580 = vst [vmem:[#allocation34_spill] sm:$0xff] %v12607_v38  ;;  %16581 = vst [vmem:[#allocation35_spill] sm:$0xff] %v12609_v42  ;;  %v16583_v52 = vpack.c.bf16 %v12240_v56, %v12235_v55  ;;  %v2786_v29 = vadd.f32 %v2785_v36, %v12514_v21  ;;  %v2675_v12 = vadd.f32 %v2674_v41, %v12518_v11  ;;  %v2787_v34 = vpop.f32.mrb[7].mxu1  ;;  %v13109_v42 = vld [vmem:[%s16381_s0 + $0xbe0] sm:$0xff]  ;;  %v13162_v38 = vld [vmem:[%s16381_s0 + $0xaf8] sm:$0xff] }
 0x129   :  { %16582 = vst [vmem:[#allocation36_spill] sm:$0xff] %v12617_v63  ;;  %v12628_v27 = vmul.f32 %v12279_v0, %v12605_v50  ;;  %v12630_v43 = vpack.c.bf16 %v4734_v26, %v4702_v49  ;;  %v16585_v22 = vpack.c.bf16 %v12250_v57, %v12245_v3  ;;  %v16586_v55 = vpack.c.bf16 %v12262_v59, %v12257_v58  ;;  %v12650_v57 = vpop.permute.xlu0 %4426  ;;  %v13114_v63 = vld [vmem:[%s16381_s0 + $0xbe8] sm:$0xff] }
 0x12a   :  { %9850 = vmatpush3.bf16.xpose.msk.msra.mxu0 %vm10712_vm1, %v16583_v52  ;;  %v2788_v56 = vadd.f32 %v2787_v34, %v12522_v31  ;;  %v4511_v11 = vadd.f32 %v12524_v62, %v2782_v35  ;;  %v4508_v21 = vadd.f32 %v12524_v62, %v2667_v53  ;;  %v16587_v49 = vpack.c.bf16 %v12284_v1, %v12267_v61  ;;  %v2678_v3 = vpop.f32.mrb[8].mxu0 }
 0x12b   :  { %16584 = vst [vmem:[#allocation37_spill] sm:$0xff] %v12630_v43  ;;  %9898 = vmatpush3.bf16.xpose.msk.msra.mxu1 %vm10712_vm1, %v16585_v22  ;;  %9853 = vmatprep.subr.msk.bf16.mxu0 %vm10712_vm1, %v16586_v55  ;;  %v4541_v58 = vadd.f32 %v12553_v14, %v2675_v12  ;;  %v4765_v59 = vmax.f32 %v4509_v51, 0.0  ;;  %v4540_v28 = vadd.f32 %v12553_v14, %v2673_v46  ;;  %v2791_v13 = vpop.f32.mrb[8].mxu1  ;;  %v2680_v37 = vpop.f32.mrb[9].mxu0  ;;  %v13104_v43 = vld [vmem:[%s16381_s0 + $0xae8] sm:$0xff]  ;;  %16640 = vst [vmem:[#allocation51_spill] sm:$0xff] %v13162_v38 }
 0x12c   :  { %9901 = vmatprep.subr.msk.bf16.mxu1 %vm10712_vm1, %v16587_v49  ;;  %v4510_v31 = vadd.f32 %v12524_v62, %v2780_v39  ;;  %v963_v53 = vmul.f32 %v12279_v0, %v12600_v48  ;;  %v965_v61 = vmul.f32 %v12300_v5, %v12600_v48  ;;  %v964_v1 = vmul.f32 %v12304_v20, %v12600_v48  ;;  %v2793_v47 = vpop.f32.mrb[9].mxu1  ;;  %v12663_v0 = vpop.permute.xlu1 %4431 }
 0x12d   :  { %v4543_v35 = vadd.f32 %v12553_v14, %v2788_v56  ;;  %v2679_v60 = vadd.f32 %v2678_v3, %v12557_v32  ;;  %v2681_v26 = vadd.f32 %v2680_v37, %v900_v25  ;;  %v4797_v51 = vmax.f32 %v4541_v58, 0.0  ;;  %16588 = vst [vmem:[#allocation38_spill] sm:$0xff] %v12663_v0 }
 0x12e   :  { %v4767_v46 = vmax.f32 %v4511_v11, 0.0  ;;  %v2794_v39 = vadd.f32 %v2793_v47, %v902_v54  ;;  %v4764_v41 = vmax.f32 %v4508_v21, 0.0  ;;  %v4796_v52 = vmax.f32 %v4540_v28, 0.0  ;;  %v2684_v12 = vpop.f32.mrb[10].mxu0 }
 0x12f   :  { %v4799_v36 = vmax.f32 %v4543_v35, 0.0  ;;  %v12665_v34 = vpack.c.bf16 %v4797_v51, %v4765_v59  ;;  %v4542_v22 = vadd.f32 %v12553_v14, %v2786_v29  ;;  %v4766_v55 = vmax.f32 %v4510_v31, 0.0  ;;  %v2797_v25 = vpop.f32.mrb[10].mxu1  ;;  %v2686_v49 = vpop.f32.mrb[11].mxu0 }
 0x130   :  { %v4573_v56 = vadd.f32 %v12650_v57, %v2681_v26  ;;  %v2685_v32 = vadd.f32 %v2684_v12, %v12528_v17  ;;  %v966_v54 = vmul.f32 %v12308_v6, %v12600_v48  ;;  %v12674_v21 = vpack.c.bf16 %v4796_v52, %v4764_v41  ;;  %v2799_v59 = vpop.f32.mrb[11].mxu1 }
 0x131   :  { %16589 = vst [vmem:[#allocation39_spill] sm:$0xff] %v12665_v34  ;;  %v12672_v11 = vpack.c.bf16 %v4799_v36, %v4767_v46  ;;  %v16592_v3 = vpack.c.bf16 %v12294_v2, %v12289_v15  ;;  %v2792_v29 = vadd.f32 %v2791_v13, %v12571_v45  ;;  %v2798_v58 = vadd.f32 %v2797_v25, %v12532_v30  ;;  %v16595_v45 = vld [vmem:[#allocation19_spill] sm:$0xff]  ;;  %v12713_v36 = vpop.permute.xlu0 %4436 }
 0x132   :  { %16591 = vst [vmem:[#allocation41_spill] sm:$0xff] %v12674_v21  ;;  %v2687_v17 = vadd.f32 %v2686_v49, %v12539_v7  ;;  %v4798_v28 = vmax.f32 %v4542_v22, 0.0  ;;  %v16593_v31 = vpack.c.bf16 %v12325_v9, %v12320_v8  ;;  %v16594_v15 = vpack.c.bf16 %v12345_v16, %v12330_v10  ;;  %v2690_v8 = vpop.f32.mrb[12].mxu0  ;;  %16598 = vst [vmem:[#allocation42_spill] sm:$0xff] %v12713_v36 }
 0x133   :  { %16590 = vst [vmem:[#allocation40_spill] sm:$0xff] %v12672_v11  ;;  %9856 = vmatpush3.bf16.xpose.msk.msra.mxu0 %vm10712_vm1, %v16592_v3  ;;  %v2800_v2 = vadd.f32 %v2799_v59, %v12543_v24  ;;  %v4575_v30 = vadd.f32 %v12650_v57, %v2794_v39  ;;  %v4572_v7 = vadd.f32 %v12650_v57, %v2679_v60  ;;  %v4829_v16 = vmax.f32 %v4573_v56, 0.0  ;;  %v2803_v35 = vpop.f32.mrb[12].mxu1  ;;  %v2692_v24 = vpop.f32.mrb[13].mxu0  ;;  %v16602_v59 = vld [vmem:[#allocation23_spill] sm:$0xff] }
 0x134   :  { %9904 = vmatpush3.bf16.xpose.msk.msra.mxu1 %vm10712_vm1, %v16593_v31  ;;  %9859 = vmatprep.subr.msk.bf16.mxu0 %vm10712_vm1, %v16594_v15  ;;  %v16596_v13 = vpack.c.bf16 %v12355_v18, %v16595_v45  ;;  %v12702_v9 = vpack.c.bf16 %v4798_v28, %v4766_v55  ;;  %v4605_v10 = vadd.f32 %v12663_v0, %v2687_v17  ;;  %v2805_v39 = vpop.f32.mrb[13].mxu1  ;;  %v345_v31 = vld [vmem:[%s16381_s0 + $0x970] sm:$0xff] }
 0x135   :  { %v4604_v37 = vadd.f32 %v12663_v0, %v2685_v32  ;;  %v997_v26 = vmul.f32 %v12300_v5, %v12605_v50  ;;  %v996_v60 = vmul.f32 %v12304_v20, %v12605_v50  ;;  %v998_v18 = vmul.f32 %v12308_v6, %v12605_v50 }
 0x136   :  { %9907 = vmatprep.subr.msk.bf16.mxu1 %vm10712_vm1, %v16596_v13  ;;  %16597 = vst [vmem:[#allocation19_spill] sm:$0xff] %v12702_v9  ;;  %v4607_v47 = vadd.f32 %v12663_v0, %v2800_v2  ;;  %v2691_v51 = vadd.f32 %v2690_v8, %v963_v53  ;;  %v2693_v46 = vadd.f32 %v2692_v24, %v964_v1  ;;  %v4861_v41 = vmax.f32 %v4605_v10, 0.0  ;;  %v2696_v32 = vpop.f32.mrb[14].mxu0  ;;  %v313_v53 = vld [vmem:[%s16381_s0 + $0x870] sm:$0xff]  ;;  %v314_v1 = vld [vmem:[%s16381_s0 + $0x878] sm:$0xff]  ;;  %v13083_v9 = vld [vmem:[%s16381_s0 + $0xae0] sm:$0xff] }
 0x137   :  { %v4831_v52 = vmax.f32 %v4575_v30, 0.0  ;;  %v2806_v12 = vadd.f32 %v2805_v39, %v966_v54  ;;  %v4828_v55 = vmax.f32 %v4572_v7, 0.0  ;;  %v4860_v56 = vmax.f32 %v4604_v37, 0.0  ;;  %v2809_v54 = vpop.f32.mrb[14].mxu1  ;;  %v2698_v3 = vpop.f32.mrb[15].mxu0  ;;  %v16606_v8 = vld [vmem:[#allocation25_spill] sm:$0xff] }
 0x138   :  { %v4863_v22 = vmax.f32 %v4607_v47, 0.0  ;;  %v2804_v5 = vadd.f32 %v2803_v35, %v965_v61  ;;  %v12715_v25 = vpack.c.bf16 %v4861_v41, %v4829_v16  ;;  %v4574_v20 = vadd.f32 %v12650_v57, %v2792_v29  ;;  %v2811_v30 = vpop.f32.mrb[15].mxu1  ;;  %v12742_v7 = vpop.permute.xlu1 %4441  ;;  %v16607_v10 = vld [vmem:[#allocation24_spill] sm:$0xff]  ;;  %v16609_v37 = vld [vmem:[#allocation27_spill] sm:$0xff]  ;;  %v16610_v35 = vld [vmem:[#allocation26_spill] sm:$0xff] }
 0x139   :  { %v4606_v6 = vadd.f32 %v12663_v0, %v2798_v58  ;;  %v2697_v49 = vadd.f32 %v2696_v32, %v12628_v27  ;;  %v12728_v17 = vpack.c.bf16 %v4860_v56, %v4828_v55  ;;  %v4637_v29 = vadd.f32 %v12713_v36, %v2693_v46  ;;  %v16603_v58 = vld [vmem:[#allocation22_spill] sm:$0xff]  ;;  %v346_v27 = vld [vmem:[%s16381_s0 + $0x978] sm:$0xff]  ;;  %16605 = vst [vmem:[#allocation23_spill] sm:$0xff] %v12742_v7 }
 0x13a   :  { %16599 = vst [vmem:[#allocation43_spill] sm:$0xff] %v12715_v25  ;;  %v12726_v61 = vpack.c.bf16 %v4863_v22, %v4831_v52  ;;  %v16604_v28 = vpack.c.bf16 %v16602_v59, %v16603_v58  ;;  %v2810_v15 = vadd.f32 %v2809_v54, %v997_v26  ;;  %v2699_v2 = vadd.f32 %v2698_v3, %v996_v60  ;;  %v16612_v46 = vld [vmem:[#allocation29_spill] sm:$0xff]  ;;  %v16613_v39 = vld [vmem:[#allocation28_spill] sm:$0xff]  ;;  %v380_v55 = vld [vmem:[%s16381_s0 + $0xa88] sm:$0xff] }
 0x13b   :  { %16601 = vst [vmem:[#allocation45_spill] sm:$0xff] %v12728_v17  ;;  %v4830_v45 = vmax.f32 %v4574_v20, 0.0  ;;  %v4862_v13 = vmax.f32 %v4606_v6, 0.0  ;;  %v16608_v16 = vpack.c.bf16 %v16606_v8, %v16607_v10  ;;  %v16611_v24 = vpack.c.bf16 %v16609_v37, %v16610_v35  ;;  %v379_v22 = vld [vmem:[%s16381_s0 + $0xa80] sm:$0xff]  ;;  %v412_v56 = vld [vmem:[%s16381_s0 + $0xb88] sm:$0xff]  ;;  %v381_v37 = vld [vmem:[%s16381_s0 + $0xa90] sm:$0xff] }
 0x13c   :  { %16600 = vst [vmem:[#allocation44_spill] sm:$0xff] %v12726_v61  ;;  %9862 = vmatpush3.bf16.xpose.msk.msra.mxu0 %vm10712_vm1, %v16604_v28  ;;  %v2812_v47 = vadd.f32 %v2811_v30, %v998_v18  ;;  %v4639_v26 = vadd.f32 %v12713_v36, %v2806_v12  ;;  %v4636_v60 = vadd.f32 %v12713_v36, %v2691_v51  ;;  %v411_v51 = vld [vmem:[%s16381_s0 + $0xb80] sm:$0xff]  ;;  %v4893_v20 = vmax.f32 %v4637_v29, 0.0  ;;  %v396_v10 = vld [vmem:[%s16381_s0 + $0xb08] sm:$0xff]  ;;  %v382_v35 = vld [vmem:[%s16381_s0 + $0xa98] sm:$0xff] }
 0x13d   :  { %9910 = vmatpush3.bf16.xpose.msk.msra.mxu1 %vm10712_vm1, %v16608_v16  ;;  %9865 = vmatprep.subr.msk.bf16.mxu0 %vm10712_vm1, %v16611_v24  ;;  %v16614_v41 = vpack.c.bf16 %v16612_v46, %v16613_v39  ;;  %v9866_v52 = vpack.c.bf16 %v314_v1, %v313_v53  ;;  %v12767_v18 = vpack.c.bf16 %v4862_v13, %v4830_v45  ;;  %v395_v8 = vld [vmem:[%s16381_s0 + $0xb00] sm:$0xff]  ;;  %v13071_v17 = vld [vmem:[%s16381_s0 + $0xb50] sm:$0xff]  ;;  %v13076_v61 = vld [vmem:[%s16381_s0 + $0xb58] sm:$0xff] }
 0x13e   :  { %v9914_v12 = vpack.c.bf16 %v346_v27, %v345_v31  ;;  %v4669_v32 = vadd.f32 %v12742_v7, %v2699_v2  ;;  %v4671_v6 = vadd.f32 %v12742_v7, %v2812_v47  ;;  %v4895_v53 = vmax.f32 %v4639_v26, 0.0  ;;  %v413_v47 = vld [vmem:[%s16381_s0 + $0xb90] sm:$0xff]  ;;  %v414_v26 = vld [vmem:[%s16381_s0 + $0xb98] sm:$0xff] }
 0x13f   :  { %9913 = vmatprep.subr.msk.bf16.mxu1 %vm10712_vm1, %v16614_v41  ;;  %16615 = vst [vmem:[#allocation22_spill] sm:$0xff] %v12767_v18  ;;  %v4668_v1 = vadd.f32 %v12742_v7, %v2697_v49  ;;  %v4892_v54 = vmax.f32 %v4636_v60, 0.0  ;;  %v4638_v3 = vadd.f32 %v12713_v36, %v2804_v5  ;;  %v9917_v59 = vpack.c.bf16 %v380_v55, %v379_v22  ;;  %v363_v5 = vld [vmem:[%s16381_s0 + $0xa00] sm:$0xff]  ;;  %v16620_v41 = vld [vmem:[#allocation7_spill] sm:$0xff]  ;;  %v366_v22 = vld [vmem:[%s16381_s0 + $0xa18] sm:$0xff] }
 0x140   :  { %v4925_v58 = vmax.f32 %v4669_v32, 0.0  ;;  %v4927_v28 = vmax.f32 %v4671_v6, 0.0  ;;  %v4670_v31 = vadd.f32 %v12742_v7, %v2810_v15  ;;  %v9965_v27 = vpack.c.bf16 %v412_v56, %v411_v51  ;;  %v364_v15 = vld [vmem:[%s16381_s0 + $0xa08] sm:$0xff]  ;;  %v398_v55 = vld [vmem:[%s16381_s0 + $0xb18] sm:$0xff]  ;;  %v415_v56 = vld [vmem:[%s16381_s0 + $0xba0] sm:$0xff] }
 0x141   :  { %v4924_v30 = vmax.f32 %v4668_v1, 0.0  ;;  %v4894_v45 = vmax.f32 %v4638_v3, 0.0  ;;  %v9920_v24 = vpack.c.bf16 %v364_v15, %v363_v5  ;;  %v9968_v60 = vpack.c.bf16 %v396_v10, %v395_v8  ;;  %v384_v51 = vld [vmem:[%s16381_s0 + $0xaa8] sm:$0xff]  ;;  %v16631_v25 = vld [vmem:[#allocation21_spill] sm:$0xff] }
 0x142   :  { %v12780_v13 = vpack.c.bf16 %v4925_v58, %v4893_v20  ;;  %v12782_v2 = vpack.c.bf16 %v4927_v28, %v4895_v53  ;;  %v4926_v29 = vmax.f32 %v4670_v31, 0.0  ;;  %v9923_v46 = vpack.c.bf16 %v382_v35, %v381_v37  ;;  %v416_v32 = vld [vmem:[%s16381_s0 + $0xba8] sm:$0xff]  ;;  %v16621_v20 = vld [vmem:[#allocation8_spill] sm:$0xff] }
 0x143   :  { %v12786_v49 = vpack.c.bf16 %v4924_v30, %v4892_v54  ;;  %v9971_v39 = vpack.c.bf16 %v414_v26, %v413_v47  ;;  %v12863_v6 = vsub.s32 4, %v16621_v20  ;;  %v12866_v53 = vsub.s32 6, %v16621_v20  ;;  %v12888_v30 = vld [vmem:[%s16381_s0 + $0xa28] sm:$0xff]  ;;  %v12923_v35 = vld [vmem:[%s16381_s0 + $0xab0] sm:$0xff]  ;;  %v12944_v26 = vld [vmem:[%s16381_s0 + $0xbb8] sm:$0xff] }
 0x144   :  { %16616 = vst [vmem:[#allocation25_spill] sm:$0xff] %v12780_v13  ;;  %16617 = vst [vmem:[#allocation24_spill] sm:$0xff] %v12782_v2  ;;  %9868 = vmatpush3.bf16.xpose.msk.msra.mxu0 %vm10712_vm1, %v9866_v52  ;;  %v12806_v16 = vpack.c.bf16 %v4926_v29, %v4894_v45  ;;  %v365_v52 = vld [vmem:[%s16381_s0 + $0xa10] sm:$0xff]  ;;  %v12871_v54 = vsub.s32 5, %v16621_v20  ;;  %v12874_v3 = vsub.s32 7, %v16621_v20  ;;  %v9977_v31 = vpack.c.bf16 %v416_v32, %v415_v56  ;;  %v12893_v45 = vld [vmem:[%s16381_s0 + $0xb20] sm:$0xff] }
 0x145   :  { %16618 = vst [vmem:[#allocation27_spill] sm:$0xff] %v12786_v49  ;;  %9916 = vmatpush3.bf16.xpose.msk.msra.mxu1 %vm10712_vm1, %v9914_v12  ;;  %9919 = vmatprep.subr.msk.bf16.mxu0 %vm10712_vm1, %v9917_v59  ;;  %v383_v12 = vld [vmem:[%s16381_s0 + $0xaa0] sm:$0xff]  ;;  %16622 = vst [vmem:[#allocation29_spill] sm:$0xff] %v12863_v6  ;;  %v9926_v1 = vpack.c.bf16 %v366_v22, %v365_v52  ;;  %v16627_v29 = vld [vmem:[#allocation11_spill] sm:$0xff] }
 0x146   :  { %9967 = vmatprep.subr.msk.bf16.mxu1 %vm10712_vm1, %v9965_v27  ;;  %16619 = vst [vmem:[#allocation26_spill] sm:$0xff] %v12806_v16  ;;  %16623 = vst [vmem:[#allocation28_spill] sm:$0xff] %v12866_v53  ;;  %v16626_v59 = vld [vmem:[#allocation10_spill] sm:$0xff]  ;;  %v9929_v28 = vpack.c.bf16 %v384_v51, %v383_v12  ;;  %v12897_v5 = vrot.slane %v16627_v29, %v12863_v6  ;;  %v12901_v15 = vrot.slane %v16627_v29, %v12866_v53  ;;  %v12939_v47 = vld [vmem:[%s16381_s0 + $0xbb0] sm:$0xff] }
 0x147   :  { %16624 = vst [vmem:[#allocation7_spill] sm:$0xff] %v12871_v54  ;;  %16625 = vst [vmem:[#allocation46_spill] sm:$0xff] %v12874_v3  ;;  %v12883_v27 = vld [vmem:[%s16381_s0 + $0xa20] sm:$0xff]  ;;  %v12910_v8 = vld [vmem:[%s16381_s0 + $0xb28] sm:$0xff]  ;;  %v12914_v10 = vrot.slane %v16627_v29, %v12871_v54  ;;  %v12918_v37 = vrot.slane %v16627_v29, %v12874_v3 }
 0x148   :  { %v12969_v52 = vld [vmem:[%s16381_s0 + $0xac0] sm:$0xff]  ;;  %v12974_v22 = vld [vmem:[%s16381_s0 + $0xac8] sm:$0xff]  ;;  %v13037_v20 = vld [vmem:[%s16381_s0 + $0xbd0] sm:$0xff]  ;;  %16632 = vst [vmem:[#allocation10_spill] sm:$0xff] %v13083_v9 }
 0x149   :  { %v12988_v12 = vld [vmem:[%s16381_s0 + $0xbc8] sm:$0xff]  ;;  %v12993_v51 = vld [vmem:[%s16381_s0 + $0xa40] sm:$0xff]  ;;  %v13052_v16 = vld [vmem:[%s16381_s0 + $0xa58] sm:$0xff]  ;;  %16633 = vst [vmem:[#allocation11_spill] sm:$0xff] %v13109_v42 }
 0x14a   :  { %v12998_v56 = vld [vmem:[%s16381_s0 + $0xa48] sm:$0xff]  ;;  %v13003_v32 = vld [vmem:[%s16381_s0 + $0xb40] sm:$0xff]  ;;  %v13187_v3 = vld [vmem:[%s16381_s0 + $0xa70] sm:$0xff] }
 0x14b   :  { %9086 = vmatmul.mubr.msk.f32.vlgmr.msra.gmra.mrb[64].mxu0 %vm1027_vm0, %v11929_v23  ;;  %v16630_v13 = vld [vmem:[#allocation13_spill] sm:$0xff]  ;;  %v13132_v53 = vld [vmem:[%s16381_s0 + $0xa68] sm:$0xff]  ;;  %16643 = vst [vmem:[#allocation54_spill] sm:$0xff] %v13187_v3 }
 0x14c   :  { %9134 = vmatmul.mubr.msk.f32.vlgmr.msra.gmra.mrb[64].mxu1 %vm1027_vm0, %v11929_v23  ;;  %9922 = vmatpush3.bf16.xpose.msk.msra.mxu0 %vm10712_vm1, %v9920_v24  ;;  %v397_v23 = vld [vmem:[%s16381_s0 + $0xb10] sm:$0xff]  ;;  %v12928_v24 = vld [vmem:[%s16381_s0 + $0xab8] sm:$0xff]  ;;  %v13064_v18 = vmul.f32 %v12897_v5, %v16630_v13  ;;  %v13091_v21 = vmul.f32 %v12914_v10, %v16630_v13  ;;  %v13095_v11 = vmul.f32 %v12918_v37, %v16630_v13  ;;  %v13127_v54 = vld [vmem:[%s16381_s0 + $0xa60] sm:$0xff] }
 0x14d   :  { %9970 = vmatpush3.bf16.xpose.msk.msra.mxu1 %vm10712_vm1, %v9968_v60  ;;  %9087 = vmatprep.mubr.msk.f32.mxu0 %vm1027_vm0, %v16620_v41  ;;  %v9974_v58 = vpack.c.bf16 %v398_v55, %v397_v23  ;;  %v12949_v60 = vld [vmem:[%s16381_s0 + $0xa30] sm:$0xff]  ;;  %v9932_v23 = vpack.c.bf16 %v12888_v30, %v12883_v27  ;;  %v12983_v55 = vld [vmem:[%s16381_s0 + $0xbc0] sm:$0xff]  ;;  %v9935_v34 = vpack.c.bf16 %v12928_v24, %v12923_v35  ;;  %v13152_v6 = vld [vmem:[%s16381_s0 + $0xb68] sm:$0xff] }
 0x14e   :  { %9135 = vmatprep.mubr.msk.f32.mxu1 %vm1027_vm0, %v16620_v41  ;;  %9925 = vmatprep.subr.msk.bf16.mxu0 %vm10712_vm1, %v9923_v46  ;;  %v12954_v46 = vld [vmem:[%s16381_s0 + $0xa38] sm:$0xff]  ;;  %v16629_v27 = vld [vmem:[#allocation6_spill] sm:$0xff]  ;;  %v9983_v35 = vpack.c.bf16 %v12944_v26, %v12939_v47  ;;  %16635 = vst [vmem:[#allocation21_spill] sm:$0xff] %v13127_v54  ;;  %16636 = vst [vmem:[#allocation47_spill] sm:$0xff] %v13132_v53 }
 0x14f   :  { %9088 = vmatmul.mubr.msk.f32.gmra.mrb[66].mxu0 %vm1027_vm0, %v16620_v41  ;;  %9973 = vmatprep.subr.msk.bf16.mxu1 %vm10712_vm1, %v9971_v39  ;;  %v12959_v39 = vld [vmem:[%s16381_s0 + $0xb30] sm:$0xff]  ;;  %v775_v30 = vmul.f32 %v12897_v5, %v16629_v27  ;;  %v13028_v29 = vmul.f32 %v12901_v15, %v16629_v27  ;;  %v13056_v49 = vmul.f32 %v12914_v10, %v16629_v27  ;;  %v13137_v47 = vld [vmem:[%s16381_s0 + $0xb60] sm:$0xff]  ;;  %v13202_v7 = vld [vmem:[%s16381_s0 + $0xa78] sm:$0xff] }
 0x150   :  { %9136 = vmatmul.mubr.msk.f32.gmra.mrb[66].mxu1 %vm1027_vm0, %v16620_v41  ;;  %9089 = vmatprep.mubr.msk.f32.mxu0 %vm1027_vm0, %v16626_v59  ;;  %v12964_v41 = vld [vmem:[%s16381_s0 + $0xb38] sm:$0xff]  ;;  %v13060_v2 = vmul.f32 %v12918_v37, %v16629_v27  ;;  %16637 = vst [vmem:[#allocation48_spill] sm:$0xff] %v13137_v47  ;;  %16638 = vst [vmem:[#allocation49_spill] sm:$0xff] %v13152_v6  ;;  %v13157_v26 = vld [vmem:[%s16381_s0 + $0xaf0] sm:$0xff] }
 0x151   :  { %9137 = vmatprep.mubr.msk.f32.mxu1 %vm1027_vm0, %v16626_v59  ;;  %16639 = vst [vmem:[#allocation50_spill] sm:$0xff] %v13157_v26  ;;  %v13177_v27 = vld [vmem:[%s16381_s0 + $0xbf0] sm:$0xff]  ;;  %16644 = vst [vmem:[#allocation55_spill] sm:$0xff] %v13202_v7  ;;  %v16648_v53 = vld [vmem:[#allocation9_spill] sm:$0xff] }
 0x152   :  { %16641 = vst [vmem:[#allocation52_spill] sm:$0xff] %v13177_v27  ;;  %v16647_v24 = vld [vmem:[#allocation31_spill] sm:$0xff]  ;;  %v839_v36 = vmul.f32 %v12897_v5, %v16648_v53  ;;  %v13237_v54 = vld [vmem:[%s16381_s0 + $0xc80] sm:$0xff] }
 0x153   :  { %9090 = vmatmul.mubr.msk.f32.gmra.mrb[68].mxu0 %vm1027_vm0, %v16626_v59  ;;  %16649 = vst [vmem:[#allocation31_spill] sm:$0xff] %v13237_v54 }
 0x154   :  { %9928 = vmatpush3.bf16.xpose.msk.msra.mxu0 %vm10712_vm1, %v9926_v1  ;;  %9138 = vmatmul.mubr.msk.f32.gmra.mrb[68].mxu1 %vm1027_vm0, %v16626_v59  ;;  %v13008_v1 = vld [vmem:[%s16381_s0 + $0xb48] sm:$0xff] }
 0x155   :  { %9976 = vmatpush3.bf16.xpose.msk.msra.mxu1 %vm10712_vm1, %v9974_v58  ;;  %9931 = vmatprep.subr.msk.bf16.mxu0 %vm10712_vm1, %v9929_v28  ;;  %v16628_v59 = vld [vmem:[#allocation18_spill] sm:$0xff]  ;;  %v13015_v58 = vld [vmem:[%s16381_s0 + $0xad0] sm:$0xff]  ;;  %v13020_v28 = vld [vmem:[%s16381_s0 + $0xad8] sm:$0xff] }
 0x156   :  { %9979 = vmatprep.subr.msk.bf16.mxu1 %vm10712_vm1, %v9977_v31  ;;  %9091 = vmatprep.mubr.msk.f32.mxu0 %vm1027_vm0, %v16628_v59  ;;  %v9980_v31 = vpack.c.bf16 %v12910_v8, %v12893_v45  ;;  %v13042_v45 = vld [vmem:[%s16381_s0 + $0xbd8] sm:$0xff]  ;;  %v13047_v8 = vld [vmem:[%s16381_s0 + $0xa50] sm:$0xff]  ;;  %16634 = vst [vmem:[#allocation18_spill] sm:$0xff] %v13114_v63 }
 0x157   :  { %9139 = vmatprep.mubr.msk.f32.mxu1 %vm1027_vm0, %v16628_v59  ;;  %9092 = vmatmul.mubr.msk.f32.gmra.mrb[70].mxu0 %vm1027_vm0, %v16628_v59 }
 0x158   :  { %9140 = vmatmul.mubr.msk.f32.gmra.mrb[70].mxu1 %vm1027_vm0, %v16628_v59  ;;  %9093 = vmatprep.mubr.msk.f32.mxu0 %vm1027_vm0, %v16631_v25  ;;  %v13087_v59 = vmul.f32 %v12901_v15, %v16630_v13  ;;  %v841_v13 = vmul.f32 %v12901_v15, %v16648_v53 }
 0x159   :  { %9141 = vmatprep.mubr.msk.f32.mxu1 %vm1027_vm0, %v16631_v25 }
 0x15b   :  { %9094 = vmatmul.mubr.msk.f32.gmra.mrb[72].mxu0 %vm1027_vm0, %v16631_v25  ;;  %v2993_v63 = vpop.f32.mrb[16].mxu1 }
 0x15c   :  { %9934 = vmatpush3.bf16.xpose.msk.msra.mxu0 %vm10712_vm1, %v9932_v23  ;;  %9142 = vmatmul.mubr.msk.f32.gmra.mrb[72].mxu1 %vm1027_vm0, %v16631_v25  ;;  %v13182_v23 = vld [vmem:[%s16381_s0 + $0xbf8] sm:$0xff]  ;;  %v2880_v25 = vpop.f32.mrb[16].mxu0  ;;  %v2995_v26 = vpop.f32.mrb[17].mxu1 }
 0x15d   :  { %16642 = vst [vmem:[#allocation53_spill] sm:$0xff] %v13182_v23  ;;  %9982 = vmatpush3.bf16.xpose.msk.msra.mxu1 %vm10712_vm1, %v9980_v31  ;;  %9937 = vmatprep.subr.msk.bf16.mxu0 %vm10712_vm1, %v9935_v34  ;;  %v13207_v31 = vld [vmem:[%s16381_s0 + $0xb70] sm:$0xff]  ;;  %v13212_v34 = vld [vmem:[%s16381_s0 + $0xb78] sm:$0xff]  ;;  %v2881_v42 = vadd.f32 %v2880_v25, %v775_v30  ;;  %v13224_v0 = vpop.f32.mrb[17].mxu0  ;;  %v13242_v30 = vld [vmem:[%s16381_s0 + $0xc88] sm:$0xff]  ;;  %v2994_v25 = vadd.f32 %v2993_v63, %v13028_v29 }
 0x15e   :  { %16645 = vst [vmem:[#allocation56_spill] sm:$0xff] %v13207_v31  ;;  %16646 = vst [vmem:[#allocation57_spill] sm:$0xff] %v13212_v34  ;;  %9985 = vmatprep.subr.msk.bf16.mxu1 %vm10712_vm1, %v9983_v35  ;;  %9095 = vmatprep.mubr.msk.f32.mxu0 %vm1027_vm0, %v16647_v24  ;;  %v13257_v23 = vmul.f32 %v12914_v10, %v16648_v53  ;;  %v13261_v63 = vmul.f32 %v12918_v37, %v16648_v53  ;;  %v16651_v29 = vld [vmem:[#allocation17_spill] sm:$0xff]  ;;  %v2886_v3 = vpop.f32.mrb[18].mxu0 }
 0x15f   :  { %9143 = vmatprep.mubr.msk.f32.mxu1 %vm1027_vm0, %v16647_v24  ;;  %9096 = vmatmul.mubr.msk.f32.gmra.mrb[74].mxu0 %vm1027_vm0, %v16647_v24  ;;  %16650 = vst [vmem:[#allocation58_spill] sm:$0xff] %v13242_v30  ;;  %v13267_v35 = vmul.f32 %v12901_v15, %v16651_v29  ;;  %v13271_v27 = vmul.f32 %v12914_v10, %v16651_v29  ;;  %v2999_v47 = vpop.f32.mrb[18].mxu1  ;;  %v2888_v6 = vpop.f32.mrb[19].mxu0 }
 0x160   :  { %9144 = vmatmul.mubr.msk.f32.gmra.mrb[74].mxu1 %vm1027_vm0, %v16647_v24  ;;  %9097 = vmatprep.mubr.msk.f32.mxu0 %vm1027_vm0, %v12500_v40  ;;  %v871_v24 = vmul.f32 %v12897_v5, %v16651_v29  ;;  %v13275_v31 = vmul.f32 %v12918_v37, %v16651_v29  ;;  %v13281_v34 = vmul.f32 %v12897_v5, %v12454_v33 }
 0x161   :  { %9145 = vmatprep.mubr.msk.f32.mxu1 %vm1027_vm0, %v12500_v40  ;;  %v4448_v7 = vadd.f32 %v12357_v19, %v2881_v42  ;;  %v2887_v38 = vadd.f32 %v2886_v3, %v13064_v18  ;;  %v13289_v29 = vmul.f32 %v12901_v15, %v12454_v33  ;;  %v13293_v53 = vmul.f32 %v12914_v10, %v12454_v33  ;;  %v3001_v42 = vpop.f32.mrb[19].mxu1 }
 0x162   :  { %v4450_v54 = vadd.f32 %v12357_v19, %v2994_v25  ;;  %v3000_v30 = vadd.f32 %v2999_v47, %v13087_v59  ;;  %v16652_v18 = vpack.c.bf16 %v12954_v46, %v12949_v60  ;;  %v13306_v3 = vmul.f32 %v12918_v37, %v12454_v33  ;;  %v16655_v46 = vld [vmem:[#allocation32_spill] sm:$0xff] }
 0x163   :  { %9098 = vmatmul.mubr.msk.f32.gmra.mrb[76].mxu0 %vm1027_vm0, %v12500_v40  ;;  %v4480_v9 = vadd.f32 %v12414_v44, %v2887_v38  ;;  %v16653_v25 = vpack.c.bf16 %v12964_v41, %v12959_v39  ;;  %v16654_v60 = vpack.c.bf16 %v12974_v22, %v12969_v52  ;;  %v13325_v59 = vmul.f32 %v12901_v15, %v16655_v46  ;;  %v16657_v41 = vld [vmem:[#allocation33_spill] sm:$0xff]  ;;  %v2892_v52 = vpop.f32.mrb[20].mxu0 }
 0x164   :  { %9940 = vmatpush3.bf16.xpose.msk.msra.mxu0 %vm10712_vm1, %v16652_v18  ;;  %9146 = vmatmul.mubr.msk.f32.gmra.mrb[76].mxu1 %vm1027_vm0, %v12500_v40  ;;  %v13321_v40 = vmul.f32 %v12897_v5, %v16655_v46  ;;  %v4482_v38 = vadd.f32 %v12414_v44, %v3000_v30  ;;  %v16656_v39 = vpack.c.bf16 %v12988_v12, %v12983_v55  ;;  %v4960_v30 = vld [vmem:[%s16387_s6] sm:$0xff]  ;;  %v4704_v55 = vmax.f32 %v4448_v7, 0.0 }
 0x165   :  { %9988 = vmatpush3.bf16.xpose.msk.msra.mxu1 %vm10712_vm1, %v16653_v25  ;;  %9943 = vmatprep.subr.msk.bf16.mxu0 %vm10712_vm1, %v16654_v60  ;;  %v13337_v22 = vmul.f32 %v12914_v10, %v16655_v46  ;;  %v13341_v47 = vmul.f32 %v12918_v37, %v16655_v46  ;;  %v4736_v12 = vmax.f32 %v4480_v9, 0.0  ;;  %v2893_v18 = vadd.f32 %v2892_v52, %v839_v36  ;;  %v3005_v25 = vpop.f32.mrb[20].mxu1  ;;  %v2894_v60 = vpop.f32.mrb[21].mxu0 }
 0x166   :  { %9991 = vmatprep.subr.msk.bf16.mxu1 %vm10712_vm1, %v16656_v39  ;;  %9099 = vmatprep.mubr.msk.f32.mxu0 %vm1027_vm0, %v16657_v41  ;;  %v13352_v39 = vmul.f32 %v12897_v5, %v12600_v48  ;;  %v4706_v46 = vmax.f32 %v4450_v54, 0.0  ;;  %v4738_v33 = vmax.f32 %v4482_v38, 0.0  ;;  %v3006_v7 = vadd.f32 %v3005_v25, %v841_v13  ;;  %v3007_v9 = vpop.f32.mrb[21].mxu1 }
 0x167   :  { %16658 = vst [vmem:[#allocation33_spill] sm:$0xff] %v13341_v47  ;;  %9147 = vmatprep.mubr.msk.f32.mxu1 %vm1027_vm0, %v16657_v41  ;;  %9100 = vmatmul.mubr.msk.f32.gmra.mrb[78].mxu0 %vm1027_vm0, %v16657_v41  ;;  %v13359_v47 = vld [vmem:[%s16383_s2] sm:$0xff]  ;;  %v13365_v36 = vmul.f32 %v12901_v15, %v12600_v48  ;;  %v2883_v54 = vadd.f32 %v13224_v0, %v13056_v49  ;;  %v4961_v0 = vld [vmem:[%s16387_s6 + $0x8] sm:$0xff] }
 0x168   :  { %16659 = vst [vmem:[#allocation59_spill] sm:$0xff] %v13352_v39  ;;  %9148 = vmatmul.mubr.msk.f32.gmra.mrb[78].mxu1 %vm1027_vm0, %v16657_v41  ;;  %9181 = vmatprep.mubr.msk.f32.mxu0 %vm1027_vm0, %v13359_v47  ;;  %v13369_v38 = vpack.c.bf16 %v4736_v12, %v4704_v55  ;;  %v4512_v13 = vadd.f32 %v12524_v62, %v2893_v18  ;;  %v2898_v39 = vpop.f32.mrb[22].mxu0  ;;  %v3011_v12 = vpop.f32.mrb[22].mxu1 }
 0x169   :  { %16660 = vst [vmem:[#allocation60_spill] sm:$0xff] %v13365_v36  ;;  %9229 = vmatprep.mubr.msk.f32.mxu1 %vm1027_vm0, %v13359_v47  ;;  %4966 = vperm.xlu0 %10593, %v4960_v30   ;;  %v2996_v41 = vadd.f32 %v2995_v26, %v13060_v2  ;;  %v13375_v52 = vpack.c.bf16 %v4738_v33, %v4706_v46  ;;  %v2900_v30 = vpop.f32.mrb[23].mxu0  ;;  %v4962_v26 = vld [vmem:[%s16387_s6 + $0x10] sm:$0xff]  ;;  %v3013_v18 = vpop.f32.mrb[23].mxu1 }
 0x16a   :  { %16661 = vst [vmem:[#allocation61_spill] sm:$0xff] %v13369_v38  ;;  %v4514_v25 = vadd.f32 %v12524_v62, %v3006_v7  ;;  %v13380_v36 = vmul.f32 %v12914_v10, %v12600_v48  ;;  %v2889_v49 = vadd.f32 %v2888_v6, %v13091_v21  ;;  %v2899_v55 = vadd.f32 %v2898_v39, %v871_v24  ;;  %v4963_v39 = vld [vmem:[%s16387_s6 + $0x18] sm:$0xff] }
 0x16b   :  { %16662 = vst [vmem:[#allocation62_spill] sm:$0xff] %v13375_v52  ;;  %v13388_v33 = vmul.f32 %v12918_v37, %v12600_v48  ;;  %v13392_v2 = vmul.f32 %v12897_v5, %v12605_v50  ;;  %4971 = vperm.xlu1 %10594, %v4961_v0   ;;  %v3002_v46 = vadd.f32 %v3001_v42, %v13095_v11 }
 0x16c   :  { %v16663_v21 = vpack.c.bf16 %v12998_v56, %v12993_v51  ;;  %v2895_v6 = vadd.f32 %v2894_v60, %v13257_v23  ;;  %v3012_v24 = vadd.f32 %v3011_v12, %v13267_v35  ;;  %v13407_v5 = vmul.f32 %v12901_v15, %v12605_v50 }
 0x16d   :  { %v13413_v11 = vadd.f32 %v12357_v19, %v2883_v54  ;;  %v16664_v51 = vpack.c.bf16 %v13008_v1, %v13003_v32  ;;  %v16665_v56 = vpack.c.bf16 %v13020_v28, %v13015_v58  ;;  %v4768_v15 = vmax.f32 %v4512_v13, 0.0  ;;  %v2904_v28 = vpop.f32.mrb[24].mxu0  ;;  %4976 = vperm.xlu0 %10593, %v4962_v26   ;;  %v3017_v54 = vpop.f32.mrb[24].mxu1  ;;  %v6550_v13 = vld [vmem:[#allocation2] sm:$0x1] }
 0x16e   :  { %9946 = vmatpush3.bf16.xpose.msk.msra.mxu0 %vm10712_vm1, %v16663_v21  ;;  %v3008_v23 = vadd.f32 %v3007_v9, %v13261_v63  ;;  %v4544_v35 = vadd.f32 %v12553_v14, %v2899_v55  ;;  %v13428_v42 = vadd.f32 %v12357_v19, %v2996_v41  ;;  %v16666_v32 = vpack.c.bf16 %v13042_v45, %v13037_v20  ;;  %v2906_v20 = vpop.f32.mrb[25].mxu0 }
 0x16f   :  { %9994 = vmatpush3.bf16.xpose.msk.msra.mxu1 %vm10712_vm1, %v16664_v51  ;;  %9949 = vmatprep.subr.msk.bf16.mxu0 %vm10712_vm1, %v16665_v56  ;;  %v4770_v1 = vmax.f32 %v4514_v25, 0.0  ;;  %v4546_v58 = vadd.f32 %v12553_v14, %v3012_v24  ;;  %v13438_v60 = vmul.f32 %v12914_v10, %v12605_v50  ;;  %v13441_v63 = vadd.f32 %v12414_v44, %v2889_v49  ;;  %v3019_v49 = vpop.f32.mrb[25].mxu1  ;;  %v2910_v24 = vpop.f32.mrb[26].mxu0 }
 0x170   :  { %9997 = vmatprep.subr.msk.bf16.mxu1 %vm10712_vm1, %v16666_v32  ;;  %v4800_v7 = vmax.f32 %v4544_v35, 0.0  ;;  %v2905_v9 = vadd.f32 %v2904_v28, %v13281_v34  ;;  %v13446_v45 = vmul.f32 %v12918_v37, %v12605_v50  ;;  %4981 = vperm.xlu1 %10594, %v4963_v39   ;;  %v13449_v41 = vadd.f32 %v12414_v44, %v3002_v46  ;;  %v16674_v28 = vld [vmem:[#allocation18_spill] sm:$0xff] }
 0x171   :  { %v13452_v10 = vadd.f32 %v12524_v62, %v2895_v6  ;;  %v4802_v25 = vmax.f32 %v4546_v58, 0.0  ;;  %v3018_v0 = vadd.f32 %v3017_v54, %v13289_v29  ;;  %v4705_v34 = vmax.f32 %v13413_v11, 0.0  ;;  %6553 = vperm.xlu0 %10593, %v6550_v13   ;;  %v16673_v58 = vld [vmem:[#allocation38_spill] sm:$0xff]  ;;  %v16677_v54 = vld [vmem:[#allocation33_spill] sm:$0xff] }
 0x172   :  { %v13457_v55 = vadd.f32 %v12524_v62, %v3008_v23  ;;  %v13459_v12 = vpack.c.bf16 %v4800_v7, %v4768_v15  ;;  %v4576_v37 = vadd.f32 %v12650_v57, %v2905_v9  ;;  %v4707_v26 = vmax.f32 %v13428_v42, 0.0  ;;  %v3023_v15 = vpop.f32.mrb[26].mxu1  ;;  %v2912_v23 = vpop.f32.mrb[27].mxu0  ;;  %v16675_v7 = vld [vmem:[#allocation11_spill] sm:$0xff] }
 0x173   :  { %v13463_v46 = vpack.c.bf16 %v4802_v25, %v4770_v1  ;;  %v2901_v21 = vadd.f32 %v2900_v30, %v13271_v27  ;;  %v4578_v6 = vadd.f32 %v12650_v57, %v3018_v0  ;;  %v4737_v29 = vmax.f32 %v13441_v63, 0.0  ;;  %v2916_v13 = vpop.f32.mrb[28].mxu0 }
 0x174   :  { %16667 = vst [vmem:[#allocation63_spill] sm:$0xff] %v13459_v12  ;;  %v3014_v39 = vadd.f32 %v3013_v18, %v13275_v31  ;;  %v2907_v51 = vadd.f32 %v2906_v20, %v13293_v53  ;;  %v2911_v56 = vadd.f32 %v2910_v24, %v13321_v40  ;;  %v4739_v35 = vmax.f32 %v13449_v41, 0.0  ;;  %v3025_v18 = vpop.f32.mrb[27].mxu1  ;;  %v16671_v40 = vld [vmem:[#allocation10_spill] sm:$0xff]  ;;  %v16706_v41 = vld [vmem:[#allocation55_spill] sm:$0xff] }
 0x175   :  { %16668 = vst [vmem:[#allocation64_spill] sm:$0xff] %v13463_v46  ;;  %v16669_v32 = vpack.c.bf16 %v13052_v16, %v13047_v8  ;;  %v4769_v27 = vmax.f32 %v13452_v10, 0.0  ;;  %v3020_v30 = vadd.f32 %v3019_v49, %v13306_v3  ;;  %v3024_v31 = vadd.f32 %v3023_v15, %v13325_v59  ;;  %v3029_v24 = vpop.f32.mrb[28].mxu1  ;;  %v16709_v10 = vld [vmem:[#allocation57_spill] sm:$0xff] }
 0x176   :  { %v16670_v53 = vpack.c.bf16 %v13076_v61, %v13071_v17  ;;  %v16672_v1 = vpack.c.bf16 %v13104_v43, %v16671_v40  ;;  %v4771_v16 = vmax.f32 %v13457_v55, 0.0  ;;  %v4832_v8 = vmax.f32 %v4576_v37, 0.0  ;;  %v16712_v55 = vld [vmem:[#allocation58_spill] sm:$0xff]  ;;  %v16726_v46 = vld [vmem:[#allocation13_spill] sm:$0xff] }
 0x177   :  { %9952 = vmatpush3.bf16.xpose.msk.msra.mxu0 %vm10712_vm1, %v16669_v32  ;;  %v4608_v3 = vadd.f32 %v16673_v58, %v2911_v56  ;;  %v2913_v59 = vadd.f32 %v2912_v23, %v13337_v22  ;;  %v16676_v9 = vpack.c.bf16 %v16674_v28, %v16675_v7  ;;  %v4545_v61 = vadd.f32 %v12553_v14, %v2901_v21  ;;  %v16678_v22 = vld [vmem:[#allocation59_spill] sm:$0xff]  ;;  %v2918_v56 = vpop.f32.mrb[29].mxu0  ;;  %v16679_v32 = vld [vmem:[#allocation60_spill] sm:$0xff] }
 0x178   :  { %10000 = vmatpush3.bf16.xpose.msk.msra.mxu1 %vm10712_vm1, %v16670_v53  ;;  %9955 = vmatprep.subr.msk.bf16.mxu0 %vm10712_vm1, %v16672_v1  ;;  %v4834_v17 = vmax.f32 %v4578_v6, 0.0  ;;  %v4610_v43 = vadd.f32 %v16673_v58, %v3024_v31  ;;  %v3026_v20 = vadd.f32 %v3025_v18, %v16677_v54  ;;  %v4547_v25 = vadd.f32 %v12553_v14, %v3014_v39  ;;  %v3031_v31 = vpop.f32.mrb[29].mxu1  ;;  %v16681_v39 = vld [vmem:[#allocation42_spill] sm:$0xff]  ;;  %v2922_v7 = vpop.f32.mrb[30].mxu0 }
 0x179   :  { %10003 = vmatprep.subr.msk.bf16.mxu1 %vm10712_vm1, %v16676_v9  ;;  %v4577_v0 = vadd.f32 %v12650_v57, %v2907_v51  ;;  %v4864_v49 = vmax.f32 %v4608_v3, 0.0  ;;  %v2917_v37 = vadd.f32 %v2916_v13, %v16678_v22  ;;  %v4579_v15 = vadd.f32 %v12650_v57, %v3020_v30  ;;  %v2924_v54 = vpop.f32.mrb[31].mxu0  ;;  %v16683_v13 = vld [vmem:[#allocation47_spill] sm:$0xff] }
 0x17a   :  { %v4866_v23 = vmax.f32 %v4610_v43, 0.0  ;;  %v3030_v21 = vadd.f32 %v3029_v24, %v16679_v32  ;;  %v2919_v6 = vadd.f32 %v2918_v56, %v13380_v36  ;;  %v4609_v18 = vadd.f32 %v16673_v58, %v2913_v59  ;;  %v3035_v59 = vpop.f32.mrb[30].mxu1  ;;  %v16687_v24 = vld [vmem:[#allocation48_spill] sm:$0xff] }
 0x17b   :  { %v13507_v53 = vpack.c.bf16 %v4864_v49, %v4832_v8  ;;  %v4640_v40 = vadd.f32 %v16681_v39, %v2917_v37  ;;  %v3032_v51 = vadd.f32 %v3031_v31, %v13388_v33  ;;  %v4801_v1 = vmax.f32 %v4545_v61, 0.0  ;;  %v16684_v49 = vld [vmem:[#allocation21_spill] sm:$0xff]  ;;  %v3037_v22 = vpop.f32.mrb[31].mxu1 }
 0x17c   :  { %v13512_v3 = vpack.c.bf16 %v4866_v23, %v4834_v17  ;;  %v4611_v28 = vadd.f32 %v16673_v58, %v3026_v20  ;;  %v4642_v30 = vadd.f32 %v16681_v39, %v3030_v21  ;;  %v4803_v9 = vmax.f32 %v4547_v25, 0.0  ;;  %v16686_v37 = vld [vmem:[#allocation49_spill] sm:$0xff]  ;;  %v16690_v23 = vld [vmem:[#allocation50_spill] sm:$0xff]  ;;  %v16692_v21 = vld [vmem:[#allocation23_spill] sm:$0xff] }
 0x17d   :  { %16680 = vst [vmem:[#allocation10_spill] sm:$0xff] %v13507_v53  ;;  %v4641_v36 = vadd.f32 %v16681_v39, %v2919_v6  ;;  %v4643_v8 = vadd.f32 %v16681_v39, %v3032_v51  ;;  %v2923_v43 = vadd.f32 %v2922_v7, %v13392_v2  ;;  %v16685_v33 = vpack.c.bf16 %v16683_v13, %v16684_v49  ;;  %v16689_v2 = vld [vmem:[#allocation51_spill] sm:$0xff]  ;;  %v16693_v51 = vld [vmem:[#allocation53_spill] sm:$0xff]  ;;  %v16694_v7 = vld [vmem:[#allocation52_spill] sm:$0xff] }
 0x17e   :  { %16682 = vst [vmem:[#allocation18_spill] sm:$0xff] %v13512_v3  ;;  %v4833_v61 = vmax.f32 %v4577_v0, 0.0  ;;  %v4835_v17 = vmax.f32 %v4579_v15, 0.0  ;;  %v3036_v20 = vadd.f32 %v3035_v59, %v13407_v5  ;;  %v2925_v25 = vadd.f32 %v2924_v54, %v13438_v60  ;;  %v475_v0 = vld [vmem:[%s16381_s0 + $0xd80] sm:$0xff]  ;;  %v476_v5 = vld [vmem:[%s16381_s0 + $0xd88] sm:$0xff]  ;;  %v13854_v3 = vld [vmem:[%s16381_s0 + $0xc50] sm:$0xff] }
 0x17f   :  { %9958 = vmatpush3.bf16.xpose.msk.msra.mxu0 %vm10712_vm1, %v16685_v33  ;;  %v16688_v56 = vpack.c.bf16 %v16686_v37, %v16687_v24  ;;  %v16691_v32 = vpack.c.bf16 %v16689_v2, %v16690_v23  ;;  %v4865_v60 = vmax.f32 %v4609_v18, 0.0  ;;  %v4896_v15 = vmax.f32 %v4640_v40, 0.0  ;;  %v460_v2 = vld [vmem:[%s16381_s0 + $0xd08] sm:$0xff]  ;;  %v445_v23 = vld [vmem:[%s16381_s0 + $0xc90] sm:$0xff]  ;;  %16724 = vst [vmem:[#allocation57_spill] sm:$0xff] %v13854_v3  ;;  %v13859_v53 = vld [vmem:[%s16381_s0 + $0xc58] sm:$0xff] }
 0x180   :  { %v4672_v6 = vadd.f32 %v16692_v21, %v2923_v43  ;;  %v3038_v31 = vadd.f32 %v3037_v22, %v13446_v45  ;;  %v16695_v59 = vpack.c.bf16 %v16693_v51, %v16694_v7  ;;  %v4867_v54 = vmax.f32 %v4611_v28, 0.0  ;;  %v13636_v51 = vld [vmem:[%s16383_s2 + $0x8] sm:$0xff]  ;;  %v429_v7 = vld [vmem:[%s16381_s0 + $0xc10] sm:$0xff]  ;;  %v13994_v39 = vld [vmem:[%s16381_s0 + $0xdf8] sm:$0xff] }
 0x181   :  { %10006 = vmatpush3.bf16.xpose.msk.msra.mxu1 %vm10712_vm1, %v16688_v56  ;;  %9961 = vmatprep.subr.msk.bf16.mxu0 %vm10712_vm1, %v16691_v32  ;;  %v4898_v13 = vmax.f32 %v4642_v30, 0.0  ;;  %v4674_v49 = vadd.f32 %v16692_v21, %v3036_v20  ;;  %v4673_v33 = vadd.f32 %v16692_v21, %v2925_v25  ;;  %v4897_v37 = vmax.f32 %v4641_v36, 0.0  ;;  %v459_v25 = vld [vmem:[%s16381_s0 + $0xd00] sm:$0xff]  ;;  %v446_v32 = vld [vmem:[%s16381_s0 + $0xc98] sm:$0xff]  ;;  %16715 = vst [vmem:[#allocation53_spill] sm:$0xff] %v13636_v51 }
 0x182   :  { %10009 = vmatprep.subr.msk.bf16.mxu1 %vm10712_vm1, %v16695_v59  ;;  %v4899_v24 = vmax.f32 %v4643_v8, 0.0  ;;  %v4928_v18 = vmax.f32 %v4672_v6, 0.0  ;;  %v4675_v40 = vadd.f32 %v16692_v21, %v3038_v31  ;;  %v10061_v43 = vpack.c.bf16 %v476_v5, %v475_v0  ;;  %v477_v5 = vld [vmem:[%s16381_s0 + $0xd90] sm:$0xff]  ;;  %v430_v59 = vld [vmem:[%s16381_s0 + $0xc18] sm:$0xff]  ;;  %16741 = vst [vmem:[#allocation77_spill] sm:$0xff] %v13994_v39 }
 0x183   :  { %v4930_v56 = vmax.f32 %v4674_v49, 0.0  ;;  %v4929_v45 = vmax.f32 %v4673_v33, 0.0  ;;  %v13556_v22 = vpack.c.bf16 %v4737_v29, %v4705_v34  ;;  %v13564_v36 = vpack.c.bf16 %v4739_v35, %v4707_v26  ;;  %v16707_v26 = vld [vmem:[#allocation54_spill] sm:$0xff]  ;;  %v13989_v21 = vld [vmem:[%s16381_s0 + $0xdf0] sm:$0xff] }
 0x184   :  { %v13558_v28 = vpack.c.bf16 %v4928_v18, %v4896_v15  ;;  %v4931_v30 = vmax.f32 %v4675_v40, 0.0  ;;  %v13568_v8 = vpack.c.bf16 %v4801_v1, %v4769_v27  ;;  %v13574_v11 = vpack.c.bf16 %v4803_v9, %v4771_v16  ;;  %v16710_v27 = vld [vmem:[#allocation56_spill] sm:$0xff]  ;;  %v16713_v16 = vld [vmem:[#allocation31_spill] sm:$0xff]  ;;  %v447_v33 = vld [vmem:[%s16381_s0 + $0xca0] sm:$0xff]  ;;  %16740 = vst [vmem:[#allocation76_spill] sm:$0xff] %v13989_v21 }
 0x185   :  { %16696 = vst [vmem:[#allocation11_spill] sm:$0xff] %v13556_v22  ;;  %16698 = vst [vmem:[#allocation59_spill] sm:$0xff] %v13564_v36  ;;  %v13570_v20 = vpack.c.bf16 %v4930_v56, %v4898_v13  ;;  %v13576_v63 = vpack.c.bf16 %v4865_v60, %v4833_v61  ;;  %v13578_v34 = vpack.c.bf16 %v4867_v54, %v4835_v17  ;;  %v427_v61 = vld [vmem:[%s16381_s0 + $0xc00] sm:$0xff]  ;;  %v428_v17 = vld [vmem:[%s16381_s0 + $0xc08] sm:$0xff] }
 0x186   :  { %16697 = vst [vmem:[#allocation33_spill] sm:$0xff] %v13558_v28  ;;  %16699 = vst [vmem:[#allocation60_spill] sm:$0xff] %v13568_v8  ;;  %v13580_v29 = vpack.c.bf16 %v4929_v45, %v4897_v37  ;;  %v13582_v42 = vpack.c.bf16 %v4931_v30, %v4899_v24  ;;  %v16708_v35 = vpack.c.bf16 %v16706_v41, %v16707_v26  ;;  %v478_v60 = vld [vmem:[%s16381_s0 + $0xd98] sm:$0xff]  ;;  %v461_v54 = vld [vmem:[%s16381_s0 + $0xd10] sm:$0xff] }
 0x187   :  { %16700 = vst [vmem:[#allocation47_spill] sm:$0xff] %v13570_v20  ;;  %16701 = vst [vmem:[#allocation21_spill] sm:$0xff] %v13574_v11  ;;  %v16711_v1 = vpack.c.bf16 %v16709_v10, %v16710_v27  ;;  %v16714_v9 = vpack.c.bf16 %v16712_v55, %v16713_v16  ;;  %v10016_v0 = vpack.c.bf16 %v428_v17, %v427_v61  ;;  %v462_v13 = vld [vmem:[%s16381_s0 + $0xd18] sm:$0xff]  ;;  %v13659_v49 = vld [vmem:[%s16382_s1 + $0x8] sm:$0xff] }
 0x188   :  { %16702 = vst [vmem:[#allocation49_spill] sm:$0xff] %v13576_v63  ;;  %16703 = vst [vmem:[#allocation48_spill] sm:$0xff] %v13578_v34  ;;  %9964 = vmatpush3.bf16.xpose.msk.msra.mxu0 %vm10712_vm1, %v16708_v35  ;;  %v10064_v15 = vpack.c.bf16 %v460_v2, %v459_v25  ;;  %v10019_v6 = vpack.c.bf16 %v446_v32, %v445_v23  ;;  %v10067_v31 = vpack.c.bf16 %v478_v60, %v477_v5  ;;  %v448_v37 = vld [vmem:[%s16381_s0 + $0xca8] sm:$0xff]  ;;  %v13676_v24 = vld [vmem:[%s16383_s2 + $0x10] sm:$0xff] }
 0x189   :  { %16704 = vst [vmem:[#allocation51_spill] sm:$0xff] %v13580_v29  ;;  %16705 = vst [vmem:[#allocation50_spill] sm:$0xff] %v13582_v42  ;;  %10012 = vmatpush3.bf16.xpose.msk.msra.mxu1 %vm10712_vm1, %v16711_v1  ;;  %10015 = vmatprep.subr.msk.bf16.mxu0 %vm10712_vm1, %v16714_v9  ;;  %v10022_v18 = vpack.c.bf16 %v430_v59, %v429_v7  ;;  %v479_v40 = vld [vmem:[%s16381_s0 + $0xda0] sm:$0xff]  ;;  %v10070_v56 = vpack.c.bf16 %v462_v13, %v461_v54  ;;  %v13696_v30 = vld [vmem:[%s16381_s0 + $0xc28] sm:$0xff] }
 0x18a   :  { %10063 = vmatprep.subr.msk.bf16.mxu1 %vm10712_vm1, %v10061_v43  ;;  %16716 = vst [vmem:[#allocation52_spill] sm:$0xff] %v13659_v49  ;;  %16717 = vst [vmem:[#allocation55_spill] sm:$0xff] %v13676_v24  ;;  %v480_v43 = vld [vmem:[%s16381_s0 + $0xda8] sm:$0xff]  ;;  %v13691_v45 = vld [vmem:[%s16381_s0 + $0xc20] sm:$0xff]  ;;  %v10025_v1 = vpack.c.bf16 %v448_v37, %v447_v33 }
 0x18b   :  { %v13701_v41 = vld [vmem:[%s16381_s0 + $0xd20] sm:$0xff]  ;;  %v16718_v26 = vld [vmem:[#allocation12_spill] sm:$0xff]  ;;  %v13714_v55 = vld [vmem:[%s16381_s0 + $0xd28] sm:$0xff]  ;;  %v10073_v23 = vpack.c.bf16 %v480_v43, %v479_v40  ;;  %16725 = vst [vmem:[#allocation56_spill] sm:$0xff] %v13859_v53  ;;  %v16742_v58 = vpack.c.bf16 %v13696_v30, %v13691_v45 }
 0x18c   :  { %v13705_v35 = vrot.slane %v13659_v49, %v16718_v26  ;;  %v16719_v10 = vld [vmem:[#allocation14_spill] sm:$0xff]  ;;  %v16720_v16 = vld [vmem:[#allocation15_spill] sm:$0xff]  ;;  %v16721_v61 = vld [vmem:[#allocation16_spill] sm:$0xff]  ;;  %v10076_v40 = vpack.c.bf16 %v13714_v55, %v13701_v41 }
 0x18d   :  { %v13709_v27 = vrot.slane %v13659_v49, %v16719_v10  ;;  %v13718_v9 = vrot.slane %v13659_v49, %v16720_v16  ;;  %v13722_v17 = vrot.slane %v13659_v49, %v16721_v61  ;;  %v13727_v25 = vld [vmem:[%s16381_s0 + $0xcb0] sm:$0xff]  ;;  %v13732_v2 = vld [vmem:[%s16381_s0 + $0xcb8] sm:$0xff]  ;;  %v13775_v7 = vld [vmem:[%s16381_s0 + $0xcc0] sm:$0xff] }
 0x18e   :  { %v13739_v32 = vld [vmem:[%s16381_s0 + $0xdb0] sm:$0xff]  ;;  %v13754_v60 = vld [vmem:[%s16381_s0 + $0xc38] sm:$0xff]  ;;  %v13780_v59 = vld [vmem:[%s16381_s0 + $0xcc8] sm:$0xff]  ;;  %v13875_v12 = vmul.f32 %v13705_v35, %v16726_v46  ;;  %v10031_v36 = vpack.c.bf16 %v13732_v2, %v13727_v25 }
 0x18f   :  { %9182 = vmatmul.mubr.msk.f32.vlgmr.msra.gmra.mrb[80].mxu0 %vm1027_vm0, %v13359_v47  ;;  %v13749_v5 = vld [vmem:[%s16381_s0 + $0xc30] sm:$0xff]  ;;  %v13785_v54 = vld [vmem:[%s16381_s0 + $0xdc0] sm:$0xff]  ;;  %v13790_v13 = vld [vmem:[%s16381_s0 + $0xdc8] sm:$0xff]  ;;  %v13898_v52 = vmul.f32 %v13709_v27, %v16726_v46  ;;  %v13902_v38 = vmul.f32 %v13718_v9, %v16726_v46  ;;  %v13932_v2 = vmul.f32 %v13722_v17, %v16726_v46 }
 0x190   :  { %9230 = vmatmul.mubr.msk.f32.vlgmr.msra.gmra.mrb[80].mxu1 %vm1027_vm0, %v13359_v47  ;;  %10018 = vmatpush3.bf16.xpose.msk.msra.mxu0 %vm10712_vm1, %v10016_v0  ;;  %v13744_v0 = vld [vmem:[%s16381_s0 + $0xdb8] sm:$0xff]  ;;  %v13795_v33 = vld [vmem:[%s16381_s0 + $0xc40] sm:$0xff]  ;;  %v13800_v37 = vld [vmem:[%s16381_s0 + $0xc48] sm:$0xff] }
 0x191   :  { %10066 = vmatpush3.bf16.xpose.msk.msra.mxu1 %vm10712_vm1, %v10064_v15  ;;  %9183 = vmatprep.mubr.msk.f32.mxu0 %vm1027_vm0, %v13636_v51  ;;  %v16723_v43 = vld [vmem:[#allocation6_spill] sm:$0xff]  ;;  %v13834_v41 = vld [vmem:[%s16381_s0 + $0xcd0] sm:$0xff]  ;;  %v13839_v55 = vld [vmem:[%s16381_s0 + $0xcd8] sm:$0xff]  ;;  %v10079_v16 = vpack.c.bf16 %v13744_v0, %v13739_v32 }
 0x192   :  { %9231 = vmatprep.mubr.msk.f32.mxu1 %vm1027_vm0, %v13636_v51  ;;  %10021 = vmatprep.subr.msk.bf16.mxu0 %vm10712_vm1, %v10019_v6  ;;  %v13765_v6 = vld [vmem:[%s16381_s0 + $0xd30] sm:$0xff]  ;;  %v13815_v15 = vmul.f32 %v13705_v35, %v16723_v43  ;;  %v13819_v20 = vmul.f32 %v13709_v27, %v16723_v43  ;;  %v13829_v28 = vld [vmem:[%s16381_s0 + $0xd48] sm:$0xff]  ;;  %v13849_v29 = vld [vmem:[%s16381_s0 + $0xdd8] sm:$0xff]  ;;  %v13867_v34 = vmul.f32 %v13718_v9, %v16723_v43 }
 0x193   :  { %9184 = vmatmul.mubr.msk.f32.gmra.mrb[82].mxu0 %vm1027_vm0, %v13636_v51  ;;  %10069 = vmatprep.subr.msk.bf16.mxu1 %vm10712_vm1, %v10067_v31  ;;  %v13770_v31 = vld [vmem:[%s16381_s0 + $0xd38] sm:$0xff]  ;;  %v13844_v42 = vld [vmem:[%s16381_s0 + $0xdd0] sm:$0xff]  ;;  %v13871_v63 = vmul.f32 %v13722_v17, %v16723_v43  ;;  %v13890_v8 = vld [vmem:[%s16381_s0 + $0xce0] sm:$0xff] }
 0x194   :  { %9232 = vmatmul.mubr.msk.f32.gmra.mrb[82].mxu1 %vm1027_vm0, %v13636_v51  ;;  %9185 = vmatprep.mubr.msk.f32.mxu0 %vm1027_vm0, %v13676_v24  ;;  %v13880_v11 = vld [vmem:[%s16381_s0 + $0xd50] sm:$0xff]  ;;  %16729 = vst [vmem:[#allocation65_spill] sm:$0xff] %v13890_v8  ;;  %v13909_v22 = vld [vmem:[%s16381_s0 + $0xce8] sm:$0xff]  ;;  %v13926_v25 = vld [vmem:[%s16383_s2 + $0x20] sm:$0xff] }
 0x195   :  { %9233 = vmatprep.mubr.msk.f32.mxu1 %vm1027_vm0, %v13676_v24  ;;  %16727 = vst [vmem:[#allocation58_spill] sm:$0xff] %v13880_v11  ;;  %16730 = vst [vmem:[#allocation66_spill] sm:$0xff] %v13909_v22  ;;  %v13919_v61 = vld [vmem:[%s16381_s0 + $0xde8] sm:$0xff]  ;;  %v13941_v26 = vld [vmem:[%s16381_s0 + $0xc60] sm:$0xff] }
 0x196   :  { %16732 = vst [vmem:[#allocation68_spill] sm:$0xff] %v13919_v61  ;;  %16733 = vst [vmem:[#allocation69_spill] sm:$0xff] %v13926_v25  ;;  %v13946_v43 = vld [vmem:[%s16381_s0 + $0xc68] sm:$0xff]  ;;  %v13951_v46 = vld [vmem:[%s16381_s0 + $0xd60] sm:$0xff] }
 0x197   :  { %9186 = vmatmul.mubr.msk.f32.gmra.mrb[84].mxu0 %vm1027_vm0, %v13676_v24  ;;  %16734 = vst [vmem:[#allocation70_spill] sm:$0xff] %v13941_v26  ;;  %16735 = vst [vmem:[#allocation71_spill] sm:$0xff] %v13946_v43  ;;  %v13966_v49 = vld [vmem:[%s16381_s0 + $0xd68] sm:$0xff]  ;;  %v13976_v0 = vld [vmem:[%s16381_s0 + $0xcf8] sm:$0xff] }
 0x198   :  { %9234 = vmatmul.mubr.msk.f32.gmra.mrb[84].mxu1 %vm1027_vm0, %v13676_v24  ;;  %10024 = vmatpush3.bf16.xpose.msk.msra.mxu0 %vm10712_vm1, %v10022_v18  ;;  %v13807_v18 = vld [vmem:[%s16383_s2 + $0x18] sm:$0xff]  ;;  %16736 = vst [vmem:[#allocation72_spill] sm:$0xff] %v13951_v46  ;;  %16737 = vst [vmem:[#allocation73_spill] sm:$0xff] %v13966_v49  ;;  %v13971_v24 = vld [vmem:[%s16381_s0 + $0xcf0] sm:$0xff] }
 0x199   :  { %10072 = vmatpush3.bf16.xpose.msk.msra.mxu1 %vm10712_vm1, %v10070_v56  ;;  %16722 = vst [vmem:[#allocation54_spill] sm:$0xff] %v13807_v18  ;;  %9187 = vmatprep.mubr.msk.f32.mxu0 %vm1027_vm0, %v13807_v18  ;;  %v13824_v56 = vld [vmem:[%s16381_s0 + $0xd40] sm:$0xff]  ;;  %16738 = vst [vmem:[#allocation74_spill] sm:$0xff] %v13971_v24  ;;  %v14026_v45 = vld [vmem:[%s16383_s2 + $0x28] sm:$0xff] }
 0x19a   :  { %9235 = vmatprep.mubr.msk.f32.mxu1 %vm1027_vm0, %v13807_v18  ;;  %10027 = vmatprep.subr.msk.bf16.mxu0 %vm10712_vm1, %v10025_v1  ;;  %v13885_v1 = vld [vmem:[%s16381_s0 + $0xd58] sm:$0xff]  ;;  %16739 = vst [vmem:[#allocation75_spill] sm:$0xff] %v13976_v0  ;;  %16744 = vst [vmem:[#allocation78_spill] sm:$0xff] %v14026_v45 }
 0x19b   :  { %16728 = vst [vmem:[#allocation31_spill] sm:$0xff] %v13885_v1  ;;  %9188 = vmatmul.mubr.msk.f32.gmra.mrb[86].mxu0 %vm1027_vm0, %v13807_v18  ;;  %10075 = vmatprep.subr.msk.bf16.mxu1 %vm10712_vm1, %v10073_v23  ;;  %v13914_v23 = vld [vmem:[%s16381_s0 + $0xde0] sm:$0xff]  ;;  %v3219_v39 = vpop.f32.mrb[32].mxu1 }
 0x19c   :  { %16731 = vst [vmem:[#allocation67_spill] sm:$0xff] %v13914_v23  ;;  %9236 = vmatmul.mubr.msk.f32.gmra.mrb[86].mxu1 %vm1027_vm0, %v13807_v18  ;;  %9189 = vmatprep.mubr.msk.f32.mxu0 %vm1027_vm0, %v13926_v25  ;;  %v16743_v8 = vld [vmem:[#allocation9_spill] sm:$0xff]  ;;  %v3220_v0 = vadd.f32 %v3219_v39, %v13819_v20  ;;  %v3221_v46 = vpop.f32.mrb[33].mxu1 }
 0x19d   :  { %9237 = vmatprep.mubr.msk.f32.mxu1 %vm1027_vm0, %v13926_v25  ;;  %v14019_v51 = vmul.f32 %v13705_v35, %v16743_v8  ;;  %v14034_v30 = vmul.f32 %v13709_v27, %v16743_v8  ;;  %v14038_v32 = vmul.f32 %v13718_v9, %v16743_v8  ;;  %v14046_v18 = vmul.f32 %v13722_v17, %v16743_v8 }
 0x19e   :  { %v3222_v11 = vadd.f32 %v3221_v46, %v13871_v63  ;;  %v14138_v63 = vmul.f32 %v13718_v9, %v12600_v48 }
 0x19f   :  { %9190 = vmatmul.mubr.msk.f32.gmra.mrb[88].mxu0 %vm1027_vm0, %v13926_v25  ;;  %v3225_v3 = vpop.f32.mrb[34].mxu1 }
 0x1a0   :  { %9238 = vmatmul.mubr.msk.f32.gmra.mrb[88].mxu1 %vm1027_vm0, %v13926_v25  ;;  %10030 = vmatpush3.bf16.xpose.msk.msra.mxu0 %vm10712_vm1, %v16742_v58  ;;  %v16745_v58 = vld [vmem:[#allocation17_spill] sm:$0xff]  ;;  %v3227_v46 = vpop.f32.mrb[35].mxu1 }
 0x1a1   :  { %10078 = vmatpush3.bf16.xpose.msk.msra.mxu1 %vm10712_vm1, %v10076_v40  ;;  %9191 = vmatprep.mubr.msk.f32.mxu0 %vm1027_vm0, %v14026_v45  ;;  %v3106_v40 = vpop.f32.mrb[32].mxu0  ;;  %v14050_v10 = vmul.f32 %v13705_v35, %v16745_v58  ;;  %v14054_v25 = vmul.f32 %v13709_v27, %v16745_v58  ;;  %v14067_v8 = vmul.f32 %v13722_v17, %v16745_v58 }
 0x1a2   :  { %9239 = vmatprep.mubr.msk.f32.mxu1 %vm1027_vm0, %v14026_v45  ;;  %10033 = vmatprep.subr.msk.bf16.mxu0 %vm10712_vm1, %v10031_v36  ;;  %v3107_v21 = vadd.f32 %v3106_v40, %v13815_v15  ;;  %v3108_v24 = vpop.f32.mrb[33].mxu0  ;;  %v14063_v36 = vmul.f32 %v13718_v9, %v16745_v58  ;;  %v14075_v15 = vld [vmem:[%s16383_s2 + $0x30] sm:$0xff] }
 0x1a3   :  { %9192 = vmatmul.mubr.msk.f32.gmra.mrb[90].mxu0 %vm1027_vm0, %v14026_v45  ;;  %10081 = vmatprep.subr.msk.bf16.mxu1 %vm10712_vm1, %v10079_v16  ;;  %v16746_v16 = vld [vmem:[#allocation30_spill] sm:$0xff]  ;;  %v3109_v23 = vadd.f32 %v3108_v24, %v13867_v34  ;;  %v3112_v61 = vpop.f32.mrb[34].mxu0  ;;  %v14125_v34 = vmul.f32 %v13709_v27, %v12600_v48  ;;  %v4454_v24 = vadd.f32 %v12357_v19, %v3220_v0 }
 0x1a4   :  { %9240 = vmatmul.mubr.msk.f32.gmra.mrb[90].mxu1 %vm1027_vm0, %v14026_v45  ;;  %9193 = vmatprep.mubr.msk.f32.mxu0 %vm1027_vm0, %v14075_v15  ;;  %v14081_v40 = vmul.f32 %v13705_v35, %v16746_v16  ;;  %v14085_v58 = vmul.f32 %v13709_v27, %v16746_v16  ;;  %v14091_v39 = vmul.f32 %v13718_v9, %v16746_v16  ;;  %v16747_v45 = vld [vmem:[#allocation32_spill] sm:$0xff]  ;;  %v3114_v53 = vpop.f32.mrb[35].mxu0 }
 0x1a5   :  { %9241 = vmatprep.mubr.msk.f32.mxu1 %vm1027_vm0, %v14075_v15  ;;  %v14095_v20 = vmul.f32 %v13722_v17, %v16746_v16  ;;  %v14099_v49 = vmul.f32 %v13705_v35, %v16747_v45  ;;  %v14103_v26 = vmul.f32 %v13709_v27, %v16747_v45  ;;  %v4452_v43 = vadd.f32 %v12357_v19, %v3107_v21 }
 0x1a6   :  { %v14109_v22 = vmul.f32 %v13718_v9, %v16747_v45  ;;  %v14113_v16 = vmul.f32 %v13722_v17, %v16747_v45  ;;  %v3113_v1 = vadd.f32 %v3112_v61, %v13875_v12  ;;  %v14121_v21 = vmul.f32 %v13705_v35, %v12600_v48 }
 0x1a7   :  { %9194 = vmatmul.mubr.msk.f32.gmra.mrb[92].mxu0 %vm1027_vm0, %v14075_v15  ;;  %v3226_v45 = vadd.f32 %v3225_v3, %v13898_v52  ;;  %v16748_v12 = vpack.c.bf16 %v13754_v60, %v13749_v5  ;;  %v16749_v0 = vpack.c.bf16 %v13770_v31, %v13765_v6  ;;  %v14149_v52 = vld [vmem:[%s16383_s2 + $0x38] sm:$0xff]  ;;  %v14155_v3 = vmul.f32 %v13722_v17, %v12600_v48 }
 0x1a8   :  { %9242 = vmatmul.mubr.msk.f32.gmra.mrb[92].mxu1 %vm1027_vm0, %v14075_v15  ;;  %v4484_v61 = vadd.f32 %v12414_v44, %v3113_v1  ;;  %9195 = vmatprep.mubr.msk.f32.mxu0 %vm1027_vm0, %v14149_v52  ;;  %v14159_v5 = vmul.f32 %v13705_v35, %v12605_v50  ;;  %v4708_v60 = vmax.f32 %v4452_v43, 0.0  ;;  %v14162_v6 = vadd.f32 %v12357_v19, %v3109_v23 }
 0x1a9   :  { %10036 = vmatpush3.bf16.xpose.msk.msra.mxu0 %vm10712_vm1, %v16748_v12  ;;  %10084 = vmatpush3.bf16.xpose.msk.msra.mxu1 %vm10712_vm1, %v16749_v0  ;;  %v4486_v31 = vadd.f32 %v12414_v44, %v3226_v45  ;;  %v3115_v1 = vadd.f32 %v3114_v53, %v13902_v38  ;;  %v16750_v12 = vpack.c.bf16 %v13780_v59, %v13775_v7  ;;  %v3118_v0 = vpop.f32.mrb[36].mxu0  ;;  %v3231_v7 = vpop.f32.mrb[36].mxu1  ;;  %v4710_v45 = vmax.f32 %v4454_v24, 0.0 }
 0x1aa   :  { %9243 = vmatprep.mubr.msk.f32.mxu1 %vm1027_vm0, %v14149_v52  ;;  %v14174_v35 = vadd.f32 %v12357_v19, %v3222_v11  ;;  %v4740_v43 = vmax.f32 %v4484_v61, 0.0  ;;  %v3228_v23 = vadd.f32 %v3227_v46, %v13932_v2  ;;  %v16751_v38 = vpack.c.bf16 %v13790_v13, %v13785_v54  ;;  %v3120_v59 = vpop.f32.mrb[37].mxu0  ;;  %v3233_v46 = vpop.f32.mrb[37].mxu1 }
 0x1ab   :  { %10039 = vmatprep.subr.msk.bf16.mxu0 %vm10712_vm1, %v16750_v12  ;;  %9196 = vmatmul.mubr.msk.f32.gmra.mrb[94].mxu0 %vm1027_vm0, %v14149_v52  ;;  %v3119_v53 = vadd.f32 %v3118_v0, %v14019_v51  ;;  %v4742_v12 = vmax.f32 %v4486_v31, 0.0  ;;  %v3232_v11 = vadd.f32 %v3231_v7, %v14034_v30  ;;  %v3121_v2 = vadd.f32 %v3120_v59, %v14038_v32 }
 0x1ac   :  { %10087 = vmatprep.subr.msk.bf16.mxu1 %vm10712_vm1, %v16751_v38  ;;  %9244 = vmatmul.mubr.msk.f32.gmra.mrb[94].mxu1 %vm1027_vm0, %v14149_v52  ;;  %v14191_v54 = vpack.c.bf16 %v4740_v43, %v4708_v60  ;;  %v3234_v51 = vadd.f32 %v3233_v46, %v14046_v18  ;;  %v14199_v24 = vmul.f32 %v13709_v27, %v12605_v50  ;;  %v3124_v60 = vpop.f32.mrb[38].mxu0  ;;  %v4709_v18 = vmax.f32 %v14162_v6, 0.0  ;;  %v3237_v43 = vpop.f32.mrb[38].mxu1 }
 0x1ad   :  { %9277 = vmatprep.mubr.msk.f32.mxu0 %vm1027_vm0, %v13359_v47  ;;  %v4516_v13 = vadd.f32 %v12524_v62, %v3119_v53  ;;  %9325 = vmatprep.mubr.msk.f32.mxu1 %vm1027_vm0, %v13359_v47  ;;  %v14201_v30 = vpack.c.bf16 %v4742_v12, %v4710_v45  ;;  %v14204_v32 = vadd.f32 %v12414_v44, %v3115_v1  ;;  %v3126_v38 = vpop.f32.mrb[39].mxu0  ;;  %v4711_v53 = vmax.f32 %v14174_v35, 0.0 }
 0x1ae   :  { %16752 = vst [vmem:[#allocation79_spill] sm:$0xff] %v14191_v54  ;;  %v4518_v61 = vadd.f32 %v12524_v62, %v3232_v11  ;;  %v14209_v31 = vmul.f32 %v13718_v9, %v12605_v50  ;;  %v14213_v0 = vadd.f32 %v12414_v44, %v3228_v23  ;;  %v3125_v27 = vadd.f32 %v3124_v60, %v14050_v10  ;;  %v3239_v23 = vpop.f32.mrb[39].mxu1  ;;  %v3130_v45 = vpop.f32.mrb[40].mxu0  ;;  %v14697_v54 = vld [vmem:[%s16381_s0 + $0xe60] sm:$0xff] }
 0x1af   :  { %16753 = vst [vmem:[#allocation80_spill] sm:$0xff] %v14201_v30  ;;  %v14218_v1 = vmul.f32 %v13722_v17, %v12605_v50  ;;  %v16754_v7 = vpack.c.bf16 %v13800_v37, %v13795_v33  ;;  %v4517_v9 = vadd.f32 %v12524_v62, %v3121_v2  ;;  %v3238_v6 = vadd.f32 %v3237_v43, %v14054_v25  ;;  %v3243_v46 = vpop.f32.mrb[40].mxu1 }
 0x1b0   :  { %v3127_v10 = vadd.f32 %v3126_v38, %v14063_v36  ;;  %v16755_v59 = vpack.c.bf16 %v13829_v28, %v13824_v56  ;;  %v16756_v17 = vpack.c.bf16 %v13839_v55, %v13834_v41  ;;  %v4772_v33 = vmax.f32 %v4516_v13, 0.0  ;;  %v3132_v13 = vpop.f32.mrb[41].mxu0 }
 0x1b1   :  { %10042 = vmatpush3.bf16.xpose.msk.msra.mxu0 %vm10712_vm1, %v16754_v7  ;;  %v4519_v37 = vadd.f32 %v12524_v62, %v3234_v51  ;;  %v4548_v25 = vadd.f32 %v12553_v14, %v3125_v27  ;;  %v3240_v36 = vadd.f32 %v3239_v23, %v14067_v8  ;;  %v4741_v35 = vmax.f32 %v14204_v32, 0.0 }
 0x1b2   :  { %10090 = vmatpush3.bf16.xpose.msk.msra.mxu1 %vm10712_vm1, %v16755_v59  ;;  %10045 = vmatprep.subr.msk.bf16.mxu0 %vm10712_vm1, %v16756_v17  ;;  %v16757_v28 = vpack.c.bf16 %v13849_v29, %v13844_v42  ;;  %v4774_v56 = vmax.f32 %v4518_v61, 0.0  ;;  %v4550_v41 = vadd.f32 %v12553_v14, %v3238_v6  ;;  %v4549_v55 = vadd.f32 %v12553_v14, %v3127_v10  ;;  %v3245_v61 = vpop.f32.mrb[41].mxu1  ;;  %v3136_v6 = vpop.f32.mrb[42].mxu0 }
 0x1b3   :  { %v4743_v12 = vmax.f32 %v14213_v0, 0.0  ;;  %v4804_v11 = vmax.f32 %v4548_v25, 0.0  ;;  %v4551_v2 = vadd.f32 %v12553_v14, %v3240_v36  ;;  %v3131_v8 = vadd.f32 %v3130_v45, %v14081_v40  ;;  %v3249_v59 = vpop.f32.mrb[42].mxu1  ;;  %v3138_v17 = vpop.f32.mrb[43].mxu0  ;;  %v16764_v45 = vld [vmem:[#allocation58_spill] sm:$0xff] }
 0x1b4   :  { %10093 = vmatprep.subr.msk.bf16.mxu1 %vm10712_vm1, %v16757_v28  ;;  %v4773_v51 = vmax.f32 %v4517_v9, 0.0  ;;  %v4806_v29 = vmax.f32 %v4550_v41, 0.0  ;;  %v3244_v42 = vadd.f32 %v3243_v46, %v14085_v58  ;;  %v3133_v32 = vadd.f32 %v3132_v13, %v14091_v39  ;;  %v3251_v41 = vpop.f32.mrb[43].mxu1  ;;  %v16769_v13 = vld [vmem:[#allocation38_spill] sm:$0xff] }
 0x1b5   :  { %v4775_v60 = vmax.f32 %v4519_v37, 0.0  ;;  %v14255_v27 = vpack.c.bf16 %v4804_v11, %v4772_v33  ;;  %v4580_v43 = vadd.f32 %v12650_v57, %v3131_v8  ;;  %v3246_v0 = vadd.f32 %v3245_v61, %v14095_v20  ;;  %v16760_v33 = vld [vmem:[#allocation56_spill] sm:$0xff]  ;;  %v16761_v37 = vld [vmem:[#allocation57_spill] sm:$0xff] }
 0x1b6   :  { %v14259_v38 = vpack.c.bf16 %v4806_v29, %v4774_v56  ;;  %v4805_v7 = vmax.f32 %v4549_v55, 0.0  ;;  %v4582_v40 = vadd.f32 %v12650_v57, %v3244_v42  ;;  %v4581_v9 = vadd.f32 %v12650_v57, %v3133_v32  ;;  %v16763_v55 = vld [vmem:[#allocation31_spill] sm:$0xff] }
 0x1b7   :  { %16758 = vst [vmem:[#allocation81_spill] sm:$0xff] %v14255_v27  ;;  %v4807_v10 = vmax.f32 %v4551_v2, 0.0  ;;  %v4836_v58 = vmax.f32 %v4580_v43, 0.0  ;;  %v4583_v39 = vadd.f32 %v12650_v57, %v3246_v0  ;;  %v3137_v23 = vadd.f32 %v3136_v6, %v14099_v49  ;;  %v16766_v49 = vld [vmem:[#allocation66_spill] sm:$0xff]  ;;  %v16767_v2 = vld [vmem:[#allocation65_spill] sm:$0xff]  ;;  %v16772_v32 = vld [vmem:[#allocation67_spill] sm:$0xff] }
 0x1b8   :  { %16759 = vst [vmem:[#allocation82_spill] sm:$0xff] %v14259_v38  ;;  %v16762_v25 = vpack.c.bf16 %v16760_v33, %v16761_v37  ;;  %v4838_v20 = vmax.f32 %v4582_v40, 0.0  ;;  %v4837_v36 = vmax.f32 %v4581_v9, 0.0  ;;  %v3250_v28 = vadd.f32 %v3249_v59, %v14103_v26  ;;  %v3142_v40 = vpop.f32.mrb[44].mxu0  ;;  %v14680_v38 = vld [vmem:[%s16381_s0 + $0xfe8] sm:$0xff]  ;;  %v16814_v27 = vld [vmem:[#allocation69_spill] sm:$0xff] }
 0x1b9   :  { %v3139_v56 = vadd.f32 %v3138_v17, %v14109_v22  ;;  %v16765_v11 = vpack.c.bf16 %v16763_v55, %v16764_v45  ;;  %v16768_v8 = vpack.c.bf16 %v16766_v49, %v16767_v2  ;;  %v4839_v46 = vmax.f32 %v4583_v39, 0.0  ;;  %v16771_v22 = vld [vmem:[#allocation68_spill] sm:$0xff]  ;;  %v16782_v49 = vld [vmem:[#allocation71_spill] sm:$0xff]  ;;  %v16783_v2 = vld [vmem:[#allocation70_spill] sm:$0xff] }
 0x1ba   :  { %10048 = vmatpush3.bf16.xpose.msk.msra.mxu0 %vm10712_vm1, %v16762_v25  ;;  %v4612_v29 = vadd.f32 %v16769_v13, %v3137_v23  ;;  %v3252_v26 = vadd.f32 %v3251_v41, %v14113_v16  ;;  %v14284_v42 = vpack.c.bf16 %v4741_v35, %v4709_v18  ;;  %v16773_v61 = vpack.c.bf16 %v16771_v22, %v16772_v32  ;;  %v3255_v35 = vpop.f32.mrb[44].mxu1  ;;  %v3144_v23 = vpop.f32.mrb[45].mxu0 }
 0x1bb   :  { %10096 = vmatpush3.bf16.xpose.msk.msra.mxu1 %vm10712_vm1, %v16765_v11  ;;  %10051 = vmatprep.subr.msk.bf16.mxu0 %vm10712_vm1, %v16768_v8  ;;  %v4614_v43 = vadd.f32 %v16769_v13, %v3250_v28  ;;  %v4613_v0 = vadd.f32 %v16769_v13, %v3139_v56  ;;  %v14293_v9 = vpack.c.bf16 %v4743_v12, %v4711_v53  ;;  %v3257_v28 = vpop.f32.mrb[45].mxu1 }
 0x1bc   :  { %16770 = vst [vmem:[#allocation56_spill] sm:$0xff] %v14284_v42  ;;  %10099 = vmatprep.subr.msk.bf16.mxu1 %vm10712_vm1, %v16773_v61  ;;  %v14295_v6 = vpack.c.bf16 %v4805_v7, %v4773_v51  ;;  %v4868_v39 = vmax.f32 %v4612_v29, 0.0  ;;  %v4615_v16 = vadd.f32 %v16769_v13, %v3252_v26  ;;  %v3143_v18 = vadd.f32 %v3142_v40, %v14121_v21  ;;  %v16778_v51 = vld [vmem:[#allocation42_spill] sm:$0xff]  ;;  %v16785_v29 = vld [vmem:[#allocation73_spill] sm:$0xff]  ;;  %v16786_v26 = vld [vmem:[#allocation72_spill] sm:$0xff] }
 0x1bd   :  { %16774 = vst [vmem:[#allocation57_spill] sm:$0xff] %v14293_v9  ;;  %v14299_v59 = vpack.c.bf16 %v4807_v10, %v4775_v60  ;;  %v4870_v17 = vmax.f32 %v4614_v43, 0.0  ;;  %v4869_v33 = vmax.f32 %v4613_v0, 0.0  ;;  %v3256_v37 = vadd.f32 %v3255_v35, %v14125_v34  ;;  %v3148_v10 = vpop.f32.mrb[46].mxu0  ;;  %v441_v61 = vld [vmem:[%s16381_s0 + $0xc70] sm:$0xff]  ;;  %v14707_v9 = vld [vmem:[%s16381_s0 + $0xf60] sm:$0xff] }
 0x1be   :  { %16775 = vst [vmem:[#allocation31_spill] sm:$0xff] %v14295_v6  ;;  %v3145_v25 = vadd.f32 %v3144_v23, %v14138_v63  ;;  %v14303_v53 = vpack.c.bf16 %v4868_v39, %v4836_v58  ;;  %v4871_v12 = vmax.f32 %v4615_v16, 0.0  ;;  %v4644_v7 = vadd.f32 %v16778_v51, %v3143_v18  ;;  %v3261_v58 = vpop.f32.mrb[46].mxu1  ;;  %v3150_v45 = vpop.f32.mrb[47].mxu0  ;;  %v16791_v0 = vld [vmem:[#allocation23_spill] sm:$0xff]  ;;  %v16792_v16 = vld [vmem:[#allocation77_spill] sm:$0xff] }
 0x1bf   :  { %16776 = vst [vmem:[#allocation58_spill] sm:$0xff] %v14299_v59  ;;  %v3258_v56 = vadd.f32 %v3257_v28, %v14155_v3  ;;  %v14307_v41 = vpack.c.bf16 %v4870_v17, %v4838_v20  ;;  %v4646_v21 = vadd.f32 %v16778_v51, %v3256_v37  ;;  %v14311_v55 = vpack.c.bf16 %v4869_v33, %v4837_v36  ;;  %v3263_v36 = vpop.f32.mrb[47].mxu1  ;;  %v16793_v18 = vld [vmem:[#allocation76_spill] sm:$0xff]  ;;  %v507_v17 = vld [vmem:[%s16381_s0 + $0xe80] sm:$0xff]  ;;  %v508_v33 = vld [vmem:[%s16381_s0 + $0xe88] sm:$0xff] }
 0x1c0   :  { %16777 = vst [vmem:[#allocation66_spill] sm:$0xff] %v14303_v53  ;;  %v4645_v60 = vadd.f32 %v16778_v51, %v3145_v25  ;;  %v3149_v63 = vadd.f32 %v3148_v10, %v14159_v5  ;;  %v14315_v11 = vpack.c.bf16 %v4871_v12, %v4839_v46  ;;  %v16784_v3 = vpack.c.bf16 %v16782_v49, %v16783_v2  ;;  %v16788_v5 = vld [vmem:[#allocation75_spill] sm:$0xff]  ;;  %v16789_v46 = vld [vmem:[#allocation74_spill] sm:$0xff]  ;;  %v474_v23 = vld [vmem:[%s16381_s0 + $0xd78] sm:$0xff] }
 0x1c1   :  { %16779 = vst [vmem:[#allocation65_spill] sm:$0xff] %v14307_v41  ;;  %16780 = vst [vmem:[#allocation68_spill] sm:$0xff] %v14311_v55  ;;  %v4647_v34 = vadd.f32 %v16778_v51, %v3258_v56  ;;  %v3262_v20 = vadd.f32 %v3261_v58, %v14199_v24  ;;  %v3151_v8 = vadd.f32 %v3150_v45, %v14209_v31  ;;  %v442_v24 = vld [vmem:[%s16381_s0 + $0xc78] sm:$0xff]  ;;  %v473_v31 = vld [vmem:[%s16381_s0 + $0xd70] sm:$0xff]  ;;  %v4900_v43 = vmax.f32 %v4644_v7, 0.0 }
 0x1c2   :  { %16781 = vst [vmem:[#allocation67_spill] sm:$0xff] %v14315_v11  ;;  %10054 = vmatpush3.bf16.xpose.msk.msra.mxu0 %vm10712_vm1, %v16784_v3  ;;  %v16787_v22 = vpack.c.bf16 %v16785_v29, %v16786_v26  ;;  %v16790_v32 = vpack.c.bf16 %v16788_v5, %v16789_v46  ;;  %v4676_v40 = vadd.f32 %v16791_v0, %v3149_v63  ;;  %v4902_v37 = vmax.f32 %v4646_v21, 0.0  ;;  %v539_v12 = vld [vmem:[%s16381_s0 + $0xf80] sm:$0xff]  ;;  %v540_v7 = vld [vmem:[%s16381_s0 + $0xf88] sm:$0xff]  ;;  %v509_v46 = vld [vmem:[%s16381_s0 + $0xe90] sm:$0xff] }
 0x1c3   :  { %v3264_v39 = vadd.f32 %v3263_v36, %v14218_v1  ;;  %v16794_v35 = vpack.c.bf16 %v16792_v16, %v16793_v18  ;;  %v4901_v1 = vmax.f32 %v4645_v60, 0.0  ;;  %v4678_v25 = vadd.f32 %v16791_v0, %v3262_v20  ;;  %v492_v26 = vld [vmem:[%s16381_s0 + $0xe08] sm:$0xff]  ;;  %v16799_v16 = vld [vmem:[#allocation53_spill] sm:$0xff]  ;;  %v493_v18 = vld [vmem:[%s16381_s0 + $0xe10] sm:$0xff] }
 0x1c4   :  { %10102 = vmatpush3.bf16.xpose.msk.msra.mxu1 %vm10712_vm1, %v16787_v22  ;;  %10057 = vmatprep.subr.msk.bf16.mxu0 %vm10712_vm1, %v16790_v32  ;;  %v4677_v28 = vadd.f32 %v16791_v0, %v3151_v8  ;;  %v4903_v56 = vmax.f32 %v4647_v34, 0.0  ;;  %v4932_v10 = vmax.f32 %v4676_v40, 0.0  ;;  %v10058_v58 = vpack.c.bf16 %v442_v24, %v441_v61  ;;  %v491_v34 = vld [vmem:[%s16381_s0 + $0xe00] sm:$0xff]  ;;  %v524_v5 = vld [vmem:[%s16381_s0 + $0xf08] sm:$0xff]  ;;  %v510_v32 = vld [vmem:[%s16381_s0 + $0xe98] sm:$0xff]  ;;  %16813 = vst [vmem:[#allocation53_spill] sm:$0xff] %v14680_v38 }
 0x1c5   :  { %10105 = vmatprep.subr.msk.bf16.mxu1 %vm10712_vm1, %v16794_v35  ;;  %v4679_v63 = vadd.f32 %v16791_v0, %v3264_v39  ;;  %v4934_v45 = vmax.f32 %v4678_v25, 0.0  ;;  %v10106_v60 = vpack.c.bf16 %v474_v23, %v473_v31  ;;  %v10109_v49 = vpack.c.bf16 %v508_v33, %v507_v17  ;;  %v523_v22 = vld [vmem:[%s16381_s0 + $0xf00] sm:$0xff]  ;;  %v541_v24 = vld [vmem:[%s16381_s0 + $0xf90] sm:$0xff]  ;;  %v542_v31 = vld [vmem:[%s16381_s0 + $0xf98] sm:$0xff] }
 0x1c6   :  { %v4933_v21 = vmax.f32 %v4677_v28, 0.0  ;;  %v14368_v2 = vpack.c.bf16 %v4932_v10, %v4900_v43  ;;  %v10157_v20 = vpack.c.bf16 %v540_v7, %v539_v12  ;;  %v10112_v61 = vpack.c.bf16 %v492_v26, %v491_v34  ;;  %v494_v35 = vld [vmem:[%s16381_s0 + $0xe18] sm:$0xff]  ;;  %v511_v17 = vld [vmem:[%s16381_s0 + $0xea0] sm:$0xff]  ;;  %v512_v33 = vld [vmem:[%s16381_s0 + $0xea8] sm:$0xff] }
 0x1c7   :  { %v4935_v3 = vmax.f32 %v4679_v63, 0.0  ;;  %v14370_v8 = vpack.c.bf16 %v4934_v45, %v4902_v37  ;;  %v10160_v43 = vpack.c.bf16 %v524_v5, %v523_v22  ;;  %v10115_v40 = vpack.c.bf16 %v510_v32, %v509_v46  ;;  %v526_v23 = vld [vmem:[%s16381_s0 + $0xf18] sm:$0xff]  ;;  %v16800_v37 = vld [vmem:[#allocation55_spill] sm:$0xff]  ;;  %v543_v25 = vld [vmem:[%s16381_s0 + $0xfa0] sm:$0xff] }
 0x1c8   :  { %16795 = vst [vmem:[#allocation71_spill] sm:$0xff] %v14368_v2  ;;  %v14372_v36 = vpack.c.bf16 %v4933_v21, %v4901_v1  ;;  %v10163_v39 = vpack.c.bf16 %v542_v31, %v541_v24  ;;  %v10118_v1 = vpack.c.bf16 %v494_v35, %v493_v18  ;;  %v544_v28 = vld [vmem:[%s16381_s0 + $0xfa8] sm:$0xff]  ;;  %v14459_v7 = vld [vmem:[%s16381_s0 + $0xe20] sm:$0xff]  ;;  %v16802_v10 = vld [vmem:[#allocation52_spill] sm:$0xff] }
 0x1c9   :  { %16796 = vst [vmem:[#allocation70_spill] sm:$0xff] %v14370_v8  ;;  %v14374_v29 = vpack.c.bf16 %v4935_v3, %v4903_v56  ;;  %v16801_v56 = vld [vmem:[#allocation29_spill] sm:$0xff]  ;;  %v14468_v45 = vld [vmem:[%s16381_s0 + $0xe28] sm:$0xff]  ;;  %v10169_v5 = vpack.c.bf16 %v544_v28, %v543_v25  ;;  %v14497_v46 = vld [vmem:[%s16381_s0 + $0xeb0] sm:$0xff] }
 0x1ca   :  { %16797 = vst [vmem:[#allocation73_spill] sm:$0xff] %v14372_v36  ;;  %10060 = vmatpush3.bf16.xpose.msk.msra.mxu0 %vm10712_vm1, %v10058_v58  ;;  %v14463_v63 = vrot.slane %v16802_v10, %v16801_v56  ;;  %v10121_v58 = vpack.c.bf16 %v512_v33, %v511_v17  ;;  %v14473_v21 = vld [vmem:[%s16381_s0 + $0xf20] sm:$0xff]  ;;  %v14502_v32 = vld [vmem:[%s16381_s0 + $0xeb8] sm:$0xff]  ;;  %v14521_v31 = vld [vmem:[%s16381_s0 + $0xe30] sm:$0xff]  ;;  %v10124_v17 = vpack.c.bf16 %v14468_v45, %v14459_v7 }
 0x1cb   :  { %16798 = vst [vmem:[#allocation72_spill] sm:$0xff] %v14374_v29  ;;  %10111 = vmatprep.subr.msk.bf16.mxu0 %vm10712_vm1, %v10109_v49  ;;  %v16803_v49 = vld [vmem:[#allocation28_spill] sm:$0xff]  ;;  %v16805_v26 = vld [vmem:[#allocation46_spill] sm:$0xff]  ;;  %v16810_v36 = vld [vmem:[#allocation13_spill] sm:$0xff]  ;;  %v10127_v6 = vpack.c.bf16 %v14502_v32, %v14497_v46 }
 0x1cc   :  { %10108 = vmatpush3.bf16.xpose.msk.msra.mxu1 %vm10712_vm1, %v10106_v60  ;;  %v14478_v60 = vld [vmem:[%s16381_s0 + $0xf28] sm:$0xff]  ;;  %v14482_v3 = vrot.slane %v16802_v10, %v16803_v49  ;;  %v14490_v22 = vrot.slane %v16802_v10, %v16805_v26  ;;  %v14512_v24 = vld [vmem:[%s16381_s0 + $0xfb8] sm:$0xff]  ;;  %v14551_v35 = vld [vmem:[%s16381_s0 + $0xfc0] sm:$0xff]  ;;  %v14657_v41 = vmul.f32 %v14463_v63, %v16810_v36  ;;  %16815 = vst [vmem:[#allocation55_spill] sm:$0xff] %v14697_v54 }
 0x1cd   :  { %10159 = vmatprep.subr.msk.bf16.mxu1 %vm10712_vm1, %v10157_v20  ;;  %v16804_v20 = vld [vmem:[#allocation7_spill] sm:$0xff]  ;;  %v10172_v33 = vpack.c.bf16 %v14478_v60, %v14473_v21  ;;  %v14573_v25 = vld [vmem:[%s16381_s0 + $0xe40] sm:$0xff]  ;;  %v14598_v45 = vld [vmem:[%s16381_s0 + $0xed8] sm:$0xff] }
 0x1ce   :  { %v14486_v34 = vrot.slane %v16802_v10, %v16804_v20  ;;  %v14546_v18 = vld [vmem:[%s16381_s0 + $0xec8] sm:$0xff]  ;;  %v14593_v10 = vld [vmem:[%s16381_s0 + $0xed0] sm:$0xff]  ;;  %v14608_v60 = vld [vmem:[%s16381_s0 + $0xfd8] sm:$0xff]  ;;  %v14661_v53 = vmul.f32 %v14482_v3, %v16810_v36  ;;  %v14688_v59 = vmul.f32 %v14490_v22, %v16810_v36 }
 0x1cf   :  { %v14578_v28 = vld [vmem:[%s16381_s0 + $0xe48] sm:$0xff]  ;;  %v14603_v21 = vld [vmem:[%s16381_s0 + $0xfd0] sm:$0xff]  ;;  %v14644_v2 = vld [vmem:[%s16381_s0 + $0xf58] sm:$0xff] }
 0x1d0   :  { %v14588_v7 = vld [vmem:[%s16381_s0 + $0xf48] sm:$0xff]  ;;  %v14629_v56 = vld [vmem:[%s16381_s0 + $0xe50] sm:$0xff]  ;;  %v14649_v29 = vld [vmem:[%s16381_s0 + $0xee0] sm:$0xff]  ;;  %v14665_v11 = vmul.f32 %v14486_v34, %v16810_v36 }
 0x1d1   :  { %9278 = vmatmul.mubr.msk.f32.vlgmr.msra.gmra.mrb[96].mxu0 %vm1027_vm0, %v13359_v47  ;;  %v14639_v8 = vld [vmem:[%s16381_s0 + $0xf50] sm:$0xff]  ;;  %16809 = vst [vmem:[#allocation74_spill] sm:$0xff] %v14649_v29  ;;  %v14670_v55 = vld [vmem:[%s16381_s0 + $0xee8] sm:$0xff]  ;;  %v14732_v32 = vld [vmem:[%s16381_s0 + $0xef8] sm:$0xff] }
 0x1d2   :  { %10114 = vmatpush3.bf16.xpose.msk.msra.mxu0 %vm10712_vm1, %v10112_v61  ;;  %9279 = vmatprep.mubr.msk.f32.mxu0 %vm1027_vm0, %v16799_v16  ;;  %v14507_v61 = vld [vmem:[%s16381_s0 + $0xfb0] sm:$0xff]  ;;  %16808 = vst [vmem:[#allocation75_spill] sm:$0xff] %v14639_v8  ;;  %16811 = vst [vmem:[#allocation77_spill] sm:$0xff] %v14670_v55  ;;  %v14722_v42 = vld [vmem:[%s16381_s0 + $0xf68] sm:$0xff] }
 0x1d3   :  { %9326 = vmatmul.mubr.msk.f32.vlgmr.msra.gmra.mrb[96].mxu1 %vm1027_vm0, %v13359_v47  ;;  %10117 = vmatprep.subr.msk.bf16.mxu0 %vm10712_vm1, %v10115_v40  ;;  %v525_v47 = vld [vmem:[%s16381_s0 + $0xf10] sm:$0xff]  ;;  %v10175_v30 = vpack.c.bf16 %v14512_v24, %v14507_v61  ;;  %16818 = vst [vmem:[#allocation69_spill] sm:$0xff] %v14722_v42  ;;  %16820 = vst [vmem:[#allocation84_spill] sm:$0xff] %v14732_v32  ;;  %v14750_v51 = vld [vmem:[%s16381_s0 + $0xff8] sm:$0xff] }
 0x1d4   :  { %10162 = vmatpush3.bf16.xpose.msk.msra.mxu1 %vm10712_vm1, %v10160_v43  ;;  %9327 = vmatprep.mubr.msk.f32.mxu1 %vm1027_vm0, %v16799_v16  ;;  %v10166_v12 = vpack.c.bf16 %v526_v23, %v525_v47  ;;  %v14526_v43 = vld [vmem:[%s16381_s0 + $0xe38] sm:$0xff]  ;;  %v14531_v40 = vld [vmem:[%s16381_s0 + $0xf30] sm:$0xff]  ;;  %v14556_v47 = vld [vmem:[%s16381_s0 + $0xfc8] sm:$0xff]  ;;  %16822 = vst [vmem:[#allocation86_spill] sm:$0xff] %v14750_v51 }
 0x1d5   :  { %9280 = vmatmul.mubr.msk.f32.gmra.mrb[98].mxu0 %vm1027_vm0, %v16799_v16  ;;  %10165 = vmatprep.subr.msk.bf16.mxu1 %vm10712_vm1, %v10163_v39  ;;  %v14536_v39 = vld [vmem:[%s16381_s0 + $0xf38] sm:$0xff]  ;;  %v16806_v23 = vld [vmem:[#allocation54_spill] sm:$0xff]  ;;  %v14727_v36 = vld [vmem:[%s16381_s0 + $0xef0] sm:$0xff] }
 0x1d6   :  { %9281 = vmatprep.mubr.msk.f32.mxu0 %vm1027_vm0, %v16800_v37  ;;  %16817 = vst [vmem:[#allocation54_spill] sm:$0xff] %v14707_v9  ;;  %16819 = vst [vmem:[#allocation83_spill] sm:$0xff] %v14727_v36  ;;  %v14745_v0 = vld [vmem:[%s16381_s0 + $0xff0] sm:$0xff]  ;;  %v16824_v61 = vld [vmem:[#allocation9_spill] sm:$0xff] }
 0x1d7   :  { %9328 = vmatmul.mubr.msk.f32.gmra.mrb[98].mxu1 %vm1027_vm0, %v16799_v16  ;;  %v14541_v16 = vld [vmem:[%s16381_s0 + $0xec0] sm:$0xff]  ;;  %16821 = vst [vmem:[#allocation85_spill] sm:$0xff] %v14745_v0  ;;  %v14782_v13 = vmul.f32 %v14482_v3, %v16824_v61 }
 0x1d8   :  { %9329 = vmatprep.mubr.msk.f32.mxu1 %vm1027_vm0, %v16800_v37  ;;  %v16825_v46 = vld [vmem:[#allocation17_spill] sm:$0xff] }
 0x1d9   :  { %9282 = vmatmul.mubr.msk.f32.gmra.mrb[100].mxu0 %vm1027_vm0, %v16800_v37  ;;  %v14798_v0 = vmul.f32 %v14463_v63, %v16825_v46 }
 0x1da   :  { %10120 = vmatpush3.bf16.xpose.msk.msra.mxu0 %vm10712_vm1, %v10118_v1  ;;  %9283 = vmatprep.mubr.msk.f32.mxu0 %vm1027_vm0, %v16806_v23  ;;  %v3332_v24 = vpop.f32.mrb[48].mxu0 }
 0x1db   :  { %9330 = vmatmul.mubr.msk.f32.gmra.mrb[100].mxu1 %vm1027_vm0, %v16800_v37  ;;  %v16807_v37 = vld [vmem:[#allocation6_spill] sm:$0xff]  ;;  %10123 = vmatprep.subr.msk.bf16.mxu0 %vm10712_vm1, %v10121_v58  ;;  %v14634_v58 = vld [vmem:[%s16381_s0 + $0xe58] sm:$0xff]  ;;  %v3445_v36 = vpop.f32.mrb[48].mxu1  ;;  %v3334_v32 = vpop.f32.mrb[49].mxu0 }
 0x1dc   :  { %10168 = vmatpush3.bf16.xpose.msk.msra.mxu1 %vm10712_vm1, %v10166_v12  ;;  %v14568_v1 = vmul.f32 %v14463_v63, %v16807_v37  ;;  %v14583_v12 = vld [vmem:[%s16381_s0 + $0xf40] sm:$0xff]  ;;  %9331 = vmatprep.mubr.msk.f32.mxu1 %vm1027_vm0, %v16806_v23  ;;  %v14616_v26 = vmul.f32 %v14482_v3, %v16807_v37  ;;  %v14620_v20 = vmul.f32 %v14486_v34, %v16807_v37 }
 0x1dd   :  { %v14624_v49 = vmul.f32 %v14490_v22, %v16807_v37  ;;  %9284 = vmatmul.mubr.msk.f32.gmra.mrb[102].mxu0 %vm1027_vm0, %v16806_v23  ;;  %10171 = vmatprep.subr.msk.bf16.mxu1 %vm10712_vm1, %v10169_v5  ;;  %v14675_v5 = vld [vmem:[%s16381_s0 + $0xfe0] sm:$0xff] }
 0x1de   :  { %16812 = vst [vmem:[#allocation76_spill] sm:$0xff] %v14675_v5  ;;  %9285 = vmatprep.mubr.msk.f32.mxu0 %vm1027_vm0, %v16814_v27  ;;  %v16823_v37 = vld [vmem:[#allocation78_spill] sm:$0xff]  ;;  %v3333_v51 = vadd.f32 %v3332_v24, %v14568_v1  ;;  %v3446_v9 = vadd.f32 %v3445_v36, %v14616_v26  ;;  %v3335_v1 = vadd.f32 %v3334_v32, %v14620_v20  ;;  %v3447_v24 = vpop.f32.mrb[49].mxu1 }
 0x1df   :  { %9332 = vmatmul.mubr.msk.f32.gmra.mrb[102].mxu1 %vm1027_vm0, %v16806_v23  ;;  %v14702_v23 = vld [vmem:[%s16381_s0 + $0xe68] sm:$0xff]  ;;  %v3448_v54 = vadd.f32 %v3447_v24, %v14624_v49  ;;  %v3451_v5 = vpop.f32.mrb[50].mxu1 }
 0x1e0   :  { %16816 = vst [vmem:[#allocation52_spill] sm:$0xff] %v14702_v23  ;;  %9333 = vmatprep.mubr.msk.f32.mxu1 %vm1027_vm0, %v16814_v27  ;;  %v4456_v42 = vadd.f32 %v12357_v19, %v3333_v51  ;;  %v16826_v36 = vld [vmem:[#allocation30_spill] sm:$0xff]  ;;  %v4457_v32 = vadd.f32 %v12357_v19, %v3335_v1 }
 0x1e1   :  { %9286 = vmatmul.mubr.msk.f32.gmra.mrb[104].mxu0 %vm1027_vm0, %v16814_v27  ;;  %v14829_v20 = vmul.f32 %v14463_v63, %v16826_v36  ;;  %v14833_v26 = vmul.f32 %v14482_v3, %v16826_v36  ;;  %v14839_v51 = vmul.f32 %v14486_v34, %v16826_v36  ;;  %v14843_v49 = vmul.f32 %v14490_v22, %v16826_v36 }
 0x1e2   :  { %10126 = vmatpush3.bf16.xpose.msk.msra.mxu0 %vm10712_vm1, %v10124_v17  ;;  %9287 = vmatprep.mubr.msk.f32.mxu0 %vm1027_vm0, %v16823_v37  ;;  %v847_v17 = vmul.f32 %v14463_v63, %v16824_v61  ;;  %v4459_v24 = vadd.f32 %v12357_v19, %v3448_v54  ;;  %v3452_v36 = vadd.f32 %v3451_v5, %v14661_v53  ;;  %v3453_v54 = vpop.f32.mrb[51].mxu1 }
 0x1e3   :  { %9334 = vmatmul.mubr.msk.f32.gmra.mrb[104].mxu1 %vm1027_vm0, %v16814_v27  ;;  %10129 = vmatprep.subr.msk.bf16.mxu0 %vm10712_vm1, %v10127_v6  ;;  %v14794_v27 = vmul.f32 %v14490_v22, %v16824_v61  ;;  %v14807_v6 = vmul.f32 %v14482_v3, %v16825_v46  ;;  %v3454_v53 = vadd.f32 %v3453_v54, %v14688_v59 }
 0x1e4   :  { %10174 = vmatpush3.bf16.xpose.msk.msra.mxu1 %vm10712_vm1, %v10172_v33  ;;  %9335 = vmatprep.mubr.msk.f32.mxu1 %vm1027_vm0, %v16823_v37  ;;  %v14790_v33 = vmul.f32 %v14486_v34, %v16824_v61  ;;  %v14811_v61 = vmul.f32 %v14486_v34, %v16825_v46  ;;  %v16830_v59 = vpack.c.bf16 %v14546_v18, %v14541_v16 }
 0x1e5   :  { %9288 = vmatmul.mubr.msk.f32.gmra.mrb[106].mxu0 %vm1027_vm0, %v16823_v37  ;;  %10177 = vmatprep.subr.msk.bf16.mxu1 %vm10712_vm1, %v10175_v30  ;;  %v14821_v30 = vmul.f32 %v14490_v22, %v16825_v46  ;;  %v3338_v46 = vpop.f32.mrb[50].mxu0 }
 0x1e6   :  { %9289 = vmatprep.mubr.msk.f32.mxu0 %vm1027_vm0, %v14075_v15  ;;  %v3339_v23 = vadd.f32 %v3338_v46, %v14657_v41  ;;  %v3340_v38 = vpop.f32.mrb[51].mxu0  ;;  %v16828_v41 = vpack.c.bf16 %v14526_v43, %v14521_v31  ;;  %v4713_v31 = vmax.f32 %v4457_v32, 0.0 }
 0x1e7   :  { %9336 = vmatmul.mubr.msk.f32.gmra.mrb[106].mxu1 %vm1027_vm0, %v16823_v37  ;;  %v4458_v37 = vadd.f32 %v12357_v19, %v3446_v9  ;;  %v16827_v9 = vld [vmem:[#allocation32_spill] sm:$0xff]  ;;  %v3341_v55 = vadd.f32 %v3340_v38, %v14665_v11  ;;  %v4712_v19 = vmax.f32 %v4456_v42, 0.0  ;;  %v16829_v38 = vpack.c.bf16 %v14536_v39, %v14531_v40  ;;  %v3344_v40 = vpop.f32.mrb[52].mxu0 }
 0x1e8   :  { %9337 = vmatprep.mubr.msk.f32.mxu1 %vm1027_vm0, %v14075_v15  ;;  %v14851_v1 = vmul.f32 %v14463_v63, %v16827_v9  ;;  %v14855_v29 = vmul.f32 %v14482_v3, %v16827_v9  ;;  %v14868_v46 = vmul.f32 %v14486_v34, %v16827_v9  ;;  %v4488_v8 = vadd.f32 %v12414_v44, %v3339_v23  ;;  %v3346_v16 = vpop.f32.mrb[53].mxu0 }
 0x1e9   :  { %9290 = vmatmul.mubr.msk.f32.gmra.mrb[108].mxu0 %vm1027_vm0, %v14075_v15  ;;  %v4714_v11 = vmax.f32 %v4458_v37, 0.0  ;;  %v4490_v42 = vadd.f32 %v12414_v44, %v3452_v36  ;;  %v4489_v43 = vadd.f32 %v12414_v44, %v3341_v55  ;;  %v4715_v39 = vmax.f32 %v4459_v24, 0.0  ;;  %v3457_v37 = vpop.f32.mrb[52].mxu1 }
 0x1ea   :  { %10132 = vmatpush3.bf16.xpose.msk.msra.mxu0 %vm10712_vm1, %v16828_v41  ;;  %9291 = vmatprep.mubr.msk.f32.mxu0 %vm1027_vm0, %v14149_v52  ;;  %v4744_v5 = vmax.f32 %v4488_v8, 0.0  ;;  %v4491_v23 = vadd.f32 %v12414_v44, %v3454_v53  ;;  %v16831_v55 = vpack.c.bf16 %v14556_v47, %v14551_v35  ;;  %v3345_v36 = vadd.f32 %v3344_v40, %v847_v17  ;;  %v3459_v54 = vpop.f32.mrb[53].mxu1  ;;  %v14907_v35 = vld [vmem:[%s16383_s2] sm:$0xff] }
 0x1eb   :  { %9338 = vmatmul.mubr.msk.f32.gmra.mrb[108].mxu1 %vm1027_vm0, %v14075_v15  ;;  %v14881_v15 = vmul.f32 %v14490_v22, %v16827_v9  ;;  %10135 = vmatprep.subr.msk.bf16.mxu0 %vm10712_vm1, %v16830_v59  ;;  %v4746_v18 = vmax.f32 %v4490_v42, 0.0  ;;  %v4745_v32 = vmax.f32 %v4489_v43, 0.0  ;;  %v3458_v8 = vadd.f32 %v3457_v37, %v14782_v13  ;;  %v3463_v59 = vpop.f32.mrb[54].mxu1 }
 0x1ec   :  { %10180 = vmatpush3.bf16.xpose.msk.msra.mxu1 %vm10712_vm1, %v16829_v38  ;;  %9339 = vmatprep.mubr.msk.f32.mxu1 %vm1027_vm0, %v14149_v52  ;;  %v3347_v24 = vadd.f32 %v3346_v16, %v14790_v33  ;;  %v14911_v47 = vpack.c.bf16 %v4744_v5, %v4712_v19  ;;  %v4747_v17 = vmax.f32 %v4491_v23, 0.0  ;;  %v4520_v41 = vadd.f32 %v12524_v62, %v3345_v36  ;;  %v3350_v38 = vpop.f32.mrb[54].mxu0 }
 0x1ed   :  { %9292 = vmatmul.mubr.msk.f32.gmra.mrb[110].mxu0 %vm1027_vm0, %v14149_v52  ;;  %10183 = vmatprep.subr.msk.bf16.mxu1 %vm10712_vm1, %v16831_v55  ;;  %v14917_v13 = vpack.c.bf16 %v4746_v18, %v4714_v11  ;;  %v4522_v33 = vadd.f32 %v12524_v62, %v3458_v8  ;;  %v14921_v42 = vpack.c.bf16 %v4745_v32, %v4713_v31  ;;  %v3352_v40 = vpop.f32.mrb[55].mxu0  ;;  %v3465_v55 = vpop.f32.mrb[55].mxu1 }
 0x1ee   :  { %9373 = vmatprep.mubr.msk.f32.mxu0 %vm1027_vm0, %v14907_v35  ;;  %v4521_v53 = vadd.f32 %v12524_v62, %v3347_v24  ;;  %v3351_v43 = vadd.f32 %v3350_v38, %v14798_v0  ;;  %v14929_v5 = vpack.c.bf16 %v4747_v17, %v4715_v39  ;;  %v16832_v11 = vpack.c.bf16 %v14578_v28, %v14573_v25  ;;  %v3356_v18 = vpop.f32.mrb[56].mxu0 }
 0x1ef   :  { %9340 = vmatmul.mubr.msk.f32.gmra.mrb[110].mxu1 %vm1027_vm0, %v14149_v52  ;;  %v3460_v52 = vadd.f32 %v3459_v54, %v14794_v27  ;;  %v14927_v27 = vmul.f32 %v14463_v63, %v12600_v48  ;;  %v3464_v31 = vadd.f32 %v3463_v59, %v14807_v6  ;;  %v3353_v23 = vadd.f32 %v3352_v40, %v14811_v61  ;;  %v3469_v54 = vpop.f32.mrb[56].mxu1  ;;  %v3358_v17 = vpop.f32.mrb[57].mxu0 }
 0x1f0   :  { %9421 = vmatprep.mubr.msk.f32.mxu1 %vm1027_vm0, %v14907_v35  ;;  %v14940_v0 = vmul.f32 %v14482_v3, %v12600_v48  ;;  %v14944_v36 = vmul.f32 %v14486_v34, %v12600_v48  ;;  %v16833_v39 = vpack.c.bf16 %v14588_v7, %v14583_v12  ;;  %v16834_v25 = vpack.c.bf16 %v14598_v45, %v14593_v10 }
 0x1f1   :  { %v4523_v19 = vadd.f32 %v12524_v62, %v3460_v52  ;;  %v4776_v28 = vmax.f32 %v4520_v41, 0.0  ;;  %v4552_v61 = vadd.f32 %v12553_v14, %v3351_v43  ;;  %v3466_v6 = vadd.f32 %v3465_v55, %v14821_v30 }
 0x1f2   :  { %10138 = vmatpush3.bf16.xpose.msk.msra.mxu0 %vm10712_vm1, %v16832_v11  ;;  %v14960_v37 = vmul.f32 %v14490_v22, %v12600_v48  ;;  %v16835_v12 = vpack.c.bf16 %v14608_v60, %v14603_v21  ;;  %v4778_v7 = vmax.f32 %v4522_v33, 0.0  ;;  %v4777_v10 = vmax.f32 %v4521_v53, 0.0  ;;  %v3471_v33 = vpop.f32.mrb[57].mxu1  ;;  %v3362_v11 = vpop.f32.mrb[58].mxu0 }
 0x1f3   :  { %10141 = vmatprep.subr.msk.bf16.mxu0 %vm10712_vm1, %v16834_v25  ;;  %v4554_v45 = vadd.f32 %v12553_v14, %v3464_v31  ;;  %v4553_v16 = vadd.f32 %v12553_v14, %v3353_v23  ;;  %v4779_v32 = vmax.f32 %v4523_v19, 0.0  ;;  %v4808_v8 = vmax.f32 %v4552_v61, 0.0  ;;  %v3475_v23 = vpop.f32.mrb[58].mxu1  ;;  %v3364_v55 = vpop.f32.mrb[59].mxu0 }
 0x1f4   :  { %10186 = vmatpush3.bf16.xpose.msk.msra.mxu1 %vm10712_vm1, %v16833_v39  ;;  %v4555_v30 = vadd.f32 %v12553_v14, %v3466_v6  ;;  %v3357_v24 = vadd.f32 %v3356_v18, %v14829_v20  ;;  %v3470_v60 = vadd.f32 %v3469_v54, %v14833_v26  ;;  %v3359_v52 = vadd.f32 %v3358_v17, %v14839_v51  ;;  %v3477_v6 = vpop.f32.mrb[59].mxu1  ;;  %v16844_v18 = vld [vmem:[#allocation76_spill] sm:$0xff]  ;;  %v3368_v54 = vpop.f32.mrb[60].mxu0 }
 0x1f5   :  { %10189 = vmatprep.subr.msk.bf16.mxu1 %vm10712_vm1, %v16835_v12  ;;  %v4810_v41 = vmax.f32 %v4554_v45, 0.0  ;;  %v4809_v21 = vmax.f32 %v4553_v16, 0.0  ;;  %v14973_v53 = vpack.c.bf16 %v4808_v8, %v4776_v28  ;;  %v3472_v19 = vadd.f32 %v3471_v33, %v14843_v49  ;;  %v16843_v16 = vld [vmem:[#allocation53_spill] sm:$0xff] }
 0x1f6   :  { %v4811_v38 = vmax.f32 %v4555_v30, 0.0  ;;  %v4584_v43 = vadd.f32 %v12650_v57, %v3357_v24  ;;  %v4586_v20 = vadd.f32 %v12650_v57, %v3470_v60  ;;  %v4585_v40 = vadd.f32 %v12650_v57, %v3359_v52  ;;  %v3370_v60 = vpop.f32.mrb[61].mxu0 }
 0x1f7   :  { %v14977_v59 = vpack.c.bf16 %v4810_v41, %v4778_v7  ;;  %v14981_v31 = vpack.c.bf16 %v4809_v21, %v4777_v10  ;;  %v4587_v26 = vadd.f32 %v12650_v57, %v3472_v19  ;;  %v3363_v51 = vadd.f32 %v3362_v11, %v14851_v1  ;;  %v16847_v11 = vld [vmem:[#allocation42_spill] sm:$0xff] }
 0x1f8   :  { %v1007_v39 = vmul.f32 %v14463_v63, %v12605_v50  ;;  %v14987_v25 = vpack.c.bf16 %v4811_v38, %v4779_v32  ;;  %v16836_v49 = vpack.c.bf16 %v14634_v58, %v14629_v56  ;;  %v3476_v28 = vadd.f32 %v3475_v23, %v14855_v29  ;;  %v16837_v63 = vld [vmem:[#allocation75_spill] sm:$0xff]  ;;  %v16839_v56 = vld [vmem:[#allocation77_spill] sm:$0xff]  ;;  %v16840_v58 = vld [vmem:[#allocation74_spill] sm:$0xff] }
 0x1f9   :  { %v3365_v61 = vadd.f32 %v3364_v55, %v14868_v46  ;;  %v1009_v1 = vmul.f32 %v14482_v3, %v12605_v50  ;;  %v1008_v12 = vmul.f32 %v14486_v34, %v12605_v50  ;;  %v16838_v7 = vpack.c.bf16 %v14644_v2, %v16837_v63  ;;  %v16842_v46 = vld [vmem:[#allocation38_spill] sm:$0xff] }
 0x1fa   :  { %10144 = vmatpush3.bf16.xpose.msk.msra.mxu0 %vm10712_vm1, %v16836_v49  ;;  %v16841_v10 = vpack.c.bf16 %v16839_v56, %v16840_v58  ;;  %v4840_v29 = vmax.f32 %v4584_v43, 0.0  ;;  %v4616_v45 = vadd.f32 %v16842_v46, %v3363_v51  ;;  %v3478_v3 = vadd.f32 %v3477_v6, %v14881_v15  ;;  %v3374_v49 = vpop.f32.mrb[62].mxu0  ;;  %v16851_v56 = vld [vmem:[#allocation55_spill] sm:$0xff] }
 0x1fb   :  { %v1010_v34 = vmul.f32 %v14490_v22, %v12605_v50  ;;  %v16845_v2 = vpack.c.bf16 %v16843_v16, %v16844_v18  ;;  %v4842_v32 = vmax.f32 %v4586_v20, 0.0  ;;  %v4841_v8 = vmax.f32 %v4585_v40, 0.0  ;;  %v3481_v22 = vpop.f32.mrb[60].mxu1  ;;  %v3376_v6 = vpop.f32.mrb[63].mxu0  ;;  %v16857_v18 = vld [vmem:[#allocation83_spill] sm:$0xff] }
 0x1fc   :  { %10192 = vmatpush3.bf16.xpose.msk.msra.mxu1 %vm10712_vm1, %v16838_v7  ;;  %10147 = vmatprep.subr.msk.bf16.mxu0 %vm10712_vm1, %v16841_v10  ;;  %v4618_v30 = vadd.f32 %v16842_v46, %v3476_v28  ;;  %v4617_v24 = vadd.f32 %v16842_v46, %v3365_v61  ;;  %v4843_v17 = vmax.f32 %v4587_v26, 0.0  ;;  %v4872_v41 = vmax.f32 %v4616_v45, 0.0  ;;  %v3483_v19 = vpop.f32.mrb[61].mxu1  ;;  %v16850_v7 = vld [vmem:[#allocation52_spill] sm:$0xff]  ;;  %v16853_v45 = vld [vmem:[#allocation69_spill] sm:$0xff] }
 0x1fd   :  { %10195 = vmatprep.subr.msk.bf16.mxu1 %vm10712_vm1, %v16845_v2  ;;  %v4619_v15 = vadd.f32 %v16842_v46, %v3478_v3  ;;  %v3369_v21 = vadd.f32 %v3368_v54, %v14927_v27  ;;  %v3482_v38 = vadd.f32 %v3481_v22, %v14940_v0  ;;  %v3371_v43 = vadd.f32 %v3370_v60, %v14944_v36  ;;  %v3487_v61 = vpop.f32.mrb[62].mxu1  ;;  %v16854_v3 = vld [vmem:[#allocation54_spill] sm:$0xff] }
 0x1fe   :  { %v4874_v52 = vmax.f32 %v4618_v30, 0.0  ;;  %v4873_v33 = vmax.f32 %v4617_v24, 0.0  ;;  %v15025_v20 = vpack.c.bf16 %v4872_v41, %v4840_v29  ;;  %v3484_v26 = vadd.f32 %v3483_v19, %v14960_v37  ;;  %v3489_v29 = vpop.f32.mrb[63].mxu1  ;;  %v16860_v54 = vld [vmem:[#allocation86_spill] sm:$0xff] }
 0x1ff   :  { %v4875_v40 = vmax.f32 %v4619_v15, 0.0  ;;  %v4648_v51 = vadd.f32 %v16847_v11, %v3369_v21  ;;  %v4650_v27 = vadd.f32 %v16847_v11, %v3482_v38  ;;  %v4649_v55 = vadd.f32 %v16847_v11, %v3371_v43  ;;  %v537_v15 = vld [vmem:[%s16381_s0 + $0xf70] sm:$0xff]  ;;  %v538_v21 = vld [vmem:[%s16381_s0 + $0xf78] sm:$0xff] }
 0x200   :  { %16846 = vst [vmem:[#allocation78_spill] sm:$0xff] %v15025_v20  ;;  %v15029_v23 = vpack.c.bf16 %v4874_v52, %v4842_v32  ;;  %v15033_v28 = vpack.c.bf16 %v4873_v33, %v4841_v8  ;;  %v4651_v0 = vadd.f32 %v16847_v11, %v3484_v26  ;;  %v3375_v36 = vadd.f32 %v3374_v49, %v1007_v39  ;;  %v16856_v39 = vld [vmem:[#allocation84_spill] sm:$0xff]  ;;  %v16859_v8 = vld [vmem:[#allocation23_spill] sm:$0xff] }
 0x201   :  { %v15036_v63 = vpack.c.bf16 %v4875_v40, %v4843_v17  ;;  %v16852_v58 = vpack.c.bf16 %v16850_v7, %v16851_v56  ;;  %v3488_v37 = vadd.f32 %v3487_v61, %v1009_v1  ;;  %v3377_v10 = vadd.f32 %v3376_v6, %v1008_v12  ;;  %v505_v32 = vld [vmem:[%s16381_s0 + $0xe70] sm:$0xff]  ;;  %v506_v1 = vld [vmem:[%s16381_s0 + $0xe78] sm:$0xff] }
 0x202   :  { %16848 = vst [vmem:[#allocation75_spill] sm:$0xff] %v15029_v23  ;;  %v16855_v16 = vpack.c.bf16 %v16853_v45, %v16854_v3  ;;  %v16858_v2 = vpack.c.bf16 %v16856_v39, %v16857_v18  ;;  %v4904_v12 = vmax.f32 %v4648_v51, 0.0  ;;  %v4680_v30 = vadd.f32 %v16859_v8, %v3375_v36  ;;  %v16861_v17 = vld [vmem:[#allocation85_spill] sm:$0xff]  ;;  %v16869_v7 = vld [vmem:[#allocation35_spill] sm:$0xff]  ;;  %v16876_v45 = vld [vmem:[#allocation44_spill] sm:$0xff] }
 0x203   :  { %16849 = vst [vmem:[#allocation77_spill] sm:$0xff] %v15036_v63  ;;  %10150 = vmatpush3.bf16.xpose.msk.msra.mxu0 %vm10712_vm1, %v16852_v58  ;;  %v3490_v24 = vadd.f32 %v3489_v29, %v1010_v34  ;;  %v16862_v41 = vpack.c.bf16 %v16860_v54, %v16861_v17  ;;  %v4906_v22 = vmax.f32 %v4650_v27, 0.0  ;;  %v4905_v60 = vmax.f32 %v4649_v55, 0.0  ;;  %v16867_v55 = vld [vmem:[#allocation34_spill] sm:$0xff]  ;;  %v16870_v56 = vld [vmem:[#allocation37_spill] sm:$0xff]  ;;  %v16871_v58 = vld [vmem:[#allocation39_spill] sm:$0xff] }
 0x204   :  { %10198 = vmatpush3.bf16.xpose.msk.msra.mxu1 %vm10712_vm1, %v16855_v16  ;;  %10153 = vmatprep.subr.msk.bf16.mxu0 %vm10712_vm1, %v16858_v2  ;;  %v4682_v52 = vadd.f32 %v16859_v8, %v3488_v37  ;;  %v4681_v34 = vadd.f32 %v16859_v8, %v3377_v10  ;;  %v4907_v33 = vmax.f32 %v4651_v0, 0.0  ;;  %v4936_v38 = vmax.f32 %v4680_v30, 0.0  ;;  %v16868_v0 = vld [vmem:[#allocation36_spill] sm:$0xff]  ;;  %v16874_v10 = vld [vmem:[#allocation19_spill] sm:$0xff]  ;;  %v16878_v39 = vld [vmem:[#allocation45_spill] sm:$0xff] }
 0x205   :  { %10201 = vmatprep.subr.msk.bf16.mxu1 %vm10712_vm1, %v16862_v41  ;;  %v4683_v43 = vadd.f32 %v16859_v8, %v3490_v24  ;;  %v10154_v19 = vpack.c.bf16 %v506_v1, %v505_v32  ;;  %v10202_v26 = vpack.c.bf16 %v538_v21, %v537_v15  ;;  %v16872_v37 = vld [vmem:[#allocation40_spill] sm:$0xff]  ;;  %v16875_v29 = vld [vmem:[#allocation43_spill] sm:$0xff]  ;;  %v16879_v18 = vld [vmem:[#allocation22_spill] sm:$0xff] }
 0x206   :  { %v4938_v40 = vmax.f32 %v4682_v52, 0.0  ;;  %v4937_v51 = vmax.f32 %v4681_v34, 0.0  ;;  %v15074_v49 = vpack.c.bf16 %v4936_v38, %v4904_v12  ;;  %v10613_v3 = vld [vmem:[%s16383_s2 + $0x10] sm:$0xff]  ;;  %v16880_v2 = vld [vmem:[#allocation25_spill] sm:$0xff]  ;;  %v16883_v24 = vld [vmem:[#allocation14_spill] sm:$0xff] }
 0x207   :  { %v4939_v36 = vmax.f32 %v4683_v43, 0.0  ;;  %v15116_v16 = vld [vmem:[%s16382_s1 + $0x10] sm:$0xff]  ;;  %v10614_v1 = vld [vmem:[%s16383_s2 + $0x18] sm:$0xff]  ;;  %v16890_v38 = vld [vmem:[#allocation6_spill] sm:$0xff] }
 0x208   :  { %16863 = vst [vmem:[#allocation74_spill] sm:$0xff] %v15074_v49  ;;  %v15076_v61 = vpack.c.bf16 %v4938_v40, %v4906_v22  ;;  %v15078_v6 = vpack.c.bf16 %v4937_v51, %v4905_v60  ;;  %16877 = vst [vmem:[#allocation42_spill] sm:$0xff] %v15116_v16  ;;  %v16881_v32 = vld [vmem:[#allocation24_spill] sm:$0xff]  ;;  %v15133_v54 = vrot.slane %v15116_v16, %v16883_v24  ;;  %v16884_v17 = vld [vmem:[#allocation15_spill] sm:$0xff] }
 0x209   :  { %v15080_v27 = vpack.c.bf16 %v4939_v36, %v4907_v33  ;;  %v16882_v12 = vld [vmem:[#allocation12_spill] sm:$0xff]  ;;  %v15139_v41 = vrot.slane %v15116_v16, %v16884_v17  ;;  %v16886_v22 = vld [vmem:[#allocation27_spill] sm:$0xff]  ;;  %v16887_v60 = vld [vmem:[#allocation26_spill] sm:$0xff] }
 0x20a   :  { %16864 = vst [vmem:[#allocation38_spill] sm:$0xff] %v15076_v61  ;;  %16865 = vst [vmem:[#allocation53_spill] sm:$0xff] %v15078_v6  ;;  %v15129_v30 = vrot.slane %v15116_v16, %v16882_v12  ;;  %v16885_v15 = vld [vmem:[#allocation16_spill] sm:$0xff]  ;;  %v16888_v52 = vld [vmem:[#allocation11_spill] sm:$0xff] }
 0x20b   :  { %16866 = vst [vmem:[#allocation76_spill] sm:$0xff] %v15080_v27  ;;  %10156 = vmatpush3.bf16.xpose.msk.msra.mxu0 %vm10712_vm1, %v10154_v19  ;;  %v15143_v21 = vrot.slane %v15116_v16, %v16885_v15  ;;  %v16889_v34 = vld [vmem:[#allocation59_spill] sm:$0xff]  ;;  %v10615_v33 = vld [vmem:[%s16383_s2 + $0x20] sm:$0xff]  ;;  %v789_v19 = vmul.f32 %v15133_v54, %v16890_v38  ;;  %v788_v40 = vmul.f32 %v15139_v41, %v16890_v38  ;;  %v16895_v12 = vld [vmem:[#allocation20_spill] sm:$0xff] }
 0x20c   :  { %10204 = vmatpush3.bf16.xpose.msk.msra.mxu1 %vm10712_vm1, %v10202_v26  ;;  %10206 = vmatprep.subr.bf16.mxu0 %v16867_v55  ;;  %v787_v43 = vmul.f32 %v15129_v30, %v16890_v38  ;;  %v16891_v26 = vld [vmem:[#allocation13_spill] sm:$0xff]  ;;  %v10616_v55 = vld [vmem:[%s16383_s2 + $0x28] sm:$0xff] }
 0x20d   :  { %10222 = vmatprep.subr.bf16.mxu1 %v16868_v0  ;;  %v790_v51 = vmul.f32 %v15143_v21, %v16890_v38  ;;  %v819_v36 = vmul.f32 %v15129_v30, %v16891_v26  ;;  %v821_v0 = vmul.f32 %v15133_v54, %v16891_v26 }
 0x212   :  { %9374 = vmatmul.mubr.msk.f32.vlgmr.msra.gmra.mrb[112].mxu0 %vm1027_vm0, %v14907_v35 }
 0x213   :  { %9422 = vmatmul.mubr.msk.f32.vlgmr.msra.gmra.mrb[112].mxu1 %vm1027_vm0, %v14907_v35  ;;  %10208 = vmatpush1.bf16.msra.mxu0 %v16869_v7  ;;  %v16873_v35 = vld [vmem:[#allocation41_spill] sm:$0xff]  ;;  %v820_v7 = vmul.f32 %v15139_v41, %v16891_v26 }
 0x214   :  { %10224 = vmatpush1.bf16.msra.mxu1 %v16870_v56  ;;  %10210 = vmatprep.subr.bf16.mxu0 %v16871_v58  ;;  %v822_v56 = vmul.f32 %v15143_v21, %v16891_v26  ;;  %v16892_v58 = vld [vmem:[#allocation9_spill] sm:$0xff] }
 0x215   :  { %10226 = vmatprep.subr.bf16.mxu1 %v16872_v37  ;;  %9375 = vmatprep.mubr.msk.f32.mxu0 %vm1027_vm0, %v10612_v4  ;;  %v851_v37 = vmul.f32 %v15129_v30, %v16892_v58 }
 0x216   :  { %9423 = vmatprep.mubr.msk.f32.mxu1 %vm1027_vm0, %v10612_v4  ;;  %9376 = vmatmul.mubr.msk.f32.gmra.mrb[114].mxu0 %vm1027_vm0, %v10612_v4 }
 0x217   :  { %9424 = vmatmul.mubr.msk.f32.gmra.mrb[114].mxu1 %vm1027_vm0, %v10612_v4  ;;  %10212 = vmatpush1.bf16.msra.mxu0 %v16873_v35  ;;  %v15182_v4 = vmul.f32 %v15133_v54, %v16892_v58  ;;  %v15186_v35 = vmul.f32 %v15139_v41, %v16892_v58 }
 0x218   :  { %10228 = vmatpush1.bf16.msra.mxu1 %v16874_v10  ;;  %10214 = vmatprep.subr.bf16.mxu0 %v16875_v29  ;;  %v15190_v10 = vmul.f32 %v15143_v21, %v16892_v58 }
 0x219   :  { %10230 = vmatprep.subr.bf16.mxu1 %v16876_v45  ;;  %9377 = vmatprep.mubr.msk.f32.mxu0 %vm1027_vm0, %v10613_v3  ;;  %v16893_v45 = vld [vmem:[#allocation17_spill] sm:$0xff] }
 0x21a   :  { %9425 = vmatprep.mubr.msk.f32.mxu1 %vm1027_vm0, %v10613_v3  ;;  %9378 = vmatmul.mubr.msk.f32.gmra.mrb[116].mxu0 %vm1027_vm0, %v10613_v3 }
 0x21b   :  { %9426 = vmatmul.mubr.msk.f32.gmra.mrb[116].mxu1 %vm1027_vm0, %v10613_v3  ;;  %10216 = vmatpush1.bf16.msra.mxu0 %v16878_v39  ;;  %v15194_v3 = vmul.f32 %v15129_v30, %v16893_v45  ;;  %v15198_v39 = vmul.f32 %v15133_v54, %v16893_v45 }
 0x21c   :  { %10232 = vmatpush1.bf16.msra.mxu1 %v16879_v18  ;;  %10218 = vmatprep.subr.bf16.mxu0 %v16880_v2  ;;  %v15202_v18 = vmul.f32 %v15139_v41, %v16893_v45  ;;  %v15206_v2 = vmul.f32 %v15143_v21, %v16893_v45 }
 0x21d   :  { %10234 = vmatprep.subr.bf16.mxu1 %v16881_v32  ;;  %9379 = vmatprep.mubr.msk.f32.mxu0 %vm1027_vm0, %v10614_v1 }
 0x21e   :  { %9427 = vmatprep.mubr.msk.f32.mxu1 %vm1027_vm0, %v10614_v1  ;;  %9380 = vmatmul.mubr.msk.f32.gmra.mrb[118].mxu0 %vm1027_vm0, %v10614_v1  ;;  %v3558_v29 = vpop.f32.mrb[64].mxu0 }
 0x21f   :  { %9428 = vmatmul.mubr.msk.f32.gmra.mrb[118].mxu1 %vm1027_vm0, %v10614_v1  ;;  %10220 = vmatpush1.bf16.msra.mxu0 %v16886_v22  ;;  %v3559_v32 = vadd.f32 %v3558_v29, %v787_v43  ;;  %v3671_v1 = vpop.f32.mrb[64].mxu1  ;;  %v3560_v22 = vpop.f32.mrb[65].mxu0  ;;  %v10617_v43 = vld [vmem:[%s16383_s2 + $0x30] sm:$0xff] }
 0x220   :  { %10236 = vmatpush1.bf16.msra.mxu1 %v16887_v60  ;;  %10238 = vmatprep.subr.bf16.mxu0 %v16888_v52  ;;  %v16894_v60 = vld [vmem:[#allocation30_spill] sm:$0xff]  ;;  %v3672_v15 = vadd.f32 %v3671_v1, %v789_v19  ;;  %v3561_v17 = vadd.f32 %v3560_v22, %v788_v40  ;;  %v3673_v24 = vpop.f32.mrb[65].mxu1  ;;  %v15234_v19 = vmul.f32 %v15129_v30, %v16827_v9 }
 0x221   :  { %10254 = vmatprep.subr.bf16.mxu1 %v16889_v34  ;;  %9381 = vmatprep.mubr.msk.f32.mxu0 %vm1027_vm0, %v10615_v33  ;;  %v15211_v52 = vmul.f32 %v15129_v30, %v16894_v60  ;;  %v15215_v34 = vmul.f32 %v15133_v54, %v16894_v60  ;;  %v15228_v29 = vmul.f32 %v15143_v21, %v16894_v60 }
 0x222   :  { %9429 = vmatprep.mubr.msk.f32.mxu1 %vm1027_vm0, %v10615_v33  ;;  %9382 = vmatmul.mubr.msk.f32.gmra.mrb[120].mxu0 %vm1027_vm0, %v10615_v33  ;;  %v4460_v45 = vadd.f32 %v16895_v12, %v3559_v32  ;;  %v3674_v58 = vadd.f32 %v3673_v24, %v790_v51  ;;  %v15238_v40 = vmul.f32 %v15133_v54, %v16827_v9  ;;  %v3564_v22 = vpop.f32.mrb[66].mxu0 }
 0x223   :  { %9430 = vmatmul.mubr.msk.f32.gmra.mrb[120].mxu1 %vm1027_vm0, %v10615_v33  ;;  %9383 = vmatprep.mubr.msk.f32.mxu0 %vm1027_vm0, %v10616_v55  ;;  %v15219_v33 = vmul.f32 %v15139_v41, %v16894_v60  ;;  %v4461_v1 = vadd.f32 %v16895_v12, %v3561_v17  ;;  %v15244_v60 = vmul.f32 %v15139_v41, %v16827_v9  ;;  %v3677_v26 = vpop.f32.mrb[66].mxu1  ;;  %v3566_v38 = vpop.f32.mrb[67].mxu0 }
 0x224   :  { %9431 = vmatprep.mubr.msk.f32.mxu1 %vm1027_vm0, %v10616_v55  ;;  %v15248_v24 = vmul.f32 %v15143_v21, %v16827_v9  ;;  %v4463_v51 = vadd.f32 %v16895_v12, %v3674_v58  ;;  %v3565_v32 = vadd.f32 %v3564_v22, %v819_v36  ;;  %v15258_v17 = vmul.f32 %v15133_v54, %v12600_v48  ;;  %v3679_v16 = vpop.f32.mrb[67].mxu1  ;;  %v10618_v36 = vld [vmem:[%s16383_s2 + $0x38] sm:$0xff] }
 0x225   :  { %v3678_v61 = vadd.f32 %v3677_v26, %v821_v0  ;;  %v3567_v49 = vadd.f32 %v3566_v38, %v820_v7  ;;  %v15267_v58 = vmul.f32 %v15139_v41, %v12600_v48  ;;  %v4716_v22 = vmax.f32 %v4460_v45, 0.0 }
 0x226   :  { %9384 = vmatmul.mubr.msk.f32.gmra.mrb[122].mxu0 %vm1027_vm0, %v10616_v55  ;;  %v4492_v9 = vadd.f32 %v12414_v44, %v3565_v32  ;;  %v15273_v38 = vmul.f32 %v15143_v21, %v12600_v48  ;;  %v4717_v0 = vmax.f32 %v4461_v1, 0.0  ;;  %v3570_v27 = vpop.f32.mrb[68].mxu0  ;;  %v4719_v6 = vmax.f32 %v4463_v51, 0.0 }
 0x227   :  { %9432 = vmatmul.mubr.msk.f32.gmra.mrb[122].mxu1 %vm1027_vm0, %v10616_v55  ;;  %9385 = vmatprep.mubr.msk.f32.mxu0 %vm1027_vm0, %v10617_v43  ;;  %v4462_v55 = vadd.f32 %v16895_v12, %v3672_v15  ;;  %v15254_v15 = vmul.f32 %v15129_v30, %v12600_v48  ;;  %v3680_v12 = vadd.f32 %v3679_v16, %v822_v56  ;;  %v3683_v56 = vpop.f32.mrb[68].mxu1  ;;  %v3572_v32 = vpop.f32.mrb[69].mxu0 }
 0x228   :  { %9433 = vmatprep.mubr.msk.f32.mxu1 %vm1027_vm0, %v10617_v43  ;;  %v4494_v7 = vadd.f32 %v12414_v44, %v3678_v61  ;;  %v4748_v23 = vmax.f32 %v4492_v9, 0.0  ;;  %v3571_v16 = vadd.f32 %v3570_v27, %v851_v37  ;;  %v3684_v9 = vadd.f32 %v3683_v56, %v15182_v4 }
 0x229   :  { %v4718_v26 = vmax.f32 %v4462_v55, 0.0  ;;  %v4495_v45 = vadd.f32 %v12414_v44, %v3680_v12  ;;  %v16542_v55 = vmov 0.0   ;;  %v3573_v61 = vadd.f32 %v3572_v32, %v15186_v35  ;;  %v3685_v12 = vpop.f32.mrb[69].mxu1  ;;  %v16898_v32 = vld [vmem:[#allocation60_spill] sm:$0xff] }
 0x22a   :  { %9386 = vmatmul.mubr.msk.f32.gmra.mrb[124].mxu0 %vm1027_vm0, %v10617_v43  ;;  %v4750_v20 = vmax.f32 %v4494_v7, 0.0  ;;  %v15288_v27 = vpack.c.bf16 %v4748_v23, %v4716_v22  ;;  %v4524_v1 = vadd.f32 %v12524_v62, %v3571_v16  ;;  %v3686_v51 = vadd.f32 %v3685_v12, %v15190_v10  ;;  %v3576_v4 = vpop.f32.mrb[70].mxu0 }
 0x22b   :  { %9434 = vmatmul.mubr.msk.f32.gmra.mrb[124].mxu1 %vm1027_vm0, %v10617_v43  ;;  %9387 = vmatprep.mubr.msk.f32.mxu0 %vm1027_vm0, %v10618_v36  ;;  %v4493_v43 = vadd.f32 %v12414_v44, %v3567_v49  ;;  %v15284_v49 = vld [vmem:[%s16386_s5] sm:$0xff]  ;;  %v4751_v37 = vmax.f32 %v4495_v45, 0.0  ;;  %v4526_v7 = vadd.f32 %v12524_v62, %v3684_v9  ;;  %v3577_v35 = vadd.f32 %v3576_v4, %v15194_v3  ;;  %v3689_v22 = vpop.f32.mrb[70].mxu1  ;;  %v3578_v10 = vpop.f32.mrb[71].mxu0 }
 0x22c   :  { %9435 = vmatprep.mubr.msk.f32.mxu1 %vm1027_vm0, %v10618_v36  ;;  %v15304_v23 = vadd.f32 %v12524_v62, %v3686_v51  ;;  %v3690_v3 = vadd.f32 %v3689_v22, %v15198_v39  ;;  %v3579_v45 = vadd.f32 %v3578_v10, %v15202_v18  ;;  %v3691_v16 = vpop.f32.mrb[71].mxu1  ;;  %v4780_v9 = vmax.f32 %v4524_v1, 0.0  ;;  %v16899_v39 = vld [vmem:[#allocation21_spill] sm:$0xff] }
 0x22d   :  { %v4749_v63 = vmax.f32 %v4493_v43, 0.0  ;;  %v15297_v43 = vadd.f32 %v12524_v62, %v3573_v61  ;;  %v4556_v61 = vadd.f32 %v12553_v14, %v3577_v35  ;;  %v3692_v12 = vadd.f32 %v3691_v16, %v15206_v2 }
 0x22e   :  { %9388 = vmatmul.mubr.msk.f32.gmra.mrb[126].mxu0 %vm1027_vm0, %v10618_v36  ;;  %v4782_v18 = vmax.f32 %v4526_v7, 0.0  ;;  %v4558_v51 = vadd.f32 %v12553_v14, %v3690_v3  ;;  %v4557_v4 = vadd.f32 %v12553_v14, %v3579_v45  ;;  %v3582_v1 = vpop.f32.mrb[72].mxu0 }
 0x22f   :  { %9436 = vmatmul.mubr.msk.f32.gmra.mrb[126].mxu1 %vm1027_vm0, %v10618_v36  ;;  %5061 = vmatprep.mubr.f32.mxu0 %v16542_v55  ;;  %v15293_v36 = vpack.c.bf16 %v4750_v20, %v4718_v26  ;;  %v15299_v56 = vpack.c.bf16 %v4749_v63, %v4717_v0  ;;  %v15309_v20 = vmul.f32 %v15129_v30, %v12605_v50  ;;  %v16896_v63 = vld [vmem:[#allocation61_spill] sm:$0xff]  ;;  %v15319_v0 = vld [vmem:[%s16386_s5 + $0x8] sm:$0xff]  ;;  %v4812_v2 = vmax.f32 %v4556_v61, 0.0  ;;  %v3695_v7 = vpop.f32.mrb[72].mxu1  ;;  %v3584_v10 = vpop.f32.mrb[73].mxu0 }
 0x230   :  { %5150 = vmatprep.mubr.f32.mxu1 %v16542_v55  ;;  %v15311_v26 = vpack.c.bf16 %v4751_v37, %v4719_v6  ;;  %v15325_v30 = vmul.f32 %v15133_v54, %v12605_v50  ;;  %v16897_v6 = vld [vmem:[#allocation62_spill] sm:$0xff]  ;;  %v15333_v37 = vmul.f32 %v15139_v41, %v12605_v50  ;;  %v4781_v54 = vmax.f32 %v15297_v43, 0.0  ;;  %v16900_v43 = vld [vmem:[#allocation63_spill] sm:$0xff] }
 0x231   :  { %v4783_v41 = vmax.f32 %v15304_v23, 0.0  ;;  %v4559_v35 = vadd.f32 %v12553_v14, %v3692_v12  ;;  %v3583_v22 = vadd.f32 %v3582_v1, %v15211_v52  ;;  %v4814_v3 = vmax.f32 %v4558_v51, 0.0  ;;  %v16901_v52 = vld [vmem:[#allocation64_spill] sm:$0xff] }
 0x232   :  { %8589 = vmatmul.mubr.msk.f32.vlgmr.msra.gmra.mrb[128].mxu0 %vm4984_vm2, %v15284_v49  ;;  %v4813_v45 = vmax.f32 %v4557_v4, 0.0  ;;  %v3696_v23 = vadd.f32 %v3695_v7, %v15215_v34  ;;  %v3585_v16 = vadd.f32 %v3584_v10, %v15219_v33  ;;  %v15358_v61 = vpack.c.bf16 %v4812_v2, %v4780_v9  ;;  %v3588_v4 = vpop.f32.mrb[74].mxu0  ;;  %v15385_v7 = vld [vmem:[%s16386_s5 + $0x18] sm:$0xff] }
 0x233   :  { %8593 = vmatmul.mubr.msk.f32.vlgmr.msra.gmra.mrb[128].mxu1 %vm4984_vm2, %v15284_v49  ;;  %10240 = vmatpush1.bf16.msra.mxu0 %v16896_v63  ;;  %v15352_v63 = vld [vmem:[%s16386_s5 + $0x10] sm:$0xff]  ;;  %v4815_v12 = vmax.f32 %v4559_v35, 0.0  ;;  %v15364_v51 = vpack.c.bf16 %v4814_v3, %v4782_v18  ;;  %v3590_v35 = vpop.f32.mrb[75].mxu0 }
 0x234   :  { %10256 = vmatpush1.bf16.msra.mxu1 %v16897_v6  ;;  %10242 = vmatprep.subr.bf16.mxu0 %v16898_v32  ;;  %v3697_v6 = vpop.f32.mrb[73].mxu1  ;;  %v16902_v32 = vld [vmem:[#allocation49_spill] sm:$0xff]  ;;  %v4590_v34 = vadd.f32 %v12650_v57, %v3696_v23  ;;  %v15368_v33 = vadd.f32 %v12650_v57, %v3585_v16  ;;  %v15377_v18 = vpack.c.bf16 %v4813_v45, %v4781_v54  ;;  %v16905_v54 = vld [vmem:[#allocation18_spill] sm:$0xff]  ;;  %v16906_v45 = vld [vmem:[#allocation51_spill] sm:$0xff] }
 0x235   :  { %10258 = vmatprep.subr.bf16.mxu1 %v16899_v39  ;;  %5067 = vmatprep.mubr.f32.mxu0 %v16542_v55  ;;  %v4588_v39 = vadd.f32 %v12650_v57, %v3583_v22  ;;  %v3698_v1 = vadd.f32 %v3697_v6, %v15228_v29  ;;  %v3589_v29 = vadd.f32 %v3588_v4, %v15234_v19  ;;  %v3701_v2 = vpop.f32.mrb[74].mxu1  ;;  %v16904_v22 = vld [vmem:[#allocation10_spill] sm:$0xff] }
 0x236   :  { %5156 = vmatprep.mubr.f32.mxu1 %v16542_v55  ;;  %8590 = vmatmul.mubr.msk.f32.gmra.mrb[130].mxu0 %vm4984_vm2, %v15319_v0  ;;  %v3702_v10 = vadd.f32 %v3701_v2, %v15238_v40  ;;  %v3591_v3 = vadd.f32 %v3590_v35, %v15244_v60  ;;  %v3703_v23 = vpop.f32.mrb[75].mxu1  ;;  %v1014_v19 = vmul.f32 %v15143_v21, %v12605_v50  ;;  %v4846_v60 = vmax.f32 %v4590_v34, 0.0  ;;  %v3594_v4 = vpop.f32.mrb[76].mxu0 }
 0x237   :  { %8594 = vmatmul.mubr.msk.f32.gmra.mrb[130].mxu1 %vm4984_vm2, %v15319_v0  ;;  %10244 = vmatpush1.bf16.msra.mxu0 %v16900_v43  ;;  %v16903_v43 = vld [vmem:[#allocation48_spill] sm:$0xff]  ;;  %v15374_v9 = vadd.f32 %v12650_v57, %v3698_v1  ;;  %v4844_v16 = vmax.f32 %v4588_v39, 0.0  ;;  %v4620_v6 = vadd.f32 %v16842_v46, %v3589_v29  ;;  %v16907_v1 = vld [vmem:[#allocation50_spill] sm:$0xff]  ;;  %v4845_v40 = vmax.f32 %v15368_v33, 0.0  ;;  %v3707_v34 = vpop.f32.mrb[76].mxu1  ;;  %v3596_v29 = vpop.f32.mrb[77].mxu0 }
 0x238   :  { %10260 = vmatpush1.bf16.msra.mxu1 %v16901_v52  ;;  %10246 = vmatprep.subr.bf16.mxu0 %v16902_v32  ;;  %v3704_v52 = vadd.f32 %v3703_v23, %v15248_v24  ;;  %v15395_v32 = vpack.c.bf16 %v4815_v12, %v4783_v41  ;;  %v4622_v21 = vadd.f32 %v16842_v46, %v3702_v10  ;;  %v16908_v33 = vld [vmem:[#allocation33_spill] sm:$0xff]  ;;  %v16910_v23 = vld [vmem:[#allocation56_spill] sm:$0xff] }
 0x239   :  { %10262 = vmatprep.subr.bf16.mxu1 %v16903_v43  ;;  %5073 = vmatprep.mubr.f32.mxu0 %v16542_v55  ;;  %v4621_v43 = vadd.f32 %v16842_v46, %v3591_v3  ;;  %v4847_v24 = vmax.f32 %v15374_v9, 0.0  ;;  %v4876_v41 = vmax.f32 %v4620_v6, 0.0  ;;  %v3595_v39 = vadd.f32 %v3594_v4, %v15254_v15  ;;  %v3709_v3 = vpop.f32.mrb[77].mxu1  ;;  %v16909_v9 = vld [vmem:[#allocation47_spill] sm:$0xff] }
 0x23a   :  { %5162 = vmatprep.mubr.f32.mxu1 %v16542_v55  ;;  %8591 = vmatmul.mubr.msk.f32.gmra.mrb[132].mxu0 %vm4984_vm2, %v15352_v63  ;;  %v4623_v12 = vadd.f32 %v16842_v46, %v3704_v52  ;;  %v4878_v2 = vmax.f32 %v4622_v21, 0.0  ;;  %v3597_v10 = vadd.f32 %v3596_v29, %v15267_v58  ;;  %v3710_v6 = vadd.f32 %v3709_v3, %v15273_v38  ;;  %v16911_v52 = vld [vmem:[#allocation57_spill] sm:$0xff]  ;;  %v3600_v21 = vpop.f32.mrb[78].mxu0  ;;  %v16913_v29 = vld [vmem:[#allocation80_spill] sm:$0xff] }
 0x23b   :  { %8595 = vmatmul.mubr.msk.f32.gmra.mrb[132].mxu1 %vm4984_vm2, %v15352_v63  ;;  %10248 = vmatpush1.bf16.msra.mxu0 %v16904_v22  ;;  %v4877_v35 = vmax.f32 %v4621_v43, 0.0  ;;  %v3708_v22 = vadd.f32 %v3707_v34, %v15258_v17  ;;  %v3601_v38 = vadd.f32 %v3600_v21, %v15309_v20  ;;  %v3713_v43 = vpop.f32.mrb[78].mxu1  ;;  %v3602_v4 = vpop.f32.mrb[79].mxu0  ;;  %v16919_v21 = vld [vmem:[#allocation67_spill] sm:$0xff] }
 0x23c   :  { %10264 = vmatpush1.bf16.msra.mxu1 %v16905_v54  ;;  %10250 = vmatprep.subr.bf16.mxu0 %v16906_v45  ;;  %v15415_v54 = vpack.c.bf16 %v4876_v41, %v4844_v16  ;;  %v4879_v15 = vmax.f32 %v4623_v12, 0.0  ;;  %v4652_v45 = vadd.f32 %v16847_v11, %v3595_v39  ;;  %v4653_v58 = vadd.f32 %v16847_v11, %v3597_v10  ;;  %v3715_v34 = vpop.f32.mrb[79].mxu1 }
 0x23d   :  { %10266 = vmatprep.subr.bf16.mxu1 %v16907_v1  ;;  %5079 = vmatprep.mubr.f32.mxu0 %v16542_v55  ;;  %v15421_v1 = vpack.c.bf16 %v4878_v2, %v4846_v60  ;;  %v4654_v17 = vadd.f32 %v16847_v11, %v3708_v22  ;;  %v4655_v16 = vadd.f32 %v16847_v11, %v3710_v6  ;;  %v16912_v60 = vld [vmem:[#allocation79_spill] sm:$0xff]  ;;  %v16917_v6 = vld [vmem:[#allocation82_spill] sm:$0xff] }
 0x23e   :  { %5168 = vmatprep.mubr.f32.mxu1 %v16542_v55  ;;  %8592 = vmatmul.mubr.msk.f32.gmra.mrb[134].mxu0 %vm4984_vm2, %v15385_v7  ;;  %v15430_v41 = vpack.c.bf16 %v4877_v35, %v4845_v40  ;;  %v3714_v12 = vadd.f32 %v3713_v43, %v15325_v30  ;;  %v3603_v39 = vadd.f32 %v3602_v4, %v15333_v37  ;;  %v4908_v2 = vmax.f32 %v4652_v45, 0.0  ;;  %v16915_v35 = vld [vmem:[#allocation58_spill] sm:$0xff] }
 0x23f   :  { %8596 = vmatmul.mubr.msk.f32.gmra.mrb[134].mxu1 %vm4984_vm2, %v15385_v7  ;;  %10252 = vmatpush1.bf16.msra.mxu0 %v16908_v33  ;;  %v16914_v33 = vld [vmem:[#allocation31_spill] sm:$0xff]  ;;  %v4684_v20 = vadd.f32 %v16859_v8, %v3601_v38  ;;  %v3716_v22 = vadd.f32 %v3715_v34, %v1014_v19  ;;  %v15440_v40 = vpack.c.bf16 %v4879_v15, %v4847_v24  ;;  %v4910_v10 = vmax.f32 %v4654_v17, 0.0  ;;  %v16916_v24 = vld [vmem:[#allocation81_spill] sm:$0xff]  ;;  %v16920_v4 = vld [vmem:[#allocation66_spill] sm:$0xff] }
 0x240   :  { %10268 = vmatpush1.bf16.msra.mxu1 %v16909_v9  ;;  %10270 = vmatprep.subr.bf16.mxu0 %v16910_v23  ;;  %v4909_v3 = vmax.f32 %v4653_v58, 0.0  ;;  %v4686_v30 = vadd.f32 %v16859_v8, %v3714_v12  ;;  %v4685_v37 = vadd.f32 %v16859_v8, %v3603_v39  ;;  %v4911_v9 = vmax.f32 %v4655_v16, 0.0  ;;  %v16922_v12 = vld [vmem:[#allocation73_spill] sm:$0xff]  ;;  %v16923_v39 = vld [vmem:[#allocation72_spill] sm:$0xff]  ;;  %v16924_v34 = vld [vmem:[#allocation71_spill] sm:$0xff] }
 0x241   :  { %10286 = vmatprep.subr.bf16.mxu1 %v16911_v52  ;;  %5239 = vmatprep.mubr.f32.mxu0 %v16542_v55  ;;  %v4940_v23 = vmax.f32 %v4684_v20, 0.0  ;;  %v4687_v19 = vadd.f32 %v16859_v8, %v3716_v22  ;;  %v16918_v52 = vld [vmem:[#allocation68_spill] sm:$0xff]  ;;  %v16935_v22 = vld [vmem:[#allocation46_spill] sm:$0xff] }
 0x242   :  { %5328 = vmatprep.mubr.f32.mxu1 %v16542_v55  ;;  %8597 = vmatmul.mubr.msk.f32.vlgmr.msra.gmra.mrb[136].mxu0 %vm4984_vm2, %v15284_v49  ;;  %v4942_v15 = vmax.f32 %v4686_v30, 0.0  ;;  %v4941_v45 = vmax.f32 %v4685_v37, 0.0  ;;  %v16938_v30 = vld [vmem:[#allocation6_spill] sm:$0xff] }
 0x243   :  { %8601 = vmatmul.mubr.msk.f32.vlgmr.msra.gmra.mrb[136].mxu1 %vm4984_vm2, %v15284_v49  ;;  %10272 = vmatpush1.bf16.msra.mxu0 %v16912_v60  ;;  %v15455_v17 = vpack.c.bf16 %v4940_v23, %v4908_v2  ;;  %v4943_v58 = vmax.f32 %v4687_v19, 0.0  ;;  %v16921_v60 = vld [vmem:[#allocation65_spill] sm:$0xff]  ;;  %v16934_v2 = vld [vmem:[#allocation7_spill] sm:$0xff] }
 0x244   :  { %10288 = vmatpush1.bf16.msra.mxu1 %v16913_v29  ;;  %10274 = vmatprep.subr.bf16.mxu0 %v16914_v33  ;;  %v15459_v16 = vpack.c.bf16 %v4942_v15, %v4910_v10  ;;  %v15461_v38 = vpack.c.bf16 %v4941_v45, %v4909_v3  ;;  %v16925_v29 = vld [vmem:[#allocation70_spill] sm:$0xff] }
 0x245   :  { %10290 = vmatprep.subr.bf16.mxu1 %v16915_v35  ;;  %5245 = vmatprep.mubr.f32.mxu0 %v16542_v55  ;;  %v15466_v43 = vpack.c.bf16 %v4943_v58, %v4911_v9  ;;  %v16936_v10 = vld [vmem:[#allocation74_spill] sm:$0xff] }
 0x246   :  { %5334 = vmatprep.mubr.f32.mxu1 %v16542_v55  ;;  %8598 = vmatmul.mubr.msk.f32.gmra.mrb[138].mxu0 %vm4984_vm2, %v15319_v0  ;;  %v16937_v3 = vld [vmem:[#allocation38_spill] sm:$0xff] }
 0x247   :  { %8602 = vmatmul.mubr.msk.f32.gmra.mrb[138].mxu1 %vm4984_vm2, %v15319_v0  ;;  %10276 = vmatpush1.bf16.msra.mxu0 %v16916_v24 }
 0x248   :  { %10292 = vmatpush1.bf16.msra.mxu1 %v16917_v6  ;;  %10278 = vmatprep.subr.bf16.mxu0 %v16918_v52  ;;  %v16940_v6 = vld [vmem:[#allocation9_spill] sm:$0xff] }
 0x249   :  { %10294 = vmatprep.subr.bf16.mxu1 %v16919_v21  ;;  %5251 = vmatprep.mubr.f32.mxu0 %v16542_v55 }
 0x24a   :  { %5340 = vmatprep.mubr.f32.mxu1 %v16542_v55  ;;  %8599 = vmatmul.mubr.msk.f32.gmra.mrb[140].mxu0 %vm4984_vm2, %v15352_v63 }
 0x24b   :  { %8603 = vmatmul.mubr.msk.f32.gmra.mrb[140].mxu1 %vm4984_vm2, %v15352_v63  ;;  %10280 = vmatpush1.bf16.msra.mxu0 %v16920_v4 }
 0x24c   :  { %10296 = vmatpush1.bf16.msra.mxu1 %v16921_v60  ;;  %10282 = vmatprep.subr.bf16.mxu0 %v16922_v12 }
 0x24d   :  { %10298 = vmatprep.subr.bf16.mxu1 %v16923_v39  ;;  %5257 = vmatprep.mubr.f32.mxu0 %v16542_v55 }
 0x24e   :  { %5346 = vmatprep.mubr.f32.mxu1 %v16542_v55  ;;  %8600 = vmatmul.mubr.msk.f32.gmra.mrb[142].mxu0 %vm4984_vm2, %v15385_v7 }
 0x24f   :  { %8604 = vmatmul.mubr.msk.f32.gmra.mrb[142].mxu1 %vm4984_vm2, %v15385_v7  ;;  %10284 = vmatpush1.bf16.msra.mxu0 %v16924_v34 }
 0x250   :  { %10300 = vmatpush1.bf16.msra.mxu1 %v16925_v29  ;;  %10302 = vmatprep.subr.bf16.mxu0 %v14921_v42  ;;  %v16928_v42 = vld [vmem:[#allocation75_spill] sm:$0xff] }
 0x251   :  { %10318 = vmatprep.subr.bf16.mxu1 %v14929_v5  ;;  %5417 = vmatprep.mubr.f32.mxu0 %v16542_v55  ;;  %v16929_v5 = vld [vmem:[#allocation53_spill] sm:$0xff] }
 0x252   :  { %5506 = vmatprep.mubr.f32.mxu1 %v16542_v55  ;;  %8605 = vmatmul.mubr.msk.f32.vlgmr.msra.gmra.mrb[144].mxu0 %vm4984_vm2, %v15284_v49 }
 0x253   :  { %8609 = vmatmul.mubr.msk.f32.vlgmr.msra.gmra.mrb[144].mxu1 %vm4984_vm2, %v15284_v49  ;;  %10304 = vmatpush1.bf16.msra.mxu0 %v14911_v47  ;;  %v16926_v47 = vld [vmem:[#allocation77_spill] sm:$0xff] }
 0x254   :  { %10320 = vmatpush1.bf16.msra.mxu1 %v14917_v13  ;;  %10306 = vmatprep.subr.bf16.mxu0 %v14981_v31  ;;  %v16927_v13 = vld [vmem:[#allocation78_spill] sm:$0xff] }
 0x255   :  { %10322 = vmatprep.subr.bf16.mxu1 %v14987_v25  ;;  %5423 = vmatprep.mubr.f32.mxu0 %v16542_v55  ;;  %v16932_v31 = vld [vmem:[#allocation42_spill] sm:$0xff] }
 0x256   :  { %5512 = vmatprep.mubr.f32.mxu1 %v16542_v55  ;;  %8606 = vmatmul.mubr.msk.f32.gmra.mrb[146].mxu0 %vm4984_vm2, %v15319_v0  ;;  %v15525_v20 = vrot.slane %v16932_v31, %v16934_v2  ;;  %v15532_v35 = vrot.slane %v16932_v31, %v16935_v22  ;;  %v16945_v22 = vmov 0.0  }
 0x257   :  { %8610 = vmatmul.mubr.msk.f32.gmra.mrb[146].mxu1 %vm4984_vm2, %v15319_v0  ;;  %10308 = vmatpush1.bf16.msra.mxu0 %v14973_v53  ;;  %v16930_v53 = vld [vmem:[#allocation76_spill] sm:$0xff] }
 0x258   :  { %10324 = vmatpush1.bf16.msra.mxu1 %v14977_v59  ;;  %10310 = vmatprep.subr.bf16.mxu0 %v15033_v28  ;;  %v16931_v59 = vld [vmem:[#allocation29_spill] sm:$0xff]  ;;  %v16933_v28 = vld [vmem:[#allocation28_spill] sm:$0xff]  ;;  %v792_v23 = vmul.f32 %v15525_v20, %v16938_v30  ;;  %v15579_v21 = vmul.f32 %v15532_v35, %v16940_v6 }
 0x259   :  { %10326 = vmatprep.subr.bf16.mxu1 %v16926_v47  ;;  %5429 = vmatprep.mubr.f32.mxu0 %v16542_v55  ;;  %v15517_v25 = vrot.slane %v16932_v31, %v16931_v59  ;;  %v15521_v33 = vrot.slane %v16932_v31, %v16933_v28  ;;  %v16942_v47 = vld [vmem:[#allocation30_spill] sm:$0xff] }
 0x25a   :  { %5518 = vmatprep.mubr.f32.mxu1 %v16542_v55  ;;  %8607 = vmatmul.mubr.msk.f32.gmra.mrb[148].mxu0 %vm4984_vm2, %v15352_v63 }
 0x25b   :  { %8611 = vmatmul.mubr.msk.f32.gmra.mrb[148].mxu1 %vm4984_vm2, %v15352_v63  ;;  %10312 = vmatpush1.bf16.msra.mxu0 %v16927_v13  ;;  %v791_v37 = vmul.f32 %v15517_v25, %v16938_v30  ;;  %v793_v9 = vmul.f32 %v15521_v33, %v16938_v30  ;;  %v15565_v52 = vmul.f32 %v15517_v25, %v16940_v6 }
 0x25c   :  { %10328 = vmatpush1.bf16.msra.mxu1 %v16928_v42  ;;  %10314 = vmatprep.subr.bf16.mxu0 %v16929_v5  ;;  %v15571_v58 = vmul.f32 %v15521_v33, %v16940_v6  ;;  %v15604_v13 = vmul.f32 %v15517_v25, %v16942_v47  ;;  %v15611_v31 = vmul.f32 %v15521_v33, %v16942_v47 }
 0x25d   :  { %10330 = vmatprep.subr.bf16.mxu1 %v16930_v53  ;;  %5435 = vmatprep.mubr.f32.mxu0 %v16542_v55 }
 0x25e   :  { %5524 = vmatprep.mubr.f32.mxu1 %v16542_v55  ;;  %8608 = vmatmul.mubr.msk.f32.gmra.mrb[150].mxu0 %vm4984_vm2, %v15385_v7 }
 0x25f   :  { %8612 = vmatmul.mubr.msk.f32.gmra.mrb[150].mxu1 %vm4984_vm2, %v15385_v7  ;;  %10316 = vmatpush1.bf16.msra.mxu0 %v16936_v10  ;;  %v16943_v10 = vld [vmem:[#allocation20_spill] sm:$0xff] }
 0x260   :  { %10332 = vmatpush1.bf16.msra.mxu1 %v16937_v3  ;;  %10334 = vmatprep.subr.bf16.mxu0 %v15299_v56  ;;  %v794_v56 = vmul.f32 %v15532_v35, %v16938_v30 }
 0x261   :  { %10350 = vmatprep.subr.bf16.mxu1 %v15311_v26  ;;  %5595 = vmatprep.mubr.f32.mxu0 %v16542_v55  ;;  %v16939_v26 = vld [vmem:[#allocation13_spill] sm:$0xff] }
 0x262   :  { %5684 = vmatprep.mubr.f32.mxu1 %v16542_v55  ;;  %8613 = vmatmul.mubr.msk.f32.vlgmr.msra.gmra.mrb[152].mxu0 %vm4984_vm2, %v15284_v49  ;;  %v823_v19 = vmul.f32 %v15517_v25, %v16939_v26  ;;  %v825_v24 = vmul.f32 %v15521_v33, %v16939_v26  ;;  %v824_v15 = vmul.f32 %v15525_v20, %v16939_v26  ;;  %v3784_v4 = vpop.f32.mrb[80].mxu0 }
 0x263   :  { %8617 = vmatmul.mubr.msk.f32.vlgmr.msra.gmra.mrb[152].mxu1 %vm4984_vm2, %v15284_v49  ;;  %10336 = vmatpush1.bf16.msra.mxu0 %v15288_v27  ;;  %v826_v45 = vmul.f32 %v15532_v35, %v16939_v26  ;;  %v15575_v27 = vmul.f32 %v15525_v20, %v16940_v6  ;;  %v3785_v39 = vadd.f32 %v3784_v4, %v791_v37  ;;  %v3897_v34 = vpop.f32.mrb[80].mxu1 }
 0x264   :  { %10352 = vmatpush1.bf16.msra.mxu1 %v15293_v36  ;;  %10338 = vmatprep.subr.bf16.mxu0 %v15377_v18  ;;  %v16941_v36 = vld [vmem:[#allocation17_spill] sm:$0xff]  ;;  %v3898_v42 = vadd.f32 %v3897_v34, %v793_v9  ;;  %v3899_v53 = vpop.f32.mrb[81].mxu1  ;;  %v15618_v9 = vmul.f32 %v15525_v20, %v16942_v47 }
 0x265   :  { %10354 = vmatprep.subr.bf16.mxu1 %v15395_v32  ;;  %5601 = vmatprep.mubr.f32.mxu0 %v16542_v55  ;;  %v15585_v18 = vmul.f32 %v15517_v25, %v16941_v36  ;;  %v15589_v60 = vmul.f32 %v15521_v33, %v16941_v36  ;;  %v15593_v12 = vmul.f32 %v15525_v20, %v16941_v36  ;;  %v3786_v32 = vpop.f32.mrb[81].mxu0 }
 0x266   :  { %5690 = vmatprep.mubr.f32.mxu1 %v16542_v55  ;;  %8614 = vmatmul.mubr.msk.f32.gmra.mrb[154].mxu0 %vm4984_vm2, %v15319_v0  ;;  %v15600_v29 = vmul.f32 %v15532_v35, %v16941_v36  ;;  %v3787_v5 = vadd.f32 %v3786_v32, %v792_v23  ;;  %v4464_v3 = vadd.f32 %v16943_v10, %v3785_v39  ;;  %v16944_v32 = vld [vmem:[#allocation32_spill] sm:$0xff] }
 0x267   :  { %8618 = vmatmul.mubr.msk.f32.gmra.mrb[154].mxu1 %vm4984_vm2, %v15319_v0  ;;  %10340 = vmatpush1.bf16.msra.mxu0 %v15358_v61  ;;  %v3900_v37 = vadd.f32 %v3899_v53, %v794_v56  ;;  %v4466_v23 = vadd.f32 %v16943_v10, %v3898_v42  ;;  %v3790_v61 = vpop.f32.mrb[82].mxu0  ;;  %v15626_v56 = vmul.f32 %v15532_v35, %v16942_v47  ;;  %v3903_v39 = vpop.f32.mrb[82].mxu1 }
 0x268   :  { %10356 = vmatpush1.bf16.msra.mxu1 %v15364_v51  ;;  %10342 = vmatprep.subr.bf16.mxu0 %v15430_v41  ;;  %v4465_v4 = vadd.f32 %v16943_v10, %v3787_v5  ;;  %v3791_v41 = vadd.f32 %v3790_v61, %v823_v19  ;;  %v3792_v34 = vpop.f32.mrb[83].mxu0  ;;  %v3904_v42 = vadd.f32 %v3903_v39, %v825_v24  ;;  %v3905_v53 = vpop.f32.mrb[83].mxu1 }
 0x269   :  { %10358 = vmatprep.subr.bf16.mxu1 %v15440_v40  ;;  %5607 = vmatprep.mubr.f32.mxu0 %v16542_v55  ;;  %v4467_v51 = vadd.f32 %v16943_v10, %v3900_v37  ;;  %v15634_v40 = vmul.f32 %v15517_v25, %v16944_v32  ;;  %v3793_v5 = vadd.f32 %v3792_v34, %v824_v15  ;;  %v4720_v37 = vmax.f32 %v4464_v3, 0.0 }
 0x26a   :  { %5696 = vmatprep.mubr.f32.mxu1 %v16542_v55  ;;  %8615 = vmatmul.mubr.msk.f32.gmra.mrb[156].mxu0 %vm4984_vm2, %v15352_v63  ;;  %v15641_v19 = vmul.f32 %v15521_v33, %v16944_v32  ;;  %v4496_v61 = vadd.f32 %v12414_v44, %v3791_v41  ;;  %v3906_v55 = vadd.f32 %v3905_v53, %v826_v45  ;;  %v4722_v15 = vmax.f32 %v4466_v23, 0.0  ;;  %v3796_v3 = vpop.f32.mrb[84].mxu0 }
 0x26b   :  { %8619 = vmatmul.mubr.msk.f32.gmra.mrb[156].mxu1 %vm4984_vm2, %v15352_v63  ;;  %10344 = vmatpush1.bf16.msra.mxu0 %v15415_v54  ;;  %v15648_v24 = vmul.f32 %v15525_v20, %v16944_v32  ;;  %v4721_v39 = vmax.f32 %v4465_v4, 0.0  ;;  %v4498_v54 = vadd.f32 %v12414_v44, %v3904_v42  ;;  %v4497_v34 = vadd.f32 %v12414_v44, %v3793_v5  ;;  %v3909_v53 = vpop.f32.mrb[84].mxu1  ;;  %v3798_v23 = vpop.f32.mrb[85].mxu0 }
 0x26c   :  { %10360 = vmatpush1.bf16.msra.mxu1 %v15421_v1  ;;  %10346 = vmatprep.subr.bf16.mxu0 %v15461_v38  ;;  %v4723_v45 = vmax.f32 %v4467_v51, 0.0  ;;  %v4752_v41 = vmax.f32 %v4496_v61, 0.0  ;;  %v4499_v1 = vadd.f32 %v12414_v44, %v3906_v55  ;;  %v3797_v38 = vadd.f32 %v3796_v3, %v15565_v52  ;;  %v3911_v2 = vpop.f32.mrb[85].mxu1 }
 0x26d   :  { %10362 = vmatprep.subr.bf16.mxu1 %v15466_v43  ;;  %5613 = vmatprep.mubr.f32.mxu0 %v16945_v22  ;;  %v4754_v4 = vmax.f32 %v4498_v54, 0.0  ;;  %v4753_v42 = vmax.f32 %v4497_v34, 0.0  ;;  %v3910_v43 = vadd.f32 %v3909_v53, %v15571_v58  ;;  %v3799_v5 = vadd.f32 %v3798_v23, %v15575_v27 }
 0x26e   :  { %5702 = vmatprep.mubr.f32.mxu1 %v16945_v22  ;;  %8616 = vmatmul.mubr.msk.f32.gmra.mrb[158].mxu0 %vm4984_vm2, %v15385_v7  ;;  %v10367_v55 = vpack.c.bf16 %v4752_v41, %v4720_v37  ;;  %v4755_v52 = vmax.f32 %v4499_v1, 0.0  ;;  %v4528_v51 = vadd.f32 %v12524_v62, %v3797_v38  ;;  %v3912_v61 = vadd.f32 %v3911_v2, %v15579_v21  ;;  %v3802_v34 = vpop.f32.mrb[86].mxu0 }
 0x26f   :  { %8620 = vmatmul.mubr.msk.f32.gmra.mrb[158].mxu1 %vm4984_vm2, %v15385_v7  ;;  %10348 = vmatpush1.bf16.msra.mxu0 %v15455_v17  ;;  %v10383_v54 = vpack.c.bf16 %v4754_v4, %v4722_v15  ;;  %v4530_v58 = vadd.f32 %v12524_v62, %v3910_v43  ;;  %v4529_v27 = vadd.f32 %v12524_v62, %v3799_v5  ;;  %v3915_v41 = vpop.f32.mrb[86].mxu1  ;;  %v3804_v1 = vpop.f32.mrb[87].mxu0 }
 0x270   :  { %10364 = vmatpush1.bf16.msra.mxu1 %v15459_v16  ;;  %5773 = vmatprep.mubr.f32.mxu0 %v16945_v22  ;;  %v10365_v3 = vpack.c.bf16 %v4753_v42, %v4721_v39  ;;  %v4531_v17 = vadd.f32 %v12524_v62, %v3912_v61  ;;  %v3803_v37 = vadd.f32 %v3802_v34, %v15585_v18  ;;  %v3917_v38 = vpop.f32.mrb[87].mxu1  ;;  %v4784_v39 = vmax.f32 %v4528_v51, 0.0 }
 0x271   :  { %5862 = vmatprep.mubr.f32.mxu1 %v16945_v22  ;;  %v10381_v16 = vpack.c.bf16 %v4755_v52, %v4723_v45  ;;  %v954_v2 = vmul.f32 %v15532_v35, %v16944_v32  ;;  %v3916_v21 = vadd.f32 %v3915_v41, %v15589_v60  ;;  %v3805_v15 = vadd.f32 %v3804_v1, %v15593_v12 }
 0x272   :  { %8621 = vmatmul.mubr.msk.f32.vlgmr.msra.gmra.mrb[160].mxu0 %vm4984_vm2, %v15284_v49  ;;  %10366 = vmatprep.subr.bf16.mxu0 %v10365_v3  ;;  %v15683_v18 = vmul.f32 %v15517_v25, %v12600_v48  ;;  %v4560_v53 = vadd.f32 %v12553_v14, %v3803_v37  ;;  %v3918_v45 = vadd.f32 %v3917_v38, %v15600_v29  ;;  %v4786_v12 = vmax.f32 %v4530_v58, 0.0  ;;  %v3808_v43 = vpop.f32.mrb[88].mxu0 }
 0x273   :  { %8625 = vmatmul.mubr.msk.f32.vlgmr.msra.gmra.mrb[160].mxu1 %vm4984_vm2, %v15284_v49  ;;  %10382 = vmatprep.subr.bf16.mxu1 %v10381_v16  ;;  %v15689_v60 = vmul.f32 %v15521_v33, %v12600_v48  ;;  %v4785_v23 = vmax.f32 %v4529_v27, 0.0  ;;  %v4562_v4 = vadd.f32 %v12553_v14, %v3916_v21  ;;  %v4561_v42 = vadd.f32 %v12553_v14, %v3805_v15  ;;  %v3921_v51 = vpop.f32.mrb[88].mxu1  ;;  %v3810_v61 = vpop.f32.mrb[89].mxu0 }
 0x274   :  { %10368 = vmatpush1.bf16.msra.mxu0 %v10367_v55  ;;  %10384 = vmatpush1.bf16.msra.mxu1 %v10383_v54  ;;  %v4787_v5 = vmax.f32 %v4531_v17, 0.0  ;;  %v4816_v52 = vmax.f32 %v4560_v53, 0.0  ;;  %v4563_v29 = vadd.f32 %v12553_v14, %v3918_v45  ;;  %v3809_v55 = vadd.f32 %v3808_v43, %v15604_v13  ;;  %v3923_v3 = vpop.f32.mrb[89].mxu1 }
 0x275   :  { %5779 = vmatprep.mubr.f32.mxu0 %v16945_v22  ;;  %5868 = vmatprep.mubr.f32.mxu1 %v16945_v22  ;;  %v4818_v58 = vmax.f32 %v4562_v4, 0.0  ;;  %v4817_v27 = vmax.f32 %v4561_v42, 0.0  ;;  %v3922_v54 = vadd.f32 %v3921_v51, %v15611_v31  ;;  %v3811_v34 = vadd.f32 %v3810_v61, %v15618_v9 }
 0x276   :  { %8622 = vmatmul.mubr.msk.f32.gmra.mrb[162].mxu0 %vm4984_vm2, %v15319_v0  ;;  %v10371_v13 = vpack.c.bf16 %v4816_v52, %v4784_v39  ;;  %v4819_v17 = vmax.f32 %v4563_v29, 0.0  ;;  %v3924_v37 = vadd.f32 %v3923_v3, %v15626_v56  ;;  %v984_v41 = vmul.f32 %v15525_v20, %v12600_v48  ;;  %v3814_v16 = vpop.f32.mrb[90].mxu0 }
 0x277   :  { %8626 = vmatmul.mubr.msk.f32.gmra.mrb[162].mxu1 %vm4984_vm2, %v15319_v0  ;;  %5785 = vmatprep.mubr.f32.mxu0 %v16945_v22  ;;  %v10387_v1 = vpack.c.bf16 %v4818_v58, %v4786_v12  ;;  %v4592_v31 = vadd.f32 %v12650_v57, %v3809_v55  ;;  %v4594_v9 = vadd.f32 %v12650_v57, %v3922_v54  ;;  %v3927_v39 = vpop.f32.mrb[90].mxu1  ;;  %v3816_v53 = vpop.f32.mrb[91].mxu0 }
 0x278   :  { %5874 = vmatprep.mubr.f32.mxu1 %v16945_v22  ;;  %v10369_v21 = vpack.c.bf16 %v4817_v27, %v4785_v23  ;;  %v4593_v15 = vadd.f32 %v12650_v57, %v3811_v34  ;;  %v3815_v38 = vadd.f32 %v3814_v16, %v15634_v40  ;;  %v10385_v56 = vpack.c.bf16 %v4819_v17, %v4787_v5  ;;  %v3929_v42 = vpop.f32.mrb[91].mxu1 }
 0x279   :  { %v986_v45 = vmul.f32 %v15532_v35, %v12600_v48  ;;  %v3928_v12 = vadd.f32 %v3927_v39, %v15641_v19  ;;  %v3817_v4 = vadd.f32 %v3816_v53, %v15648_v24  ;;  %v1015_v40 = vmul.f32 %v15517_v25, %v12605_v50 }
 0x27a   :  { %8623 = vmatmul.mubr.msk.f32.gmra.mrb[164].mxu0 %vm4984_vm2, %v15352_v63  ;;  %10370 = vmatprep.subr.bf16.mxu0 %v10369_v21  ;;  %v4595_v23 = vadd.f32 %v12650_v57, %v3924_v37  ;;  %v4624_v43 = vadd.f32 %v16842_v46, %v3815_v38  ;;  %v3930_v5 = vadd.f32 %v3929_v42, %v954_v2  ;;  %v4848_v52 = vmax.f32 %v4592_v31, 0.0  ;;  %v3820_v55 = vpop.f32.mrb[92].mxu0 }
 0x27b   :  { %8627 = vmatmul.mubr.msk.f32.gmra.mrb[164].mxu1 %vm4984_vm2, %v15352_v63  ;;  %10386 = vmatprep.subr.bf16.mxu1 %v10385_v56  ;;  %v4850_v29 = vmax.f32 %v4594_v9, 0.0  ;;  %v4626_v19 = vadd.f32 %v16842_v46, %v3928_v12  ;;  %v4625_v24 = vadd.f32 %v16842_v46, %v3817_v4  ;;  %v4849_v51 = vmax.f32 %v4593_v15, 0.0  ;;  %v3933_v27 = vpop.f32.mrb[92].mxu1  ;;  %v3822_v2 = vpop.f32.mrb[93].mxu0 }
 0x27c   :  { %10372 = vmatpush1.bf16.msra.mxu0 %v10371_v13  ;;  %10388 = vmatpush1.bf16.msra.mxu1 %v10387_v1  ;;  %v4880_v61 = vmax.f32 %v4624_v43, 0.0  ;;  %v4627_v25 = vadd.f32 %v16842_v46, %v3930_v5  ;;  %v3821_v58 = vadd.f32 %v3820_v55, %v15683_v18  ;;  %v3934_v3 = vadd.f32 %v3933_v27, %v15689_v60  ;;  %v3935_v17 = vpop.f32.mrb[93].mxu1 }
 0x27d   :  { %5791 = vmatprep.mubr.f32.mxu0 %v16945_v22  ;;  %5880 = vmatprep.mubr.f32.mxu1 %v16945_v22  ;;  %v4882_v54 = vmax.f32 %v4626_v19, 0.0  ;;  %v4881_v34 = vmax.f32 %v4625_v24, 0.0  ;;  %v3823_v13 = vadd.f32 %v3822_v2, %v984_v41  ;;  %v4851_v37 = vmax.f32 %v4595_v23, 0.0 }
 0x27e   :  { %8624 = vmatmul.mubr.msk.f32.gmra.mrb[166].mxu0 %vm4984_vm2, %v15385_v7  ;;  %v10375_v18 = vpack.c.bf16 %v4880_v61, %v4848_v52  ;;  %v4883_v1 = vmax.f32 %v4627_v25, 0.0  ;;  %v3936_v31 = vadd.f32 %v3935_v17, %v986_v45  ;;  %v3826_v16 = vpop.f32.mrb[94].mxu0  ;;  %v1017_v21 = vmul.f32 %v15521_v33, %v12605_v50  ;;  %v16948_v17 = vld [vmem:[#allocation15_spill] sm:$0xff] }
 0x27f   :  { %8628 = vmatmul.mubr.msk.f32.gmra.mrb[166].mxu1 %vm4984_vm2, %v15385_v7  ;;  %5951 = vmatprep.mubr.f32.mxu0 %v16945_v22  ;;  %v10391_v9 = vpack.c.bf16 %v4882_v54, %v4850_v29  ;;  %v1016_v60 = vmul.f32 %v15525_v20, %v12605_v50  ;;  %v10373_v41 = vpack.c.bf16 %v4881_v34, %v4849_v51  ;;  %v3939_v39 = vpop.f32.mrb[94].mxu1  ;;  %v3828_v53 = vpop.f32.mrb[95].mxu0 }
 0x280   :  { %6040 = vmatprep.mubr.f32.mxu1 %v16945_v22  ;;  %v4656_v15 = vadd.f32 %v16847_v11, %v3821_v58  ;;  %v3827_v38 = vadd.f32 %v3826_v16, %v1015_v40  ;;  %v1018_v56 = vmul.f32 %v15532_v35, %v12605_v50  ;;  %v10389_v45 = vpack.c.bf16 %v4883_v1, %v4851_v37  ;;  %v3941_v33 = vpop.f32.mrb[95].mxu1  ;;  %v16949_v37 = vld [vmem:[#allocation16_spill] sm:$0xff] }
 0x281   :  { %v4658_v12 = vadd.f32 %v16847_v11, %v3934_v3  ;;  %v4657_v4 = vadd.f32 %v16847_v11, %v3823_v13  ;;  %v3940_v42 = vadd.f32 %v3939_v39, %v1017_v21  ;;  %v3829_v23 = vadd.f32 %v3828_v53, %v1016_v60  ;;  %10374 = vmatprep.subr.bf16.mxu0 %v10373_v41  ;;  %v16947_v3 = vld [vmem:[#allocation14_spill] sm:$0xff] }
 0x282   :  { %v4659_v20 = vadd.f32 %v16847_v11, %v3936_v31  ;;  %v4688_v43 = vadd.f32 %v16859_v8, %v3827_v38  ;;  %v3942_v5 = vadd.f32 %v3941_v33, %v1018_v56  ;;  %10390 = vmatprep.subr.bf16.mxu1 %v10389_v45  ;;  %10376 = vmatpush1.bf16.msra.mxu0 %v10375_v18  ;;  %v4912_v52 = vmax.f32 %v4656_v15, 0.0 }
 0x283   :  { %v4690_v40 = vadd.f32 %v16859_v8, %v3940_v42  ;;  %v4689_v35 = vadd.f32 %v16859_v8, %v3829_v23  ;;  %10392 = vmatpush1.bf16.msra.mxu1 %v10391_v9  ;;  %v4914_v24 = vmax.f32 %v4658_v12, 0.0  ;;  %v4913_v55 = vmax.f32 %v4657_v4, 0.0 }
 0x284   :  { %v4944_v29 = vmax.f32 %v4688_v43, 0.0  ;;  %v4691_v19 = vadd.f32 %v16859_v8, %v3942_v5  ;;  %v4915_v25 = vmax.f32 %v4659_v20, 0.0 }
 0x285   :  { %v4946_v51 = vmax.f32 %v4690_v40, 0.0  ;;  %v4945_v61 = vmax.f32 %v4689_v35, 0.0 }
 0x286   :  { %v10379_v58 = vpack.c.bf16 %v4944_v29, %v4912_v52  ;;  %v4947_v27 = vmax.f32 %v4691_v19, 0.0 }
 0x287   :  { %v10395_v2 = vpack.c.bf16 %v4946_v51, %v4914_v24  ;;  %v10377_v54 = vpack.c.bf16 %v4945_v61, %v4913_v55 }
 0x288   :  { %v10393_v34 = vpack.c.bf16 %v4947_v27, %v4915_v25 }
 0x289   :  { %10378 = vmatprep.subr.bf16.mxu0 %v10377_v54 }
 0x28a   :  { %10394 = vmatprep.subr.bf16.mxu1 %v10393_v34  ;;  %10380 = vmatpush1.bf16.msra.mxu0 %v10379_v58 }
 0x28b   :  { %10396 = vmatpush1.bf16.msra.mxu1 %v10395_v2 }
 0x28d   :  { %8629 = vmatmul.mubr.msk.f32.vlgmr.msra.gmra.mrb[168].mxu0 %vm4984_vm2, %v15284_v49 }
 0x28e   :  { %8633 = vmatmul.mubr.msk.f32.vlgmr.msra.gmra.mrb[168].mxu1 %vm4984_vm2, %v15284_v49  ;;  %5957 = vmatprep.mubr.f32.mxu0 %v16945_v22  ;;  %v15777_v49 = vld [vmem:[%s16382_s1 + $0x18] sm:$0xff] }
 0x28f   :  { %6046 = vmatprep.mubr.f32.mxu1 %v16945_v22  ;;  %v15786_v13 = vrot.slane %v15777_v49, %v16947_v3  ;;  %v15794_v18 = vrot.slane %v15777_v49, %v16949_v37 }
 0x291   :  { %8630 = vmatmul.mubr.msk.f32.gmra.mrb[170].mxu0 %vm4984_vm2, %v15319_v0  ;;  %v797_v31 = vmul.f32 %v15786_v13, %v16938_v30  ;;  %v798_v16 = vmul.f32 %v15794_v18, %v16938_v30  ;;  %v829_v41 = vmul.f32 %v15786_v13, %v16939_v26  ;;  %v830_v38 = vmul.f32 %v15794_v18, %v16939_v26 }
 0x292   :  { %8634 = vmatmul.mubr.msk.f32.gmra.mrb[170].mxu1 %vm4984_vm2, %v15319_v0  ;;  %5963 = vmatprep.mubr.f32.mxu0 %v16945_v22  ;;  %v16946_v0 = vld [vmem:[#allocation12_spill] sm:$0xff]  ;;  %v861_v12 = vmul.f32 %v15786_v13, %v16940_v6  ;;  %v862_v20 = vmul.f32 %v15794_v18, %v16940_v6  ;;  %v893_v40 = vmul.f32 %v15786_v13, %v16941_v36 }
 0x293   :  { %6052 = vmatprep.mubr.f32.mxu1 %v16945_v22  ;;  %v894_v52 = vmul.f32 %v15794_v18, %v16941_v36  ;;  %v15836_v51 = vmul.f32 %v15786_v13, %v16942_v47  ;;  %v15845_v54 = vmul.f32 %v15794_v18, %v16942_v47 }
 0x295   :  { %8631 = vmatmul.mubr.msk.f32.gmra.mrb[172].mxu0 %vm4984_vm2, %v15352_v63 }
 0x296   :  { %8635 = vmatmul.mubr.msk.f32.gmra.mrb[172].mxu1 %vm4984_vm2, %v15352_v63  ;;  %5969 = vmatprep.mubr.f32.mxu0 %v16945_v22  ;;  %v15782_v63 = vrot.slane %v15777_v49, %v16946_v0 }
 0x297   :  { %6058 = vmatprep.mubr.f32.mxu1 %v16945_v22 }
 0x298   :  { %v795_v1 = vmul.f32 %v15782_v63, %v16938_v30  ;;  %v827_v60 = vmul.f32 %v15782_v63, %v16939_v26  ;;  %v859_v45 = vmul.f32 %v15782_v63, %v16940_v6  ;;  %v891_v43 = vmul.f32 %v15782_v63, %v16941_v36 }
 0x299   :  { %8632 = vmatmul.mubr.msk.f32.gmra.mrb[174].mxu0 %vm4984_vm2, %v15385_v7  ;;  %v15832_v55 = vmul.f32 %v15782_v63, %v16942_v47  ;;  %v15849_v37 = vmul.f32 %v15782_v63, %v16944_v32 }
 0x29a   :  { %8636 = vmatmul.mubr.msk.f32.gmra.mrb[174].mxu1 %vm4984_vm2, %v15385_v7  ;;  %6129 = vmatprep.mubr.f32.mxu0 %v16945_v22  ;;  %v15790_v7 = vrot.slane %v15777_v49, %v16948_v17 }
 0x29b   :  { %6218 = vmatprep.mubr.f32.mxu1 %v16945_v22 }
 0x29c   :  { %v796_v9 = vmul.f32 %v15790_v7, %v16938_v30  ;;  %v828_v15 = vmul.f32 %v15790_v7, %v16939_v26  ;;  %v860_v4 = vmul.f32 %v15790_v7, %v16940_v6  ;;  %v892_v35 = vmul.f32 %v15790_v7, %v16941_v36 }
 0x29d   :  { %v15841_v2 = vmul.f32 %v15790_v7, %v16942_v47 }
 0x2a4   :  { %v4010_v21 = vpop.f32.mrb[96].mxu0 }
 0x2a5   :  { %v4011_v39 = vadd.f32 %v4010_v21, %v795_v1  ;;  %v4012_v56 = vpop.f32.mrb[97].mxu0  ;;  %v15853_v1 = vmul.f32 %v15786_v13, %v16944_v32  ;;  %v15859_v21 = vmul.f32 %v15790_v7, %v16944_v32 }
 0x2a6   :  { %v4123_v53 = vpop.f32.mrb[96].mxu1  ;;  %v4013_v23 = vadd.f32 %v4012_v56, %v796_v9 }
 0x2a7   :  { %v4124_v42 = vadd.f32 %v4123_v53, %v797_v31  ;;  %v4125_v33 = vpop.f32.mrb[97].mxu1  ;;  %v4468_v29 = vadd.f32 %v16943_v10, %v4011_v39 }
 0x2a8   :  { %v4126_v5 = vadd.f32 %v4125_v33, %v798_v16  ;;  %v4016_v24 = vpop.f32.mrb[98].mxu0  ;;  %v4469_v61 = vadd.f32 %v16943_v10, %v4013_v23 }
 0x2a9   :  { %v4470_v19 = vadd.f32 %v16943_v10, %v4124_v42  ;;  %v4017_v25 = vadd.f32 %v4016_v24, %v827_v60  ;;  %v4018_v27 = vpop.f32.mrb[99].mxu0  ;;  %v4724_v60 = vmax.f32 %v4468_v29, 0.0 }
 0x2aa   :  { %v4129_v58 = vpop.f32.mrb[98].mxu1  ;;  %v4019_v3 = vadd.f32 %v4018_v27, %v828_v15  ;;  %v4471_v31 = vadd.f32 %v16943_v10, %v4126_v5  ;;  %v4725_v56 = vmax.f32 %v4469_v61, 0.0 }
 0x2ab   :  { %v4130_v34 = vadd.f32 %v4129_v58, %v829_v41  ;;  %v4131_v17 = vpop.f32.mrb[99].mxu1  ;;  %v4500_v9 = vadd.f32 %v12414_v44, %v4017_v25  ;;  %v4726_v41 = vmax.f32 %v4470_v19, 0.0 }
 0x2ac   :  { %v4132_v16 = vadd.f32 %v4131_v17, %v830_v38  ;;  %v4501_v39 = vadd.f32 %v12414_v44, %v4019_v3  ;;  %v4022_v53 = vpop.f32.mrb[100].mxu0  ;;  %v4727_v0 = vmax.f32 %v4471_v31, 0.0 }
 0x2ad   :  { %v4502_v15 = vadd.f32 %v12414_v44, %v4130_v34  ;;  %v4756_v42 = vmax.f32 %v4500_v9, 0.0  ;;  %v4023_v33 = vadd.f32 %v4022_v53, %v859_v45  ;;  %v4024_v24 = vpop.f32.mrb[101].mxu0 }
 0x2ae   :  { %v4503_v23 = vadd.f32 %v12414_v44, %v4132_v16  ;;  %v4135_v5 = vpop.f32.mrb[100].mxu1  ;;  %v4757_v38 = vmax.f32 %v4501_v39, 0.0  ;;  %v4025_v27 = vadd.f32 %v4024_v24, %v860_v4 }
 0x2af   :  { %v4758_v25 = vmax.f32 %v4502_v15, 0.0  ;;  %v4136_v58 = vadd.f32 %v4135_v5, %v861_v12  ;;  %v4137_v17 = vpop.f32.mrb[101].mxu1  ;;  %v10399_v29 = vpack.c.bf16 %v4756_v42, %v4724_v60  ;;  %v4532_v3 = vadd.f32 %v12524_v62, %v4023_v33 }
 0x2b0   :  { %v4759_v19 = vmax.f32 %v4503_v23, 0.0  ;;  %v4138_v47 = vadd.f32 %v4137_v17, %v862_v20  ;;  %v4028_v9 = vpop.f32.mrb[102].mxu0  ;;  %v10397_v10 = vpack.c.bf16 %v4757_v38, %v4725_v56  ;;  %v4533_v45 = vadd.f32 %v12524_v62, %v4025_v27 }
 0x2b1   :  { %v10415_v34 = vpack.c.bf16 %v4758_v25, %v4726_v41  ;;  %v4534_v61 = vadd.f32 %v12524_v62, %v4136_v58  ;;  %v4029_v16 = vadd.f32 %v4028_v9, %v891_v43  ;;  %v4030_v15 = vpop.f32.mrb[103].mxu0  ;;  %v958_v12 = vmul.f32 %v15794_v18, %v16944_v32 }
 0x2b2   :  { %v4141_v53 = vpop.f32.mrb[102].mxu1  ;;  %v10413_v39 = vpack.c.bf16 %v4759_v19, %v4727_v0  ;;  %v4031_v31 = vadd.f32 %v4030_v15, %v892_v35  ;;  %10398 = vmatprep.subr.bf16.mxu0 %v10397_v10  ;;  %v987_v20 = vmul.f32 %v15782_v63, %v12600_v48  ;;  %v15873_v41 = vmul.f32 %v15786_v13, %v12600_v48 }
 0x2b3   :  { %v4142_v4 = vadd.f32 %v4141_v53, %v893_v40  ;;  %v4143_v60 = vpop.f32.mrb[103].mxu1  ;;  %v4535_v56 = vadd.f32 %v12524_v62, %v4138_v47  ;;  %v4564_v43 = vadd.f32 %v12553_v14, %v4029_v16  ;;  %10400 = vmatpush1.bf16.msra.mxu0 %v10399_v29  ;;  %v4788_v0 = vmax.f32 %v4532_v3, 0.0 }
 0x2b4   :  { %v4144_v42 = vadd.f32 %v4143_v60, %v894_v52  ;;  %10414 = vmatprep.subr.bf16.mxu1 %v10413_v39  ;;  %v4790_v23 = vmax.f32 %v4534_v61, 0.0  ;;  %v4565_v10 = vadd.f32 %v12553_v14, %v4031_v31  ;;  %v4034_v35 = vpop.f32.mrb[104].mxu0  ;;  %v4789_v33 = vmax.f32 %v4533_v45, 0.0 }
 0x2b5   :  { %v4566_v40 = vadd.f32 %v12553_v14, %v4142_v4  ;;  %10416 = vmatpush1.bf16.msra.mxu1 %v10415_v34  ;;  %v4820_v5 = vmax.f32 %v4564_v43, 0.0  ;;  %v4035_v25 = vadd.f32 %v4034_v35, %v15832_v55  ;;  %v4036_v38 = vpop.f32.mrb[105].mxu0  ;;  %v4791_v19 = vmax.f32 %v4535_v56, 0.0 }
 0x2b6   :  { %v4567_v24 = vadd.f32 %v12553_v14, %v4144_v42  ;;  %v4147_v47 = vpop.f32.mrb[104].mxu1  ;;  %v4821_v52 = vmax.f32 %v4565_v10, 0.0  ;;  %v4037_v17 = vadd.f32 %v4036_v38, %v15841_v2  ;;  %v988_v31 = vmul.f32 %v15790_v7, %v12600_v48 }
 0x2b7   :  { %v4822_v58 = vmax.f32 %v4566_v40, 0.0  ;;  %v4148_v27 = vadd.f32 %v4147_v47, %v15836_v51  ;;  %v4149_v29 = vpop.f32.mrb[105].mxu1  ;;  %v10403_v3 = vpack.c.bf16 %v4820_v5, %v4788_v0  ;;  %v4596_v45 = vadd.f32 %v12650_v57, %v4035_v25 }
 0x2b8   :  { %v4823_v61 = vmax.f32 %v4567_v24, 0.0  ;;  %v4150_v34 = vadd.f32 %v4149_v29, %v15845_v54  ;;  %v4040_v55 = vpop.f32.mrb[106].mxu0  ;;  %v10401_v53 = vpack.c.bf16 %v4821_v52, %v4789_v33  ;;  %v4597_v15 = vadd.f32 %v12650_v57, %v4037_v17 }
 0x2b9   :  { %v10419_v9 = vpack.c.bf16 %v4822_v58, %v4790_v23  ;;  %v4598_v16 = vadd.f32 %v12650_v57, %v4148_v27  ;;  %v4041_v39 = vadd.f32 %v4040_v55, %v15849_v37  ;;  %v4042_v4 = vpop.f32.mrb[107].mxu0  ;;  %v990_v43 = vmul.f32 %v15794_v18, %v12600_v48 }
 0x2ba   :  { %v4153_v51 = vpop.f32.mrb[106].mxu1  ;;  %v10417_v2 = vpack.c.bf16 %v4823_v61, %v4791_v19  ;;  %v4043_v54 = vadd.f32 %v4042_v4, %v15859_v21  ;;  %10402 = vmatprep.subr.bf16.mxu0 %v10401_v53  ;;  %v1019_v42 = vmul.f32 %v15782_v63, %v12605_v50  ;;  %v4599_v37 = vadd.f32 %v12650_v57, %v4150_v34 }
 0x2bb   :  { %v4154_v60 = vadd.f32 %v4153_v51, %v15853_v1  ;;  %v4155_v56 = vpop.f32.mrb[107].mxu1  ;;  %v4628_v0 = vadd.f32 %v16842_v46, %v4041_v39  ;;  %10404 = vmatpush1.bf16.msra.mxu0 %v10403_v3  ;;  %v4852_v40 = vmax.f32 %v4596_v45, 0.0  ;;  %v4854_v10 = vmax.f32 %v4598_v16, 0.0 }
 0x2bc   :  { %v4156_v23 = vadd.f32 %v4155_v56, %v958_v12  ;;  %10418 = vmatprep.subr.bf16.mxu1 %v10417_v2  ;;  %v4629_v21 = vadd.f32 %v16842_v46, %v4043_v54  ;;  %v4046_v35 = vpop.f32.mrb[108].mxu0  ;;  %v4853_v33 = vmax.f32 %v4597_v15, 0.0  ;;  %v4855_v17 = vmax.f32 %v4599_v37, 0.0 }
 0x2bd   :  { %v4630_v1 = vadd.f32 %v16842_v46, %v4154_v60  ;;  %10420 = vmatpush1.bf16.msra.mxu1 %v10419_v9  ;;  %v4884_v5 = vmax.f32 %v4628_v0, 0.0  ;;  %v4047_v63 = vadd.f32 %v4046_v35, %v987_v20  ;;  %v4048_v47 = vpop.f32.mrb[109].mxu0  ;;  %v1021_v9 = vmul.f32 %v15786_v13, %v12605_v50 }
 0x2be   :  { %v4631_v24 = vadd.f32 %v16842_v46, %v4156_v23  ;;  %v4159_v25 = vpop.f32.mrb[108].mxu1  ;;  %v4885_v58 = vmax.f32 %v4629_v21, 0.0  ;;  %v4049_v52 = vadd.f32 %v4048_v47, %v988_v31  ;;  %v1020_v20 = vmul.f32 %v15790_v7, %v12605_v50  ;;  %v15941_v47 = vld [vmem:[%s16386_s5 + $0x10] sm:$0xff] }
 0x2bf   :  { %v4886_v38 = vmax.f32 %v4630_v1, 0.0  ;;  %v4160_v12 = vadd.f32 %v4159_v25, %v15873_v41  ;;  %v4161_v27 = vpop.f32.mrb[109].mxu1  ;;  %v10407_v29 = vpack.c.bf16 %v4884_v5, %v4852_v40  ;;  %v4660_v16 = vadd.f32 %v16847_v11, %v4047_v63  ;;  %v15919_v63 = vld [vmem:[%s16386_s5] sm:$0xff]  ;;  %v15930_v25 = vld [vmem:[%s16386_s5 + $0x8] sm:$0xff] }
 0x2c0   :  { %v4887_v19 = vmax.f32 %v4631_v24, 0.0  ;;  %v4162_v3 = vadd.f32 %v4161_v27, %v990_v43  ;;  %v4052_v34 = vpop.f32.mrb[110].mxu0  ;;  %v10405_v45 = vpack.c.bf16 %v4885_v58, %v4853_v33  ;;  %v1022_v15 = vmul.f32 %v15794_v18, %v12605_v50 }
 0x2c1   :  { %v10423_v61 = vpack.c.bf16 %v4886_v38, %v4854_v10  ;;  %v4053_v55 = vadd.f32 %v4052_v34, %v1019_v42  ;;  %v4054_v41 = vpop.f32.mrb[111].mxu0  ;;  %v4662_v51 = vadd.f32 %v16847_v11, %v4160_v12  ;;  %v4661_v4 = vadd.f32 %v16847_v11, %v4049_v52  ;;  %v15952_v38 = vld [vmem:[%s16386_s5 + $0x18] sm:$0xff]  ;;  %v16950_v52 = vld [vmem:[#allocation7_spill] sm:$0xff] }
 0x2c2   :  { %v4165_v53 = vpop.f32.mrb[110].mxu1  ;;  %v10421_v39 = vpack.c.bf16 %v4887_v19, %v4855_v17  ;;  %v4055_v31 = vadd.f32 %v4054_v41, %v1020_v20  ;;  %10406 = vmatprep.subr.bf16.mxu0 %v10405_v45  ;;  %v4663_v7 = vadd.f32 %v16847_v11, %v4162_v3  ;;  %v4916_v43 = vmax.f32 %v4660_v16, 0.0  ;;  %v16951_v17 = vld [vmem:[#allocation46_spill] sm:$0xff] }
 0x2c3   :  { %v4166_v2 = vadd.f32 %v4165_v53, %v1021_v9  ;;  %v4167_v13 = vpop.f32.mrb[111].mxu1  ;;  %v4692_v60 = vadd.f32 %v16859_v8, %v4053_v55  ;;  %10408 = vmatpush1.bf16.msra.mxu0 %v10407_v29  ;;  %v4918_v0 = vmax.f32 %v4662_v51, 0.0  ;;  %v4917_v23 = vmax.f32 %v4661_v4, 0.0 }
 0x2c4   :  { %v4168_v54 = vadd.f32 %v4167_v13, %v1022_v15  ;;  %10422 = vmatprep.subr.bf16.mxu1 %v10421_v39  ;;  %v4693_v18 = vadd.f32 %v16859_v8, %v4055_v31  ;;  %v4919_v1 = vmax.f32 %v4663_v7, 0.0  ;;  %v15962_v58 = vrot.slane %v15777_v49, %v16931_v59 }
 0x2c5   :  { %v4694_v56 = vadd.f32 %v16859_v8, %v4166_v2  ;;  %10424 = vmatpush1.bf16.msra.mxu1 %v10423_v61  ;;  %v4948_v42 = vmax.f32 %v4692_v60, 0.0  ;;  %v15966_v12 = vrot.slane %v15777_v49, %v16933_v28  ;;  %v15970_v27 = vrot.slane %v15777_v49, %v16950_v52  ;;  %v16952_v60 = vld [vmem:[#allocation20_spill] sm:$0xff] }
 0x2c6   :  { %v4695_v37 = vadd.f32 %v16859_v8, %v4168_v54  ;;  %v4949_v10 = vmax.f32 %v4693_v18, 0.0  ;;  %v15974_v29 = vrot.slane %v15777_v49, %v16951_v17  ;;  %v799_v19 = vmul.f32 %v15962_v58, %v16938_v30 }
 0x2c7   :  { %v4950_v40 = vmax.f32 %v4694_v56, 0.0  ;;  %v10411_v21 = vpack.c.bf16 %v4948_v42, %v4916_v43  ;;  %v801_v3 = vmul.f32 %v15966_v12, %v16938_v30  ;;  %v800_v59 = vmul.f32 %v15970_v27, %v16938_v30  ;;  %v16953_v43 = vld [vmem:[#allocation30_spill] sm:$0xff] }
 0x2c8   :  { %v4951_v35 = vmax.f32 %v4695_v37, 0.0  ;;  %v10409_v5 = vpack.c.bf16 %v4949_v10, %v4917_v23  ;;  %v802_v28 = vmul.f32 %v15974_v29, %v16938_v30  ;;  %v831_v34 = vmul.f32 %v15962_v58, %v16939_v26 }
 0x2c9   :  { %v10427_v33 = vpack.c.bf16 %v4950_v40, %v4918_v0  ;;  %v833_v49 = vmul.f32 %v15966_v12, %v16939_v26  ;;  %v832_v9 = vmul.f32 %v15970_v27, %v16939_v26  ;;  %v834_v20 = vmul.f32 %v15974_v29, %v16939_v26 }
 0x2ca   :  { %v10425_v24 = vpack.c.bf16 %v4951_v35, %v4919_v1  ;;  %10410 = vmatprep.subr.bf16.mxu0 %v10409_v5  ;;  %v863_v53 = vmul.f32 %v15962_v58, %v16940_v6  ;;  %v865_v30 = vmul.f32 %v15966_v12, %v16940_v6  ;;  %v864_v41 = vmul.f32 %v15970_v27, %v16940_v6 }
 0x2cb   :  { %10412 = vmatpush1.bf16.msra.mxu0 %v10411_v21  ;;  %v866_v4 = vmul.f32 %v15974_v29, %v16940_v6  ;;  %v895_v26 = vmul.f32 %v15962_v58, %v16941_v36  ;;  %v897_v31 = vmul.f32 %v15966_v12, %v16941_v36  ;;  %v896_v13 = vmul.f32 %v15970_v27, %v16941_v36 }
 0x2cc   :  { %10426 = vmatprep.subr.bf16.mxu1 %v10425_v24  ;;  %v898_v7 = vmul.f32 %v15974_v29, %v16941_v36  ;;  %v16012_v6 = vmul.f32 %v15962_v58, %v16953_v43  ;;  %v16016_v42 = vmul.f32 %v15966_v12, %v16953_v43  ;;  %v16021_v36 = vmul.f32 %v15970_v27, %v16953_v43 }
 0x2cd   :  { %10428 = vmatpush1.bf16.msra.mxu1 %v10427_v33  ;;  %v16025_v10 = vmul.f32 %v15974_v29, %v16953_v43  ;;  %v16029_v33 = vmul.f32 %v15962_v58, %v16944_v32  ;;  %v16033_v5 = vmul.f32 %v15966_v12, %v16944_v32 }
 0x2ce   :  { %8637 = vmatmul.mubr.msk.f32.vlgmr.msra.gmra.mrb[176].mxu0 %vm4984_vm2, %v15919_v63 }
 0x2cf   :  { %6135 = vmatprep.mubr.f32.mxu0 %v16945_v22 }
 0x2d0   :  { %8641 = vmatmul.mubr.msk.f32.vlgmr.msra.gmra.mrb[176].mxu1 %vm4984_vm2, %v15919_v63 }
 0x2d1   :  { %6224 = vmatprep.mubr.f32.mxu1 %v16945_v22 }
 0x2d2   :  { %8638 = vmatmul.mubr.msk.f32.gmra.mrb[178].mxu0 %vm4984_vm2, %v15930_v25 }
 0x2d3   :  { %6141 = vmatprep.mubr.f32.mxu0 %v16945_v22 }
 0x2d4   :  { %8642 = vmatmul.mubr.msk.f32.gmra.mrb[178].mxu1 %vm4984_vm2, %v15930_v25 }
 0x2d5   :  { %6230 = vmatprep.mubr.f32.mxu1 %v16945_v22 }
 0x2d6   :  { %8639 = vmatmul.mubr.msk.f32.gmra.mrb[180].mxu0 %vm4984_vm2, %v15941_v47 }
 0x2d7   :  { %6147 = vmatprep.mubr.f32.mxu0 %v16945_v22 }
 0x2d8   :  { %8643 = vmatmul.mubr.msk.f32.gmra.mrb[180].mxu1 %vm4984_vm2, %v15941_v47 }
 0x2d9   :  { %6236 = vmatprep.mubr.f32.mxu1 %v16945_v22 }
 0x2da   :  { %8640 = vmatmul.mubr.msk.f32.gmra.mrb[182].mxu0 %vm4984_vm2, %v15952_v38 }
 0x2db   :  { %6307 = vmatprep.mubr.f32.mxu0 %v16945_v22 }
 0x2dc   :  { %8644 = vmatmul.mubr.msk.f32.gmra.mrb[182].mxu1 %vm4984_vm2, %v15952_v38 }
 0x2dd   :  { %6396 = vmatprep.mubr.f32.mxu1 %v16945_v22 }
 0x2e5   :  { %v4236_v61 = vpop.f32.mrb[112].mxu0 }
 0x2e6   :  { %v4237_v45 = vadd.f32 %v4236_v61, %v799_v19  ;;  %v4349_v16 = vpop.f32.mrb[112].mxu1  ;;  %v4238_v55 = vpop.f32.mrb[113].mxu0  ;;  %v16039_v19 = vmul.f32 %v15970_v27, %v16944_v32 }
 0x2e7   :  { %v4350_v15 = vadd.f32 %v4349_v16, %v801_v3  ;;  %v4239_v39 = vadd.f32 %v4238_v55, %v800_v59  ;;  %v4351_v51 = vpop.f32.mrb[113].mxu1 }
 0x2e8   :  { %v4352_v2 = vadd.f32 %v4351_v51, %v802_v28  ;;  %v4472_v54 = vadd.f32 %v16952_v60, %v4237_v45 }
 0x2e9   :  { %v4474_v56 = vadd.f32 %v16952_v60, %v4350_v15  ;;  %v4242_v18 = vpop.f32.mrb[114].mxu0  ;;  %v4473_v37 = vadd.f32 %v16952_v60, %v4239_v39 }
 0x2ea   :  { %v4243_v0 = vadd.f32 %v4242_v18, %v831_v34  ;;  %v4355_v23 = vpop.f32.mrb[114].mxu1  ;;  %v4244_v40 = vpop.f32.mrb[115].mxu0  ;;  %v4475_v24 = vadd.f32 %v16952_v60, %v4352_v2  ;;  %v4728_v3 = vmax.f32 %v4472_v54, 0.0 }
 0x2eb   :  { %v4356_v1 = vadd.f32 %v4355_v23, %v833_v49  ;;  %v4245_v21 = vadd.f32 %v4244_v40, %v832_v9  ;;  %v4357_v35 = vpop.f32.mrb[115].mxu1  ;;  %v4730_v59 = vmax.f32 %v4474_v56, 0.0  ;;  %v4729_v49 = vmax.f32 %v4473_v37, 0.0 }
 0x2ec   :  { %v4504_v52 = vadd.f32 %v12414_v44, %v4243_v0  ;;  %v4358_v17 = vadd.f32 %v4357_v35, %v834_v20  ;;  %v4731_v18 = vmax.f32 %v4475_v24, 0.0 }
 0x2ed   :  { %v4506_v28 = vadd.f32 %v12414_v44, %v4356_v1  ;;  %v4505_v61 = vadd.f32 %v12414_v44, %v4245_v21  ;;  %v4248_v34 = vpop.f32.mrb[116].mxu0 }
 0x2ee   :  { %v4760_v9 = vmax.f32 %v4504_v52, 0.0  ;;  %v4507_v45 = vadd.f32 %v12414_v44, %v4358_v17  ;;  %v4249_v16 = vadd.f32 %v4248_v34, %v863_v53  ;;  %v4361_v55 = vpop.f32.mrb[116].mxu1  ;;  %v4250_v15 = vpop.f32.mrb[117].mxu0 }
 0x2ef   :  { %v4762_v39 = vmax.f32 %v4506_v28, 0.0  ;;  %v4761_v20 = vmax.f32 %v4505_v61, 0.0  ;;  %v4362_v51 = vadd.f32 %v4361_v55, %v865_v30  ;;  %v4251_v2 = vadd.f32 %v4250_v15, %v864_v41  ;;  %v4363_v60 = vpop.f32.mrb[117].mxu1 }
 0x2f0   :  { %v10431_v54 = vpack.c.bf16 %v4760_v9, %v4728_v3  ;;  %v4763_v56 = vmax.f32 %v4507_v45, 0.0  ;;  %v4364_v43 = vadd.f32 %v4363_v60, %v866_v4  ;;  %v4536_v23 = vadd.f32 %v12524_v62, %v4249_v16 }
 0x2f1   :  { %v10447_v0 = vpack.c.bf16 %v4762_v39, %v4730_v59  ;;  %v4538_v37 = vadd.f32 %v12524_v62, %v4362_v51  ;;  %v4254_v40 = vpop.f32.mrb[118].mxu0  ;;  %v10429_v1 = vpack.c.bf16 %v4761_v20, %v4729_v49  ;;  %v4537_v44 = vadd.f32 %v12524_v62, %v4251_v2 }
 0x2f2   :  { %v4255_v53 = vadd.f32 %v4254_v40, %v895_v26  ;;  %v4367_v21 = vpop.f32.mrb[118].mxu1  ;;  %v4256_v35 = vpop.f32.mrb[119].mxu0  ;;  %v10445_v52 = vpack.c.bf16 %v4763_v56, %v4731_v18  ;;  %v962_v30 = vmul.f32 %v15974_v29, %v16944_v32  ;;  %v991_v4 = vmul.f32 %v15962_v58, %v12600_v48 }
 0x2f3   :  { %v4368_v41 = vadd.f32 %v4367_v21, %v897_v31  ;;  %v4257_v24 = vadd.f32 %v4256_v35, %v896_v13  ;;  %v4369_v17 = vpop.f32.mrb[119].mxu1  ;;  %10430 = vmatprep.subr.bf16.mxu0 %v10429_v1  ;;  %v16053_v3 = vmul.f32 %v15966_v12, %v12600_v48  ;;  %v4539_v59 = vadd.f32 %v12524_v62, %v4364_v43 }
 0x2f4   :  { %v4568_v26 = vadd.f32 %v12553_v14, %v4255_v53  ;;  %v4370_v28 = vadd.f32 %v4369_v17, %v898_v7  ;;  %10446 = vmatprep.subr.bf16.mxu1 %v10445_v52  ;;  %10432 = vmatpush1.bf16.msra.mxu0 %v10431_v54  ;;  %v4792_v61 = vmax.f32 %v4536_v23, 0.0  ;;  %v4794_v32 = vmax.f32 %v4538_v37, 0.0 }
 0x2f5   :  { %v4570_v31 = vadd.f32 %v12553_v14, %v4368_v41  ;;  %v4569_v13 = vadd.f32 %v12553_v14, %v4257_v24  ;;  %10448 = vmatpush1.bf16.msra.mxu1 %v10447_v0  ;;  %v4260_v34 = vpop.f32.mrb[120].mxu0  ;;  %v4793_v49 = vmax.f32 %v4537_v44, 0.0  ;;  %v4795_v2 = vmax.f32 %v4539_v59, 0.0 }
 0x2f6   :  { %v4824_v9 = vmax.f32 %v4568_v26, 0.0  ;;  %v4571_v45 = vadd.f32 %v12553_v14, %v4370_v28  ;;  %v4261_v16 = vadd.f32 %v4260_v34, %v16012_v6  ;;  %v4373_v62 = vpop.f32.mrb[120].mxu1  ;;  %v4262_v55 = vpop.f32.mrb[121].mxu0  ;;  %v992_v1 = vmul.f32 %v15970_v27, %v12600_v48 }
 0x2f7   :  { %v4826_v15 = vmax.f32 %v4570_v31, 0.0  ;;  %v4825_v7 = vmax.f32 %v4569_v13, 0.0  ;;  %v4374_v39 = vadd.f32 %v4373_v62, %v16016_v42  ;;  %v4263_v20 = vadd.f32 %v4262_v55, %v16021_v36  ;;  %v4375_v51 = vpop.f32.mrb[121].mxu1 }
 0x2f8   :  { %v10435_v60 = vpack.c.bf16 %v4824_v9, %v4792_v61  ;;  %v4827_v18 = vmax.f32 %v4571_v45, 0.0  ;;  %v4376_v54 = vadd.f32 %v4375_v51, %v16025_v10  ;;  %v4600_v43 = vadd.f32 %v12650_v57, %v4261_v16 }
 0x2f9   :  { %v10451_v56 = vpack.c.bf16 %v4826_v15, %v4794_v32  ;;  %v4602_v14 = vadd.f32 %v12650_v57, %v4374_v39  ;;  %v4266_v6 = vpop.f32.mrb[122].mxu0  ;;  %v10433_v0 = vpack.c.bf16 %v4825_v7, %v4793_v49  ;;  %v4601_v23 = vadd.f32 %v12650_v57, %v4263_v20 }
 0x2fa   :  { %v4267_v37 = vadd.f32 %v4266_v6, %v16029_v33  ;;  %v4379_v42 = vpop.f32.mrb[122].mxu1  ;;  %v4268_v40 = vpop.f32.mrb[123].mxu0  ;;  %v10449_v36 = vpack.c.bf16 %v4827_v18, %v4795_v2  ;;  %v994_v21 = vmul.f32 %v15974_v29, %v12600_v48  ;;  %v1023_v35 = vmul.f32 %v15962_v58, %v12605_v50 }
 0x2fb   :  { %v4380_v44 = vadd.f32 %v4379_v42, %v16033_v5  ;;  %v4269_v10 = vadd.f32 %v4268_v40, %v16039_v19  ;;  %v4381_v53 = vpop.f32.mrb[123].mxu1  ;;  %10434 = vmatprep.subr.bf16.mxu0 %v10433_v0  ;;  %v4603_v33 = vadd.f32 %v12650_v57, %v4376_v54  ;;  %v4856_v24 = vmax.f32 %v4600_v43, 0.0 }
 0x2fc   :  { %v4632_v52 = vadd.f32 %v16842_v46, %v4267_v37  ;;  %v4382_v41 = vadd.f32 %v4381_v53, %v962_v30  ;;  %10450 = vmatprep.subr.bf16.mxu1 %v10449_v36  ;;  %10436 = vmatpush1.bf16.msra.mxu0 %v10435_v60  ;;  %v4858_v17 = vmax.f32 %v4602_v14, 0.0  ;;  %v4857_v26 = vmax.f32 %v4601_v23, 0.0  ;;  %v16096_v36 = vpop.permute.xlu0 %4966 }
 0x2fd   :  { %v4634_v5 = vadd.f32 %v16842_v46, %v4380_v44  ;;  %v4633_v19 = vadd.f32 %v16842_v46, %v4269_v10  ;;  %10452 = vmatpush1.bf16.msra.mxu1 %v10451_v56  ;;  %v4272_v59 = vpop.f32.mrb[124].mxu0  ;;  %v4859_v49 = vmax.f32 %v4603_v33, 0.0  ;;  %v1025_v15 = vmul.f32 %v15966_v12, %v12605_v50 }
 0x2fe   :  { %v4888_v48 = vmax.f32 %v4632_v52, 0.0  ;;  %v4635_v28 = vadd.f32 %v16842_v46, %v4382_v41  ;;  %v4273_v58 = vadd.f32 %v4272_v59, %v991_v4  ;;  %v4385_v61 = vpop.f32.mrb[124].mxu1  ;;  %v4274_v57 = vpop.f32.mrb[125].mxu0  ;;  %v1024_v46 = vmul.f32 %v15970_v27, %v12605_v50 }
 0x2ff   :  { %v4890_v32 = vmax.f32 %v4634_v5, 0.0  ;;  %v4889_v31 = vmax.f32 %v4633_v19, 0.0  ;;  %v4386_v30 = vadd.f32 %v4385_v61, %v16053_v3  ;;  %v4275_v13 = vadd.f32 %v4274_v57, %v992_v1  ;;  %v4387_v34 = vpop.f32.mrb[125].mxu1  ;;  %v16099_v41 = vpop.permute.xlu1 %4971 }
 0x300   :  { %v10439_v9 = vpack.c.bf16 %v4888_v48, %v4856_v24  ;;  %v4891_v45 = vmax.f32 %v4635_v28, 0.0  ;;  %v4388_v16 = vadd.f32 %v4387_v34, %v994_v21  ;;  %v4664_v7 = vadd.f32 %v16847_v11, %v4273_v58 }
 0x301   :  { %v10455_v62 = vpack.c.bf16 %v4890_v32, %v4858_v17  ;;  %v4278_v55 = vpop.f32.mrb[126].mxu0  ;;  %v10437_v4 = vpack.c.bf16 %v4889_v31, %v4857_v26  ;;  %v1026_v51 = vmul.f32 %v15974_v29, %v12605_v50  ;;  %v4666_v60 = vadd.f32 %v16847_v11, %v4386_v30 }
 0x302   :  { %v4279_v39 = vadd.f32 %v4278_v55, %v1023_v35  ;;  %v4391_v20 = vpop.f32.mrb[126].mxu1  ;;  %v4280_v3 = vpop.f32.mrb[127].mxu0  ;;  %v10453_v2 = vpack.c.bf16 %v4891_v45, %v4859_v49  ;;  %v4665_v18 = vadd.f32 %v16847_v11, %v4275_v13  ;;  %v4667_v27 = vadd.f32 %v16847_v11, %v4388_v16 }
 0x303   :  { %v4392_v54 = vadd.f32 %v4391_v20, %v1025_v15  ;;  %v4281_v56 = vadd.f32 %v4280_v3, %v1024_v46  ;;  %v4393_v12 = vpop.f32.mrb[127].mxu1  ;;  %10438 = vmatprep.subr.bf16.mxu0 %v10437_v4  ;;  %v4920_v0 = vmax.f32 %v4664_v7, 0.0  ;;  %v4922_v11 = vmax.f32 %v4666_v60, 0.0  ;;  %v16108_v7 = vpop.permute.xlu0 %4976 }
 0x304   :  { %v4696_v43 = vadd.f32 %v16859_v8, %v4279_v39  ;;  %v4394_v14 = vadd.f32 %v4393_v12, %v1026_v51  ;;  %10454 = vmatprep.subr.bf16.mxu1 %v10453_v2  ;;  %10440 = vmatpush1.bf16.msra.mxu0 %v10439_v9  ;;  %v4921_v1 = vmax.f32 %v4665_v18, 0.0  ;;  %v4923_v21 = vmax.f32 %v4667_v27, 0.0  ;;  %v16116_v60 = vpop.permute.xlu1 %4981 }
 0x305   :  { %v4698_v6 = vadd.f32 %v16859_v8, %v4392_v54  ;;  %v4697_v50 = vadd.f32 %v16859_v8, %v4281_v56  ;;  %10456 = vmatpush1.bf16.msra.mxu1 %v10455_v62  ;;  %v5063_v29 = vpop.f32.mrb[128].mxu0 }
 0x306   :  { %v4952_v23 = vmax.f32 %v4696_v43, 0.0  ;;  %v4699_v37 = vadd.f32 %v16859_v8, %v4394_v14  ;;  %v5152_v42 = vpop.f32.mrb[128].mxu1  ;;  %v5065_v40 = vpop.f32.mrb[129].mxu0  ;;  %v5064_v52 = vadd.f32 %v5063_v29, %v16096_v36 }
 0x307   :  { %v4954_v44 = vmax.f32 %v4698_v6, 0.0  ;;  %v4953_v10 = vmax.f32 %v4697_v50, 0.0  ;;  %v5154_v53 = vpop.f32.mrb[129].mxu1  ;;  %v5153_v17 = vadd.f32 %v5152_v42, %v16096_v36  ;;  %v5066_v8 = vadd.f32 %v5065_v40, %v16096_v36 }
 0x308   :  { %v10443_v35 = vpack.c.bf16 %v4952_v23, %v4920_v0  ;;  %v4955_v33 = vmax.f32 %v4699_v37, 0.0  ;;  %v5155_v59 = vadd.f32 %v5154_v53, %v16096_v36  ;;  %v6421_v31 = vmax.f32 %v5064_v52, 0.0 }
 0x309   :  { %v10459_v24 = vpack.c.bf16 %v4954_v44, %v4922_v11  ;;  %v5069_v5 = vpop.f32.mrb[130].mxu0  ;;  %v10441_v19 = vpack.c.bf16 %v4953_v10, %v4921_v1  ;;  %v6423_v34 = vmax.f32 %v5153_v17, 0.0  ;;  %v6422_v49 = vmax.f32 %v5066_v8, 0.0 }
 0x30a   :  { %v5070_v26 = vadd.f32 %v5069_v5, %v16099_v41  ;;  %v5158_v48 = vpop.f32.mrb[130].mxu1  ;;  %v5071_v28 = vpop.f32.mrb[131].mxu0  ;;  %v10457_v58 = vpack.c.bf16 %v4955_v33, %v4923_v21  ;;  %v6424_v62 = vmax.f32 %v5155_v59, 0.0 }
 0x30b   :  { %v5159_v61 = vadd.f32 %v5158_v48, %v16099_v41  ;;  %v5072_v57 = vadd.f32 %v5071_v28, %v16099_v41  ;;  %v5160_v32 = vpop.f32.mrb[131].mxu1  ;;  %10442 = vmatprep.subr.bf16.mxu0 %v10441_v19 }
 0x30c   :  { %v6453_v30 = vmax.f32 %v5070_v26, 0.0  ;;  %v5161_v13 = vadd.f32 %v5160_v32, %v16099_v41  ;;  %10458 = vmatprep.subr.bf16.mxu1 %v10457_v58  ;;  %10444 = vmatpush1.bf16.msra.mxu0 %v10443_v35 }
 0x30d   :  { %v6455_v9 = vmax.f32 %v5159_v61, 0.0  ;;  %v6454_v45 = vmax.f32 %v5072_v57, 0.0  ;;  %10460 = vmatpush1.bf16.msra.mxu1 %v10459_v24  ;;  %v5075_v16 = vpop.f32.mrb[132].mxu0 }
 0x30e   :  { %v10463_v55 = vpack.c.bf16 %v6453_v30, %v6421_v31  ;;  %v6456_v15 = vmax.f32 %v5161_v13, 0.0  ;;  %v5164_v46 = vpop.f32.mrb[132].mxu1  ;;  %v5077_v4 = vpop.f32.mrb[133].mxu0  ;;  %v5076_v2 = vadd.f32 %v5075_v16, %v16108_v7  ;;  %v16154_v30 = vld [vmem:[%s16388_s7] sm:$0x1] }
 0x30f   :  { %v10471_v39 = vpack.c.bf16 %v6455_v9, %v6423_v34  ;;  %v10461_v20 = vpack.c.bf16 %v6454_v45, %v6422_v49  ;;  %v5166_v3 = vpop.f32.mrb[133].mxu1  ;;  %8645 = vmatmul.mubr.msk.f32.vlgmr.msra.gmra.mrb[184].mxu0 %vm4984_vm2, %v15919_v63  ;;  %v5165_v18 = vadd.f32 %v5164_v46, %v16108_v7  ;;  %v5078_v54 = vadd.f32 %v5077_v4, %v16108_v7 }
 0x310   :  { %v10469_v51 = vpack.c.bf16 %v6456_v15, %v6424_v62  ;;  %8649 = vmatmul.mubr.msk.f32.vlgmr.msra.gmra.mrb[184].mxu1 %vm4984_vm2, %v15919_v63  ;;  %6313 = vmatprep.mubr.f32.mxu0 %v16945_v22  ;;  %v5167_v12 = vadd.f32 %v5166_v3, %v16108_v7  ;;  %v6485_v29 = vmax.f32 %v5076_v2, 0.0 }
 0x311   :  { %v5081_v56 = vpop.f32.mrb[134].mxu0  ;;  %10462 = vmatprep.subr.bf16.mxu0 %v10461_v20  ;;  %6402 = vmatprep.mubr.f32.mxu1 %v16945_v22  ;;  %v6487_v37 = vmax.f32 %v5165_v18, 0.0  ;;  %v6486_v42 = vmax.f32 %v5078_v54, 0.0 }
 0x312   :  { %v5082_v27 = vadd.f32 %v5081_v56, %v16116_v60  ;;  %v5170_v43 = vpop.f32.mrb[134].mxu1  ;;  %10470 = vmatprep.subr.bf16.mxu1 %v10469_v51  ;;  %v5083_v14 = vpop.f32.mrb[135].mxu0  ;;  %10464 = vmatpush1.bf16.msra.mxu0 %v10463_v55  ;;  %v6488_v44 = vmax.f32 %v5167_v12, 0.0 }
 0x313   :  { %v5171_v63 = vadd.f32 %v5170_v43, %v16116_v60  ;;  %v5084_v6 = vadd.f32 %v5083_v14, %v16116_v60  ;;  %v5172_v50 = vpop.f32.mrb[135].mxu1  ;;  %10472 = vmatpush1.bf16.msra.mxu1 %v10471_v39  ;;  %8646 = vmatmul.mubr.msk.f32.gmra.mrb[186].mxu0 %vm4984_vm2, %v15930_v25 }
 0x314   :  { %v6517_v0 = vmax.f32 %v5082_v27, 0.0  ;;  %v5173_v23 = vadd.f32 %v5172_v50, %v16116_v60  ;;  %8650 = vmatmul.mubr.msk.f32.gmra.mrb[186].mxu1 %vm4984_vm2, %v15930_v25  ;;  %6319 = vmatprep.mubr.f32.mxu0 %v16945_v22 }
 0x315   :  { %v6519_v40 = vmax.f32 %v5171_v63, 0.0  ;;  %v6518_v11 = vmax.f32 %v5084_v6, 0.0  ;;  %v5241_v1 = vpop.f32.mrb[136].mxu0  ;;  %6408 = vmatprep.mubr.f32.mxu1 %v16945_v22 }
 0x316   :  { %v10467_v10 = vpack.c.bf16 %v6517_v0, %v6485_v29  ;;  %v6520_v53 = vmax.f32 %v5173_v23, 0.0  ;;  %v5330_v21 = vpop.f32.mrb[136].mxu1  ;;  %v5243_v35 = vpop.f32.mrb[137].mxu0  ;;  %v5242_v17 = vadd.f32 %v5241_v1, %v16096_v36 }
 0x317   :  { %v10475_v33 = vpack.c.bf16 %v6519_v40, %v6487_v37  ;;  %v10465_v52 = vpack.c.bf16 %v6518_v11, %v6486_v42  ;;  %v5332_v24 = vpop.f32.mrb[137].mxu1  ;;  %8647 = vmatmul.mubr.msk.f32.gmra.mrb[188].mxu0 %vm4984_vm2, %v15941_v47  ;;  %v5331_v8 = vadd.f32 %v5330_v21, %v16096_v36  ;;  %v5244_v5 = vadd.f32 %v5243_v35, %v16096_v36 }
 0x318   :  { %v10473_v25 = vpack.c.bf16 %v6520_v53, %v6488_v44  ;;  %8651 = vmatmul.mubr.msk.f32.gmra.mrb[188].mxu1 %vm4984_vm2, %v15941_v47  ;;  %6325 = vmatprep.mubr.f32.mxu0 %v16945_v22  ;;  %v5333_v59 = vadd.f32 %v5332_v24, %v16096_v36  ;;  %v6425_v57 = vmax.f32 %v5242_v17, 0.0 }
 0x319   :  { %v5247_v19 = vpop.f32.mrb[138].mxu0  ;;  %10466 = vmatprep.subr.bf16.mxu0 %v10465_v52  ;;  %6414 = vmatprep.mubr.f32.mxu1 %v16945_v22  ;;  %v6427_v13 = vmax.f32 %v5331_v8, 0.0  ;;  %v6426_v34 = vmax.f32 %v5244_v5, 0.0 }
 0x31a   :  { %v5248_v26 = vadd.f32 %v5247_v19, %v16099_v41  ;;  %v5336_v48 = vpop.f32.mrb[138].mxu1  ;;  %10474 = vmatprep.subr.bf16.mxu1 %v10473_v25  ;;  %v5249_v28 = vpop.f32.mrb[139].mxu0  ;;  %10468 = vmatpush1.bf16.msra.mxu0 %v10467_v10  ;;  %v6428_v16 = vmax.f32 %v5333_v59, 0.0 }
 0x31b   :  { %v5337_v47 = vadd.f32 %v5336_v48, %v16099_v41  ;;  %v5250_v58 = vadd.f32 %v5249_v28, %v16099_v41  ;;  %v5338_v61 = vpop.f32.mrb[139].mxu1  ;;  %10476 = vmatpush1.bf16.msra.mxu1 %v10475_v33  ;;  %8648 = vmatmul.mubr.msk.f32.gmra.mrb[190].mxu0 %vm4984_vm2, %v15952_v38 }
 0x31c   :  { %v6457_v32 = vmax.f32 %v5248_v26, 0.0  ;;  %v5339_v31 = vadd.f32 %v5338_v61, %v16099_v41  ;;  %8652 = vmatmul.mubr.msk.f32.gmra.mrb[190].mxu1 %vm4984_vm2, %v15952_v38  ;;  %6627 = vmatprep.mubr.f32.mxu0 %v16945_v22 }
 0x31d   :  { %v6459_v49 = vmax.f32 %v5337_v47, 0.0  ;;  %v6458_v9 = vmax.f32 %v5250_v58, 0.0  ;;  %v5253_v45 = vpop.f32.mrb[140].mxu0  ;;  %6698 = vmatprep.mubr.f32.mxu1 %v16945_v22 }
 0x31e   :  { %v10479_v62 = vpack.c.bf16 %v6457_v32, %v6425_v57  ;;  %v6460_v55 = vmax.f32 %v5339_v31, 0.0  ;;  %v5342_v15 = vpop.f32.mrb[140].mxu1  ;;  %v5255_v46 = vpop.f32.mrb[141].mxu0  ;;  %v5254_v3 = vadd.f32 %v5253_v45, %v16108_v7 }
 0x31f   :  { %v10487_v38 = vpack.c.bf16 %v6459_v49, %v6427_v13  ;;  %v10477_v4 = vpack.c.bf16 %v6458_v9, %v6426_v34  ;;  %v5344_v39 = vpop.f32.mrb[141].mxu1  ;;  %8653 = vmatmul.mubr.msk.f32.vlgmr.msra.gmra.mrb[192].mxu0 %vm1027_vm0, %v16154_v30  ;;  %v5343_v51 = vadd.f32 %v5342_v15, %v16108_v7  ;;  %v5256_v2 = vadd.f32 %v5255_v46, %v16108_v7 }
 0x320   :  { %v10485_v20 = vpack.c.bf16 %v6460_v55, %v6428_v16  ;;  %8654 = vmatmul.mubr.msk.f32.vlgmr.msra.gmra.mrb[192].mxu1 %vm1027_vm0, %v16154_v30  ;;  %6769 = vmatprep.mubr.f32.mxu0 %v16945_v22  ;;  %v5345_v54 = vadd.f32 %v5344_v39, %v16108_v7  ;;  %v6489_v6 = vmax.f32 %v5254_v3, 0.0 }
 0x321   :  { %v5259_v18 = vpop.f32.mrb[142].mxu0  ;;  %10478 = vmatprep.subr.bf16.mxu0 %v10477_v4  ;;  %6840 = vmatprep.mubr.f32.mxu1 %v16945_v22  ;;  %v6491_v0 = vmax.f32 %v5343_v51, 0.0  ;;  %v6490_v23 = vmax.f32 %v5256_v2, 0.0 }
 0x322   :  { %v5260_v56 = vadd.f32 %v5259_v18, %v16116_v60  ;;  %v5348_v12 = vpop.f32.mrb[142].mxu1  ;;  %10486 = vmatprep.subr.bf16.mxu1 %v10485_v20  ;;  %v5261_v27 = vpop.f32.mrb[143].mxu0  ;;  %10480 = vmatpush1.bf16.msra.mxu0 %v10479_v62  ;;  %v6492_v11 = vmax.f32 %v5345_v54, 0.0 }
 0x323   :  { %v5349_v43 = vadd.f32 %v5348_v12, %v16116_v60  ;;  %v5262_v14 = vadd.f32 %v5261_v27, %v16116_v60  ;;  %v5350_v63 = vpop.f32.mrb[143].mxu1  ;;  %10488 = vmatpush1.bf16.msra.mxu1 %v10487_v38 }
 0x324   :  { %v6521_v50 = vmax.f32 %v5260_v56, 0.0  ;;  %v5351_v29 = vadd.f32 %v5350_v63, %v16116_v60 }
 0x325   :  { %v6523_v37 = vmax.f32 %v5349_v43, 0.0  ;;  %v6522_v42 = vmax.f32 %v5262_v14, 0.0  ;;  %v5419_v40 = vpop.f32.mrb[144].mxu0 }
 0x326   :  { %v10483_v1 = vpack.c.bf16 %v6521_v50, %v6489_v6  ;;  %v6524_v44 = vmax.f32 %v5351_v29, 0.0  ;;  %v5508_v10 = vpop.f32.mrb[144].mxu1  ;;  %v5421_v53 = vpop.f32.mrb[145].mxu0  ;;  %v5420_v24 = vadd.f32 %v5419_v40, %v16096_v36 }
 0x327   :  { %v10491_v21 = vpack.c.bf16 %v6523_v37, %v6491_v0  ;;  %v10481_v35 = vpack.c.bf16 %v6522_v42, %v6490_v23  ;;  %v5510_v33 = vpop.f32.mrb[145].mxu1  ;;  %v5509_v25 = vadd.f32 %v5508_v10, %v16096_v36  ;;  %v5422_v17 = vadd.f32 %v5421_v53, %v16096_v36 }
 0x328   :  { %v10489_v52 = vpack.c.bf16 %v6524_v44, %v6492_v11  ;;  %v5511_v5 = vadd.f32 %v5510_v33, %v16096_v36  ;;  %v6429_v58 = vmax.f32 %v5420_v24, 0.0 }
 0x329   :  { %v5425_v8 = vpop.f32.mrb[146].mxu0  ;;  %10482 = vmatprep.subr.bf16.mxu0 %v10481_v35  ;;  %v6431_v32 = vmax.f32 %v5509_v25, 0.0  ;;  %v6430_v31 = vmax.f32 %v5422_v17, 0.0 }
 0x32a   :  { %v5426_v19 = vadd.f32 %v5425_v8, %v16099_v41  ;;  %v5514_v59 = vpop.f32.mrb[146].mxu1  ;;  %10490 = vmatprep.subr.bf16.mxu1 %v10489_v52  ;;  %v5427_v26 = vpop.f32.mrb[147].mxu0  ;;  %10484 = vmatpush1.bf16.msra.mxu0 %v10483_v1  ;;  %v6432_v9 = vmax.f32 %v5511_v5, 0.0 }
 0x32b   :  { %v5515_v48 = vadd.f32 %v5514_v59, %v16099_v41  ;;  %v5428_v28 = vadd.f32 %v5427_v26, %v16099_v41  ;;  %v5516_v47 = vpop.f32.mrb[147].mxu1  ;;  %10492 = vmatpush1.bf16.msra.mxu1 %v10491_v21 }
 0x32c   :  { %v6461_v61 = vmax.f32 %v5426_v19, 0.0  ;;  %v5517_v57 = vadd.f32 %v5516_v47, %v16099_v41 }
 0x32d   :  { %v6463_v13 = vmax.f32 %v5515_v48, 0.0  ;;  %v6462_v34 = vmax.f32 %v5428_v28, 0.0  ;;  %v5431_v49 = vpop.f32.mrb[148].mxu0  ;;  %8655 = vmatmul.mubr.msk.f32.vlgmr.msra.gmra.mrb[194].mxu0 %vm1027_vm0, %v16154_v30 }
 0x32e   :  { %v10495_v45 = vpack.c.bf16 %v6461_v61, %v6429_v58  ;;  %v6464_v16 = vmax.f32 %v5517_v57, 0.0  ;;  %v5520_v62 = vpop.f32.mrb[148].mxu1  ;;  %8656 = vmatmul.mubr.msk.f32.vlgmr.msra.gmra.mrb[194].mxu1 %vm1027_vm0, %v16154_v30  ;;  %v5433_v55 = vpop.f32.mrb[149].mxu0  ;;  %6911 = vmatprep.mubr.f32.mxu0 %v16945_v22  ;;  %v5432_v39 = vadd.f32 %v5431_v49, %v16108_v7 }
 0x32f   :  { %v10503_v15 = vpack.c.bf16 %v6463_v13, %v6431_v32  ;;  %v10493_v46 = vpack.c.bf16 %v6462_v34, %v6430_v31  ;;  %v5522_v38 = vpop.f32.mrb[149].mxu1  ;;  %6982 = vmatprep.mubr.f32.mxu1 %v16945_v22  ;;  %v5521_v20 = vadd.f32 %v5520_v62, %v16108_v7  ;;  %v5434_v3 = vadd.f32 %v5433_v55, %v16108_v7 }
 0x330   :  { %v10501_v4 = vpack.c.bf16 %v6464_v16, %v6432_v9  ;;  %v5523_v2 = vadd.f32 %v5522_v38, %v16108_v7  ;;  %v6493_v14 = vmax.f32 %v5432_v39, 0.0 }
 0x331   :  { %v5437_v51 = vpop.f32.mrb[150].mxu0  ;;  %10494 = vmatprep.subr.bf16.mxu0 %v10493_v46  ;;  %v6495_v50 = vmax.f32 %v5521_v20, 0.0  ;;  %v6494_v29 = vmax.f32 %v5434_v3, 0.0 }
 0x332   :  { %v5438_v18 = vadd.f32 %v5437_v51, %v16116_v60  ;;  %v5526_v54 = vpop.f32.mrb[150].mxu1  ;;  %10502 = vmatprep.subr.bf16.mxu1 %v10501_v4  ;;  %v5439_v56 = vpop.f32.mrb[151].mxu0  ;;  %10496 = vmatpush1.bf16.msra.mxu0 %v10495_v45  ;;  %v6496_v42 = vmax.f32 %v5523_v2, 0.0 }
 0x333   :  { %v5527_v12 = vadd.f32 %v5526_v54, %v16116_v60  ;;  %v5440_v27 = vadd.f32 %v5439_v56, %v16116_v60  ;;  %v5528_v43 = vpop.f32.mrb[151].mxu1  ;;  %10504 = vmatpush1.bf16.msra.mxu1 %v10503_v15 }
 0x334   :  { %v6525_v63 = vmax.f32 %v5438_v18, 0.0  ;;  %v5529_v6 = vadd.f32 %v5528_v43, %v16116_v60 }
 0x335   :  { %v6527_v0 = vmax.f32 %v5527_v12, 0.0  ;;  %v6526_v23 = vmax.f32 %v5440_v27, 0.0  ;;  %v5597_v37 = vpop.f32.mrb[152].mxu0 }
 0x336   :  { %v10499_v40 = vpack.c.bf16 %v6525_v63, %v6493_v14  ;;  %v6528_v11 = vmax.f32 %v5529_v6, 0.0  ;;  %v5686_v1 = vpop.f32.mrb[152].mxu1  ;;  %v5599_v44 = vpop.f32.mrb[153].mxu0  ;;  %v5598_v33 = vadd.f32 %v5597_v37, %v16096_v36 }
 0x337   :  { %v10507_v10 = vpack.c.bf16 %v6527_v0, %v6495_v50  ;;  %v10497_v53 = vpack.c.bf16 %v6526_v23, %v6494_v29  ;;  %v5688_v21 = vpop.f32.mrb[153].mxu1  ;;  %v5687_v52 = vadd.f32 %v5686_v1, %v16096_v36  ;;  %v5600_v24 = vadd.f32 %v5599_v44, %v16096_v36 }
 0x338   :  { %v10505_v35 = vpack.c.bf16 %v6528_v11, %v6496_v42  ;;  %v5689_v17 = vadd.f32 %v5688_v21, %v16096_v36  ;;  %v6433_v28 = vmax.f32 %v5598_v33, 0.0 }
 0x339   :  { %v5603_v25 = vpop.f32.mrb[154].mxu0  ;;  %10498 = vmatprep.subr.bf16.mxu0 %v10497_v53  ;;  %v6435_v61 = vmax.f32 %v5687_v52, 0.0  ;;  %v6434_v57 = vmax.f32 %v5600_v24, 0.0 }
 0x33a   :  { %v5604_v8 = vadd.f32 %v5603_v25, %v16099_v41  ;;  %v5692_v5 = vpop.f32.mrb[154].mxu1  ;;  %10506 = vmatprep.subr.bf16.mxu1 %v10505_v35  ;;  %v5605_v19 = vpop.f32.mrb[155].mxu0  ;;  %10500 = vmatpush1.bf16.msra.mxu0 %v10499_v40  ;;  %v6436_v34 = vmax.f32 %v5689_v17, 0.0 }
 0x33b   :  { %v5693_v59 = vadd.f32 %v5692_v5, %v16099_v41  ;;  %v5606_v26 = vadd.f32 %v5605_v19, %v16099_v41  ;;  %v5694_v48 = vpop.f32.mrb[155].mxu1  ;;  %10508 = vmatpush1.bf16.msra.mxu1 %v10507_v10 }
 0x33c   :  { %v6465_v47 = vmax.f32 %v5604_v8, 0.0  ;;  %v5695_v58 = vadd.f32 %v5694_v48, %v16099_v41 }
 0x33d   :  { %v6467_v32 = vmax.f32 %v5693_v59, 0.0  ;;  %v6466_v31 = vmax.f32 %v5606_v26, 0.0  ;;  %v5609_v13 = vpop.f32.mrb[156].mxu0  ;;  %8657 = vmatmul.mubr.msk.f32.vlgmr.msra.gmra.mrb[196].mxu0 %vm1027_vm0, %v16154_v30 }
 0x33e   :  { %v10511_v49 = vpack.c.bf16 %v6465_v47, %v6433_v28  ;;  %v6468_v9 = vmax.f32 %v5695_v58, 0.0  ;;  %v5698_v45 = vpop.f32.mrb[156].mxu1  ;;  %8658 = vmatmul.mubr.msk.f32.vlgmr.msra.gmra.mrb[196].mxu1 %vm1027_vm0, %v16154_v30  ;;  %v5611_v16 = vpop.f32.mrb[157].mxu0  ;;  %7053 = vmatprep.mubr.f32.mxu0 %v16945_v22  ;;  %v5610_v38 = vadd.f32 %v5609_v13, %v16108_v7 }
 0x33f   :  { %v10519_v62 = vpack.c.bf16 %v6467_v32, %v6435_v61  ;;  %v10509_v55 = vpack.c.bf16 %v6466_v31, %v6434_v57  ;;  %v5700_v15 = vpop.f32.mrb[157].mxu1  ;;  %7124 = vmatprep.mubr.f32.mxu1 %v16945_v22  ;;  %v5699_v4 = vadd.f32 %v5698_v45, %v16108_v7  ;;  %v5612_v39 = vadd.f32 %v5611_v16, %v16108_v7 }
 0x340   :  { %v10517_v46 = vpack.c.bf16 %v6468_v9, %v6436_v34  ;;  %v5701_v3 = vadd.f32 %v5700_v15, %v16108_v7  ;;  %v6497_v27 = vmax.f32 %v5610_v38, 0.0 }
 0x341   :  { %v5615_v20 = vpop.f32.mrb[158].mxu0  ;;  %10510 = vmatprep.subr.bf16.mxu0 %v10509_v55  ;;  %v6499_v63 = vmax.f32 %v5699_v4, 0.0  ;;  %v6498_v6 = vmax.f32 %v5612_v39, 0.0 }
 0x342   :  { %v5616_v51 = vadd.f32 %v5615_v20, %v16116_v60  ;;  %v5704_v2 = vpop.f32.mrb[158].mxu1  ;;  %10518 = vmatprep.subr.bf16.mxu1 %v10517_v46  ;;  %v5617_v18 = vpop.f32.mrb[159].mxu0  ;;  %10512 = vmatpush1.bf16.msra.mxu0 %v10511_v49  ;;  %v6500_v23 = vmax.f32 %v5701_v3, 0.0 }
 0x343   :  { %v5705_v54 = vadd.f32 %v5704_v2, %v16116_v60  ;;  %v5618_v56 = vadd.f32 %v5617_v18, %v16116_v60  ;;  %v5706_v12 = vpop.f32.mrb[159].mxu1  ;;  %10520 = vmatpush1.bf16.msra.mxu1 %v10519_v62 }
 0x344   :  { %v6529_v43 = vmax.f32 %v5616_v51, 0.0  ;;  %v5707_v14 = vadd.f32 %v5706_v12, %v16116_v60 }
 0x345   :  { %v6531_v50 = vmax.f32 %v5705_v54, 0.0  ;;  %v6530_v29 = vmax.f32 %v5618_v56, 0.0  ;;  %v5775_v0 = vpop.f32.mrb[160].mxu0 }
 0x346   :  { %v10515_v37 = vpack.c.bf16 %v6529_v43, %v6497_v27  ;;  %v6532_v42 = vmax.f32 %v5707_v14, 0.0  ;;  %v5864_v40 = vpop.f32.mrb[160].mxu1  ;;  %v5777_v11 = vpop.f32.mrb[161].mxu0  ;;  %v5776_v21 = vadd.f32 %v5775_v0, %v16096_v36 }
 0x347   :  { %v10523_v1 = vpack.c.bf16 %v6531_v50, %v6499_v63  ;;  %v10513_v44 = vpack.c.bf16 %v6530_v29, %v6498_v6  ;;  %v5866_v10 = vpop.f32.mrb[161].mxu1  ;;  %v5865_v35 = vadd.f32 %v5864_v40, %v16096_v36  ;;  %v5778_v33 = vadd.f32 %v5777_v11, %v16096_v36 }
 0x348   :  { %v10521_v53 = vpack.c.bf16 %v6532_v42, %v6500_v23  ;;  %v5867_v24 = vadd.f32 %v5866_v10, %v16096_v36  ;;  %v6437_v26 = vmax.f32 %v5776_v21, 0.0 }
 0x349   :  { %v5781_v52 = vpop.f32.mrb[162].mxu0  ;;  %10514 = vmatprep.subr.bf16.mxu0 %v10513_v44  ;;  %v6439_v47 = vmax.f32 %v5865_v35, 0.0  ;;  %v6438_v58 = vmax.f32 %v5778_v33, 0.0 }
 0x34a   :  { %v5782_v25 = vadd.f32 %v5781_v52, %v16099_v41  ;;  %v5870_v17 = vpop.f32.mrb[162].mxu1  ;;  %10522 = vmatprep.subr.bf16.mxu1 %v10521_v53  ;;  %v5783_v8 = vpop.f32.mrb[163].mxu0  ;;  %10516 = vmatpush1.bf16.msra.mxu0 %v10515_v37  ;;  %v6440_v31 = vmax.f32 %v5867_v24, 0.0 }
 0x34b   :  { %v5871_v5 = vadd.f32 %v5870_v17, %v16099_v41  ;;  %v5784_v19 = vadd.f32 %v5783_v8, %v16099_v41  ;;  %v5872_v59 = vpop.f32.mrb[163].mxu1  ;;  %10524 = vmatpush1.bf16.msra.mxu1 %v10523_v1 }
 0x34c   :  { %v6469_v48 = vmax.f32 %v5782_v25, 0.0  ;;  %v5873_v28 = vadd.f32 %v5872_v59, %v16099_v41 }
 0x34d   :  { %v6471_v61 = vmax.f32 %v5871_v5, 0.0  ;;  %v6470_v57 = vmax.f32 %v5784_v19, 0.0  ;;  %v5787_v32 = vpop.f32.mrb[164].mxu0  ;;  %8659 = vmatmul.mubr.msk.f32.vlgmr.msra.gmra.mrb[198].mxu0 %vm1027_vm0, %v16154_v30 }
 0x34e   :  { %v10527_v13 = vpack.c.bf16 %v6469_v48, %v6437_v26  ;;  %v6472_v34 = vmax.f32 %v5873_v28, 0.0  ;;  %v5876_v49 = vpop.f32.mrb[164].mxu1  ;;  %8660 = vmatmul.mubr.msk.f32.vlgmr.msra.gmra.mrb[198].mxu1 %vm1027_vm0, %v16154_v30  ;;  %v5789_v9 = vpop.f32.mrb[165].mxu0  ;;  %7195 = vmatprep.mubr.f32.mxu0 %v16945_v22  ;;  %v5788_v15 = vadd.f32 %v5787_v32, %v16108_v7 }
 0x34f   :  { %v10535_v45 = vpack.c.bf16 %v6471_v61, %v6439_v47  ;;  %v10525_v16 = vpack.c.bf16 %v6470_v57, %v6438_v58  ;;  %v5878_v62 = vpop.f32.mrb[165].mxu1  ;;  %7266 = vmatprep.mubr.f32.mxu1 %v16945_v22  ;;  %v5877_v46 = vadd.f32 %v5876_v49, %v16108_v7  ;;  %v5790_v38 = vadd.f32 %v5789_v9, %v16108_v7 }
 0x350   :  { %v10533_v55 = vpack.c.bf16 %v6472_v34, %v6440_v31  ;;  %v5879_v39 = vadd.f32 %v5878_v62, %v16108_v7  ;;  %v6501_v56 = vmax.f32 %v5788_v15, 0.0 }
 0x351   :  { %v5793_v4 = vpop.f32.mrb[166].mxu0  ;;  %10526 = vmatprep.subr.bf16.mxu0 %v10525_v16  ;;  %v6503_v43 = vmax.f32 %v5877_v46, 0.0  ;;  %v6502_v14 = vmax.f32 %v5790_v38, 0.0 }
 0x352   :  { %v5794_v20 = vadd.f32 %v5793_v4, %v16116_v60  ;;  %v5882_v3 = vpop.f32.mrb[166].mxu1  ;;  %10534 = vmatprep.subr.bf16.mxu1 %v10533_v55  ;;  %v5795_v51 = vpop.f32.mrb[167].mxu0  ;;  %10528 = vmatpush1.bf16.msra.mxu0 %v10527_v13  ;;  %v6504_v50 = vmax.f32 %v5879_v39, 0.0 }
 0x353   :  { %v5883_v2 = vadd.f32 %v5882_v3, %v16116_v60  ;;  %v5796_v18 = vadd.f32 %v5795_v51, %v16116_v60  ;;  %v5884_v54 = vpop.f32.mrb[167].mxu1  ;;  %10536 = vmatpush1.bf16.msra.mxu1 %v10535_v45 }
 0x354   :  { %v6533_v12 = vmax.f32 %v5794_v20, 0.0  ;;  %v5885_v27 = vadd.f32 %v5884_v54, %v16116_v60 }
 0x355   :  { %v6535_v63 = vmax.f32 %v5883_v2, 0.0  ;;  %v6534_v6 = vmax.f32 %v5796_v18, 0.0 }
 0x356   :  { %v10531_v29 = vpack.c.bf16 %v6533_v12, %v6501_v56  ;;  %v6536_v0 = vmax.f32 %v5885_v27, 0.0 }
 0x357   :  { %v10539_v23 = vpack.c.bf16 %v6535_v63, %v6503_v43  ;;  %v10529_v37 = vpack.c.bf16 %v6534_v6, %v6502_v14 }
 0x358   :  { %v10537_v42 = vpack.c.bf16 %v6536_v0, %v6504_v50 }
 0x359   :  { %10530 = vmatprep.subr.bf16.mxu0 %v10529_v37 }
 0x35a   :  { %10538 = vmatprep.subr.bf16.mxu1 %v10537_v42  ;;  %10532 = vmatpush1.bf16.msra.mxu0 %v10531_v29 }
 0x35b   :  { %10540 = vmatpush1.bf16.msra.mxu1 %v10539_v23 }
 0x35d   :  { %8661 = vmatmul.mubr.msk.f32.vlgmr.msra.gmra.mrb[200].mxu0 %vm1027_vm0, %v16154_v30 }
 0x35e   :  { %8662 = vmatmul.mubr.msk.f32.vlgmr.msra.gmra.mrb[200].mxu1 %vm1027_vm0, %v16154_v30  ;;  %7337 = vmatprep.mubr.f32.mxu0 %v16945_v22 }
 0x35f   :  { %7408 = vmatprep.mubr.f32.mxu1 %v16945_v22 }
 0x360   :  { %v5953_v40 = vpop.f32.mrb[168].mxu0 }
 0x361   :  { %v6042_v11 = vpop.f32.mrb[168].mxu1  ;;  %v5955_v1 = vpop.f32.mrb[169].mxu0  ;;  %v5954_v10 = vadd.f32 %v5953_v40, %v16096_v36 }
 0x362   :  { %v6044_v44 = vpop.f32.mrb[169].mxu1  ;;  %v6043_v53 = vadd.f32 %v6042_v11, %v16096_v36  ;;  %v5956_v21 = vadd.f32 %v5955_v1, %v16096_v36 }
 0x363   :  { %v6045_v33 = vadd.f32 %v6044_v44, %v16096_v36  ;;  %v6441_v19 = vmax.f32 %v5954_v10, 0.0 }
 0x364   :  { %v5959_v35 = vpop.f32.mrb[170].mxu0  ;;  %v6443_v48 = vmax.f32 %v6043_v53, 0.0  ;;  %v6442_v28 = vmax.f32 %v5956_v21, 0.0 }
 0x365   :  { %v5960_v52 = vadd.f32 %v5959_v35, %v16099_v41  ;;  %v6048_v24 = vpop.f32.mrb[170].mxu1  ;;  %v5961_v25 = vpop.f32.mrb[171].mxu0  ;;  %v6444_v57 = vmax.f32 %v6045_v33, 0.0 }
 0x366   :  { %v6049_v17 = vadd.f32 %v6048_v24, %v16099_v41  ;;  %v5962_v8 = vadd.f32 %v5961_v25, %v16099_v41  ;;  %v6050_v5 = vpop.f32.mrb[171].mxu1 }
 0x367   :  { %v6473_v59 = vmax.f32 %v5960_v52, 0.0  ;;  %v6051_v26 = vadd.f32 %v6050_v5, %v16099_v41 }
 0x368   :  { %v6475_v47 = vmax.f32 %v6049_v17, 0.0  ;;  %v6474_v58 = vmax.f32 %v5962_v8, 0.0  ;;  %v5965_v61 = vpop.f32.mrb[172].mxu0 }
 0x369   :  { %v10543_v32 = vpack.c.bf16 %v6473_v59, %v6441_v19  ;;  %v6476_v31 = vmax.f32 %v6051_v26, 0.0  ;;  %v6054_v13 = vpop.f32.mrb[172].mxu1  ;;  %v5967_v34 = vpop.f32.mrb[173].mxu0  ;;  %v5966_v62 = vadd.f32 %v5965_v61, %v16108_v7 }
 0x36a   :  { %v10551_v49 = vpack.c.bf16 %v6475_v47, %v6443_v48  ;;  %v10541_v9 = vpack.c.bf16 %v6474_v58, %v6442_v28  ;;  %v6056_v45 = vpop.f32.mrb[173].mxu1  ;;  %v6055_v55 = vadd.f32 %v6054_v13, %v16108_v7  ;;  %v5968_v15 = vadd.f32 %v5967_v34, %v16108_v7 }
 0x36b   :  { %v10549_v16 = vpack.c.bf16 %v6476_v31, %v6444_v57  ;;  %v6057_v38 = vadd.f32 %v6056_v45, %v16108_v7  ;;  %v6505_v18 = vmax.f32 %v5966_v62, 0.0 }
 0x36c   :  { %v5971_v46 = vpop.f32.mrb[174].mxu0  ;;  %10542 = vmatprep.subr.bf16.mxu0 %v10541_v9  ;;  %v6507_v12 = vmax.f32 %v6055_v55, 0.0  ;;  %v6506_v27 = vmax.f32 %v5968_v15, 0.0 }
 0x36d   :  { %v5972_v4 = vadd.f32 %v5971_v46, %v16116_v60  ;;  %v6060_v39 = vpop.f32.mrb[174].mxu1  ;;  %10550 = vmatprep.subr.bf16.mxu1 %v10549_v16  ;;  %v5973_v20 = vpop.f32.mrb[175].mxu0  ;;  %10544 = vmatpush1.bf16.msra.mxu0 %v10543_v32  ;;  %v6508_v63 = vmax.f32 %v6057_v38, 0.0 }
 0x36e   :  { %v6061_v3 = vadd.f32 %v6060_v39, %v16116_v60  ;;  %v5974_v51 = vadd.f32 %v5973_v20, %v16116_v60  ;;  %v6062_v2 = vpop.f32.mrb[175].mxu1  ;;  %10552 = vmatpush1.bf16.msra.mxu1 %v10551_v49 }
 0x36f   :  { %v6537_v54 = vmax.f32 %v5972_v4, 0.0  ;;  %v6063_v56 = vadd.f32 %v6062_v2, %v16116_v60 }
 0x370   :  { %v6539_v43 = vmax.f32 %v6061_v3, 0.0  ;;  %v6538_v14 = vmax.f32 %v5974_v51, 0.0 }
 0x371   :  { %v10547_v6 = vpack.c.bf16 %v6537_v54, %v6505_v18  ;;  %v6540_v50 = vmax.f32 %v6063_v56, 0.0 }
 0x372   :  { %v10555_v29 = vpack.c.bf16 %v6539_v43, %v6507_v12  ;;  %v10545_v0 = vpack.c.bf16 %v6538_v14, %v6506_v27 }
 0x373   :  { %v10553_v23 = vpack.c.bf16 %v6540_v50, %v6508_v63 }
 0x374   :  { %10546 = vmatprep.subr.bf16.mxu0 %v10545_v0 }
 0x375   :  { %10554 = vmatprep.subr.bf16.mxu1 %v10553_v23  ;;  %10548 = vmatpush1.bf16.msra.mxu0 %v10547_v6 }
 0x376   :  { %10556 = vmatpush1.bf16.msra.mxu1 %v10555_v29 }
 0x378   :  { %8663 = vmatmul.mubr.msk.f32.vlgmr.msra.gmra.mrb[202].mxu0 %vm1027_vm0, %v16154_v30 }
 0x379   :  { %8664 = vmatmul.mubr.msk.f32.vlgmr.msra.gmra.mrb[202].mxu1 %vm1027_vm0, %v16154_v30  ;;  %7479 = vmatprep.mubr.f32.mxu0 %v16945_v22 }
 0x37a   :  { %7550 = vmatprep.mubr.f32.mxu1 %v16945_v22 }
 0x3a1   :  { %v6131_v37 = vpop.f32.mrb[176].mxu0 }
 0x3a2   :  { %v6133_v40 = vpop.f32.mrb[177].mxu0  ;;  %v6132_v1 = vadd.f32 %v6131_v37, %v16096_v36 }
 0x3a3   :  { %v6220_v42 = vpop.f32.mrb[176].mxu1  ;;  %v6134_v10 = vadd.f32 %v6133_v40, %v16096_v36 }
 0x3a4   :  { %v6222_v11 = vpop.f32.mrb[177].mxu1  ;;  %v6221_v44 = vadd.f32 %v6220_v42, %v16096_v36  ;;  %v6445_v8 = vmax.f32 %v6132_v1, 0.0 }
 0x3a5   :  { %v6137_v53 = vpop.f32.mrb[178].mxu0  ;;  %v6223_v21 = vadd.f32 %v6222_v11, %v16096_v36  ;;  %v6446_v26 = vmax.f32 %v6134_v10, 0.0 }
 0x3a6   :  { %v6138_v35 = vadd.f32 %v6137_v53, %v16099_v41  ;;  %v6139_v52 = vpop.f32.mrb[179].mxu0  ;;  %v6447_v59 = vmax.f32 %v6221_v44, 0.0 }
 0x3a7   :  { %v6226_v33 = vpop.f32.mrb[178].mxu1  ;;  %v6140_v25 = vadd.f32 %v6139_v52, %v16099_v41  ;;  %v6448_v58 = vmax.f32 %v6223_v21, 0.0 }
 0x3a8   :  { %v6227_v24 = vadd.f32 %v6226_v33, %v16099_v41  ;;  %v6228_v17 = vpop.f32.mrb[179].mxu1  ;;  %v6477_v5 = vmax.f32 %v6138_v35, 0.0 }
 0x3a9   :  { %v6229_v19 = vadd.f32 %v6228_v17, %v16099_v41  ;;  %v6478_v28 = vmax.f32 %v6140_v25, 0.0  ;;  %v6143_v47 = vpop.f32.mrb[180].mxu0 }
 0x3aa   :  { %v6479_v48 = vmax.f32 %v6227_v24, 0.0  ;;  %v10559_v61 = vpack.c.bf16 %v6477_v5, %v6445_v8  ;;  %v6145_v31 = vpop.f32.mrb[181].mxu0  ;;  %v6144_v45 = vadd.f32 %v6143_v47, %v16108_v7  ;;  %v10649_v8 = vmov 1966171168  }
 0x3ab   :  { %v6480_v57 = vmax.f32 %v6229_v19, 0.0  ;;  %v6232_v32 = vpop.f32.mrb[180].mxu1  ;;  %v10557_v34 = vpack.c.bf16 %v6478_v28, %v6446_v26  ;;  %v6146_v62 = vadd.f32 %v6145_v31, %v16108_v7  ;;  %v7736_v5 = vunpack.c.l.s4 %v10649_v8 }
 0x3ac   :  { %v10567_v13 = vpack.c.bf16 %v6479_v48, %v6447_v59  ;;  %v6234_v49 = vpop.f32.mrb[181].mxu1  ;;  %v6233_v16 = vadd.f32 %v6232_v32, %v16108_v7  ;;  %v6509_v51 = vmax.f32 %v6144_v45, 0.0 }
 0x3ad   :  { %v10565_v9 = vpack.c.bf16 %v6480_v57, %v6448_v58  ;;  %v6149_v55 = vpop.f32.mrb[182].mxu0  ;;  %10558 = vmatprep.subr.bf16.mxu0 %v10557_v34  ;;  %v6235_v15 = vadd.f32 %v6234_v49, %v16108_v7  ;;  %v6510_v56 = vmax.f32 %v6146_v62, 0.0  ;;  %v6554_v34 = vpop.permute.xlu0 %6553 }
 0x3ae   :  { %v6150_v46 = vadd.f32 %v6149_v55, %v16116_v60  ;;  %v6151_v4 = vpop.f32.mrb[183].mxu0  ;;  %10560 = vmatpush1.bf16.msra.mxu0 %v10559_v61  ;;  %v6511_v54 = vmax.f32 %v6233_v16, 0.0 }
 0x3af   :  { %v6238_v38 = vpop.f32.mrb[182].mxu1  ;;  %10566 = vmatprep.subr.bf16.mxu1 %v10565_v9  ;;  %v6152_v20 = vadd.f32 %v6151_v4, %v16116_v60  ;;  %v6512_v43 = vmax.f32 %v6235_v15, 0.0  ;;  %v16954_v4 = vld [vmem:[#allocation12_spill] sm:$0xff] }
 0x3b0   :  { %v6239_v39 = vadd.f32 %v6238_v38, %v16116_v60  ;;  %v6240_v3 = vpop.f32.mrb[183].mxu1  ;;  %10568 = vmatpush1.bf16.msra.mxu1 %v10567_v13  ;;  %v6541_v2 = vmax.f32 %v6150_v46, 0.0 }
 0x3b1   :  { %v6241_v18 = vadd.f32 %v6240_v3, %v16116_v60  ;;  %v6542_v27 = vmax.f32 %v6152_v20, 0.0 }
 0x3b2   :  { %v6543_v12 = vmax.f32 %v6239_v39, 0.0  ;;  %v10563_v14 = vpack.c.bf16 %v6541_v2, %v6509_v51  ;;  %v16301_v39 = vrot.slane %v6554_v34, %v16954_v4 }
 0x3b3   :  { %v6544_v63 = vmax.f32 %v6241_v18, 0.0  ;;  %v10561_v50 = vpack.c.bf16 %v6542_v27, %v6510_v56 }
 0x3b4   :  { %v10571_v6 = vpack.c.bf16 %v6543_v12, %v6511_v54 }
 0x3b5   :  { %v10569_v29 = vpack.c.bf16 %v6544_v63, %v6512_v43  ;;  %10562 = vmatprep.subr.bf16.mxu0 %v10561_v50 }
 0x3b6   :  { %10564 = vmatpush1.bf16.msra.mxu0 %v10563_v14 }
 0x3b7   :  { %10570 = vmatprep.subr.bf16.mxu1 %v10569_v29 }
 0x3b8   :  { %10572 = vmatpush1.bf16.msra.mxu1 %v10571_v6 }
 0x3b9   :  { %8665 = vmatmul.mubr.msk.f32.vlgmr.msra.gmra.mrb[204].mxu0 %vm1027_vm0, %v16154_v30 }
 0x3ba   :  { %7621 = vmatprep.mubr.f32.mxu0 %v16945_v22 }
 0x3bb   :  { %8666 = vmatmul.mubr.msk.f32.vlgmr.msra.gmra.mrb[204].mxu1 %vm1027_vm0, %v16154_v30 }
 0x3bc   :  { %7692 = vmatprep.mubr.f32.mxu1 %v16945_v22 }
 0x3e2   :  { %v6309_v0 = vpop.f32.mrb[184].mxu0 }
 0x3e3   :  { %v6398_v23 = vpop.f32.mrb[184].mxu1  ;;  %v6311_v37 = vpop.f32.mrb[185].mxu0  ;;  %v6310_v40 = vadd.f32 %v6309_v0, %v16096_v36 }
 0x3e4   :  { %v6400_v42 = vpop.f32.mrb[185].mxu1  ;;  %v6399_v11 = vadd.f32 %v6398_v23, %v16096_v36  ;;  %v6312_v1 = vadd.f32 %v6311_v37, %v16096_v36 }
 0x3e5   :  { %v6401_v10 = vadd.f32 %v6400_v42, %v16096_v36  ;;  %v6449_v24 = vmax.f32 %v6310_v40, 0.0 }
 0x3e6   :  { %v6315_v44 = vpop.f32.mrb[186].mxu0  ;;  %v6451_v19 = vmax.f32 %v6399_v11, 0.0  ;;  %v6450_v59 = vmax.f32 %v6312_v1, 0.0 }
 0x3e7   :  { %v6316_v53 = vadd.f32 %v6315_v44, %v16099_v41  ;;  %v6404_v21 = vpop.f32.mrb[186].mxu1  ;;  %v6317_v35 = vpop.f32.mrb[187].mxu0  ;;  %v6452_v28 = vmax.f32 %v6401_v10, 0.0 }
 0x3e8   :  { %v6405_v33 = vadd.f32 %v6404_v21, %v16099_v41  ;;  %v6318_v22 = vadd.f32 %v6317_v35, %v16099_v41  ;;  %v6406_v52 = vpop.f32.mrb[187].mxu1 }
 0x3e9   :  { %v6481_v25 = vmax.f32 %v6316_v53, 0.0  ;;  %v6407_v17 = vadd.f32 %v6406_v52, %v16099_v41  ;;  %v7737_v41 = vunpack.c.0.s8 %v7736_v5 }
 0x3ea   :  { %v6483_v26 = vmax.f32 %v6405_v33, 0.0  ;;  %v6482_v48 = vmax.f32 %v6318_v22, 0.0  ;;  %v6321_v36 = vpop.f32.mrb[188].mxu0 }
 0x3eb   :  { %v10575_v47 = vpack.c.bf16 %v6481_v25, %v6449_v24  ;;  %v6484_v58 = vmax.f32 %v6407_v17, 0.0  ;;  %v6410_v61 = vpop.f32.mrb[188].mxu1  ;;  %v6323_v57 = vpop.f32.mrb[189].mxu0  ;;  %v6322_v9 = vadd.f32 %v6321_v36, %v16108_v7 }
 0x3ec   :  { %v10583_v32 = vpack.c.bf16 %v6483_v26, %v6451_v19  ;;  %v10573_v31 = vpack.c.bf16 %v6482_v48, %v6450_v59  ;;  %v6412_v13 = vpop.f32.mrb[189].mxu1  ;;  %v6411_v45 = vadd.f32 %v6410_v61, %v16108_v7  ;;  %v6324_v16 = vadd.f32 %v6323_v57, %v16108_v7 }
 0x3ed   :  { %v10581_v49 = vpack.c.bf16 %v6484_v58, %v6452_v28  ;;  %v6413_v55 = vadd.f32 %v6412_v13, %v16108_v7  ;;  %v6513_v2 = vmax.f32 %v6322_v9, 0.0  ;;  %v16955_v7 = vld [vmem:[#allocation8_spill] sm:$0xff] }
 0x3ee   :  { %v6327_v62 = vpop.f32.mrb[190].mxu0  ;;  %10574 = vmatprep.subr.bf16.mxu0 %v10573_v31  ;;  %v16307_v56 = vsub.s32 %v7737_v41, %v16955_v7  ;;  %v6515_v12 = vmax.f32 %v6411_v45, 0.0  ;;  %v6514_v27 = vmax.f32 %v6324_v16, 0.0 }
 0x3ef   :  { %v6328_v15 = vadd.f32 %v6327_v62, %v16116_v60  ;;  %v6416_v46 = vpop.f32.mrb[190].mxu1  ;;  %10582 = vmatprep.subr.bf16.mxu1 %v10581_v49  ;;  %v6329_v38 = vpop.f32.mrb[191].mxu0  ;;  %10576 = vmatpush1.bf16.msra.mxu0 %v10575_v47  ;;  %v6516_v6 = vmax.f32 %v6413_v55, 0.0 }
 0x3f0   :  { %v6417_v20 = vadd.f32 %v6416_v46, %v16116_v60  ;;  %v6330_v3 = vadd.f32 %v6329_v38, %v16116_v60  ;;  %v6418_v51 = vpop.f32.mrb[191].mxu1  ;;  %10584 = vmatpush1.bf16.msra.mxu1 %v10583_v32 }
 0x3f1   :  { %v6545_v18 = vmax.f32 %v6328_v15, 0.0  ;;  %v6419_v54 = vadd.f32 %v6418_v51, %v16116_v60 }
 0x3f2   :  { %v6547_v43 = vmax.f32 %v6417_v20, 0.0  ;;  %v6546_v14 = vmax.f32 %v6330_v3, 0.0  ;;  %v6629_v63 = vpop.f32.mrb[192].mxu0 }
 0x3f3   :  { %v10579_v50 = vpack.c.bf16 %v6545_v18, %v6513_v2  ;;  %v6548_v29 = vmax.f32 %v6419_v54, 0.0  ;;  %v6630_v0 = vadd.f32 %v6629_v63, %v16301_v39  ;;  %v6700_v23 = vpop.f32.mrb[192].mxu1  ;;  %v6631_v37 = vpop.f32.mrb[193].mxu0 }
 0x3f4   :  { %v10587_v42 = vpack.c.bf16 %v6547_v43, %v6515_v12  ;;  %v10577_v40 = vpack.c.bf16 %v6546_v14, %v6514_v27  ;;  %v6701_v11 = vadd.f32 %v6700_v23, %v16301_v39  ;;  %v6632_v60 = vadd.f32 %v6631_v37, %v16301_v39  ;;  %v6702_v1 = vpop.f32.mrb[193].mxu1 }
 0x3f5   :  { %v10585_v44 = vpack.c.bf16 %v6548_v29, %v6516_v6  ;;  %v6703_v10 = vadd.f32 %v6702_v1, %v16301_v39 }
 0x3f6   :  { %v7731_v53 = vcombine.low %v6630_v0, %v6632_v60  ;;  %10578 = vmatprep.subr.bf16.mxu0 %v10577_v40 }
 0x3f7   :  { %v7732_v21 = vcombine.low %v6701_v11, %v6703_v10  ;;  %10586 = vmatprep.subr.bf16.mxu1 %v10585_v44  ;;  %10580 = vmatpush1.bf16.msra.mxu0 %v10579_v50 }
 0x3f8   :  { %v7741_v35 = vrot.slane %v7731_v53, %v16307_v56  ;;  %10588 = vmatpush1.bf16.msra.mxu1 %v10587_v42 }
 0x3f9   :  { %v7748_v33 = vrot.slane %v7732_v21, %v16307_v56 }
 0x3fa   :  { %8667 = vmatmul.mubr.msk.f32.vlgmr.msra.gmra.mrb[206].mxu0 %vm1027_vm0, %v16154_v30 }
 0x3fb   :  { %v7763_v22 = vcombine.low %v7741_v35, %v7748_v33  ;;  %8668 = vmatmul.mubr.msk.f32.vlgmr.msra.gmra.mrb[206].mxu1 %vm1027_vm0, %v16154_v30 }
 0x3fd   :  { %v7771_v30 = vrot.slane %v7763_v22, %v16307_v56 }
 0x400   :  { %v6771_v52 = vpop.f32.mrb[194].mxu0 }
 0x401   :  { %v6772_v24 = vadd.f32 %v6771_v52, %v16301_v39  ;;  %v6842_v25 = vpop.f32.mrb[194].mxu1  ;;  %v6773_v17 = vpop.f32.mrb[195].mxu0 }
 0x402   :  { %v6843_v8 = vadd.f32 %v6842_v25, %v16301_v39  ;;  %v6774_v5 = vadd.f32 %v6773_v17, %v16301_v39  ;;  %v6844_v19 = vpop.f32.mrb[195].mxu1 }
 0x403   :  { %v6845_v59 = vadd.f32 %v6844_v19, %v16301_v39 }
 0x404   :  { %v7733_v26 = vcombine.low %v6772_v24, %v6774_v5 }
 0x405   :  { %v7734_v48 = vcombine.low %v6843_v8, %v6845_v59 }
 0x406   :  { %v7755_v36 = vrot.slane %v7733_v26, %v16307_v56 }
 0x407   :  { %v7762_v28 = vrot.slane %v7734_v48, %v16307_v56 }
 0x409   :  { %v7764_v47 = vcombine.low %v7755_v36, %v7762_v28 }
 0x40b   :  { %v7778_v58 = vrot.slane %v7764_v47, %v16307_v56 }
 0x40d   :  { %v7779_v61 = vcombine.low %v7771_v30, %v7778_v58 }
 0x40f   :  { %7931 = vst [vmem:[#allocation3] sm:$0xff] %v7779_v61 }
 0x410   :  { %v6913_v57 = vpop.f32.mrb[196].mxu0 }
 0x411   :  { %v6914_v32 = vadd.f32 %v6913_v57, %v16301_v39  ;;  %v6984_v31 = vpop.f32.mrb[196].mxu1  ;;  %v6915_v13 = vpop.f32.mrb[197].mxu0 }
 0x412   :  { %v6985_v34 = vadd.f32 %v6984_v31, %v16301_v39  ;;  %v6916_v49 = vadd.f32 %v6915_v13, %v16301_v39  ;;  %v6986_v9 = vpop.f32.mrb[197].mxu1 }
 0x413   :  { %v6987_v41 = vadd.f32 %v6986_v9, %v16301_v39 }
 0x414   :  { %v7780_v45 = vcombine.low %v6914_v32, %v6916_v49 }
 0x415   :  { %v7781_v16 = vcombine.low %v6985_v34, %v6987_v41 }
 0x416   :  { %v7790_v62 = vrot.slane %v7780_v45, %v16307_v56 }
 0x417   :  { %v7797_v55 = vrot.slane %v7781_v16, %v16307_v56 }
 0x419   :  { %v7812_v15 = vcombine.low %v7790_v62, %v7797_v55 }
 0x41b   :  { %v7820_v14 = vrot.slane %v7812_v15, %v16307_v56 }
 0x420   :  { %v7055_v46 = vpop.f32.mrb[198].mxu0 }
 0x421   :  { %v7056_v38 = vadd.f32 %v7055_v46, %v16301_v39  ;;  %v7126_v4 = vpop.f32.mrb[198].mxu1  ;;  %v7057_v20 = vpop.f32.mrb[199].mxu0 }
 0x422   :  { %v7127_v3 = vadd.f32 %v7126_v4, %v16301_v39  ;;  %v7058_v51 = vadd.f32 %v7057_v20, %v16301_v39  ;;  %v7128_v2 = vpop.f32.mrb[199].mxu1 }
 0x423   :  { %v7129_v18 = vadd.f32 %v7128_v2, %v16301_v39 }
 0x424   :  { %v7782_v54 = vcombine.low %v7056_v38, %v7058_v51 }
 0x425   :  { %v7783_v7 = vcombine.low %v7127_v3, %v7129_v18 }
 0x426   :  { %v7804_v12 = vrot.slane %v7782_v54, %v16307_v56 }
 0x427   :  { %v7811_v27 = vrot.slane %v7783_v7, %v16307_v56 }
 0x429   :  { %v7813_v43 = vcombine.low %v7804_v12, %v7811_v27 }
 0x42b   :  { %v7827_v63 = vrot.slane %v7813_v43, %v16307_v56 }
 0x42d   :  { %v7828_v6 = vcombine.low %v7820_v14, %v7827_v63 }
 0x42f   :  { %7932 = vst [vmem:[#allocation3 + $0x8] sm:$0xff] %v7828_v6 }
 0x430   :  { %v7197_v50 = vpop.f32.mrb[200].mxu0 }
 0x431   :  { %v7198_v29 = vadd.f32 %v7197_v50, %v16301_v39  ;;  %v7268_v0 = vpop.f32.mrb[200].mxu1  ;;  %v7199_v23 = vpop.f32.mrb[201].mxu0 }
 0x432   :  { %v7269_v37 = vadd.f32 %v7268_v0, %v16301_v39  ;;  %v7200_v42 = vadd.f32 %v7199_v23, %v16301_v39  ;;  %v7270_v40 = vpop.f32.mrb[201].mxu1 }
 0x433   :  { %v7271_v11 = vadd.f32 %v7270_v40, %v16301_v39 }
 0x434   :  { %v7829_v60 = vcombine.low %v7198_v29, %v7200_v42 }
 0x435   :  { %v7830_v1 = vcombine.low %v7269_v37, %v7271_v11 }
 0x436   :  { %v7839_v44 = vrot.slane %v7829_v60, %v16307_v56 }
 0x437   :  { %v7846_v10 = vrot.slane %v7830_v1, %v16307_v56 }
 0x439   :  { %v7861_v53 = vcombine.low %v7839_v44, %v7846_v10 }
 0x43b   :  { %v7869_v48 = vrot.slane %v7861_v53, %v16307_v56 }
 0x44b   :  { %v7339_v21 = vpop.f32.mrb[202].mxu0 }
 0x44c   :  { %v7340_v35 = vadd.f32 %v7339_v21, %v16301_v39  ;;  %v7410_v33 = vpop.f32.mrb[202].mxu1  ;;  %v7341_v22 = vpop.f32.mrb[203].mxu0 }
 0x44d   :  { %v7411_v52 = vadd.f32 %v7410_v33, %v16301_v39  ;;  %v7342_v24 = vadd.f32 %v7341_v22, %v16301_v39  ;;  %v7412_v25 = vpop.f32.mrb[203].mxu1 }
 0x44e   :  { %v7413_v17 = vadd.f32 %v7412_v25, %v16301_v39 }
 0x44f   :  { %v7831_v8 = vcombine.low %v7340_v35, %v7342_v24 }
 0x450   :  { %v7832_v5 = vcombine.low %v7411_v52, %v7413_v17 }
 0x451   :  { %v7853_v19 = vrot.slane %v7831_v8, %v16307_v56 }
 0x452   :  { %v7860_v59 = vrot.slane %v7832_v5, %v16307_v56 }
 0x454   :  { %v7862_v26 = vcombine.low %v7853_v19, %v7860_v59 }
 0x456   :  { %v7876_v36 = vrot.slane %v7862_v26, %v16307_v56 }
 0x458   :  { %v7877_v28 = vcombine.low %v7869_v48, %v7876_v36 }
 0x45a   :  { %7933 = vst [vmem:[#allocation3 + $0x10] sm:$0xff] %v7877_v28 }
 0x48c   :  { %v7481_v47 = vpop.f32.mrb[204].mxu0 }
 0x48d   :  { %v7482_v30 = vadd.f32 %v7481_v47, %v16301_v39  ;;  %v7483_v61 = vpop.f32.mrb[205].mxu0 }
 0x48e   :  { %v7552_v58 = vpop.f32.mrb[204].mxu1  ;;  %v7484_v32 = vadd.f32 %v7483_v61, %v16301_v39 }
 0x48f   :  { %v7553_v57 = vadd.f32 %v7552_v58, %v16301_v39  ;;  %v7554_v31 = vpop.f32.mrb[205].mxu1 }
 0x490   :  { %v7555_v13 = vadd.f32 %v7554_v31, %v16301_v39  ;;  %v7878_v34 = vcombine.low %v7482_v30, %v7484_v32 }
 0x492   :  { %v7879_v49 = vcombine.low %v7553_v57, %v7555_v13  ;;  %v7888_v9 = vrot.slane %v7878_v34, %v16307_v56 }
 0x494   :  { %v7895_v41 = vrot.slane %v7879_v49, %v16307_v56 }
 0x496   :  { %v7910_v45 = vcombine.low %v7888_v9, %v7895_v41 }
 0x498   :  { %v7918_v7 = vrot.slane %v7910_v45, %v16307_v56 }
 0x4cd   :  { %v7623_v16 = vpop.f32.mrb[206].mxu0 }
 0x4ce   :  { %v7624_v62 = vadd.f32 %v7623_v16, %v16301_v39  ;;  %v7694_v55 = vpop.f32.mrb[206].mxu1  ;;  %v7625_v15 = vpop.f32.mrb[207].mxu0 }
 0x4cf   :  { %v7695_v46 = vadd.f32 %v7694_v55, %v16301_v39  ;;  %v7626_v38 = vadd.f32 %v7625_v15, %v16301_v39  ;;  %v7696_v4 = vpop.f32.mrb[207].mxu1 }
 0x4d0   :  { %v7697_v20 = vadd.f32 %v7696_v4, %v16301_v39 }
 0x4d1   :  { %v7880_v3 = vcombine.low %v7624_v62, %v7626_v38 }
 0x4d2   :  { %v7881_v51 = vcombine.low %v7695_v46, %v7697_v20 }
 0x4d3   :  { %v7902_v2 = vrot.slane %v7880_v3, %v16307_v56 }
 0x4d4   :  { %v7909_v18 = vrot.slane %v7881_v51, %v16307_v56 }
 0x4d6   :  { %v7911_v54 = vcombine.low %v7902_v2, %v7909_v18 }
 0x4d8   :  { %v7925_v12 = vrot.slane %v7911_v54, %v16307_v56 }
 0x4da   :  { %v7926_v27 = vcombine.low %v7918_v7, %v7925_v12 }
 0x4dc   :  { %7934 = vst [vmem:[#allocation3 + $0x18] sm:$0xff] %v7926_v27 }
 0x4dd   :  { %7939 = vsyncadd [#allocation4], 496  ;;  %s10650_s7 = smov [#allocation3]  }
 0x4de   :  { %s7941_s8 = sshll.u32 %s10650_s7, 4  ;;  %s7942_s8 = int_to_ptr.vmem [resolvable:$true] %s7941_s8 }
 0x4df   :  { %s10623_s16 = scalar_lea.vmem %s7942_s8, 16  ;;  %s10627_s17 = scalar_lea.vmem %s7942_s8, 512 }
 0x4e0   :  { %p10624_p0 = scmp.ne.s32.totalorder %s7942_s8, %s10623_s16  ;;  %p10628_p1 = scmp.lt.s32.totalorder %s7942_s8, %s7942_s8 }
 0x4e1   :  { %p10629_p2 = scmp.lt.s32.totalorder %s10627_s17, %s10623_s16 }
 0x4e3   :  { %p10630_p3 = por %p10629_p2, %p10628_p1 }
 0x4e5   :  { %p10631_p4 = pnand %p10630_p3, %p10624_p0 }
 0x4e7   :  { %10634 = shalt.err (!%p10631_p4)
}
 0x4e8   :  { %s10635_s20 = scalar_lea.hbm %s16390_s9, 16 }
 0x4e9   :  { %p10636_p5 = scmp.ne.s32.totalorder %s16390_s9, %s10635_s20  ;;  %p10639_p6 = scmp.lt.u32.totalorder %s10635_s20, %s16390_s9 }
 0x4eb   :  { %p10641_p7 = pnand %p10639_p6, %p10636_p5 }
 0x4ed   :  { %10644 = shalt.err (!%p10641_p7)
}
 0x4ee   :  { %7944 = dma.vmem_to_hbm [thread:$0]  %s7942_s8, 16, %s16390_s9, [#allocation4]  }
 0x4ef   :  { %10645 = dma.done.wait [#allocation4], 512  }
 0x4f0   :  { %10646 = vsyncadd [#allocation4], 4294966784 }
 0x4f1   :  { %7948 = vsyncpa [#allocation4], 1 }

</bundles_post_ra>
